<compile_context>
chip_gen: v5e
topology: v5e:2x2
jax: 0.10.0
libtpu: 0.0.40
codegen_flags: <defaults>
</compile_context>

<pallas_src>
import jax
import jax.numpy as jnp
from jax.experimental import pallas as pl
from jax.experimental.pallas import tpu as pltpu


def _elu(x):
    # exp(min(x, 0)) keeps the unselected branch finite (safer numerics).
    return jnp.where(x > 0, x, jnp.exp(jnp.minimum(x, 0.0)) - 1.0)


def make_kernel(F, N):
    """Fused IBRNet aggregator kernel for one (batch, voxel-tile) grid point."""

    def kernel(feats_ref, dir_ref, depth_ref, mask_ref,
               w1d, w1z, b1, w2, b2,
               w3m, w3v, w3f, b3, w4, b4,
               w5, b5, w6, b6,
               w7, b7, w8, b8,
               w9m, w9v, w9w, b9,
               out_ref):
        def mm(W, x):
            return jnp.dot(W[...], x, preferred_element_type=jnp.float32)

        def lin(W, b, x):
            return mm(W, x) + b[...]

        # --- ray_depth_encoder (per image) + residual into features ---------
        fe, msk = [], []
        for n in range(N):
            d3 = dir_ref[0, n]                      # (3, TV)
            dz = depth_ref[0, n]                    # (1, TV)
            # depth column of w1 handled as an outer-product add (K=1 term).
            h = _elu(mm(w1d, d3) + w1z[...] * dz + b1[...])       # (F//2, TV)
            fe.append(feats_ref[0, n] + _elu(lin(w2, b2, h)))     # (F, TV)
            msk.append(mask_ref[0, n])                            # (1, TV)

        # --- first weighted mean / variance over images ----------------------
        msum = msk[0]
        for n in range(1, N):
            msum = msum + msk[n]
        inv_msum = 1.0 / (msum + 1e-8)                            # (1, TV)
        wgt = [msk[n] * inv_msum for n in range(N)]

        mean = fe[0] * wgt[0]
        for n in range(1, N):
            mean = mean + fe[n] * wgt[n]                          # (F, TV)
        var = wgt[0] * (fe[0] - mean) ** 2
        for n in range(1, N):
            var = var + wgt[n] * (fe[n] - mean) ** 2              # (F, TV)

        # Global half of base_fc, shared across images; b3 folded in once.
        xg = mm(w3m, mean) + mm(w3v, var) + b3[...]               # (2F, TV)

        # --- per-image base_fc / vis_fc / vis_fc2 -----------------------------
        xs, vis = [], []
        for n in range(N):
            xn = _elu(xg + mm(w3f, fe[n]))                        # (2F, TV)
            xn = _elu(lin(w4, b4, xn))                            # (F, TV)
            h5 = _elu(lin(w5, b5, xn * wgt[n]))                   # (F, TV)
            xv = _elu(lin(w6, b6, h5))                            # (F+1, TV)
            v = jax.nn.sigmoid(xv[F:F + 1, :]) * msk[n]           # (1, TV)
            xn = xn + xv[0:F, :]                                  # (F, TV)
            h7 = _elu(lin(w7, b7, xn * v))                        # (F, TV)
            v = jax.nn.sigmoid(lin(w8, b8, h7)) * msk[n]          # (1, TV)
            xs.append(xn)
            vis.append(v)

        # --- second weighted mean / variance ----------------------------------
        vsum = vis[0]
        for n in range(1, N):
            vsum = vsum + vis[n]
        inv_vsum = 1.0 / (vsum + 1e-8)                            # (1, TV)
        wgt2 = [vis[n] * inv_vsum for n in range(N)]

        mean2 = xs[0] * wgt2[0]
        for n in range(1, N):
            mean2 = mean2 + xs[n] * wgt2[n]                       # (F, TV)
        var2 = wgt2[0] * (xs[0] - mean2) ** 2
        for n in range(1, N):
            var2 = var2 + wgt2[n] * (xs[n] - mean2) ** 2          # (F, TV)
        wmean = (vsum * inv_vsum) * (1.0 / N)                     # (1, TV)

        # --- statistics_out (w9 split: no (2F+1, TV) concat) ------------------
        out = mm(w9m, mean2) + mm(w9v, var2) + w9w[...] * wmean + b9[...]
        out_ref[0] = _elu(out)

    return kernel


def ibrnet_aggregator_pallas(features, mask, voxel_depth, voxel_dir, params,
                             *, tile_v=2048):
    B, N, F, D, H, W = features.shape
    V = D * H * W

    # Largest tile_v <= requested that is a multiple of 128 and divides V;
    # otherwise fall back to the whole voxel axis (block dim == full dim).
    tv = min(tile_v, V)
    tv -= tv % 128
    while tv >= 128 and V % tv != 0:
        tv -= 128
    tile_v = tv if tv >= 128 else V
    T = V // tile_v

    # Free, contiguous reshape (no HBM copy): (B, N, C, D, H, W) -> (B, N, C, V).
    def to_flat(x):
        return x.reshape(B, N, x.shape[2], V)

    feats_k = to_flat(features)
    dir_k = to_flat(voxel_dir)
    depth_k = to_flat(voxel_depth)
    mask_k = to_flat(mask)

    # Split weights in the wrapper so the kernel never slices weights or builds
    # concatenated global-feature slabs.
    w1, w3, w9 = params['w1'], params['w3'], params['w9']
    plist = [w1[:, :3], w1[:, 3:4], params['b1'], params['w2'], params['b2'],
             w3[:, :F], w3[:, F:2 * F], w3[:, 2 * F:], params['b3'],
             params['w4'], params['b4'],
             params['w5'], params['b5'],
             params['w6'], params['b6'],
             params['w7'], params['b7'], params['w8'], params['b8'],
             w9[:, :F], w9[:, F:2 * F], w9[:, 2 * F:], params['b9']]

    def data_spec(c):
        return pl.BlockSpec((1, N, c, tile_v), lambda b, t: (b, 0, 0, t))

    def param_spec(p):
        return pl.BlockSpec(p.shape, lambda b, t: (0, 0))

    # VMEM budget: double-buffered IO tiles + live (F, tile_v) activation slabs.
    # Clamp to 48 MiB so it stays safe on v7x (64 MiB physical per TC).
    est = 4 * tile_v * (2 * N * (F + 24) + 2 * F + 32 * F) + (6 << 20)
    vmem_limit = int(min(max(est, 24 << 20), 48 << 20))

    out = pl.pallas_call(
        make_kernel(F, N),
        out_shape=jax.ShapeDtypeStruct((B, F, V), jnp.float32),
        grid=(B, T),
        in_specs=[data_spec(F), data_spec(3), data_spec(1), data_spec(1)]
                 + [param_spec(p) for p in plist],
        out_specs=pl.BlockSpec((1, F, tile_v), lambda b, t: (b, 0, t)),
        compiler_params=pltpu.CompilerParams(
            dimension_semantics=("parallel", "parallel"),
            vmem_limit_bytes=vmem_limit),
    )(feats_k, dir_k, depth_k, mask_k, *plist)

    return out.reshape(B, F, D, H, W)


# ------------------------- pure-JAX reference ------------------------------
def ibrnet_aggregator_reference(features, mask, voxel_depth, voxel_dir, params, F):
    B, N = features.shape[:2]

    def conv(x, Wm, b):  # pointwise Conv3d on (X, C, D, H, W)
        return jnp.einsum('oc,xcdhw->xodhw', Wm, x) + b[None, :, 0, None, None, None]

    def collapse(x):
        return x.reshape((B * N,) + x.shape[2:])

    def expand(x):
        return x.reshape((B, N) + x.shape[1:])

    p = params
    rdd = collapse(jnp.concatenate([voxel_dir, voxel_depth], axis=2))
    rdd = _elu(conv(rdd, p['w1'], p['b1']))
    rdd = _elu(conv(rdd, p['w2'], p['b2']))
    feats = features + expand(rdd)

    weight = mask / (jnp.sum(mask, axis=1, keepdims=True) + 1e-8)
    mean = jnp.sum(feats * weight, axis=1, keepdims=True)
    var = jnp.sum(weight * (feats - mean) ** 2, axis=1, keepdims=True)
    gfeat = jnp.concatenate([mean, var], axis=2)
    x = jnp.concatenate(
        [jnp.broadcast_to(gfeat, (B, N) + gfeat.shape[2:]), feats], axis=2)

    x, w_c, m_c = collapse(x), collapse(weight), collapse(mask)
    x = _elu(conv(x, p['w3'], p['b3']))
    x = _elu(conv(x, p['w4'], p['b4']))
    xv = _elu(conv(x * w_c, p['w5'], p['b5']))
    xv = _elu(conv(xv, p['w6'], p['b6']))
    x_res, vis = xv[:, :F], xv[:, F:F + 1]
    vis = jax.nn.sigmoid(vis) * m_c
    x = x + x_res
    vis = jax.nn.sigmoid(
        conv(_elu(conv(x * vis, p['w7'], p['b7'])), p['w8'], p['b8'])) * m_c

    vis, x = expand(vis), expand(x)
    weight2 = vis / (jnp.sum(vis, axis=1, keepdims=True) + 1e-8)
    mean2 = jnp.sum(x * weight2, axis=1, keepdims=True)
    var2 = jnp.sum(weight2 * (x - mean2) ** 2, axis=1, keepdims=True)
    gf = jnp.concatenate(
        [mean2[:, 0], var2[:, 0], jnp.mean(weight2, axis=1)], axis=1)
    return _elu(conv(gf, p['w9'], p['b9']))


# ------------------------- parameter init ----------------------------------
def init_params(key, F):
    shapes = {
        'w1': (F // 2, 4), 'w2': (F, F // 2),
        'w3': (2 * F, 3 * F), 'w4': (F, 2 * F),
        'w5': (F, F), 'w6': (F + 1, F),
        'w7': (F, F), 'w8': (1, F),
        'w9': (F, 2 * F + 1),
    }
    params = {}
    for name, (oc, ic) in shapes.items():
        key, kw, kb = jax.random.split(key, 3)
        bound = 1.0 / float(ic) ** 0.5
        params[name] = jax.random.uniform(kw, (oc, ic), jnp.float32, -bound, bound)
        params['b' + name[1:]] = jax.random.uniform(
            kb, (oc, 1), jnp.float32, -bound, bound)
    return params


if __name__ == "__main__":
    B, N, F, G = 2, 3, 32, 8      # batch, num_images, feature_dim, grid_dim
    key = jax.random.PRNGKey(0)
    k1, k2, k3, k4, k5 = jax.random.split(key, 5)

    features = jax.random.normal(k1, (B, N, F, G, G, G), jnp.float32)
    voxel_dir = jax.random.normal(k2, (B, N, 3, G, G, G), jnp.float32)
    voxel_depth = jax.random.uniform(k3, (B, N, 1, G, G, G), jnp.float32)
    mask = jax.random.bernoulli(k4, 0.8, (B, N, 1, G, G, G)).astype(jnp.float32)
    params = init_params(k5, F)

    out = ibrnet_aggregator_pallas(features, mask, voxel_depth, voxel_dir, params)
    out = jax.block_until_ready(out)

    ref = ibrnet_aggregator_reference(features, mask, voxel_depth, voxel_dir, params, F)
    ref = jax.block_until_ready(ref)

    assert out.shape == (B, F, G, G, G), out.shape
    max_err = float(jnp.max(jnp.abs(out - ref)))
    assert max_err < 2e-3, f"mismatch vs reference: {max_err}"

    print("KERNEL_OK")
</pallas_src>

<mosaic_0001>
module attributes {stable_mosaic.version = 11 : i64} {
  func.func @kernel(%arg0: i32, %arg1: i32, %arg2: memref<1x3x32x512xf32, #tpu.memory_space<vmem>>, %arg3: memref<1x3x3x512xf32, #tpu.memory_space<vmem>>, %arg4: memref<1x3x1x512xf32, #tpu.memory_space<vmem>>, %arg5: memref<1x3x1x512xf32, #tpu.memory_space<vmem>>, %arg6: memref<16x3xf32, #tpu.memory_space<vmem>>, %arg7: memref<16x1xf32, #tpu.memory_space<vmem>>, %arg8: memref<16x1xf32, #tpu.memory_space<vmem>>, %arg9: memref<32x16xf32, #tpu.memory_space<vmem>>, %arg10: memref<32x1xf32, #tpu.memory_space<vmem>>, %arg11: memref<64x32xf32, #tpu.memory_space<vmem>>, %arg12: memref<64x32xf32, #tpu.memory_space<vmem>>, %arg13: memref<64x32xf32, #tpu.memory_space<vmem>>, %arg14: memref<64x1xf32, #tpu.memory_space<vmem>>, %arg15: memref<32x64xf32, #tpu.memory_space<vmem>>, %arg16: memref<32x1xf32, #tpu.memory_space<vmem>>, %arg17: memref<32x32xf32, #tpu.memory_space<vmem>>, %arg18: memref<32x1xf32, #tpu.memory_space<vmem>>, %arg19: memref<33x32xf32, #tpu.memory_space<vmem>>, %arg20: memref<33x1xf32, #tpu.memory_space<vmem>>, %arg21: memref<32x32xf32, #tpu.memory_space<vmem>>, %arg22: memref<32x1xf32, #tpu.memory_space<vmem>>, %arg23: memref<1x32xf32, #tpu.memory_space<vmem>>, %arg24: memref<1x1xf32, #tpu.memory_space<vmem>>, %arg25: memref<32x32xf32, #tpu.memory_space<vmem>>, %arg26: memref<32x32xf32, #tpu.memory_space<vmem>>, %arg27: memref<32x1xf32, #tpu.memory_space<vmem>>, %arg28: memref<32x1xf32, #tpu.memory_space<vmem>>, %arg29: memref<1x32x512xf32, #tpu.memory_space<vmem>>) attributes {dimension_semantics = [#tpu.dimension_semantics<parallel>, #tpu.dimension_semantics<parallel>], iteration_bounds = array<i64: 2, 1>, scalar_prefetch = 0 : i64, scratch_operands = 0 : i64, tpu.core_type = #tpu.core_type<tc>, window_params = [{transform_indices = @transform_0, window_bounds = array<i64: 1, 3, 32, 512>}, {transform_indices = @transform_1, window_bounds = array<i64: 1, 3, 3, 512>}, {transform_indices = @transform_2, window_bounds = array<i64: 1, 3, 1, 512>}, {transform_indices = @transform_3, window_bounds = array<i64: 1, 3, 1, 512>}, {pipeline_mode = #tpu.pipeline_mode<synchronous>, transform_indices = @transform_4, window_bounds = array<i64: 16, 3>}, {pipeline_mode = #tpu.pipeline_mode<synchronous>, transform_indices = @transform_5, window_bounds = array<i64: 16, 1>}, {pipeline_mode = #tpu.pipeline_mode<synchronous>, transform_indices = @transform_6, window_bounds = array<i64: 16, 1>}, {pipeline_mode = #tpu.pipeline_mode<synchronous>, transform_indices = @transform_7, window_bounds = array<i64: 32, 16>}, {pipeline_mode = #tpu.pipeline_mode<synchronous>, transform_indices = @transform_8, window_bounds = array<i64: 32, 1>}, {pipeline_mode = #tpu.pipeline_mode<synchronous>, transform_indices = @transform_9, window_bounds = array<i64: 64, 32>}, {pipeline_mode = #tpu.pipeline_mode<synchronous>, transform_indices = @transform_10, window_bounds = array<i64: 64, 32>}, {pipeline_mode = #tpu.pipeline_mode<synchronous>, transform_indices = @transform_11, window_bounds = array<i64: 64, 32>}, {pipeline_mode = #tpu.pipeline_mode<synchronous>, transform_indices = @transform_12, window_bounds = array<i64: 64, 1>}, {pipeline_mode = #tpu.pipeline_mode<synchronous>, transform_indices = @transform_13, window_bounds = array<i64: 32, 64>}, {pipeline_mode = #tpu.pipeline_mode<synchronous>, transform_indices = @transform_14, window_bounds = array<i64: 32, 1>}, {pipeline_mode = #tpu.pipeline_mode<synchronous>, transform_indices = @transform_15, window_bounds = array<i64: 32, 32>}, {pipeline_mode = #tpu.pipeline_mode<synchronous>, transform_indices = @transform_16, window_bounds = array<i64: 32, 1>}, {pipeline_mode = #tpu.pipeline_mode<synchronous>, transform_indices = @transform_17, window_bounds = array<i64: 33, 32>}, {pipeline_mode = #tpu.pipeline_mode<synchronous>, transform_indices = @transform_18, window_bounds = array<i64: 33, 1>}, {pipeline_mode = #tpu.pipeline_mode<synchronous>, transform_indices = @transform_19, window_bounds = array<i64: 32, 32>}, {pipeline_mode = #tpu.pipeline_mode<synchronous>, transform_indices = @transform_20, window_bounds = array<i64: 32, 1>}, {pipeline_mode = #tpu.pipeline_mode<synchronous>, transform_indices = @transform_21, window_bounds = array<i64: 1, 32>}, {pipeline_mode = #tpu.pipeline_mode<synchronous>, transform_indices = @transform_22, window_bounds = array<i64: 1, 1>}, {pipeline_mode = #tpu.pipeline_mode<synchronous>, transform_indices = @transform_23, window_bounds = array<i64: 32, 32>}, {pipeline_mode = #tpu.pipeline_mode<synchronous>, transform_indices = @transform_24, window_bounds = array<i64: 32, 32>}, {pipeline_mode = #tpu.pipeline_mode<synchronous>, transform_indices = @transform_25, window_bounds = array<i64: 32, 1>}, {pipeline_mode = #tpu.pipeline_mode<synchronous>, transform_indices = @transform_26, window_bounds = array<i64: 32, 1>}, {transform_indices = @transform_27, window_bounds = array<i64: 1, 32, 512>}]} {
    %c0 = arith.constant 0 : index
    %c0_0 = arith.constant 0 : index
    %c0_1 = arith.constant 0 : index
    %c0_2 = arith.constant 0 : index
    %0 = vector.load %arg3[%c0, %c0_0, %c0_1, %c0_2] : memref<1x3x3x512xf32, #tpu.memory_space<vmem>>, vector<1x1x3x512xf32>
    %1 = vector.shape_cast %0 : vector<1x1x3x512xf32> to vector<3x512xf32>
    %c0_3 = arith.constant 0 : index
    %c0_4 = arith.constant 0 : index
    %c0_5 = arith.constant 0 : index
    %c0_6 = arith.constant 0 : index
    %2 = vector.load %arg4[%c0_3, %c0_4, %c0_5, %c0_6] : memref<1x3x1x512xf32, #tpu.memory_space<vmem>>, vector<1x1x1x512xf32>
    %3 = vector.shape_cast %2 : vector<1x1x1x512xf32> to vector<1x512xf32>
    %c0_7 = arith.constant 0 : index
    %c0_8 = arith.constant 0 : index
    %4 = vector.load %arg6[%c0_7, %c0_8] : memref<16x3xf32, #tpu.memory_space<vmem>>, vector<16x3xf32>
    %cst = arith.constant dense<0.000000e+00> : vector<16x512xf32>
    %5 = tpu.matmul %4, %1, %cst {dimension_numbers = #tpu.dot_dimension_numbers<[1], [0], [0], [1], [0, 0, 1, 1], [], []>} : vector<16x3xf32>, vector<3x512xf32>, vector<16x512xf32> -> vector<16x512xf32>
    %c0_9 = arith.constant 0 : index
    %c0_10 = arith.constant 0 : index
    %6 = vector.load %arg7[%c0_9, %c0_10] : memref<16x1xf32, #tpu.memory_space<vmem>>, vector<16x1xf32>
    %7 = vector.broadcast %6 : vector<16x1xf32> to vector<16x512xf32>
    %8 = vector.broadcast %3 : vector<1x512xf32> to vector<16x512xf32>
    %9 = arith.mulf %7, %8 : vector<16x512xf32>
    %10 = arith.addf %5, %9 : vector<16x512xf32>
    %c0_11 = arith.constant 0 : index
    %c0_12 = arith.constant 0 : index
    %11 = vector.load %arg8[%c0_11, %c0_12] : memref<16x1xf32, #tpu.memory_space<vmem>>, vector<16x1xf32>
    %12 = vector.broadcast %11 : vector<16x1xf32> to vector<16x512xf32>
    %13 = arith.addf %10, %12 : vector<16x512xf32>
    %cst_13 = arith.constant 0.000000e+00 : f32
    %14 = vector.broadcast %cst_13 : f32 to vector<16x512xf32>
    %15 = arith.cmpf ogt, %13, %14 : vector<16x512xf32>
    %cst_14 = arith.constant 0.000000e+00 : f32
    %16 = vector.broadcast %cst_14 : f32 to vector<16x512xf32>
    %17 = arith.minimumf %13, %16 : vector<16x512xf32>
    %18 = math.exp %17 : vector<16x512xf32>
    %cst_15 = arith.constant 1.000000e+00 : f32
    %19 = vector.broadcast %cst_15 : f32 to vector<16x512xf32>
    %20 = arith.subf %18, %19 : vector<16x512xf32>
    %21 = arith.select %15, %13, %20 : vector<16x512xi1>, vector<16x512xf32>
    %c0_16 = arith.constant 0 : index
    %c0_17 = arith.constant 0 : index
    %c0_18 = arith.constant 0 : index
    %c0_19 = arith.constant 0 : index
    %22 = vector.load %arg2[%c0_16, %c0_17, %c0_18, %c0_19] : memref<1x3x32x512xf32, #tpu.memory_space<vmem>>, vector<1x1x32x512xf32>
    %23 = vector.shape_cast %22 : vector<1x1x32x512xf32> to vector<32x512xf32>
    %c0_20 = arith.constant 0 : index
    %c0_21 = arith.constant 0 : index
    %24 = vector.load %arg9[%c0_20, %c0_21] : memref<32x16xf32, #tpu.memory_space<vmem>>, vector<32x16xf32>
    %cst_22 = arith.constant dense<0.000000e+00> : vector<32x512xf32>
    %25 = tpu.matmul %24, %21, %cst_22 {dimension_numbers = #tpu.dot_dimension_numbers<[1], [0], [0], [1], [0, 0, 1, 1], [], []>} : vector<32x16xf32>, vector<16x512xf32>, vector<32x512xf32> -> vector<32x512xf32>
    %c0_23 = arith.constant 0 : index
    %c0_24 = arith.constant 0 : index
    %26 = vector.load %arg10[%c0_23, %c0_24] : memref<32x1xf32, #tpu.memory_space<vmem>>, vector<32x1xf32>
    %27 = vector.broadcast %26 : vector<32x1xf32> to vector<32x512xf32>
    %28 = arith.addf %25, %27 : vector<32x512xf32>
    %cst_25 = arith.constant 0.000000e+00 : f32
    %29 = vector.broadcast %cst_25 : f32 to vector<32x512xf32>
    %30 = arith.cmpf ogt, %28, %29 : vector<32x512xf32>
    %cst_26 = arith.constant 0.000000e+00 : f32
    %31 = vector.broadcast %cst_26 : f32 to vector<32x512xf32>
    %32 = arith.minimumf %28, %31 : vector<32x512xf32>
    %33 = math.exp %32 : vector<32x512xf32>
    %cst_27 = arith.constant 1.000000e+00 : f32
    %34 = vector.broadcast %cst_27 : f32 to vector<32x512xf32>
    %35 = arith.subf %33, %34 : vector<32x512xf32>
    %36 = arith.select %30, %28, %35 : vector<32x512xi1>, vector<32x512xf32>
    %37 = arith.addf %23, %36 : vector<32x512xf32>
    %c0_28 = arith.constant 0 : index
    %c0_29 = arith.constant 0 : index
    %c0_30 = arith.constant 0 : index
    %c0_31 = arith.constant 0 : index
    %38 = vector.load %arg5[%c0_28, %c0_29, %c0_30, %c0_31] : memref<1x3x1x512xf32, #tpu.memory_space<vmem>>, vector<1x1x1x512xf32>
    %39 = vector.shape_cast %38 : vector<1x1x1x512xf32> to vector<1x512xf32>
    %c0_32 = arith.constant 0 : index
    %c1 = arith.constant 1 : index
    %c0_33 = arith.constant 0 : index
    %c0_34 = arith.constant 0 : index
    %40 = vector.load %arg3[%c0_32, %c1, %c0_33, %c0_34] : memref<1x3x3x512xf32, #tpu.memory_space<vmem>>, vector<1x1x3x512xf32>
    %41 = vector.shape_cast %40 : vector<1x1x3x512xf32> to vector<3x512xf32>
    %c0_35 = arith.constant 0 : index
    %c1_36 = arith.constant 1 : index
    %c0_37 = arith.constant 0 : index
    %c0_38 = arith.constant 0 : index
    %42 = vector.load %arg4[%c0_35, %c1_36, %c0_37, %c0_38] : memref<1x3x1x512xf32, #tpu.memory_space<vmem>>, vector<1x1x1x512xf32>
    %43 = vector.shape_cast %42 : vector<1x1x1x512xf32> to vector<1x512xf32>
    %c0_39 = arith.constant 0 : index
    %c0_40 = arith.constant 0 : index
    %44 = vector.load %arg6[%c0_39, %c0_40] : memref<16x3xf32, #tpu.memory_space<vmem>>, vector<16x3xf32>
    %cst_41 = arith.constant dense<0.000000e+00> : vector<16x512xf32>
    %45 = tpu.matmul %44, %41, %cst_41 {dimension_numbers = #tpu.dot_dimension_numbers<[1], [0], [0], [1], [0, 0, 1, 1], [], []>} : vector<16x3xf32>, vector<3x512xf32>, vector<16x512xf32> -> vector<16x512xf32>
    %c0_42 = arith.constant 0 : index
    %c0_43 = arith.constant 0 : index
    %46 = vector.load %arg7[%c0_42, %c0_43] : memref<16x1xf32, #tpu.memory_space<vmem>>, vector<16x1xf32>
    %47 = vector.broadcast %46 : vector<16x1xf32> to vector<16x512xf32>
    %48 = vector.broadcast %43 : vector<1x512xf32> to vector<16x512xf32>
    %49 = arith.mulf %47, %48 : vector<16x512xf32>
    %50 = arith.addf %45, %49 : vector<16x512xf32>
    %c0_44 = arith.constant 0 : index
    %c0_45 = arith.constant 0 : index
    %51 = vector.load %arg8[%c0_44, %c0_45] : memref<16x1xf32, #tpu.memory_space<vmem>>, vector<16x1xf32>
    %52 = vector.broadcast %51 : vector<16x1xf32> to vector<16x512xf32>
    %53 = arith.addf %50, %52 : vector<16x512xf32>
    %cst_46 = arith.constant 0.000000e+00 : f32
    %54 = vector.broadcast %cst_46 : f32 to vector<16x512xf32>
    %55 = arith.cmpf ogt, %53, %54 : vector<16x512xf32>
    %cst_47 = arith.constant 0.000000e+00 : f32
    %56 = vector.broadcast %cst_47 : f32 to vector<16x512xf32>
    %57 = arith.minimumf %53, %56 : vector<16x512xf32>
    %58 = math.exp %57 : vector<16x512xf32>
    %cst_48 = arith.constant 1.000000e+00 : f32
    %59 = vector.broadcast %cst_48 : f32 to vector<16x512xf32>
    %60 = arith.subf %58, %59 : vector<16x512xf32>
    %61 = arith.select %55, %53, %60 : vector<16x512xi1>, vector<16x512xf32>
    %c0_49 = arith.constant 0 : index
    %c1_50 = arith.constant 1 : index
    %c0_51 = arith.constant 0 : index
    %c0_52 = arith.constant 0 : index
    %62 = vector.load %arg2[%c0_49, %c1_50, %c0_51, %c0_52] : memref<1x3x32x512xf32, #tpu.memory_space<vmem>>, vector<1x1x32x512xf32>
    %63 = vector.shape_cast %62 : vector<1x1x32x512xf32> to vector<32x512xf32>
    %c0_53 = arith.constant 0 : index
    %c0_54 = arith.constant 0 : index
    %64 = vector.load %arg9[%c0_53, %c0_54] : memref<32x16xf32, #tpu.memory_space<vmem>>, vector<32x16xf32>
    %cst_55 = arith.constant dense<0.000000e+00> : vector<32x512xf32>
    %65 = tpu.matmul %64, %61, %cst_55 {dimension_numbers = #tpu.dot_dimension_numbers<[1], [0], [0], [1], [0, 0, 1, 1], [], []>} : vector<32x16xf32>, vector<16x512xf32>, vector<32x512xf32> -> vector<32x512xf32>
    %c0_56 = arith.constant 0 : index
    %c0_57 = arith.constant 0 : index
    %66 = vector.load %arg10[%c0_56, %c0_57] : memref<32x1xf32, #tpu.memory_space<vmem>>, vector<32x1xf32>
    %67 = vector.broadcast %66 : vector<32x1xf32> to vector<32x512xf32>
    %68 = arith.addf %65, %67 : vector<32x512xf32>
    %cst_58 = arith.constant 0.000000e+00 : f32
    %69 = vector.broadcast %cst_58 : f32 to vector<32x512xf32>
    %70 = arith.cmpf ogt, %68, %69 : vector<32x512xf32>
    %cst_59 = arith.constant 0.000000e+00 : f32
    %71 = vector.broadcast %cst_59 : f32 to vector<32x512xf32>
    %72 = arith.minimumf %68, %71 : vector<32x512xf32>
    %73 = math.exp %72 : vector<32x512xf32>
    %cst_60 = arith.constant 1.000000e+00 : f32
    %74 = vector.broadcast %cst_60 : f32 to vector<32x512xf32>
    %75 = arith.subf %73, %74 : vector<32x512xf32>
    %76 = arith.select %70, %68, %75 : vector<32x512xi1>, vector<32x512xf32>
    %77 = arith.addf %63, %76 : vector<32x512xf32>
    %c0_61 = arith.constant 0 : index
    %c1_62 = arith.constant 1 : index
    %c0_63 = arith.constant 0 : index
    %c0_64 = arith.constant 0 : index
    %78 = vector.load %arg5[%c0_61, %c1_62, %c0_63, %c0_64] : memref<1x3x1x512xf32, #tpu.memory_space<vmem>>, vector<1x1x1x512xf32>
    %79 = vector.shape_cast %78 : vector<1x1x1x512xf32> to vector<1x512xf32>
    %c0_65 = arith.constant 0 : index
    %c2 = arith.constant 2 : index
    %c0_66 = arith.constant 0 : index
    %c0_67 = arith.constant 0 : index
    %80 = vector.load %arg3[%c0_65, %c2, %c0_66, %c0_67] : memref<1x3x3x512xf32, #tpu.memory_space<vmem>>, vector<1x1x3x512xf32>
    %81 = vector.shape_cast %80 : vector<1x1x3x512xf32> to vector<3x512xf32>
    %c0_68 = arith.constant 0 : index
    %c2_69 = arith.constant 2 : index
    %c0_70 = arith.constant 0 : index
    %c0_71 = arith.constant 0 : index
    %82 = vector.load %arg4[%c0_68, %c2_69, %c0_70, %c0_71] : memref<1x3x1x512xf32, #tpu.memory_space<vmem>>, vector<1x1x1x512xf32>
    %83 = vector.shape_cast %82 : vector<1x1x1x512xf32> to vector<1x512xf32>
    %c0_72 = arith.constant 0 : index
    %c0_73 = arith.constant 0 : index
    %84 = vector.load %arg6[%c0_72, %c0_73] : memref<16x3xf32, #tpu.memory_space<vmem>>, vector<16x3xf32>
    %cst_74 = arith.constant dense<0.000000e+00> : vector<16x512xf32>
    %85 = tpu.matmul %84, %81, %cst_74 {dimension_numbers = #tpu.dot_dimension_numbers<[1], [0], [0], [1], [0, 0, 1, 1], [], []>} : vector<16x3xf32>, vector<3x512xf32>, vector<16x512xf32> -> vector<16x512xf32>
    %c0_75 = arith.constant 0 : index
    %c0_76 = arith.constant 0 : index
    %86 = vector.load %arg7[%c0_75, %c0_76] : memref<16x1xf32, #tpu.memory_space<vmem>>, vector<16x1xf32>
    %87 = vector.broadcast %86 : vector<16x1xf32> to vector<16x512xf32>
    %88 = vector.broadcast %83 : vector<1x512xf32> to vector<16x512xf32>
    %89 = arith.mulf %87, %88 : vector<16x512xf32>
    %90 = arith.addf %85, %89 : vector<16x512xf32>
    %c0_77 = arith.constant 0 : index
    %c0_78 = arith.constant 0 : index
    %91 = vector.load %arg8[%c0_77, %c0_78] : memref<16x1xf32, #tpu.memory_space<vmem>>, vector<16x1xf32>
    %92 = vector.broadcast %91 : vector<16x1xf32> to vector<16x512xf32>
    %93 = arith.addf %90, %92 : vector<16x512xf32>
    %cst_79 = arith.constant 0.000000e+00 : f32
    %94 = vector.broadcast %cst_79 : f32 to vector<16x512xf32>
    %95 = arith.cmpf ogt, %93, %94 : vector<16x512xf32>
    %cst_80 = arith.constant 0.000000e+00 : f32
    %96 = vector.broadcast %cst_80 : f32 to vector<16x512xf32>
    %97 = arith.minimumf %93, %96 : vector<16x512xf32>
    %98 = math.exp %97 : vector<16x512xf32>
    %cst_81 = arith.constant 1.000000e+00 : f32
    %99 = vector.broadcast %cst_81 : f32 to vector<16x512xf32>
    %100 = arith.subf %98, %99 : vector<16x512xf32>
    %101 = arith.select %95, %93, %100 : vector<16x512xi1>, vector<16x512xf32>
    %c0_82 = arith.constant 0 : index
    %c2_83 = arith.constant 2 : index
    %c0_84 = arith.constant 0 : index
    %c0_85 = arith.constant 0 : index
    %102 = vector.load %arg2[%c0_82, %c2_83, %c0_84, %c0_85] : memref<1x3x32x512xf32, #tpu.memory_space<vmem>>, vector<1x1x32x512xf32>
    %103 = vector.shape_cast %102 : vector<1x1x32x512xf32> to vector<32x512xf32>
    %c0_86 = arith.constant 0 : index
    %c0_87 = arith.constant 0 : index
    %104 = vector.load %arg9[%c0_86, %c0_87] : memref<32x16xf32, #tpu.memory_space<vmem>>, vector<32x16xf32>
    %cst_88 = arith.constant dense<0.000000e+00> : vector<32x512xf32>
    %105 = tpu.matmul %104, %101, %cst_88 {dimension_numbers = #tpu.dot_dimension_numbers<[1], [0], [0], [1], [0, 0, 1, 1], [], []>} : vector<32x16xf32>, vector<16x512xf32>, vector<32x512xf32> -> vector<32x512xf32>
    %c0_89 = arith.constant 0 : index
    %c0_90 = arith.constant 0 : index
    %106 = vector.load %arg10[%c0_89, %c0_90] : memref<32x1xf32, #tpu.memory_space<vmem>>, vector<32x1xf32>
    %107 = vector.broadcast %106 : vector<32x1xf32> to vector<32x512xf32>
    %108 = arith.addf %105, %107 : vector<32x512xf32>
    %cst_91 = arith.constant 0.000000e+00 : f32
    %109 = vector.broadcast %cst_91 : f32 to vector<32x512xf32>
    %110 = arith.cmpf ogt, %108, %109 : vector<32x512xf32>
    %cst_92 = arith.constant 0.000000e+00 : f32
    %111 = vector.broadcast %cst_92 : f32 to vector<32x512xf32>
    %112 = arith.minimumf %108, %111 : vector<32x512xf32>
    %113 = math.exp %112 : vector<32x512xf32>
    %cst_93 = arith.constant 1.000000e+00 : f32
    %114 = vector.broadcast %cst_93 : f32 to vector<32x512xf32>
    %115 = arith.subf %113, %114 : vector<32x512xf32>
    %116 = arith.select %110, %108, %115 : vector<32x512xi1>, vector<32x512xf32>
    %117 = arith.addf %103, %116 : vector<32x512xf32>
    %c0_94 = arith.constant 0 : index
    %c2_95 = arith.constant 2 : index
    %c0_96 = arith.constant 0 : index
    %c0_97 = arith.constant 0 : index
    %118 = vector.load %arg5[%c0_94, %c2_95, %c0_96, %c0_97] : memref<1x3x1x512xf32, #tpu.memory_space<vmem>>, vector<1x1x1x512xf32>
    %119 = vector.shape_cast %118 : vector<1x1x1x512xf32> to vector<1x512xf32>
    %120 = arith.addf %39, %79 : vector<1x512xf32>
    %121 = arith.addf %120, %119 : vector<1x512xf32>
    %cst_98 = arith.constant 9.99999993E-9 : f32
    %122 = vector.broadcast %cst_98 : f32 to vector<1x512xf32>
    %123 = arith.addf %121, %122 : vector<1x512xf32>
    %cst_99 = arith.constant 1.000000e+00 : f32
    %124 = vector.broadcast %cst_99 : f32 to vector<1x512xf32>
    %125 = arith.divf %124, %123 : vector<1x512xf32>
    %126 = arith.mulf %39, %125 : vector<1x512xf32>
    %127 = arith.mulf %79, %125 : vector<1x512xf32>
    %128 = arith.mulf %119, %125 : vector<1x512xf32>
    %129 = vector.broadcast %126 : vector<1x512xf32> to vector<32x512xf32>
    %130 = arith.mulf %37, %129 : vector<32x512xf32>
    %131 = vector.broadcast %127 : vector<1x512xf32> to vector<32x512xf32>
    %132 = arith.mulf %77, %131 : vector<32x512xf32>
    %133 = arith.addf %130, %132 : vector<32x512xf32>
    %134 = vector.broadcast %128 : vector<1x512xf32> to vector<32x512xf32>
    %135 = arith.mulf %117, %134 : vector<32x512xf32>
    %136 = arith.addf %133, %135 : vector<32x512xf32>
    %137 = arith.subf %37, %136 : vector<32x512xf32>
    %138 = arith.mulf %137, %137 : vector<32x512xf32>
    %139 = vector.broadcast %126 : vector<1x512xf32> to vector<32x512xf32>
    %140 = arith.mulf %139, %138 : vector<32x512xf32>
    %141 = arith.subf %77, %136 : vector<32x512xf32>
    %142 = arith.mulf %141, %141 : vector<32x512xf32>
    %143 = vector.broadcast %127 : vector<1x512xf32> to vector<32x512xf32>
    %144 = arith.mulf %143, %142 : vector<32x512xf32>
    %145 = arith.addf %140, %144 : vector<32x512xf32>
    %146 = arith.subf %117, %136 : vector<32x512xf32>
    %147 = arith.mulf %146, %146 : vector<32x512xf32>
    %148 = vector.broadcast %128 : vector<1x512xf32> to vector<32x512xf32>
    %149 = arith.mulf %148, %147 : vector<32x512xf32>
    %150 = arith.addf %145, %149 : vector<32x512xf32>
    %c0_100 = arith.constant 0 : index
    %c0_101 = arith.constant 0 : index
    %151 = vector.load %arg11[%c0_100, %c0_101] : memref<64x32xf32, #tpu.memory_space<vmem>>, vector<64x32xf32>
    %cst_102 = arith.constant dense<0.000000e+00> : vector<64x512xf32>
    %152 = tpu.matmul %151, %136, %cst_102 {dimension_numbers = #tpu.dot_dimension_numbers<[1], [0], [0], [1], [0, 0, 1, 1], [], []>} : vector<64x32xf32>, vector<32x512xf32>, vector<64x512xf32> -> vector<64x512xf32>
    %c0_103 = arith.constant 0 : index
    %c0_104 = arith.constant 0 : index
    %153 = vector.load %arg12[%c0_103, %c0_104] : memref<64x32xf32, #tpu.memory_space<vmem>>, vector<64x32xf32>
    %cst_105 = arith.constant dense<0.000000e+00> : vector<64x512xf32>
    %154 = tpu.matmul %153, %150, %cst_105 {dimension_numbers = #tpu.dot_dimension_numbers<[1], [0], [0], [1], [0, 0, 1, 1], [], []>} : vector<64x32xf32>, vector<32x512xf32>, vector<64x512xf32> -> vector<64x512xf32>
    %155 = arith.addf %152, %154 : vector<64x512xf32>
    %c0_106 = arith.constant 0 : index
    %c0_107 = arith.constant 0 : index
    %156 = vector.load %arg14[%c0_106, %c0_107] : memref<64x1xf32, #tpu.memory_space<vmem>>, vector<64x1xf32>
    %157 = vector.broadcast %156 : vector<64x1xf32> to vector<64x512xf32>
    %158 = arith.addf %155, %157 : vector<64x512xf32>
    %c0_108 = arith.constant 0 : index
    %c0_109 = arith.constant 0 : index
    %159 = vector.load %arg13[%c0_108, %c0_109] : memref<64x32xf32, #tpu.memory_space<vmem>>, vector<64x32xf32>
    %cst_110 = arith.constant dense<0.000000e+00> : vector<64x512xf32>
    %160 = tpu.matmul %159, %37, %cst_110 {dimension_numbers = #tpu.dot_dimension_numbers<[1], [0], [0], [1], [0, 0, 1, 1], [], []>} : vector<64x32xf32>, vector<32x512xf32>, vector<64x512xf32> -> vector<64x512xf32>
    %161 = arith.addf %158, %160 : vector<64x512xf32>
    %cst_111 = arith.constant 0.000000e+00 : f32
    %162 = vector.broadcast %cst_111 : f32 to vector<64x512xf32>
    %163 = arith.cmpf ogt, %161, %162 : vector<64x512xf32>
    %cst_112 = arith.constant 0.000000e+00 : f32
    %164 = vector.broadcast %cst_112 : f32 to vector<64x512xf32>
    %165 = arith.minimumf %161, %164 : vector<64x512xf32>
    %166 = math.exp %165 : vector<64x512xf32>
    %cst_113 = arith.constant 1.000000e+00 : f32
    %167 = vector.broadcast %cst_113 : f32 to vector<64x512xf32>
    %168 = arith.subf %166, %167 : vector<64x512xf32>
    %169 = arith.select %163, %161, %168 : vector<64x512xi1>, vector<64x512xf32>
    %c0_114 = arith.constant 0 : index
    %c0_115 = arith.constant 0 : index
    %170 = vector.load %arg15[%c0_114, %c0_115] : memref<32x64xf32, #tpu.memory_space<vmem>>, vector<32x64xf32>
    %cst_116 = arith.constant dense<0.000000e+00> : vector<32x512xf32>
    %171 = tpu.matmul %170, %169, %cst_116 {dimension_numbers = #tpu.dot_dimension_numbers<[1], [0], [0], [1], [0, 0, 1, 1], [], []>} : vector<32x64xf32>, vector<64x512xf32>, vector<32x512xf32> -> vector<32x512xf32>
    %c0_117 = arith.constant 0 : index
    %c0_118 = arith.constant 0 : index
    %172 = vector.load %arg16[%c0_117, %c0_118] : memref<32x1xf32, #tpu.memory_space<vmem>>, vector<32x1xf32>
    %173 = vector.broadcast %172 : vector<32x1xf32> to vector<32x512xf32>
    %174 = arith.addf %171, %173 : vector<32x512xf32>
    %cst_119 = arith.constant 0.000000e+00 : f32
    %175 = vector.broadcast %cst_119 : f32 to vector<32x512xf32>
    %176 = arith.cmpf ogt, %174, %175 : vector<32x512xf32>
    %cst_120 = arith.constant 0.000000e+00 : f32
    %177 = vector.broadcast %cst_120 : f32 to vector<32x512xf32>
    %178 = arith.minimumf %174, %177 : vector<32x512xf32>
    %179 = math.exp %178 : vector<32x512xf32>
    %cst_121 = arith.constant 1.000000e+00 : f32
    %180 = vector.broadcast %cst_121 : f32 to vector<32x512xf32>
    %181 = arith.subf %179, %180 : vector<32x512xf32>
    %182 = arith.select %176, %174, %181 : vector<32x512xi1>, vector<32x512xf32>
    %183 = vector.broadcast %126 : vector<1x512xf32> to vector<32x512xf32>
    %184 = arith.mulf %182, %183 : vector<32x512xf32>
    %c0_122 = arith.constant 0 : index
    %c0_123 = arith.constant 0 : index
    %185 = vector.load %arg17[%c0_122, %c0_123] : memref<32x32xf32, #tpu.memory_space<vmem>>, vector<32x32xf32>
    %cst_124 = arith.constant dense<0.000000e+00> : vector<32x512xf32>
    %186 = tpu.matmul %185, %184, %cst_124 {dimension_numbers = #tpu.dot_dimension_numbers<[1], [0], [0], [1], [0, 0, 1, 1], [], []>} : vector<32x32xf32>, vector<32x512xf32>, vector<32x512xf32> -> vector<32x512xf32>
    %c0_125 = arith.constant 0 : index
    %c0_126 = arith.constant 0 : index
    %187 = vector.load %arg18[%c0_125, %c0_126] : memref<32x1xf32, #tpu.memory_space<vmem>>, vector<32x1xf32>
    %188 = vector.broadcast %187 : vector<32x1xf32> to vector<32x512xf32>
    %189 = arith.addf %186, %188 : vector<32x512xf32>
    %cst_127 = arith.constant 0.000000e+00 : f32
    %190 = vector.broadcast %cst_127 : f32 to vector<32x512xf32>
    %191 = arith.cmpf ogt, %189, %190 : vector<32x512xf32>
    %cst_128 = arith.constant 0.000000e+00 : f32
    %192 = vector.broadcast %cst_128 : f32 to vector<32x512xf32>
    %193 = arith.minimumf %189, %192 : vector<32x512xf32>
    %194 = math.exp %193 : vector<32x512xf32>
    %cst_129 = arith.constant 1.000000e+00 : f32
    %195 = vector.broadcast %cst_129 : f32 to vector<32x512xf32>
    %196 = arith.subf %194, %195 : vector<32x512xf32>
    %197 = arith.select %191, %189, %196 : vector<32x512xi1>, vector<32x512xf32>
    %c0_130 = arith.constant 0 : index
    %c0_131 = arith.constant 0 : index
    %198 = vector.load %arg19[%c0_130, %c0_131] : memref<33x32xf32, #tpu.memory_space<vmem>>, vector<33x32xf32>
    %cst_132 = arith.constant dense<0.000000e+00> : vector<33x512xf32>
    %199 = tpu.matmul %198, %197, %cst_132 {dimension_numbers = #tpu.dot_dimension_numbers<[1], [0], [0], [1], [0, 0, 1, 1], [], []>} : vector<33x32xf32>, vector<32x512xf32>, vector<33x512xf32> -> vector<33x512xf32>
    %c0_133 = arith.constant 0 : index
    %c0_134 = arith.constant 0 : index
    %200 = vector.load %arg20[%c0_133, %c0_134] : memref<33x1xf32, #tpu.memory_space<vmem>>, vector<33x1xf32>
    %201 = vector.broadcast %200 : vector<33x1xf32> to vector<33x512xf32>
    %202 = arith.addf %199, %201 : vector<33x512xf32>
    %cst_135 = arith.constant 0.000000e+00 : f32
    %203 = vector.broadcast %cst_135 : f32 to vector<33x512xf32>
    %204 = arith.cmpf ogt, %202, %203 : vector<33x512xf32>
    %cst_136 = arith.constant 0.000000e+00 : f32
    %205 = vector.broadcast %cst_136 : f32 to vector<33x512xf32>
    %206 = arith.minimumf %202, %205 : vector<33x512xf32>
    %207 = math.exp %206 : vector<33x512xf32>
    %cst_137 = arith.constant 1.000000e+00 : f32
    %208 = vector.broadcast %cst_137 : f32 to vector<33x512xf32>
    %209 = arith.subf %207, %208 : vector<33x512xf32>
    %210 = arith.select %204, %202, %209 : vector<33x512xi1>, vector<33x512xf32>
    %211 = vector.extract_strided_slice %210 {offsets = [32, 0], sizes = [1, 512], strides = [1, 1]} : vector<33x512xf32> to vector<1x512xf32>
    %212 = arith.negf %211 : vector<1x512xf32>
    %213 = math.exp %212 : vector<1x512xf32>
    %cst_138 = arith.constant 1.000000e+00 : f32
    %214 = vector.broadcast %cst_138 : f32 to vector<1x512xf32>
    %215 = arith.addf %214, %213 : vector<1x512xf32>
    %216 = arith.divf %214, %215 : vector<1x512xf32>
    %217 = arith.mulf %216, %39 : vector<1x512xf32>
    %218 = vector.extract_strided_slice %210 {offsets = [0, 0], sizes = [32, 512], strides = [1, 1]} : vector<33x512xf32> to vector<32x512xf32>
    %219 = arith.addf %182, %218 : vector<32x512xf32>
    %220 = vector.broadcast %217 : vector<1x512xf32> to vector<32x512xf32>
    %221 = arith.mulf %219, %220 : vector<32x512xf32>
    %c0_139 = arith.constant 0 : index
    %c0_140 = arith.constant 0 : index
    %222 = vector.load %arg21[%c0_139, %c0_140] : memref<32x32xf32, #tpu.memory_space<vmem>>, vector<32x32xf32>
    %cst_141 = arith.constant dense<0.000000e+00> : vector<32x512xf32>
    %223 = tpu.matmul %222, %221, %cst_141 {dimension_numbers = #tpu.dot_dimension_numbers<[1], [0], [0], [1], [0, 0, 1, 1], [], []>} : vector<32x32xf32>, vector<32x512xf32>, vector<32x512xf32> -> vector<32x512xf32>
    %c0_142 = arith.constant 0 : index
    %c0_143 = arith.constant 0 : index
    %224 = vector.load %arg22[%c0_142, %c0_143] : memref<32x1xf32, #tpu.memory_space<vmem>>, vector<32x1xf32>
    %225 = vector.broadcast %224 : vector<32x1xf32> to vector<32x512xf32>
    %226 = arith.addf %223, %225 : vector<32x512xf32>
    %cst_144 = arith.constant 0.000000e+00 : f32
    %227 = vector.broadcast %cst_144 : f32 to vector<32x512xf32>
    %228 = arith.cmpf ogt, %226, %227 : vector<32x512xf32>
    %cst_145 = arith.constant 0.000000e+00 : f32
    %229 = vector.broadcast %cst_145 : f32 to vector<32x512xf32>
    %230 = arith.minimumf %226, %229 : vector<32x512xf32>
    %231 = math.exp %230 : vector<32x512xf32>
    %cst_146 = arith.constant 1.000000e+00 : f32
    %232 = vector.broadcast %cst_146 : f32 to vector<32x512xf32>
    %233 = arith.subf %231, %232 : vector<32x512xf32>
    %234 = arith.select %228, %226, %233 : vector<32x512xi1>, vector<32x512xf32>
    %c0_147 = arith.constant 0 : index
    %c0_148 = arith.constant 0 : index
    %235 = vector.load %arg23[%c0_147, %c0_148] : memref<1x32xf32, #tpu.memory_space<vmem>>, vector<1x32xf32>
    %cst_149 = arith.constant dense<0.000000e+00> : vector<1x512xf32>
    %236 = tpu.matmul %235, %234, %cst_149 {dimension_numbers = #tpu.dot_dimension_numbers<[1], [0], [0], [1], [0, 0, 1, 1], [], []>} : vector<1x32xf32>, vector<32x512xf32>, vector<1x512xf32> -> vector<1x512xf32>
    %c0_150 = arith.constant 0 : index
    %c0_151 = arith.constant 0 : index
    %237 = vector.load %arg24[%c0_150, %c0_151] : memref<1x1xf32, #tpu.memory_space<vmem>>, vector<1x1xf32>
    %238 = vector.broadcast %237 : vector<1x1xf32> to vector<1x512xf32>
    %239 = arith.addf %236, %238 : vector<1x512xf32>
    %240 = arith.negf %239 : vector<1x512xf32>
    %241 = math.exp %240 : vector<1x512xf32>
    %cst_152 = arith.constant 1.000000e+00 : f32
    %242 = vector.broadcast %cst_152 : f32 to vector<1x512xf32>
    %243 = arith.addf %242, %241 : vector<1x512xf32>
    %244 = arith.divf %242, %243 : vector<1x512xf32>
    %245 = arith.mulf %244, %39 : vector<1x512xf32>
    %c0_153 = arith.constant 0 : index
    %c0_154 = arith.constant 0 : index
    %246 = vector.load %arg13[%c0_153, %c0_154] : memref<64x32xf32, #tpu.memory_space<vmem>>, vector<64x32xf32>
    %cst_155 = arith.constant dense<0.000000e+00> : vector<64x512xf32>
    %247 = tpu.matmul %246, %77, %cst_155 {dimension_numbers = #tpu.dot_dimension_numbers<[1], [0], [0], [1], [0, 0, 1, 1], [], []>} : vector<64x32xf32>, vector<32x512xf32>, vector<64x512xf32> -> vector<64x512xf32>
    %248 = arith.addf %158, %247 : vector<64x512xf32>
    %cst_156 = arith.constant 0.000000e+00 : f32
    %249 = vector.broadcast %cst_156 : f32 to vector<64x512xf32>
    %250 = arith.cmpf ogt, %248, %249 : vector<64x512xf32>
    %cst_157 = arith.constant 0.000000e+00 : f32
    %251 = vector.broadcast %cst_157 : f32 to vector<64x512xf32>
    %252 = arith.minimumf %248, %251 : vector<64x512xf32>
    %253 = math.exp %252 : vector<64x512xf32>
    %cst_158 = arith.constant 1.000000e+00 : f32
    %254 = vector.broadcast %cst_158 : f32 to vector<64x512xf32>
    %255 = arith.subf %253, %254 : vector<64x512xf32>
    %256 = arith.select %250, %248, %255 : vector<64x512xi1>, vector<64x512xf32>
    %c0_159 = arith.constant 0 : index
    %c0_160 = arith.constant 0 : index
    %257 = vector.load %arg15[%c0_159, %c0_160] : memref<32x64xf32, #tpu.memory_space<vmem>>, vector<32x64xf32>
    %cst_161 = arith.constant dense<0.000000e+00> : vector<32x512xf32>
    %258 = tpu.matmul %257, %256, %cst_161 {dimension_numbers = #tpu.dot_dimension_numbers<[1], [0], [0], [1], [0, 0, 1, 1], [], []>} : vector<32x64xf32>, vector<64x512xf32>, vector<32x512xf32> -> vector<32x512xf32>
    %c0_162 = arith.constant 0 : index
    %c0_163 = arith.constant 0 : index
    %259 = vector.load %arg16[%c0_162, %c0_163] : memref<32x1xf32, #tpu.memory_space<vmem>>, vector<32x1xf32>
    %260 = vector.broadcast %259 : vector<32x1xf32> to vector<32x512xf32>
    %261 = arith.addf %258, %260 : vector<32x512xf32>
    %cst_164 = arith.constant 0.000000e+00 : f32
    %262 = vector.broadcast %cst_164 : f32 to vector<32x512xf32>
    %263 = arith.cmpf ogt, %261, %262 : vector<32x512xf32>
    %cst_165 = arith.constant 0.000000e+00 : f32
    %264 = vector.broadcast %cst_165 : f32 to vector<32x512xf32>
    %265 = arith.minimumf %261, %264 : vector<32x512xf32>
    %266 = math.exp %265 : vector<32x512xf32>
    %cst_166 = arith.constant 1.000000e+00 : f32
    %267 = vector.broadcast %cst_166 : f32 to vector<32x512xf32>
    %268 = arith.subf %266, %267 : vector<32x512xf32>
    %269 = arith.select %263, %261, %268 : vector<32x512xi1>, vector<32x512xf32>
    %270 = vector.broadcast %127 : vector<1x512xf32> to vector<32x512xf32>
    %271 = arith.mulf %269, %270 : vector<32x512xf32>
    %c0_167 = arith.constant 0 : index
    %c0_168 = arith.constant 0 : index
    %272 = vector.load %arg17[%c0_167, %c0_168] : memref<32x32xf32, #tpu.memory_space<vmem>>, vector<32x32xf32>
    %cst_169 = arith.constant dense<0.000000e+00> : vector<32x512xf32>
    %273 = tpu.matmul %272, %271, %cst_169 {dimension_numbers = #tpu.dot_dimension_numbers<[1], [0], [0], [1], [0, 0, 1, 1], [], []>} : vector<32x32xf32>, vector<32x512xf32>, vector<32x512xf32> -> vector<32x512xf32>
    %c0_170 = arith.constant 0 : index
    %c0_171 = arith.constant 0 : index
    %274 = vector.load %arg18[%c0_170, %c0_171] : memref<32x1xf32, #tpu.memory_space<vmem>>, vector<32x1xf32>
    %275 = vector.broadcast %274 : vector<32x1xf32> to vector<32x512xf32>
    %276 = arith.addf %273, %275 : vector<32x512xf32>
    %cst_172 = arith.constant 0.000000e+00 : f32
    %277 = vector.broadcast %cst_172 : f32 to vector<32x512xf32>
    %278 = arith.cmpf ogt, %276, %277 : vector<32x512xf32>
    %cst_173 = arith.constant 0.000000e+00 : f32
    %279 = vector.broadcast %cst_173 : f32 to vector<32x512xf32>
    %280 = arith.minimumf %276, %279 : vector<32x512xf32>
    %281 = math.exp %280 : vector<32x512xf32>
    %cst_174 = arith.constant 1.000000e+00 : f32
    %282 = vector.broadcast %cst_174 : f32 to vector<32x512xf32>
    %283 = arith.subf %281, %282 : vector<32x512xf32>
    %284 = arith.select %278, %276, %283 : vector<32x512xi1>, vector<32x512xf32>
    %c0_175 = arith.constant 0 : index
    %c0_176 = arith.constant 0 : index
    %285 = vector.load %arg19[%c0_175, %c0_176] : memref<33x32xf32, #tpu.memory_space<vmem>>, vector<33x32xf32>
    %cst_177 = arith.constant dense<0.000000e+00> : vector<33x512xf32>
    %286 = tpu.matmul %285, %284, %cst_177 {dimension_numbers = #tpu.dot_dimension_numbers<[1], [0], [0], [1], [0, 0, 1, 1], [], []>} : vector<33x32xf32>, vector<32x512xf32>, vector<33x512xf32> -> vector<33x512xf32>
    %c0_178 = arith.constant 0 : index
    %c0_179 = arith.constant 0 : index
    %287 = vector.load %arg20[%c0_178, %c0_179] : memref<33x1xf32, #tpu.memory_space<vmem>>, vector<33x1xf32>
    %288 = vector.broadcast %287 : vector<33x1xf32> to vector<33x512xf32>
    %289 = arith.addf %286, %288 : vector<33x512xf32>
    %cst_180 = arith.constant 0.000000e+00 : f32
    %290 = vector.broadcast %cst_180 : f32 to vector<33x512xf32>
    %291 = arith.cmpf ogt, %289, %290 : vector<33x512xf32>
    %cst_181 = arith.constant 0.000000e+00 : f32
    %292 = vector.broadcast %cst_181 : f32 to vector<33x512xf32>
    %293 = arith.minimumf %289, %292 : vector<33x512xf32>
    %294 = math.exp %293 : vector<33x512xf32>
    %cst_182 = arith.constant 1.000000e+00 : f32
    %295 = vector.broadcast %cst_182 : f32 to vector<33x512xf32>
    %296 = arith.subf %294, %295 : vector<33x512xf32>
    %297 = arith.select %291, %289, %296 : vector<33x512xi1>, vector<33x512xf32>
    %298 = vector.extract_strided_slice %297 {offsets = [32, 0], sizes = [1, 512], strides = [1, 1]} : vector<33x512xf32> to vector<1x512xf32>
    %299 = arith.negf %298 : vector<1x512xf32>
    %300 = math.exp %299 : vector<1x512xf32>
    %cst_183 = arith.constant 1.000000e+00 : f32
    %301 = vector.broadcast %cst_183 : f32 to vector<1x512xf32>
    %302 = arith.addf %301, %300 : vector<1x512xf32>
    %303 = arith.divf %301, %302 : vector<1x512xf32>
    %304 = arith.mulf %303, %79 : vector<1x512xf32>
    %305 = vector.extract_strided_slice %297 {offsets = [0, 0], sizes = [32, 512], strides = [1, 1]} : vector<33x512xf32> to vector<32x512xf32>
    %306 = arith.addf %269, %305 : vector<32x512xf32>
    %307 = vector.broadcast %304 : vector<1x512xf32> to vector<32x512xf32>
    %308 = arith.mulf %306, %307 : vector<32x512xf32>
    %c0_184 = arith.constant 0 : index
    %c0_185 = arith.constant 0 : index
    %309 = vector.load %arg21[%c0_184, %c0_185] : memref<32x32xf32, #tpu.memory_space<vmem>>, vector<32x32xf32>
    %cst_186 = arith.constant dense<0.000000e+00> : vector<32x512xf32>
    %310 = tpu.matmul %309, %308, %cst_186 {dimension_numbers = #tpu.dot_dimension_numbers<[1], [0], [0], [1], [0, 0, 1, 1], [], []>} : vector<32x32xf32>, vector<32x512xf32>, vector<32x512xf32> -> vector<32x512xf32>
    %c0_187 = arith.constant 0 : index
    %c0_188 = arith.constant 0 : index
    %311 = vector.load %arg22[%c0_187, %c0_188] : memref<32x1xf32, #tpu.memory_space<vmem>>, vector<32x1xf32>
    %312 = vector.broadcast %311 : vector<32x1xf32> to vector<32x512xf32>
    %313 = arith.addf %310, %312 : vector<32x512xf32>
    %cst_189 = arith.constant 0.000000e+00 : f32
    %314 = vector.broadcast %cst_189 : f32 to vector<32x512xf32>
    %315 = arith.cmpf ogt, %313, %314 : vector<32x512xf32>
    %cst_190 = arith.constant 0.000000e+00 : f32
    %316 = vector.broadcast %cst_190 : f32 to vector<32x512xf32>
    %317 = arith.minimumf %313, %316 : vector<32x512xf32>
    %318 = math.exp %317 : vector<32x512xf32>
    %cst_191 = arith.constant 1.000000e+00 : f32
    %319 = vector.broadcast %cst_191 : f32 to vector<32x512xf32>
    %320 = arith.subf %318, %319 : vector<32x512xf32>
    %321 = arith.select %315, %313, %320 : vector<32x512xi1>, vector<32x512xf32>
    %c0_192 = arith.constant 0 : index
    %c0_193 = arith.constant 0 : index
    %322 = vector.load %arg23[%c0_192, %c0_193] : memref<1x32xf32, #tpu.memory_space<vmem>>, vector<1x32xf32>
    %cst_194 = arith.constant dense<0.000000e+00> : vector<1x512xf32>
    %323 = tpu.matmul %322, %321, %cst_194 {dimension_numbers = #tpu.dot_dimension_numbers<[1], [0], [0], [1], [0, 0, 1, 1], [], []>} : vector<1x32xf32>, vector<32x512xf32>, vector<1x512xf32> -> vector<1x512xf32>
    %c0_195 = arith.constant 0 : index
    %c0_196 = arith.constant 0 : index
    %324 = vector.load %arg24[%c0_195, %c0_196] : memref<1x1xf32, #tpu.memory_space<vmem>>, vector<1x1xf32>
    %325 = vector.broadcast %324 : vector<1x1xf32> to vector<1x512xf32>
    %326 = arith.addf %323, %325 : vector<1x512xf32>
    %327 = arith.negf %326 : vector<1x512xf32>
    %328 = math.exp %327 : vector<1x512xf32>
    %cst_197 = arith.constant 1.000000e+00 : f32
    %329 = vector.broadcast %cst_197 : f32 to vector<1x512xf32>
    %330 = arith.addf %329, %328 : vector<1x512xf32>
    %331 = arith.divf %329, %330 : vector<1x512xf32>
    %332 = arith.mulf %331, %79 : vector<1x512xf32>
    %c0_198 = arith.constant 0 : index
    %c0_199 = arith.constant 0 : index
    %333 = vector.load %arg13[%c0_198, %c0_199] : memref<64x32xf32, #tpu.memory_space<vmem>>, vector<64x32xf32>
    %cst_200 = arith.constant dense<0.000000e+00> : vector<64x512xf32>
    %334 = tpu.matmul %333, %117, %cst_200 {dimension_numbers = #tpu.dot_dimension_numbers<[1], [0], [0], [1], [0, 0, 1, 1], [], []>} : vector<64x32xf32>, vector<32x512xf32>, vector<64x512xf32> -> vector<64x512xf32>
    %335 = arith.addf %158, %334 : vector<64x512xf32>
    %cst_201 = arith.constant 0.000000e+00 : f32
    %336 = vector.broadcast %cst_201 : f32 to vector<64x512xf32>
    %337 = arith.cmpf ogt, %335, %336 : vector<64x512xf32>
    %cst_202 = arith.constant 0.000000e+00 : f32
    %338 = vector.broadcast %cst_202 : f32 to vector<64x512xf32>
    %339 = arith.minimumf %335, %338 : vector<64x512xf32>
    %340 = math.exp %339 : vector<64x512xf32>
    %cst_203 = arith.constant 1.000000e+00 : f32
    %341 = vector.broadcast %cst_203 : f32 to vector<64x512xf32>
    %342 = arith.subf %340, %341 : vector<64x512xf32>
    %343 = arith.select %337, %335, %342 : vector<64x512xi1>, vector<64x512xf32>
    %c0_204 = arith.constant 0 : index
    %c0_205 = arith.constant 0 : index
    %344 = vector.load %arg15[%c0_204, %c0_205] : memref<32x64xf32, #tpu.memory_space<vmem>>, vector<32x64xf32>
    %cst_206 = arith.constant dense<0.000000e+00> : vector<32x512xf32>
    %345 = tpu.matmul %344, %343, %cst_206 {dimension_numbers = #tpu.dot_dimension_numbers<[1], [0], [0], [1], [0, 0, 1, 1], [], []>} : vector<32x64xf32>, vector<64x512xf32>, vector<32x512xf32> -> vector<32x512xf32>
    %c0_207 = arith.constant 0 : index
    %c0_208 = arith.constant 0 : index
    %346 = vector.load %arg16[%c0_207, %c0_208] : memref<32x1xf32, #tpu.memory_space<vmem>>, vector<32x1xf32>
    %347 = vector.broadcast %346 : vector<32x1xf32> to vector<32x512xf32>
    %348 = arith.addf %345, %347 : vector<32x512xf32>
    %cst_209 = arith.constant 0.000000e+00 : f32
    %349 = vector.broadcast %cst_209 : f32 to vector<32x512xf32>
    %350 = arith.cmpf ogt, %348, %349 : vector<32x512xf32>
    %cst_210 = arith.constant 0.000000e+00 : f32
    %351 = vector.broadcast %cst_210 : f32 to vector<32x512xf32>
    %352 = arith.minimumf %348, %351 : vector<32x512xf32>
    %353 = math.exp %352 : vector<32x512xf32>
    %cst_211 = arith.constant 1.000000e+00 : f32
    %354 = vector.broadcast %cst_211 : f32 to vector<32x512xf32>
    %355 = arith.subf %353, %354 : vector<32x512xf32>
    %356 = arith.select %350, %348, %355 : vector<32x512xi1>, vector<32x512xf32>
    %357 = vector.broadcast %128 : vector<1x512xf32> to vector<32x512xf32>
    %358 = arith.mulf %356, %357 : vector<32x512xf32>
    %c0_212 = arith.constant 0 : index
    %c0_213 = arith.constant 0 : index
    %359 = vector.load %arg17[%c0_212, %c0_213] : memref<32x32xf32, #tpu.memory_space<vmem>>, vector<32x32xf32>
    %cst_214 = arith.constant dense<0.000000e+00> : vector<32x512xf32>
    %360 = tpu.matmul %359, %358, %cst_214 {dimension_numbers = #tpu.dot_dimension_numbers<[1], [0], [0], [1], [0, 0, 1, 1], [], []>} : vector<32x32xf32>, vector<32x512xf32>, vector<32x512xf32> -> vector<32x512xf32>
    %c0_215 = arith.constant 0 : index
    %c0_216 = arith.constant 0 : index
    %361 = vector.load %arg18[%c0_215, %c0_216] : memref<32x1xf32, #tpu.memory_space<vmem>>, vector<32x1xf32>
    %362 = vector.broadcast %361 : vector<32x1xf32> to vector<32x512xf32>
    %363 = arith.addf %360, %362 : vector<32x512xf32>
    %cst_217 = arith.constant 0.000000e+00 : f32
    %364 = vector.broadcast %cst_217 : f32 to vector<32x512xf32>
    %365 = arith.cmpf ogt, %363, %364 : vector<32x512xf32>
    %cst_218 = arith.constant 0.000000e+00 : f32
    %366 = vector.broadcast %cst_218 : f32 to vector<32x512xf32>
    %367 = arith.minimumf %363, %366 : vector<32x512xf32>
    %368 = math.exp %367 : vector<32x512xf32>
    %cst_219 = arith.constant 1.000000e+00 : f32
    %369 = vector.broadcast %cst_219 : f32 to vector<32x512xf32>
    %370 = arith.subf %368, %369 : vector<32x512xf32>
    %371 = arith.select %365, %363, %370 : vector<32x512xi1>, vector<32x512xf32>
    %c0_220 = arith.constant 0 : index
    %c0_221 = arith.constant 0 : index
    %372 = vector.load %arg19[%c0_220, %c0_221] : memref<33x32xf32, #tpu.memory_space<vmem>>, vector<33x32xf32>
    %cst_222 = arith.constant dense<0.000000e+00> : vector<33x512xf32>
    %373 = tpu.matmul %372, %371, %cst_222 {dimension_numbers = #tpu.dot_dimension_numbers<[1], [0], [0], [1], [0, 0, 1, 1], [], []>} : vector<33x32xf32>, vector<32x512xf32>, vector<33x512xf32> -> vector<33x512xf32>
    %c0_223 = arith.constant 0 : index
    %c0_224 = arith.constant 0 : index
    %374 = vector.load %arg20[%c0_223, %c0_224] : memref<33x1xf32, #tpu.memory_space<vmem>>, vector<33x1xf32>
    %375 = vector.broadcast %374 : vector<33x1xf32> to vector<33x512xf32>
    %376 = arith.addf %373, %375 : vector<33x512xf32>
    %cst_225 = arith.constant 0.000000e+00 : f32
    %377 = vector.broadcast %cst_225 : f32 to vector<33x512xf32>
    %378 = arith.cmpf ogt, %376, %377 : vector<33x512xf32>
    %cst_226 = arith.constant 0.000000e+00 : f32
    %379 = vector.broadcast %cst_226 : f32 to vector<33x512xf32>
    %380 = arith.minimumf %376, %379 : vector<33x512xf32>
    %381 = math.exp %380 : vector<33x512xf32>
    %cst_227 = arith.constant 1.000000e+00 : f32
    %382 = vector.broadcast %cst_227 : f32 to vector<33x512xf32>
    %383 = arith.subf %381, %382 : vector<33x512xf32>
    %384 = arith.select %378, %376, %383 : vector<33x512xi1>, vector<33x512xf32>
    %385 = vector.extract_strided_slice %384 {offsets = [32, 0], sizes = [1, 512], strides = [1, 1]} : vector<33x512xf32> to vector<1x512xf32>
    %386 = arith.negf %385 : vector<1x512xf32>
    %387 = math.exp %386 : vector<1x512xf32>
    %cst_228 = arith.constant 1.000000e+00 : f32
    %388 = vector.broadcast %cst_228 : f32 to vector<1x512xf32>
    %389 = arith.addf %388, %387 : vector<1x512xf32>
    %390 = arith.divf %388, %389 : vector<1x512xf32>
    %391 = arith.mulf %390, %119 : vector<1x512xf32>
    %392 = vector.extract_strided_slice %384 {offsets = [0, 0], sizes = [32, 512], strides = [1, 1]} : vector<33x512xf32> to vector<32x512xf32>
    %393 = arith.addf %356, %392 : vector<32x512xf32>
    %394 = vector.broadcast %391 : vector<1x512xf32> to vector<32x512xf32>
    %395 = arith.mulf %393, %394 : vector<32x512xf32>
    %c0_229 = arith.constant 0 : index
    %c0_230 = arith.constant 0 : index
    %396 = vector.load %arg21[%c0_229, %c0_230] : memref<32x32xf32, #tpu.memory_space<vmem>>, vector<32x32xf32>
    %cst_231 = arith.constant dense<0.000000e+00> : vector<32x512xf32>
    %397 = tpu.matmul %396, %395, %cst_231 {dimension_numbers = #tpu.dot_dimension_numbers<[1], [0], [0], [1], [0, 0, 1, 1], [], []>} : vector<32x32xf32>, vector<32x512xf32>, vector<32x512xf32> -> vector<32x512xf32>
    %c0_232 = arith.constant 0 : index
    %c0_233 = arith.constant 0 : index
    %398 = vector.load %arg22[%c0_232, %c0_233] : memref<32x1xf32, #tpu.memory_space<vmem>>, vector<32x1xf32>
    %399 = vector.broadcast %398 : vector<32x1xf32> to vector<32x512xf32>
    %400 = arith.addf %397, %399 : vector<32x512xf32>
    %cst_234 = arith.constant 0.000000e+00 : f32
    %401 = vector.broadcast %cst_234 : f32 to vector<32x512xf32>
    %402 = arith.cmpf ogt, %400, %401 : vector<32x512xf32>
    %cst_235 = arith.constant 0.000000e+00 : f32
    %403 = vector.broadcast %cst_235 : f32 to vector<32x512xf32>
    %404 = arith.minimumf %400, %403 : vector<32x512xf32>
    %405 = math.exp %404 : vector<32x512xf32>
    %cst_236 = arith.constant 1.000000e+00 : f32
    %406 = vector.broadcast %cst_236 : f32 to vector<32x512xf32>
    %407 = arith.subf %405, %406 : vector<32x512xf32>
    %408 = arith.select %402, %400, %407 : vector<32x512xi1>, vector<32x512xf32>
    %c0_237 = arith.constant 0 : index
    %c0_238 = arith.constant 0 : index
    %409 = vector.load %arg23[%c0_237, %c0_238] : memref<1x32xf32, #tpu.memory_space<vmem>>, vector<1x32xf32>
    %cst_239 = arith.constant dense<0.000000e+00> : vector<1x512xf32>
    %410 = tpu.matmul %409, %408, %cst_239 {dimension_numbers = #tpu.dot_dimension_numbers<[1], [0], [0], [1], [0, 0, 1, 1], [], []>} : vector<1x32xf32>, vector<32x512xf32>, vector<1x512xf32> -> vector<1x512xf32>
    %c0_240 = arith.constant 0 : index
    %c0_241 = arith.constant 0 : index
    %411 = vector.load %arg24[%c0_240, %c0_241] : memref<1x1xf32, #tpu.memory_space<vmem>>, vector<1x1xf32>
    %412 = vector.broadcast %411 : vector<1x1xf32> to vector<1x512xf32>
    %413 = arith.addf %410, %412 : vector<1x512xf32>
    %414 = arith.negf %413 : vector<1x512xf32>
    %415 = math.exp %414 : vector<1x512xf32>
    %cst_242 = arith.constant 1.000000e+00 : f32
    %416 = vector.broadcast %cst_242 : f32 to vector<1x512xf32>
    %417 = arith.addf %416, %415 : vector<1x512xf32>
    %418 = arith.divf %416, %417 : vector<1x512xf32>
    %419 = arith.mulf %418, %119 : vector<1x512xf32>
    %420 = arith.addf %245, %332 : vector<1x512xf32>
    %421 = arith.addf %420, %419 : vector<1x512xf32>
    %cst_243 = arith.constant 9.99999993E-9 : f32
    %422 = vector.broadcast %cst_243 : f32 to vector<1x512xf32>
    %423 = arith.addf %421, %422 : vector<1x512xf32>
    %cst_244 = arith.constant 1.000000e+00 : f32
    %424 = vector.broadcast %cst_244 : f32 to vector<1x512xf32>
    %425 = arith.divf %424, %423 : vector<1x512xf32>
    %426 = arith.mulf %245, %425 : vector<1x512xf32>
    %427 = arith.mulf %332, %425 : vector<1x512xf32>
    %428 = arith.mulf %419, %425 : vector<1x512xf32>
    %429 = vector.broadcast %426 : vector<1x512xf32> to vector<32x512xf32>
    %430 = arith.mulf %219, %429 : vector<32x512xf32>
    %431 = vector.broadcast %427 : vector<1x512xf32> to vector<32x512xf32>
    %432 = arith.mulf %306, %431 : vector<32x512xf32>
    %433 = arith.addf %430, %432 : vector<32x512xf32>
    %434 = vector.broadcast %428 : vector<1x512xf32> to vector<32x512xf32>
    %435 = arith.mulf %393, %434 : vector<32x512xf32>
    %436 = arith.addf %433, %435 : vector<32x512xf32>
    %437 = arith.subf %219, %436 : vector<32x512xf32>
    %438 = arith.mulf %437, %437 : vector<32x512xf32>
    %439 = vector.broadcast %426 : vector<1x512xf32> to vector<32x512xf32>
    %440 = arith.mulf %439, %438 : vector<32x512xf32>
    %441 = arith.subf %306, %436 : vector<32x512xf32>
    %442 = arith.mulf %441, %441 : vector<32x512xf32>
    %443 = vector.broadcast %427 : vector<1x512xf32> to vector<32x512xf32>
    %444 = arith.mulf %443, %442 : vector<32x512xf32>
    %445 = arith.addf %440, %444 : vector<32x512xf32>
    %446 = arith.subf %393, %436 : vector<32x512xf32>
    %447 = arith.mulf %446, %446 : vector<32x512xf32>
    %448 = vector.broadcast %428 : vector<1x512xf32> to vector<32x512xf32>
    %449 = arith.mulf %448, %447 : vector<32x512xf32>
    %450 = arith.addf %445, %449 : vector<32x512xf32>
    %451 = arith.mulf %421, %425 : vector<1x512xf32>
    %cst_245 = arith.constant 0.333333343 : f32
    %452 = vector.broadcast %cst_245 : f32 to vector<1x512xf32>
    %453 = arith.mulf %451, %452 : vector<1x512xf32>
    %c0_246 = arith.constant 0 : index
    %c0_247 = arith.constant 0 : index
    %454 = vector.load %arg25[%c0_246, %c0_247] : memref<32x32xf32, #tpu.memory_space<vmem>>, vector<32x32xf32>
    %cst_248 = arith.constant dense<0.000000e+00> : vector<32x512xf32>
    %455 = tpu.matmul %454, %436, %cst_248 {dimension_numbers = #tpu.dot_dimension_numbers<[1], [0], [0], [1], [0, 0, 1, 1], [], []>} : vector<32x32xf32>, vector<32x512xf32>, vector<32x512xf32> -> vector<32x512xf32>
    %c0_249 = arith.constant 0 : index
    %c0_250 = arith.constant 0 : index
    %456 = vector.load %arg26[%c0_249, %c0_250] : memref<32x32xf32, #tpu.memory_space<vmem>>, vector<32x32xf32>
    %cst_251 = arith.constant dense<0.000000e+00> : vector<32x512xf32>
    %457 = tpu.matmul %456, %450, %cst_251 {dimension_numbers = #tpu.dot_dimension_numbers<[1], [0], [0], [1], [0, 0, 1, 1], [], []>} : vector<32x32xf32>, vector<32x512xf32>, vector<32x512xf32> -> vector<32x512xf32>
    %458 = arith.addf %455, %457 : vector<32x512xf32>
    %c0_252 = arith.constant 0 : index
    %c0_253 = arith.constant 0 : index
    %459 = vector.load %arg27[%c0_252, %c0_253] : memref<32x1xf32, #tpu.memory_space<vmem>>, vector<32x1xf32>
    %460 = vector.broadcast %459 : vector<32x1xf32> to vector<32x512xf32>
    %461 = vector.broadcast %453 : vector<1x512xf32> to vector<32x512xf32>
    %462 = arith.mulf %460, %461 : vector<32x512xf32>
    %463 = arith.addf %458, %462 : vector<32x512xf32>
    %c0_254 = arith.constant 0 : index
    %c0_255 = arith.constant 0 : index
    %464 = vector.load %arg28[%c0_254, %c0_255] : memref<32x1xf32, #tpu.memory_space<vmem>>, vector<32x1xf32>
    %465 = vector.broadcast %464 : vector<32x1xf32> to vector<32x512xf32>
    %466 = arith.addf %463, %465 : vector<32x512xf32>
    %cst_256 = arith.constant 0.000000e+00 : f32
    %467 = vector.broadcast %cst_256 : f32 to vector<32x512xf32>
    %468 = arith.cmpf ogt, %466, %467 : vector<32x512xf32>
    %cst_257 = arith.constant 0.000000e+00 : f32
    %469 = vector.broadcast %cst_257 : f32 to vector<32x512xf32>
    %470 = arith.minimumf %466, %469 : vector<32x512xf32>
    %471 = math.exp %470 : vector<32x512xf32>
    %cst_258 = arith.constant 1.000000e+00 : f32
    %472 = vector.broadcast %cst_258 : f32 to vector<32x512xf32>
    %473 = arith.subf %471, %472 : vector<32x512xf32>
    %474 = arith.select %468, %466, %473 : vector<32x512xi1>, vector<32x512xf32>
    %c0_259 = arith.constant 0 : index
    %c0_260 = arith.constant 0 : index
    %c0_261 = arith.constant 0 : index
    %475 = vector.load %arg29[%c0_259, %c0_260, %c0_261] : memref<1x32x512xf32, #tpu.memory_space<vmem>>, vector<1x32x512xf32>
    %476 = vector.shape_cast %475 : vector<1x32x512xf32> to vector<32x512xf32>
    %477 = vector.shape_cast %474 : vector<32x512xf32> to vector<1x32x512xf32>
    tpu.vector_store %arg29[%c0_259, %c0_260, %c0_261], %477 {strides = array<i32>} : memref<1x32x512xf32, #tpu.memory_space<vmem>>, vector<1x32x512xf32>,
    return
  }
  func.func @transform_0(%arg0: i32, %arg1: i32) -> (i32, i32, i32, i32) {
    %c0_i32 = arith.constant 0 : i32
    %c0_i32_0 = arith.constant 0 : i32
    %c0_i32_1 = arith.constant 0 : i32
    return %arg0, %c0_i32, %c0_i32_0, %arg1 : i32, i32, i32, i32
  }
  func.func @transform_1(%arg0: i32, %arg1: i32) -> (i32, i32, i32, i32) {
    %c0_i32 = arith.constant 0 : i32
    %c0_i32_0 = arith.constant 0 : i32
    %c0_i32_1 = arith.constant 0 : i32
    return %arg0, %c0_i32, %c0_i32_0, %arg1 : i32, i32, i32, i32
  }
  func.func @transform_2(%arg0: i32, %arg1: i32) -> (i32, i32, i32, i32) {
    %c0_i32 = arith.constant 0 : i32
    %c0_i32_0 = arith.constant 0 : i32
    %c0_i32_1 = arith.constant 0 : i32
    return %arg0, %c0_i32, %c0_i32_0, %arg1 : i32, i32, i32, i32
  }
  func.func @transform_3(%arg0: i32, %arg1: i32) -> (i32, i32, i32, i32) {
    %c0_i32 = arith.constant 0 : i32
    %c0_i32_0 = arith.constant 0 : i32
    %c0_i32_1 = arith.constant 0 : i32
    return %arg0, %c0_i32, %c0_i32_0, %arg1 : i32, i32, i32, i32
  }
  func.func @transform_4(%arg0: i32, %arg1: i32) -> (i32, i32) {
    %c0_i32 = arith.constant 0 : i32
    %c0_i32_0 = arith.constant 0 : i32
    %c0_i32_1 = arith.constant 0 : i32
    return %c0_i32, %c0_i32_0 : i32, i32
  }
  func.func @transform_5(%arg0: i32, %arg1: i32) -> (i32, i32) {
    %c0_i32 = arith.constant 0 : i32
    %c0_i32_0 = arith.constant 0 : i32
    %c0_i32_1 = arith.constant 0 : i32
    return %c0_i32, %c0_i32_0 : i32, i32
  }
  func.func @transform_6(%arg0: i32, %arg1: i32) -> (i32, i32) {
    %c0_i32 = arith.constant 0 : i32
    %c0_i32_0 = arith.constant 0 : i32
    %c0_i32_1 = arith.constant 0 : i32
    return %c0_i32, %c0_i32_0 : i32, i32
  }
  func.func @transform_7(%arg0: i32, %arg1: i32) -> (i32, i32) {
    %c0_i32 = arith.constant 0 : i32
    %c0_i32_0 = arith.constant 0 : i32
    %c0_i32_1 = arith.constant 0 : i32
    return %c0_i32, %c0_i32_0 : i32, i32
  }
  func.func @transform_8(%arg0: i32, %arg1: i32) -> (i32, i32) {
    %c0_i32 = arith.constant 0 : i32
    %c0_i32_0 = arith.constant 0 : i32
    %c0_i32_1 = arith.constant 0 : i32
    return %c0_i32, %c0_i32_0 : i32, i32
  }
  func.func @transform_9(%arg0: i32, %arg1: i32) -> (i32, i32) {
    %c0_i32 = arith.constant 0 : i32
    %c0_i32_0 = arith.constant 0 : i32
    %c0_i32_1 = arith.constant 0 : i32
    return %c0_i32, %c0_i32_0 : i32, i32
  }
  func.func @transform_10(%arg0: i32, %arg1: i32) -> (i32, i32) {
    %c0_i32 = arith.constant 0 : i32
    %c0_i32_0 = arith.constant 0 : i32
    %c0_i32_1 = arith.constant 0 : i32
    return %c0_i32, %c0_i32_0 : i32, i32
  }
  func.func @transform_11(%arg0: i32, %arg1: i32) -> (i32, i32) {
    %c0_i32 = arith.constant 0 : i32
    %c0_i32_0 = arith.constant 0 : i32
    %c0_i32_1 = arith.constant 0 : i32
    return %c0_i32, %c0_i32_0 : i32, i32
  }
  func.func @transform_12(%arg0: i32, %arg1: i32) -> (i32, i32) {
    %c0_i32 = arith.constant 0 : i32
    %c0_i32_0 = arith.constant 0 : i32
    %c0_i32_1 = arith.constant 0 : i32
    return %c0_i32, %c0_i32_0 : i32, i32
  }
  func.func @transform_13(%arg0: i32, %arg1: i32) -> (i32, i32) {
    %c0_i32 = arith.constant 0 : i32
    %c0_i32_0 = arith.constant 0 : i32
    %c0_i32_1 = arith.constant 0 : i32
    return %c0_i32, %c0_i32_0 : i32, i32
  }
  func.func @transform_14(%arg0: i32, %arg1: i32) -> (i32, i32) {
    %c0_i32 = arith.constant 0 : i32
    %c0_i32_0 = arith.constant 0 : i32
    %c0_i32_1 = arith.constant 0 : i32
    return %c0_i32, %c0_i32_0 : i32, i32
  }
  func.func @transform_15(%arg0: i32, %arg1: i32) -> (i32, i32) {
    %c0_i32 = arith.constant 0 : i32
    %c0_i32_0 = arith.constant 0 : i32
    %c0_i32_1 = arith.constant 0 : i32
    return %c0_i32, %c0_i32_0 : i32, i32
  }
  func.func @transform_16(%arg0: i32, %arg1: i32) -> (i32, i32) {
    %c0_i32 = arith.constant 0 : i32
    %c0_i32_0 = arith.constant 0 : i32
    %c0_i32_1 = arith.constant 0 : i32
    return %c0_i32, %c0_i32_0 : i32, i32
  }
  func.func @transform_17(%arg0: i32, %arg1: i32) -> (i32, i32) {
    %c0_i32 = arith.constant 0 : i32
    %c0_i32_0 = arith.constant 0 : i32
    %c0_i32_1 = arith.constant 0 : i32
    return %c0_i32, %c0_i32_0 : i32, i32
  }
  func.func @transform_18(%arg0: i32, %arg1: i32) -> (i32, i32) {
    %c0_i32 = arith.constant 0 : i32
    %c0_i32_0 = arith.constant 0 : i32
    %c0_i32_1 = arith.constant 0 : i32
    return %c0_i32, %c0_i32_0 : i32, i32
  }
  func.func @transform_19(%arg0: i32, %arg1: i32) -> (i32, i32) {
    %c0_i32 = arith.constant 0 : i32
    %c0_i32_0 = arith.constant 0 : i32
    %c0_i32_1 = arith.constant 0 : i32
    return %c0_i32, %c0_i32_0 : i32, i32
  }
  func.func @transform_20(%arg0: i32, %arg1: i32) -> (i32, i32) {
    %c0_i32 = arith.constant 0 : i32
    %c0_i32_0 = arith.constant 0 : i32
    %c0_i32_1 = arith.constant 0 : i32
    return %c0_i32, %c0_i32_0 : i32, i32
  }
  func.func @transform_21(%arg0: i32, %arg1: i32) -> (i32, i32) {
    %c0_i32 = arith.constant 0 : i32
    %c0_i32_0 = arith.constant 0 : i32
    %c0_i32_1 = arith.constant 0 : i32
    return %c0_i32, %c0_i32_0 : i32, i32
  }
  func.func @transform_22(%arg0: i32, %arg1: i32) -> (i32, i32) {
    %c0_i32 = arith.constant 0 : i32
    %c0_i32_0 = arith.constant 0 : i32
    %c0_i32_1 = arith.constant 0 : i32
    return %c0_i32, %c0_i32_0 : i32, i32
  }
  func.func @transform_23(%arg0: i32, %arg1: i32) -> (i32, i32) {
    %c0_i32 = arith.constant 0 : i32
    %c0_i32_0 = arith.constant 0 : i32
    %c0_i32_1 = arith.constant 0 : i32
    return %c0_i32, %c0_i32_0 : i32, i32
  }
  func.func @transform_24(%arg0: i32, %arg1: i32) -> (i32, i32) {
    %c0_i32 = arith.constant 0 : i32
    %c0_i32_0 = arith.constant 0 : i32
    %c0_i32_1 = arith.constant 0 : i32
    return %c0_i32, %c0_i32_0 : i32, i32
  }
  func.func @transform_25(%arg0: i32, %arg1: i32) -> (i32, i32) {
    %c0_i32 = arith.constant 0 : i32
    %c0_i32_0 = arith.constant 0 : i32
    %c0_i32_1 = arith.constant 0 : i32
    return %c0_i32, %c0_i32_0 : i32, i32
  }
  func.func @transform_26(%arg0: i32, %arg1: i32) -> (i32, i32) {
    %c0_i32 = arith.constant 0 : i32
    %c0_i32_0 = arith.constant 0 : i32
    %c0_i32_1 = arith.constant 0 : i32
    return %c0_i32, %c0_i32_0 : i32, i32
  }
  func.func @transform_27(%arg0: i32, %arg1: i32) -> (i32, i32, i32) {
    %c0_i32 = arith.constant 0 : i32
    %c0_i32_0 = arith.constant 0 : i32
    return %arg0, %c0_i32, %arg1 : i32, i32, i32
  }
}

</mosaic_0001>

<bundles_post_ra>
// kernel: tpu_custom_call.1
= control target key start
LH: loop header
LB: loop body
LE: loop exit
PB: predicated region body
PF: predicated region fallthrough
CT: control target
= control target key end

     0   :  { %s17066_s0 = inlined_call_operand.hbm [shape: f32[2,3,32,512], index: 0, kind: input, shape index: {}]   ;;  %s17067_s1 = inlined_call_operand.vmem [shape: f32[2,3,3,512], index: 1, kind: input, shape index: {}]   ;;  %s17068_s2 = inlined_call_operand.vmem [shape: f32[2,3,1,512], index: 2, kind: input, shape index: {}]   ;;  %s17069_s3 = inlined_call_operand.vmem [shape: f32[2,3,1,512], index: 3, kind: input, shape index: {}]   ;;  %s17070_s4 = inlined_call_operand.vmem [shape: f32[16,3], index: 4, kind: input, shape index: {}]   ;;  %s17071_s5 = inlined_call_operand.vmem [shape: f32[16,1], index: 5, kind: input, shape index: {}]   ;;  %s17072_s6 = inlined_call_operand.vmem [shape: f32[16,1], index: 6, kind: input, shape index: {}]   ;;  %s17073_s7 = inlined_call_operand.vmem [shape: f32[32,16], index: 7, kind: input, shape index: {}]   ;;  %s17074_s8 = inlined_call_operand.vmem [shape: f32[32,1], index: 8, kind: input, shape index: {}]   ;;  %s17075_s9 = inlined_call_operand.vmem [shape: f32[64,32], index: 9, kind: input, shape index: {}]   ;;  %s17076_s10 = inlined_call_operand.vmem [shape: f32[64,32], index: 10, kind: input, shape index: {}]   ;;  %s17077_s11 = inlined_call_operand.vmem [shape: f32[64,32], index: 11, kind: input, shape index: {}]   ;;  %s17078_s12 = inlined_call_operand.vmem [shape: f32[64,1], index: 12, kind: input, shape index: {}]   ;;  %s17079_s13 = inlined_call_operand.vmem [shape: f32[32,64], index: 13, kind: input, shape index: {}]   ;;  %s17080_s14 = inlined_call_operand.vmem [shape: f32[32,1], index: 14, kind: input, shape index: {}]   ;;  %s17081_s15 = inlined_call_operand.vmem [shape: f32[32,32], index: 15, kind: input, shape index: {}]   ;;  %s17082_s16 = inlined_call_operand.vmem [shape: f32[32,1], index: 16, kind: input, shape index: {}]   ;;  %s17083_s17 = inlined_call_operand.vmem [shape: f32[33,32], index: 17, kind: input, shape index: {}]   ;;  %s17084_s18 = inlined_call_operand.vmem [shape: f32[33,1], index: 18, kind: input, shape index: {}]   ;;  %s17085_s19 = inlined_call_operand.vmem [shape: f32[32,32], index: 19, kind: input, shape index: {}]   ;;  %s17086_s20 = inlined_call_operand.vmem [shape: f32[32,1], index: 20, kind: input, shape index: {}]   ;;  %s17087_s21 = inlined_call_operand.vmem [shape: f32[1,32], index: 21, kind: input, shape index: {}]   ;;  %s17088_s22 = inlined_call_operand.<no memory space> [shape: f32[1,1], index: 22, kind: input, shape index: {}]   ;;  %s17089_s23 = inlined_call_operand.vmem [shape: f32[32,32], index: 23, kind: input, shape index: {}]   ;;  %s17090_s24 = inlined_call_operand.vmem [shape: f32[32,32], index: 24, kind: input, shape index: {}]   ;;  %s17091_s25 = inlined_call_operand.vmem [shape: f32[32,1], index: 25, kind: input, shape index: {}]   ;;  %s17092_s26 = inlined_call_operand.vmem [shape: f32[32,1], index: 26, kind: input, shape index: {}]   ;;  %s17093_s27 = inlined_call_operand.hbm [shape: f32[2,32,512], index: 27, kind: output, shape index: {}]  }
   0x1   :  { %17384 = sst [smem:[#allocation111_spill]] %s17066_s0  ;;  %v32_v0 = vstv %s17088_s22 }
   0x2   :  { %17385 = sst [smem:[#allocation112_spill]] %s17067_s1  ;;  %33 = vst [vmem:[#allocation2] sm:$0x1] %v32_v0 }
   0x3   :  { %17386 = sst [smem:[#allocation113_spill]] %s17068_s2 }
   0x4   :  { %17387 = sst [smem:[#allocation114_spill]] %s17069_s3 }
   0x5   :  { %17388 = sst [smem:[#allocation115_spill]] %s17070_s4 }
   0x6   :  { %17389 = sst [smem:[#allocation116_spill]] %s17071_s5 }
   0x7   :  { %17390 = sst [smem:[#allocation117_spill]] %s17072_s6 }
   0x8   :  { %17391 = sst [smem:[#allocation118_spill]] %s17073_s7 }
   0x9   :  { %17392 = sst [smem:[#allocation119_spill]] %s17074_s8 }
   0xa   :  { %17393 = sst [smem:[#allocation120_spill]] %s17075_s9 }
   0xb   :  { %17394 = sst [smem:[#allocation121_spill]] %s17076_s10 }
   0xc   :  { %17395 = sst [smem:[#allocation122_spill]] %s17077_s11 }
   0xd   :  { %17396 = sst [smem:[#allocation123_spill]] %s17078_s12 }
   0xe   :  { %17397 = sst [smem:[#allocation124_spill]] %s17079_s13 }
   0xf   :  { %17398 = sst [smem:[#allocation125_spill]] %s17080_s14 }
  0x10   :  { %17399 = sst [smem:[#allocation126_spill]] %s17081_s15 }
  0x11   :  { %17400 = sst [smem:[#allocation127_spill]] %s17082_s16 }
  0x12   :  { %17401 = sst [smem:[#allocation128_spill]] %s17087_s21 }
  0x13   :  { %17402 = sst [smem:[#allocation129_spill]] %s17089_s23 }
  0x14   :  { %17403 = sst [smem:[#allocation130_spill]] %s17090_s24 }
  0x15   :  { %17404 = sst [smem:[#allocation131_spill]] %s17093_s27 }
  0x16   :  { %34 = vsyncpa [#allocation4], 0 }
  0x17   :  { %36 = vsyncpa [#allocation4 + $0x1], 0 }
  0x18   :  { %37 = vsyncpa [#allocation5], 0 }
  0x19   :  { %39 = vsyncpa [#allocation5 + $0x1], 0  ;;  %s11267_s8 = smov 0   ;;  %s11269_s30 = smov 0  }
  0x1a   :  { %s11271_s9 = smov 0   ;;  %s11273_s5 = smov 0  }
  0x1b   :  { %s11275_s28 = smov 0   ;;  %s11277_s0 = smov 0  }
  0x1c LB: > { %17405 = sst [smem:[#allocation9_spill]] %s11097_s8  ;;  %s9035_s22 = sadd.s32 4294967295, %s11117_s0   ;;  %s11117_s0 = sphi %s11277_s0, %s45_s0   ;;  %s11113_s28 = sphi %s11275_s28, %s17880_s28   ;;  %s11109_s5 = sphi %s11273_s5, %s17879_s5   ;;  %s11105_s9 = sphi %s11271_s9, %s17883_s9   ;;  %s11101_s30 = sphi %s11269_s30, %s17882_s30   ;;  %s11097_s8 = sphi %s11267_s8, %s17881_s8  }
  0x1d   : > { %17406 = sst [smem:[#allocation10_spill]] %s11113_s28  ;;  %s9036_s10 = sadd.s32 4294967294, %s11117_s0  }
  0x1e   : > { %s57_s29 = sadd.s32 1, %s11113_s28  ;;  %s66_s1 = sadd.s32 1, %s11105_s9 }
  0x1f   : > { %p59_p0 = scmp.ge.s32.totalorder %s57_s29, 2  ;;  %p73_p1 = scmp.ne.s32.totalorder %s11105_s9, %s11101_s30 }
  0x20   : > { %p74_p2 = scmp.eq.s32.totalorder %s11117_s0, 0  ;;  %p79_p3 = scmp.ne.s32.totalorder %s11101_s30, %s11097_s8 }
  0x21   : > { %s17885_s29 = smov (%p59_p0, %s57_s29), 0  ;;  %p80_p5 = scmp.eq.s32.totalorder %s9035_s22, 0 }
  0x22   : > { %17407 = sst [smem:[#allocation11_spill]] %s17885_s29  ;;  %p11308_p4 = por %p74_p2, %p73_p1 }
  0x23   : > { %s61_s11 = ssub.s32 %s11113_s28, %s17885_s29  ;;  %p672_p6 = scmp.eq.s32.totalorder %s9035_s22, 1 }
  0x24   : > { %p64_p7 = scmp.eq.s32.totalorder %s61_s11, 0  ;;  %p11314_p8 = por %p80_p5, %p79_p3 }
  0x25   : > { %p11318_p9 = por %p672_p6, %p73_p1  ;;  %p678_p10 = scmp.eq.s32.totalorder %s9036_s10, 1 }
  0x26   : > { %s11323_s7 = scalar_select %p64_p7, %s11105_s9, %s66_s1  }
  0x27   : > { %s17410_s3 = scalar_select %p11318_p9, 1, 0 }
  0x28   : > { %17412 = sst [smem:[#allocation13_spill]] %s11323_s7  ;;  %p11325_p11 = por %p678_p10, %p79_p3 }
  0x29   : > { %17411 = sst [smem:[#allocation12_spill]] %s17410_s3  ;;  %p9038_p12 = scmp.ge.s32.totalorder %s11117_s0, 2 }
  0x2a   : > { %s17413_s4 = scalar_select %p11325_p11, 1, 0 }
  0x2b   : > { %p10010_p13 = scmp.lt.s32.totalorder %s11117_s0, 2  ;;  %s767_s22 = sand.u32 1, %s11105_s9  }
  0x2c   : > { %17414 = sst [smem:[#allocation14_spill]] %s17413_s4  ;;  %s9993_s11 = smul.u32 384, %s767_s22 }
  0x2d   : > { %s9994_s29 = smul.u32 384, %s11113_s28  ;;  %p10003_p0 = pnand %p10010_p13, %p11308_p4 }
  0x2e   : > { %s17415_s23 = sld [smem:[#allocation111_spill]]  ;;  %s771_s24 = scalar_lea.vmem [#allocation3], %s9993_s11 }
  0x2f   : > { %s781_s10 = sshll.u32 %s771_s24, 4  ;;  %p9040_p1 = scmp.ge.s32.totalorder %s11117_s0, 1  ;;  %s782_s10 = int_to_ptr.vmem [resolvable:$true] %s781_s10 }
  0x30   : > { %s768_s7 = scalar_lea.sflag [#allocation4], %s767_s22  ;;  %s11119_s4 = smov 512  }
  0x31   : > { %s11120_s21 = smov 32   ;;  %p826_p2 = scmp.lt.s32.totalorder %s11117_s0, 3 }
  0x33   : > { %p827_p3 = pnand %p9040_p1, %p826_p2 }
  0x34   : > { %s778_s3 = scalar_lea.hbm %s17415_s23, %s9994_s29 }
  0x35   : > { %s779_s1 = sshll.u32 %s778_s3, 4  ;;  %830 = sbr.rel (%p827_p3) target bundleno = 4373 (0x1115), region = 128  ;;  %s780_s1 = int_to_ptr.hbm [resolvable:$true] %s779_s1 }
  0x36   : > { %10005 = dma.hbm_to_vmem [thread:$0]  (!%p10003_p0), %s780_s1, 6144, %s782_s10, %s768_s7, %s11119_s4, %s11119_s4, %s11120_s21  }
  0x3a   : > { %s11341_s6 = sand.u32 1, %s11101_s30  }
  0x3b   : > { %s9995_s23 = smul.u32 384, %s11341_s6  ;;  %s833_s27 = scalar_lea.sflag [#allocation4], %s11341_s6 }
  0x3d   : > { %s11345_s24 = scalar_lea.vmem [#allocation3], %s9995_s23 }
  0x3e   : > { %11088 = dma.done.wait (%p11314_p8), %s833_s27, 6144  }
  0x3f   : > { %11090 = vsyncadd (%p11314_p8), %s833_s27, 4294961152  ;;  %p935_p4 = scmp.lt.s32.totalorder %s11109_s5, 1  ;;  %v11121_v1 = vmov 0   ;;  %s17416_s7 = sld [smem:[#allocation112_spill]]  ;;  %vm1013_vm0 = vcmask 1042432   ;;  %vm1006_vm1 = vcmask 23552  }
  0x40   : > { %10066 = vset.pattern.permute.xlu1 %v11121_v1  ;;  %10065 = vset.pattern.permute.xlu0 %v11121_v1  ;;  %s17417_s2 = sld [smem:[#allocation117_spill]]  ;;  %v4062_v28 = vld [vmem:[%s17084_s18 + $0x18] sm:$0xff]  ;;  %v4063_v29 = vld [vmem:[%s17084_s18 + $0x20] sm:$0x1]  ;;  %v4060_v31 = vld [vmem:[%s17084_s18 + $0x8] sm:$0xff]  ;;  %vm1226_vm5 = vcmask 130048  }
  0x41   : > { %s11353_s21 = scalar_select %p935_p4, %s11109_s5, 1  ;;  %10067 = vset.pattern.permute.xlu2 %v11121_v1  ;;  %v4059_v30 = vld [vmem:[%s17084_s18] sm:$0xff]  ;;  %v4482_v32 = vld [vmem:[%s17086_s20 + $0x8] sm:$0xff]  ;;  %v4483_v33 = vld [vmem:[%s17086_s20 + $0x10] sm:$0xff] }
  0x42   : > { %s17418_s23 = sld [smem:[#allocation116_spill]]  ;;  %v8670_v34 = vld [vmem:[%s17091_s25] sm:$0xff]  ;;  %v4730_v35 = vld [vmem:[#allocation2] sm:$0x1]  ;;  %v8673_v36 = vld [vmem:[%s17091_s25 + $0x18] sm:$0xff] }
  0x43   : > { %s9996_s8 = smul.u32 48, %s11353_s21  ;;  %s17419_s11 = sld [smem:[#allocation115_spill]]  ;;  %v8672_v37 = vld [vmem:[%s17091_s25 + $0x10] sm:$0xff]  ;;  %v8731_v39 = vld [vmem:[%s17092_s26 + $0x8] sm:$0xff] }
  0x44   : > { %s17420_s27 = sld [smem:[#allocation119_spill]]  ;;  %v8732_v38 = vld [vmem:[%s17092_s26 + $0x10] sm:$0xff]  ;;  %s9997_s1 = smul.u32 12, %s11353_s21 }
  0x45   : > { %s11359_s4 = scalar_lea.vmem %s17416_s7, %s9996_s8  ;;  %s17421_s12 = sld [smem:[#allocation123_spill]] }
  0x46   : > { %v1115_v2 = vld [vmem:[%s17417_s2 + $0x8] sm:$0xff]  ;;  %v963_v4 = vld [vmem:[%s11359_s4] sm:$0x77]  ;;  %v9095_v8 = vld [vmem:[%s11359_s4 + $0x10] sm:$0x77]  ;;  %s17422_s14 = sld [smem:[#allocation125_spill]] }
  0x47   : > { %1123 = vperm.xlu1 %10066, %v1115_v2   ;;  %999 = vst [vmem:[#allocation1] ss:$2 sm:$0xff] %v963_v4  ;;  %v964_v5 = vld [vmem:[%s11359_s4 + $0x8] sm:$0x77]  ;;  %v1114_v6 = vld [vmem:[%s17417_s2] sm:$0xff]  ;;  %s17423_s16 = sld [smem:[#allocation127_spill]] }
  0x48   : > { %v969_v3 = vld [vmem:[%s17418_s23 + $0x8] sm:$0xff]  ;;  %1001 = vst [vmem:[#allocation1 + $0x10] ss:$2 sm:$0xff] %v964_v5  ;;  %v968_v7 = vld [vmem:[%s17418_s23] sm:$0xff]  ;;  %v9096_v9 = vld [vmem:[%s11359_s4 + $0x18] sm:$0x77] }
  0x49   : > { %977 = vperm.xlu0 %10065, %v969_v3   ;;  %v11380_v10 = vld [vmem:[%s17419_s11] sm:$0xff]  ;;  %v11403_v17 = vld [vmem:[%s17419_s11 + $0x8] sm:$0xff]  ;;  %s17424_s3 = sld [smem:[#allocation113_spill]]  ;;  %s9992_s11 = sshll.u32 %s11109_s5, 7 }
  0x4a   : > { %v1202_v15 = vld [vmem:[%s17420_s27] sm:$0xff]  ;;  %v1203_v16 = vld [vmem:[%s17420_s27 + $0x8] sm:$0xff]  ;;  %s17425_s7 = sld [smem:[#allocation118_spill]]  ;;  %s8883_s5 = scalar_lea.sflag [#allocation5], %s11341_s6 }
  0x4b   : > { %v3038_v18 = vld [vmem:[%s17421_s12 + $0x28] sm:$0xff]  ;;  %v3039_v19 = vld [vmem:[%s17421_s12 + $0x30] sm:$0xff]  ;;  %v3036_v21 = vld [vmem:[%s17421_s12 + $0x18] sm:$0xff]  ;;  %s17535_s21 = sld [smem:[#allocation122_spill]] }
  0x4c   : > { %v3035_v20 = vld [vmem:[%s17421_s12 + $0x10] sm:$0xff]  ;;  %v3540_v22 = vld [vmem:[%s17422_s14 + $0x18] sm:$0xff]  ;;  %v3033_v23 = vld [vmem:[%s17421_s12] sm:$0xff]  ;;  %s17620_s13 = sld [smem:[#allocation124_spill]] }
  0x4d   : > { %v3537_v24 = vld [vmem:[%s17422_s14] sm:$0xff]  ;;  %v3538_v25 = vld [vmem:[%s17422_s14 + $0x8] sm:$0xff]  ;;  %v3808_v27 = vld [vmem:[%s17423_s16 + $0x10] sm:$0xff]  ;;  %s17630_s15 = sld [smem:[#allocation126_spill]] }
  0x4e   : > { %v1002_v11 = vld.sshfl [vmem:[#allocation1] sm:$0xff pattern:$0x75316420]  ;;  %v1003_v12 = vld.sshfl [vmem:[#allocation1 + $0x8] sm:$0xff pattern:$0x75316420] }
  0x4f   : > { %1118 = vperm.xlu1 %10066, %v1114_v6   ;;  %9043 = vmatpush.msk.msra.mxu0 %vm1013_vm0, %v1002_v11  ;;  %1492 = vst [vmem:[#allocation1] ss:$2 sm:$0xff] %v9095_v8  ;;  %v1004_v13 = vld.sshfl [vmem:[#allocation1 + $0x10] sm:$0xff pattern:$0x75316420]  ;;  %v3807_v26 = vld [vmem:[%s17423_s16 + $0x8] sm:$0xff]  ;;  %s951_s28 = scalar_lea.vmem %s17424_s3, %s9997_s1 }
  0x50   : > { %9046 = vmatpush.msk.msra.mxu1 %vm1013_vm0, %v1003_v12  ;;  %9049 = vmatpush.msk.msra.mxu2 %vm1013_vm0, %v1004_v13  ;;  %v1005_v14 = vld.sshfl [vmem:[#allocation1 + $0x18] sm:$0xff pattern:$0x75316420]  ;;  %v9097_v40 = vld [vmem:[%s951_s28 + $0x4] sm:$0xf]  ;;  %s17508_s3 = sld [smem:[#allocation121_spill]] }
  0x51   : > { %972 = vperm.xlu0 %10065, %v968_v7   ;;  %9044 = vmatmul.msk.f32.vlgmr.msra.gmra.mxu0 %vm1006_vm1, %v11380_v10  ;;  %1494 = vst [vmem:[#allocation1 + $0x10] ss:$2 sm:$0xff] %v9096_v9  ;;  %v1474_v41 = vperm.slane %v9097_v40, 0  ;;  %v1475_v42 = vperm.slane %v9097_v40, 1  ;;  %v1476_v43 = vperm.slane %v9097_v40, 2  ;;  %v1477_v44 = vperm.slane %v9097_v40, 3 }
  0x52   : > { %9052 = vmatpush.msk.msra.mxu3 %vm1013_vm0, %v1005_v14  ;;  %9047 = vmatmul.msk.f32.vlgmr.msra.gmra.mxu1 %vm1006_vm1, %v11380_v10  ;;  %v9169_v50 = vld [vmem:[%s951_s28 + $0x8] sm:$0xf]  ;;  %v965_v0 = vld [vmem:[%s951_s28] sm:$0xf]  ;;  %s17428_s28 = sld [smem:[#allocation114_spill]] }
  0x53   : > { %9050 = vmatmul.msk.f32.vlgmr.msra.gmra.mxu2 %vm1006_vm1, %v11380_v10  ;;  %9053 = vmatmul.msk.f32.vlgmr.msra.gmra.mxu3 %vm1006_vm1, %v11380_v10  ;;  %v1908_v51 = vperm.slane %v9169_v50, 0  ;;  %v1909_v52 = vperm.slane %v9169_v50, 1  ;;  %v1910_v53 = vperm.slane %v9169_v50, 2  ;;  %v1911_v54 = vperm.slane %v9169_v50, 3  ;;  %s17655_s8 = sld [smem:[#allocation128_spill]] }
  0x54   : > { %v981_v6 = vperm.slane %v965_v0, 0  ;;  %v982_v7 = vperm.slane %v965_v0, 1  ;;  %v983_v14 = vperm.slane %v965_v0, 2  ;;  %s17835_s29 = sld [smem:[#allocation130_spill]] }
  0x55   : > { %s17874_s10 = sld [smem:[#allocation131_spill]] }
  0x57   : > { %1208 = vperm.xlu1 %10066, %v1202_v15   ;;  %v984_v15 = vperm.slane %v965_v0, 3 }
  0x58   : > { %s11835_s2 = scalar_lea.vmem %s17428_s28, %s9997_s1  ;;  %s17839_s28 = sld [smem:[#allocation129_spill]] }
  0x59   : > { %1213 = vperm.xlu0 %10065, %v1203_v16   ;;  %9045 = vmatmul.msk.f32.gmra.mxu0 %vm1006_vm1, %v11403_v17 }
  0x5a   : > { %9048 = vmatmul.msk.f32.gmra.mxu1 %vm1006_vm1, %v11403_v17 }
  0x5b   : > { %9051 = vmatmul.msk.f32.gmra.mxu2 %vm1006_vm1, %v11403_v17  ;;  %9054 = vmatmul.msk.f32.gmra.mxu3 %vm1006_vm1, %v11403_v17 }
  0x5e   : > { %s17840_s23 = smov %s17839_s28 }
  0x5f   : > { %3068 = vperm.xlu1 %10066, %v3038_v18  }
  0x61   : > { %3073 = vperm.xlu0 %10065, %v3039_v19  }
  0x67   : > { %3053 = vperm.xlu1 %10066, %v3035_v20  }
  0x69   : > { %3058 = vperm.xlu0 %10065, %v3036_v21  }
  0x6f   : > { %3558 = vperm.xlu1 %10066, %v3540_v22  }
  0x71   : > { %3043 = vperm.xlu0 %10065, %v3033_v23  }
  0x77   : > { %3543 = vperm.xlu1 %10066, %v3537_v24  }
  0x79   : > { %3548 = vperm.xlu0 %10065, %v3538_v25  }
  0x7f   : > { %3817 = vperm.xlu1 %10066, %v3807_v26  }
  0x81   : > { %3822 = vperm.xlu0 %10065, %v3808_v27  }
  0x87   : > { %4081 = vperm.xlu1 %10066, %v4062_v28  }
  0x89   : > { %4086 = vperm.xlu0 %10065, %v4063_v29  }
  0x8f   : > { %4066 = vperm.xlu1 %10066, %v4059_v30  }
  0x91   : > { %4071 = vperm.xlu0 %10065, %v4060_v31  }
  0x97   : > { %4492 = vperm.xlu1 %10066, %v4482_v32  }
  0x99   : > { %4497 = vperm.xlu0 %10065, %v4483_v33  }
  0x9f   : > { %8676 = vperm.xlu1 %10066, %v8670_v34  }
  0xa1   : > { %4733 = vperm.xlu0 %10065, %v4730_v35  }
  0xa7   : > { %8691 = vperm.xlu1 %10066, %v8673_v36  }
  0xa9   : > { %8686 = vperm.xlu0 %10065, %v8672_v37  }
  0xaf   : > { %8746 = vperm.xlu1 %10066, %v8732_v38  }
  0xb1   : > { %8741 = vperm.xlu0 %10065, %v8731_v39  }
  0xb9   : > { %v11514_v5 = vpop.permute.xlu1 %1123 }
  0xbb   : > { %v978_v45 = vpop.permute.xlu0 %977 }
  0xbc   : > { %v11482_v46 = vmul.f32 %v1474_v41, %v978_v45  ;;  %v11484_v47 = vmul.f32 %v1475_v42, %v978_v45  ;;  %v11486_v48 = vmul.f32 %v1476_v43, %v978_v45  ;;  %v11488_v49 = vmul.f32 %v1477_v44, %v978_v45 }
  0xbd   : > { %v11490_v55 = vmul.f32 %v1908_v51, %v978_v45  ;;  %v11492_v56 = vmul.f32 %v1909_v52, %v978_v45  ;;  %v11494_v57 = vmul.f32 %v1910_v53, %v978_v45  ;;  %v11496_v58 = vmul.f32 %v1911_v54, %v978_v45 }
  0xbe   : > { %v993_v23 = vmul.f32 %v981_v6, %v978_v45  ;;  %v994_v24 = vmul.f32 %v982_v7, %v978_v45  ;;  %v996_v50 = vmul.f32 %v984_v15, %v978_v45 }
  0xc1   : > { %v11516_v18 = vpop.permute.xlu1 %1118 }
  0xc3   : > { %v973_v59 = vpop.permute.xlu0 %972 }
  0xc4   : > { %v11498_v60 = vmul.f32 %v1474_v41, %v973_v59  ;;  %v11500_v61 = vmul.f32 %v1475_v42, %v973_v59  ;;  %v11502_v62 = vmul.f32 %v1476_v43, %v973_v59  ;;  %v11504_v63 = vmul.f32 %v1477_v44, %v973_v59 }
  0xc5   : > { %v11506_v1 = vmul.f32 %v1908_v51, %v973_v59  ;;  %v11508_v2 = vmul.f32 %v1909_v52, %v973_v59  ;;  %v11510_v3 = vmul.f32 %v1910_v53, %v973_v59  ;;  %v11512_v4 = vmul.f32 %v1911_v54, %v973_v59 }
  0xc6   : > { %v989_v8 = vmul.f32 %v981_v6, %v973_v59  ;;  %v990_v9 = vmul.f32 %v982_v7, %v973_v59  ;;  %v991_v21 = vmul.f32 %v983_v14, %v973_v59  ;;  %v992_v22 = vmul.f32 %v984_v15, %v973_v59 }
  0xc7   : > { %v995_v44 = vmul.f32 %v983_v14, %v978_v45 }
  0xce   : > { %v1039_v11 = vpop.f32.mrf.mxu0 }
  0xcf   : > { %v1040_v12 = vadd.f32 %v1039_v11, %v989_v8  ;;  %v1062_v13 = vpop.f32.mrf.mxu1 }
  0xd0   : > { %v1063_v16 = vadd.f32 %v1062_v13, %v990_v9 }
  0xd1   : > { %v11519_v19 = vadd.f32 %v11516_v18, %v1040_v12 }
  0xd2   : > { %v11522_v20 = vadd.f32 %v11516_v18, %v1063_v16 }
  0xd3   : > { %v1142_v27 = vmin.f32 %v11519_v19, 0.0  ;;  %vm1134_vm4 = vcmp.gt.f32.partialorder %v11519_v19, 0.0 }
  0xd4   : > { %v1143_v32 = vmin.f32 %v11522_v20, 0.0  ;;  %vm1135_vm6 = vcmp.gt.f32.partialorder %v11522_v20, 0.0 }
  0xd5   : > { %v1150_v39 = vmul.f32 1.442695, %v1142_v27 }
  0xd6   : > { %v1085_v25 = vpop.f32.mrf.mxu2  ;;  %v1108_v26 = vpop.f32.mrf.mxu3  ;;  %v1152_v40 = vmul.f32 1.442695, %v1143_v32 }
  0xd7   : > { %v1086_v28 = vadd.f32 %v1085_v25, %v991_v21  ;;  %v1109_v29 = vadd.f32 %v1108_v26, %v992_v22  ;;  %v1042_v30 = vpop.f32.mrf.mxu0  ;;  %v1065_v31 = vpop.f32.mrf.mxu1  ;;  %10068 = vpow2.f32 %v1150_v39 }
  0xd8   : > { %v1043_v33 = vadd.f32 %v1042_v30, %v993_v23  ;;  %v1066_v34 = vadd.f32 %v1065_v31, %v994_v24  ;;  %10070 = vpow2.f32 %v1152_v40  ;;  %v11542_v30 = vld [vmem:[%s17425_s7] sm:$0xff] }
  0xd9   : > { %v11527_v35 = vadd.f32 %v11516_v18, %v1086_v28  ;;  %v11530_v36 = vadd.f32 %v11516_v18, %v1109_v29 }
  0xda   : > { %v1130_v37 = vadd.f32 %v11514_v5, %v1043_v33  ;;  %v1131_v38 = vadd.f32 %v11514_v5, %v1066_v34 }
  0xdb   : > { %v1144_v43 = vmin.f32 %v11527_v35, 0.0  ;;  %v1145_v51 = vmin.f32 %v11530_v36, 0.0  ;;  %vm1136_vm9 = vcmp.gt.f32.partialorder %v11527_v35, 0.0  ;;  %vm1137_vm10 = vcmp.gt.f32.partialorder %v11530_v36, 0.0 }
  0xdc   : > { %v1146_v41 = vmin.f32 %v1130_v37, 0.0  ;;  %v1147_v42 = vmin.f32 %v1131_v38, 0.0  ;;  %vm1138_vm2 = vcmp.gt.f32.partialorder %v1130_v37, 0.0  ;;  %vm1139_vm3 = vcmp.gt.f32.partialorder %v1131_v38, 0.0 }
  0xdd   : > { %v1154_v7 = vmul.f32 1.442695, %v1144_v43  ;;  %v1156_v11 = vmul.f32 1.442695, %v1145_v51  ;;  %v10069_v13 = vpop.eup %10068  ;;  %v9168_v51 = vld [vmem:[%s11359_s4 + $0x28] sm:$0x77] }
  0xde   : > { %v1088_v52 = vpop.f32.mrf.mxu2  ;;  %v1111_v53 = vpop.f32.mrf.mxu3  ;;  %v1158_v54 = vmul.f32 1.442695, %v1146_v41  ;;  %v1160_v59 = vmul.f32 1.442695, %v1147_v42  ;;  %v9055_v24 = vadd.f32 -1.0, %v10069_v13 }
  0xdf   : > { %v1089_v0 = vadd.f32 %v1088_v52, %v995_v44  ;;  %v1112_v6 = vadd.f32 %v1111_v53, %v996_v50  ;;  %v10071_v14 = vpop.eup %10070  ;;  %v9167_v42 = vld [vmem:[%s11359_s4 + $0x20] sm:$0x77]  ;;  %v1497_v43 = vld.sshfl [vmem:[#allocation1 + $0x10] sm:$0xff pattern:$0x75316420]  ;;  %s17534_s4 = sld [smem:[#allocation120_spill]] }
  0xe0   : > { %10072 = vpow2.f32 %v1158_v54  ;;  %v9056_v26 = vadd.f32 -1.0, %v10071_v14  ;;  %v1174_v32 = vsel %vm1134_vm4, %v11519_v19, %v9055_v24  ;;  %v1498_v50 = vld.sshfl [vmem:[#allocation1 + $0x18] sm:$0xff pattern:$0x75316420]  ;;  %v11561_v54 = vld [vmem:[%s17425_s7 + $0x8] sm:$0xff] }
  0xe1   : > { %v1132_v8 = vadd.f32 %v11514_v5, %v1089_v0  ;;  %v1133_v9 = vadd.f32 %v11514_v5, %v1112_v6  ;;  %10074 = vpow2.f32 %v1160_v59  ;;  %1928 = vst [vmem:[#allocation1 + $0x10] ss:$2 sm:$0xff] %v9168_v51  ;;  %v11593_v0 = vld [vmem:[%s17425_s7 + $0x18] sm:$0xff]  ;;  %v1204_v6 = vld [vmem:[%s17420_s27 + $0x10] sm:$0xff] }
  0xe2   : > { %10076 = vpow2.f32 %v1154_v7  ;;  %v1175_v33 = vsel %vm1135_vm6, %v11522_v20, %v9056_v26 }
  0xe3   : > { %v1148_v12 = vmin.f32 %v1132_v8, 0.0  ;;  %v1149_v45 = vmin.f32 %v1133_v9, 0.0  ;;  %10078 = vpow2.f32 %v1156_v11  ;;  %vm1140_vm7 = vcmp.gt.f32.partialorder %v1132_v8, 0.0 }
  0xe4   : > { %vm1141_vm8 = vcmp.gt.f32.partialorder %v1133_v9, 0.0 }
  0xe5   : > { %v1162_v15 = vmul.f32 1.442695, %v1148_v12  ;;  %v1164_v16 = vmul.f32 1.442695, %v1149_v45 }
  0xe6   : > { %v10073_v21 = vpop.eup %10072 }
  0xe7   : > { %v10075_v22 = vpop.eup %10074  ;;  %v9059_v23 = vadd.f32 -1.0, %v10073_v21  ;;  %10080 = vpow2.f32 %v1162_v15 }
  0xe8   : > { %v9060_v25 = vadd.f32 -1.0, %v10075_v22  ;;  %10082 = vpow2.f32 %v1164_v16  ;;  %v10077_v28 = vpop.eup %10076 }
  0xe9   : > { %v1178_v27 = vsel %vm1138_vm2, %v1130_v37, %v9059_v23  ;;  %v10079_v31 = vpop.eup %10078  ;;  %v1495_v37 = vld.sshfl [vmem:[#allocation1] sm:$0xff pattern:$0x75316420]  ;;  %v9057_v40 = vadd.f32 -1.0, %v10077_v28 }
  0xea   : > { %1253 = vmatpush.msrb.mxu0 %v1178_v27  ;;  %v1179_v29 = vsel %vm1139_vm3, %v1131_v38, %v9060_v25  ;;  %v1496_v38 = vld.sshfl [vmem:[#allocation1 + $0x8] sm:$0xff pattern:$0x75316420]  ;;  %v9058_v41 = vadd.f32 -1.0, %v10079_v31 }
  0xeb   : > { %1282 = vmatpush.msrb.mxu1 %v1179_v29  ;;  %1926 = vst [vmem:[#allocation1] ss:$2 sm:$0xff] %v9167_v42  ;;  %v1176_v53 = vsel %vm1136_vm9, %v11527_v35, %v9057_v40  ;;  %v11577_v35 = vld [vmem:[%s17425_s7 + $0x10] sm:$0xff]  ;;  %s11055_s7 = scalar_lea.hbm %s17874_s10, 256 }
  0xec   : > { %1254 = vmatpush.msrb.mxu0 %v1174_v32  ;;  %v1177_v59 = vsel %vm1137_vm10, %v11530_v36, %v9058_v41  ;;  %v1205_v36 = vld [vmem:[%s17420_s27 + $0x18] sm:$0xff] }
  0xed   : > { %v10081_v34 = vpop.eup %10080  ;;  %1283 = vmatpush.msrb.mxu1 %v1175_v33  ;;  %9063 = vmatmul.msk.f32.vlgmr.msrb.gmra.mxu0 %vm1226_vm5, %v11542_v30 }
  0xee   : > { %v10083_v39 = vpop.eup %10082  ;;  %9067 = vmatmul.msk.f32.vlgmr.msrb.gmra.mxu1 %vm1226_vm5, %v11542_v30  ;;  %v9061_v19 = vadd.f32 -1.0, %v10081_v34  ;;  %9098 = vmatpush.msk.msra.mxu0 %vm1013_vm0, %v1495_v37 }
  0xef   : > { %v9062_v20 = vadd.f32 -1.0, %v10083_v39  ;;  %9101 = vmatpush.msk.msra.mxu1 %vm1013_vm0, %v1496_v38  ;;  %1223 = vperm.xlu2 %10067, %v1205_v36  }
  0xf0   : > { %v1180_v44 = vsel %vm1140_vm7, %v1132_v8, %v9061_v19 }
  0xf1   : > { %1311 = vmatpush.msrb.mxu2 %v1180_v44  ;;  %v1181_v52 = vsel %vm1141_vm8, %v1133_v9, %v9062_v20 }
  0xf2   : > { %1340 = vmatpush.msrb.mxu3 %v1181_v52 }
  0xf3   : > { %1312 = vmatpush.msrb.mxu2 %v1176_v53 }
  0xf4   : > { %1341 = vmatpush.msrb.mxu3 %v1177_v59  ;;  %9071 = vmatmul.msk.f32.vlgmr.msrb.gmra.mxu2 %vm1226_vm5, %v11542_v30 }
  0xf5   : > { %9075 = vmatmul.msk.f32.vlgmr.msrb.gmra.mxu3 %vm1226_vm5, %v11542_v30  ;;  %9064 = vmatmul.msk.f32.gmra.mxu0 %vm1226_vm5, %v11561_v54 }
  0xf6   : > { %9068 = vmatmul.msk.f32.gmra.mxu1 %vm1226_vm5, %v11561_v54  ;;  %9104 = vmatpush.msk.msra.mxu2 %vm1013_vm0, %v1497_v43 }
  0xf7   : > { %9107 = vmatpush.msk.msra.mxu3 %vm1013_vm0, %v1498_v50  ;;  %1218 = vperm.xlu2 %10067, %v1204_v6  }
  0xfc   : > { %9072 = vmatmul.msk.f32.gmra.mxu2 %vm1226_vm5, %v11561_v54 }
  0xfd   : > { %9076 = vmatmul.msk.f32.gmra.mxu3 %vm1226_vm5, %v11561_v54  ;;  %9065 = vmatmul.msk.f32.gmra.mxu0 %vm1226_vm5, %v11577_v35 }
  0xfe   : > { %9069 = vmatmul.msk.f32.gmra.mxu1 %vm1226_vm5, %v11577_v35 }
 0x104   : > { %9073 = vmatmul.msk.f32.gmra.mxu2 %vm1226_vm5, %v11577_v35 }
 0x105   : > { %9077 = vmatmul.msk.f32.gmra.mxu3 %vm1226_vm5, %v11577_v35  ;;  %9066 = vmatmul.msk.f32.gmra.mxu0 %vm1226_vm5, %v11593_v0 }
 0x106   : > { %9070 = vmatmul.msk.f32.gmra.mxu1 %vm1226_vm5, %v11593_v0 }
 0x10c   : > { %9074 = vmatmul.msk.f32.gmra.mxu2 %vm1226_vm5, %v11593_v0 }
 0x10d   : > { %9078 = vmatmul.msk.f32.gmra.mxu3 %vm1226_vm5, %v11593_v0  ;;  %9099 = vmatmul.msk.f32.vlgmr.msra.gmra.mxu0 %vm1006_vm1, %v11380_v10 }
 0x10e   : > { %9102 = vmatmul.msk.f32.vlgmr.msra.gmra.mxu1 %vm1006_vm1, %v11380_v10 }
 0x114   : > { %9105 = vmatmul.msk.f32.vlgmr.msra.gmra.mxu2 %vm1006_vm1, %v11380_v10 }
 0x115   : > { %9108 = vmatmul.msk.f32.vlgmr.msra.gmra.mxu3 %vm1006_vm1, %v11380_v10  ;;  %9100 = vmatmul.msk.f32.gmra.mxu0 %vm1006_vm1, %v11403_v17 }
 0x116   : > { %9103 = vmatmul.msk.f32.gmra.mxu1 %vm1006_vm1, %v11403_v17 }
 0x11c   : > { %9106 = vmatmul.msk.f32.gmra.mxu2 %vm1006_vm1, %v11403_v17 }
 0x11d   : > { %9109 = vmatmul.msk.f32.gmra.mxu3 %vm1006_vm1, %v11403_v17 }
 0x16a   : > { %v11626_v7 = vpop.f32.mrf.mxu0 }
 0x16b   : > { %v11628_v8 = vpop.f32.mrf.mxu1 }
 0x172   : > { %v11630_v9 = vpop.f32.mrf.mxu0 }
 0x173   : > { %v11632_v11 = vpop.f32.mrf.mxu1 }
 0x177   : > { %v11634_v12 = vpop.f32.mrf.mxu2 }
 0x178   : > { %v11636_v45 = vpop.f32.mrf.mxu3 }
 0x17a   : > { %v11638_v13 = vpop.f32.mrf.mxu0 }
 0x17b   : > { %v11640_v14 = vpop.f32.mrf.mxu1 }
 0x17f   : > { %v11642_v15 = vpop.f32.mrf.mxu2 }
 0x180   : > { %v11644_v16 = vpop.f32.mrf.mxu3 }
 0x182   : > { %v11646_v21 = vpop.f32.mrf.mxu0 }
 0x183   : > { %v11648_v22 = vpop.f32.mrf.mxu1 }
 0x187   : > { %v11650_v23 = vpop.f32.mrf.mxu2 }
 0x188   : > { %v11652_v24 = vpop.f32.mrf.mxu3 }
 0x18a   : > { %v1524_v25 = vpop.f32.mrf.mxu0 }
 0x18b   : > { %v1547_v26 = vpop.f32.mrf.mxu1  ;;  %v1525_v27 = vadd.f32 %v1524_v25, %v11498_v60 }
 0x18c   : > { %v1548_v31 = vadd.f32 %v1547_v26, %v11500_v61 }
 0x18d   : > { %v1599_v28 = vadd.f32 %v1525_v27, %v11516_v18 }
 0x18e   : > { %v1600_v37 = vadd.f32 %v1548_v31, %v11516_v18 }
 0x18f   : > { %v11656_v29 = vpop.f32.mrf.mxu2  ;;  %v1615_v34 = vmin.f32 %v1599_v28, 0.0  ;;  %vm1607_vm13 = vcmp.gt.f32.partialorder %v1599_v28, 0.0 }
 0x190   : > { %v11659_v32 = vpop.f32.mrf.mxu3  ;;  %v1616_v42 = vmin.f32 %v1600_v37, 0.0  ;;  %vm1608_vm14 = vcmp.gt.f32.partialorder %v1600_v37, 0.0 }
 0x191   : > { %v1623_v41 = vmul.f32 1.442695, %v1615_v34 }
 0x192   : > { %v1527_v33 = vpop.f32.mrf.mxu0 }
 0x193   : > { %v1528_v38 = vadd.f32 %v1527_v33, %v11482_v46  ;;  %v1550_v39 = vpop.f32.mrf.mxu1  ;;  %10084 = vpow2.f32 %v1623_v41 }
 0x194   : > { %v1551_v40 = vadd.f32 %v1550_v39, %v11484_v47  ;;  %v1625_v47 = vmul.f32 1.442695, %v1616_v42 }
 0x195   : > { %v1603_v19 = vadd.f32 %v1528_v38, %v11514_v5 }
 0x196   : > { %v1604_v61 = vadd.f32 %v1551_v40, %v11514_v5 }
 0x197   : > { %v1570_v60 = vpop.f32.mrf.mxu2  ;;  %v1619_v43 = vmin.f32 %v1603_v19, 0.0  ;;  %vm1611_vm11 = vcmp.gt.f32.partialorder %v1603_v19, 0.0 }
 0x198   : > { %v1593_v20 = vpop.f32.mrf.mxu3  ;;  %v1571_v44 = vadd.f32 %v1570_v60, %v11502_v62  ;;  %v1620_v52 = vmin.f32 %v1604_v61, 0.0  ;;  %vm1612_vm12 = vcmp.gt.f32.partialorder %v1604_v61, 0.0 }
 0x199   : > { %v1594_v50 = vadd.f32 %v1593_v20, %v11504_v63  ;;  %v1631_v51 = vmul.f32 1.442695, %v1619_v43  ;;  %v10085_v26 = vpop.eup %10084 }
 0x19a   : > { %v11669_v46 = vadd.f32 %v1571_v44, %v11516_v18  ;;  %v1633_v59 = vmul.f32 1.442695, %v1620_v52  ;;  %v9110_v42 = vadd.f32 -1.0, %v10085_v26 }
 0x19b   : > { %v11672_v53 = vadd.f32 %v1594_v50, %v11516_v18  ;;  %10086 = vpow2.f32 %v1631_v51 }
 0x19c   : > { %v1617_v36 = vmin.f32 %v11669_v46, 0.0  ;;  %10088 = vpow2.f32 %v1625_v47  ;;  %v1647_v47 = vsel %vm1607_vm13, %v1599_v28, %v9110_v42  ;;  %vm1609_vm3 = vcmp.gt.f32.partialorder %v11669_v46, 0.0 }
 0x19d   : > { %10090 = vpow2.f32 %v1633_v59  ;;  %v1618_v62 = vmin.f32 %v11672_v53, 0.0  ;;  %v1929_v59 = vld.sshfl [vmem:[#allocation1] sm:$0xff pattern:$0x75316420]  ;;  %vm1610_vm4 = vcmp.gt.f32.partialorder %v11672_v53, 0.0 }
 0x19e   : > { %v1627_v31 = vmul.f32 1.442695, %v1617_v36 }
 0x19f   : > { %v1573_v6 = vpop.f32.mrf.mxu2  ;;  %v1629_v39 = vmul.f32 1.442695, %v1618_v62 }
 0x1a0   : > { %v1574_v63 = vadd.f32 %v1573_v6, %v11486_v48  ;;  %v1596_v25 = vpop.f32.mrf.mxu3  ;;  %10092 = vpow2.f32 %v1627_v31 }
 0x1a1   : > { %v1597_v27 = vadd.f32 %v1596_v25, %v11488_v49  ;;  %v10087_v34 = vpop.eup %10086  ;;  %10094 = vpow2.f32 %v1629_v39 }
 0x1a2   : > { %v1605_v33 = vadd.f32 %v1574_v63, %v11514_v5  ;;  %v10089_v40 = vpop.eup %10088  ;;  %v9114_v41 = vadd.f32 -1.0, %v10087_v34 }
 0x1a3   : > { %v1606_v38 = vadd.f32 %v1597_v27, %v11514_v5  ;;  %v10091_v20 = vpop.eup %10090  ;;  %v9111_v51 = vadd.f32 -1.0, %v10089_v40  ;;  %v1932_v40 = vld.sshfl [vmem:[#allocation1 + $0x18] sm:$0xff pattern:$0x75316420] }
 0x1a4   : > { %v1621_v60 = vmin.f32 %v1605_v33, 0.0  ;;  %v1651_v44 = vsel %vm1611_vm11, %v1603_v19, %v9114_v41  ;;  %v9115_v50 = vadd.f32 -1.0, %v10091_v20  ;;  %v1930_v19 = vld.sshfl [vmem:[#allocation1 + $0x8] sm:$0xff pattern:$0x75316420]  ;;  %vm1613_vm15 = vcmp.gt.f32.partialorder %v1605_v33, 0.0 }
 0x1a5   : > { %v1622_v43 = vmin.f32 %v1606_v38, 0.0  ;;  %1686 = vmatpush.msrb.mxu0 %v1651_v44  ;;  %v1648_v36 = vsel %vm1608_vm14, %v1600_v37, %v9111_v51  ;;  %vm1614_vm2 = vcmp.gt.f32.partialorder %v1606_v38, 0.0 }
 0x1a6   : > { %v1635_v48 = vmul.f32 1.442695, %v1621_v60  ;;  %v1652_v52 = vsel %vm1612_vm12, %v1604_v61, %v9115_v50  ;;  %v10093_v62 = vpop.eup %10092 }
 0x1a7   : > { %v1637_v49 = vmul.f32 1.442695, %v1622_v43  ;;  %1715 = vmatpush.msrb.mxu1 %v1652_v52  ;;  %1687 = vmatpush.msrb.mxu0 %v1647_v47  ;;  %v10095_v6 = vpop.eup %10094  ;;  %v9112_v25 = vadd.f32 -1.0, %v10093_v62  ;;  %v3037_v52 = vld [vmem:[%s17421_s12 + $0x20] sm:$0xff] }
 0x1a8   : > { %10096 = vpow2.f32 %v1635_v48  ;;  %9134 = vmatmul.msk.f32.vlgmr.msrb.gmra.mxu0 %vm1226_vm5, %v11542_v30  ;;  %v9113_v26 = vadd.f32 -1.0, %v10095_v6 }
 0x1a9   : > { %10098 = vpow2.f32 %v1637_v49  ;;  %1716 = vmatpush.msrb.mxu1 %v1648_v36  ;;  %9170 = vmatpush.msk.msra.mxu0 %vm1013_vm0, %v1929_v59  ;;  %v1649_v34 = vsel %vm1609_vm3, %v11669_v46, %v9112_v25  ;;  %v3034_v36 = vld [vmem:[%s17421_s12 + $0x8] sm:$0xff] }
 0x1aa   : > { %9138 = vmatmul.msk.f32.vlgmr.msrb.gmra.mxu1 %vm1226_vm5, %v11542_v30  ;;  %v1650_v39 = vsel %vm1610_vm4, %v11672_v53, %v9113_v26 }
 0x1ab   : > { %9173 = vmatpush.msk.msra.mxu1 %vm1013_vm0, %v1930_v19 }
 0x1ae   : > { %v10097_v28 = vpop.eup %10096 }
 0x1af   : > { %v10099_v61 = vpop.eup %10098  ;;  %v9116_v63 = vadd.f32 -1.0, %v10097_v28 }
 0x1b0   : > { %v9117_v37 = vadd.f32 -1.0, %v10099_v61  ;;  %9135 = vmatmul.msk.f32.gmra.mxu0 %vm1226_vm5, %v11561_v54 }
 0x1b1   : > { %v1653_v27 = vsel %vm1613_vm15, %v1605_v33, %v9116_v63  ;;  %v1931_v33 = vld.sshfl [vmem:[#allocation1 + $0x10] sm:$0xff pattern:$0x75316420] }
 0x1b2   : > { %1744 = vmatpush.msrb.mxu2 %v1653_v27  ;;  %v1654_v31 = vsel %vm1614_vm2, %v1606_v38, %v9117_v37  ;;  %9139 = vmatmul.msk.f32.gmra.mxu1 %vm1226_vm5, %v11561_v54 }
 0x1b3   : > { %1773 = vmatpush.msrb.mxu3 %v1654_v31 }
 0x1b4   : > { %1745 = vmatpush.msrb.mxu2 %v1649_v34 }
 0x1b5   : > { %1774 = vmatpush.msrb.mxu3 %v1650_v39  ;;  %9142 = vmatmul.msk.f32.vlgmr.msrb.gmra.mxu2 %vm1226_vm5, %v11542_v30  ;;  %v3539_v39 = vld [vmem:[%s17422_s14 + $0x10] sm:$0xff] }
 0x1b6   : > { %9146 = vmatmul.msk.f32.vlgmr.msrb.gmra.mxu3 %vm1226_vm5, %v11542_v30  ;;  %9176 = vmatpush.msk.msra.mxu2 %vm1013_vm0, %v1931_v33 }
 0x1b7   : > { %9179 = vmatpush.msk.msra.mxu3 %vm1013_vm0, %v1932_v40 }
 0x1b8   : > { %9136 = vmatmul.msk.f32.gmra.mxu0 %vm1226_vm5, %v11577_v35 }
 0x1ba   : > { %9140 = vmatmul.msk.f32.gmra.mxu1 %vm1226_vm5, %v11577_v35 }
 0x1bd   : > { %9143 = vmatmul.msk.f32.gmra.mxu2 %vm1226_vm5, %v11561_v54 }
 0x1be   : > { %9147 = vmatmul.msk.f32.gmra.mxu3 %vm1226_vm5, %v11561_v54 }
 0x1c0   : > { %9137 = vmatmul.msk.f32.gmra.mxu0 %vm1226_vm5, %v11593_v0 }
 0x1c2   : > { %9141 = vmatmul.msk.f32.gmra.mxu1 %vm1226_vm5, %v11593_v0 }
 0x1c5   : > { %9144 = vmatmul.msk.f32.gmra.mxu2 %vm1226_vm5, %v11577_v35 }
 0x1c6   : > { %9148 = vmatmul.msk.f32.gmra.mxu3 %vm1226_vm5, %v11577_v35 }
 0x1c8   : > { %9171 = vmatmul.msk.f32.vlgmr.msra.gmra.mxu0 %vm1006_vm1, %v11380_v10 }
 0x1ca   : > { %9174 = vmatmul.msk.f32.vlgmr.msra.gmra.mxu1 %vm1006_vm1, %v11380_v10 }
 0x1cd   : > { %9145 = vmatmul.msk.f32.gmra.mxu2 %vm1226_vm5, %v11593_v0 }
 0x1ce   : > { %9149 = vmatmul.msk.f32.gmra.mxu3 %vm1226_vm5, %v11593_v0 }
 0x1d0   : > { %9172 = vmatmul.msk.f32.gmra.mxu0 %vm1006_vm1, %v11403_v17 }
 0x1d2   : > { %9175 = vmatmul.msk.f32.gmra.mxu1 %vm1006_vm1, %v11403_v17 }
 0x1d5   : > { %9177 = vmatmul.msk.f32.vlgmr.msra.gmra.mxu2 %vm1006_vm1, %v11380_v10 }
 0x1d6   : > { %9180 = vmatmul.msk.f32.vlgmr.msra.gmra.mxu3 %vm1006_vm1, %v11380_v10 }
 0x1dd   : > { %9178 = vmatmul.msk.f32.gmra.mxu2 %vm1006_vm1, %v11403_v17 }
 0x1de   : > { %9181 = vmatmul.msk.f32.gmra.mxu3 %vm1006_vm1, %v11403_v17  ;;  %v3040_v17 = vld [vmem:[%s17421_s12 + $0x38] sm:$0xff] }
 0x1df   : > { %3078 = vperm.xlu2 %10067, %v3040_v17  }
 0x1e7   : > { %3063 = vperm.xlu2 %10067, %v3037_v52  }
 0x1ef   : > { %3048 = vperm.xlu2 %10067, %v3034_v36  }
 0x1f7   : > { %3553 = vperm.xlu2 %10067, %v3539_v39  }
 0x225   : > { %v11736_v46 = vpop.f32.mrf.mxu0 }
 0x227   : > { %v11738_v53 = vpop.f32.mrf.mxu1 }
 0x22d   : > { %v11740_v38 = vpop.f32.mrf.mxu0 }
 0x22f   : > { %v11742_v60 = vpop.f32.mrf.mxu1 }
 0x235   : > { %v11744_v41 = vpop.f32.mrf.mxu0 }
 0x237   : > { %v11748_v20 = vpop.f32.mrf.mxu1 }
 0x238   : > { %v11746_v42 = vpop.f32.mrf.mxu2 }
 0x239   : > { %v11750_v10 = vpop.f32.mrf.mxu3 }
 0x23d   : > { %v11752_v43 = vpop.f32.mrf.mxu0 }
 0x23f   : > { %v11759_v44 = vpop.f32.mrf.mxu1 }
 0x240   : > { %v11754_v48 = vpop.f32.mrf.mxu2 }
 0x241   : > { %v11761_v50 = vpop.f32.mrf.mxu3 }
 0x245   : > { %v1958_v51 = vpop.f32.mrf.mxu0 }
 0x246   : > { %v1959_v61 = vadd.f32 %v1958_v51, %v11506_v1 }
 0x247   : > { %v1981_v47 = vpop.f32.mrf.mxu1 }
 0x248   : > { %v11763_v49 = vpop.f32.mrf.mxu2  ;;  %v1982_v25 = vadd.f32 %v1981_v47, %v11508_v2  ;;  %v2033_v27 = vadd.f32 %v1959_v61, %v11516_v18 }
 0x249   : > { %v11768_v59 = vpop.f32.mrf.mxu3 }
 0x24a   : > { %v2034_v33 = vadd.f32 %v1982_v25, %v11516_v18  ;;  %v2049_v51 = vmin.f32 %v2033_v27, 0.0  ;;  %vm2041_vm6 = vcmp.gt.f32.partialorder %v2033_v27, 0.0 }
 0x24c   : > { %v2050_v52 = vmin.f32 %v2034_v33, 0.0  ;;  %vm2042_vm7 = vcmp.gt.f32.partialorder %v2034_v33, 0.0 }
 0x24d   : > { %v1961_v19 = vpop.f32.mrf.mxu0 }
 0x24e   : > { %v1962_v63 = vadd.f32 %v1961_v19, %v11490_v55 }
 0x24f   : > { %v1984_v6 = vpop.f32.mrf.mxu1 }
 0x250   : > { %v11773_v62 = vpop.f32.mrf.mxu2  ;;  %v2037_v37 = vadd.f32 %v1962_v63, %v11514_v5  ;;  %v1985_v26 = vadd.f32 %v1984_v6, %v11492_v56  ;;  %v2057_v6 = vmul.f32 1.442695, %v2049_v51  ;;  %v2059_v63 = vmul.f32 1.442695, %v2050_v52 }
 0x251   : > { %17426 = vst [vmem:[#allocation15_spill] sm:$0xff] %v11773_v62  ;;  %v11775_v28 = vpop.f32.mrf.mxu3 }
 0x252   : > { %17427 = vst [vmem:[#allocation16_spill] sm:$0xff] %v11775_v28  ;;  %v2053_v31 = vmin.f32 %v2037_v37, 0.0  ;;  %v2038_v34 = vadd.f32 %v1985_v26, %v11514_v5  ;;  %vm2045_vm0 = vcmp.gt.f32.partialorder %v2037_v37, 0.0 }
 0x254   : > { %v2065_v1 = vmul.f32 1.442695, %v2053_v31  ;;  %v2054_v40 = vmin.f32 %v2038_v34, 0.0  ;;  %vm2046_vm1 = vcmp.gt.f32.partialorder %v2038_v34, 0.0 }
 0x256   : > { %10100 = vpow2.f32 %v2065_v1  ;;  %v2067_v56 = vmul.f32 1.442695, %v2054_v40 }
 0x258   : > { %v2004_v55 = vpop.f32.mrf.mxu2  ;;  %10102 = vpow2.f32 %v2067_v56 }
 0x259   : > { %v2005_v2 = vadd.f32 %v2004_v55, %v11510_v3  ;;  %v2027_v17 = vpop.f32.mrf.mxu3  ;;  %v3809_v3 = vld [vmem:[%s17423_s16 + $0x18] sm:$0xff]  ;;  %10104 = vpow2.f32 %v2057_v6 }
 0x25a   : > { %v2028_v36 = vadd.f32 %v2027_v17, %v11512_v4  ;;  %3827 = vperm.xlu2 %10067, %v3809_v3   ;;  %10106 = vpow2.f32 %v2059_v63 }
 0x25b   : > { %v11790_v47 = vadd.f32 %v2005_v2, %v11516_v18 }
 0x25c   : > { %v11794_v19 = vadd.f32 %v2028_v36, %v11516_v18  ;;  %v10101_v25 = vpop.eup %10100 }
 0x25d   : > { %v2051_v61 = vmin.f32 %v11790_v47, 0.0  ;;  %v9186_v1 = vadd.f32 -1.0, %v10101_v25  ;;  %vm2043_vm10 = vcmp.gt.f32.partialorder %v11790_v47, 0.0 }
 0x25e   : > { %v2052_v26 = vmin.f32 %v11794_v19, 0.0  ;;  %v10103_v18 = vpop.eup %10102  ;;  %vm2044_vm11 = vcmp.gt.f32.partialorder %v11794_v19, 0.0 }
 0x25f   : > { %v2085_v2 = vsel %vm2045_vm0, %v2037_v37, %v9186_v1  ;;  %v9187_v17 = vadd.f32 -1.0, %v10103_v18  ;;  %v2061_v51 = vmul.f32 1.442695, %v2051_v61  ;;  %v10105_v6 = vpop.eup %10104 }
 0x260   : > { %v2007_v31 = vpop.f32.mrf.mxu2  ;;  %2120 = vmatpush.msrb.mxu0 %v2085_v2  ;;  %v2063_v52 = vmul.f32 1.442695, %v2052_v26  ;;  %v9182_v63 = vadd.f32 -1.0, %v10105_v6  ;;  %v10107_v37 = vpop.eup %10106 }
 0x261   : > { %v2008_v39 = vadd.f32 %v2007_v31, %v11494_v57  ;;  %v2030_v4 = vpop.f32.mrf.mxu3  ;;  %v2086_v57 = vsel %vm2046_vm1, %v2038_v34, %v9187_v17  ;;  %10108 = vpow2.f32 %v2061_v51  ;;  %v9183_v61 = vadd.f32 -1.0, %v10107_v37  ;;  %v11881_v37 = vpop.permute.xlu1 %1208 }
 0x262   : > { %v2031_v40 = vadd.f32 %v2030_v4, %v11496_v58  ;;  %2149 = vmatpush.msrb.mxu1 %v2086_v57  ;;  %v3806_v58 = vld [vmem:[%s17423_s16] sm:$0xff]  ;;  %10110 = vpow2.f32 %v2063_v52  ;;  %v4061_v4 = vld [vmem:[%s17084_s18 + $0x10] sm:$0xff]  ;;  %v11857_v57 = vld [vmem:[%s11835_s2 + $0x8] sm:$0xf] }
 0x263   : > { %v2039_v55 = vadd.f32 %v2008_v39, %v11514_v5  ;;  %3812 = vperm.xlu2 %10067, %v3806_v58   ;;  %v2082_v34 = vsel %vm2042_vm7, %v2034_v33, %v9183_v61  ;;  %17429 = vst [vmem:[#allocation17_spill] sm:$0xff] %v11857_v57  ;;  %v8730_v58 = vld [vmem:[%s17092_s26] sm:$0xff]  ;;  %v11887_v61 = vpop.permute.xlu0 %1213 }
 0x264   : > { %v2040_v56 = vadd.f32 %v2031_v40, %v11514_v5  ;;  %v2081_v5 = vsel %vm2041_vm6, %v2033_v27, %v9182_v63  ;;  %2150 = vmatpush.msrb.mxu1 %v2082_v34 }
 0x265   : > { %v2055_v36 = vmin.f32 %v2039_v55, 0.0  ;;  %2121 = vmatpush.msrb.mxu0 %v2081_v5  ;;  %9210 = vmatmul.msk.f32.vlgmr.msrb.gmra.mxu1 %vm1226_vm5, %v11542_v30  ;;  %vm2047_vm8 = vcmp.gt.f32.partialorder %v2039_v55, 0.0  ;;  %v11885_v5 = vadd.f32 %v11626_v7, %v11881_v37  ;;  %v11904_v7 = vadd.f32 %v11634_v12, %v11881_v37 }
 0x266   : > { %v2056_v25 = vmin.f32 %v2040_v56, 0.0  ;;  %9206 = vmatmul.msk.f32.vlgmr.msrb.gmra.mxu0 %vm1226_vm5, %v11542_v30  ;;  %vm2048_vm9 = vcmp.gt.f32.partialorder %v2040_v56, 0.0 }
 0x267   : > { %v2069_v3 = vmul.f32 1.442695, %v2055_v36  ;;  %v10109_v26 = vpop.eup %10108  ;;  %vm1355_vm15 = vcmp.gt.f32.partialorder %v11885_v5, 0.0  ;;  %vm1357_vm0 = vcmp.gt.f32.partialorder %v11904_v7, 0.0 }
 0x268   : > { %v2071_v31 = vmul.f32 1.442695, %v2056_v25  ;;  %v10111_v39 = vpop.eup %10110  ;;  %v9184_v40 = vadd.f32 -1.0, %v10109_v26  ;;  %v1371_v26 = vmin.f32 %v11885_v5, 0.0 }
 0x269   : > { %10112 = vpow2.f32 %v2069_v3  ;;  %v9185_v33 = vadd.f32 -1.0, %v10111_v39  ;;  %v11896_v39 = vadd.f32 %v11630_v9, %v11887_v61 }
 0x26a   : > { %10114 = vpow2.f32 %v2071_v31  ;;  %v2083_v52 = vsel %vm2043_vm10, %v11790_v47, %v9184_v40  ;;  %v11840_v47 = vld [vmem:[%s11835_s2] sm:$0xf]  ;;  %v1387_v40 = vmul.f32 1.442695, %v1371_v26 }
 0x26b   : > { %4076 = vperm.xlu2 %10067, %v4061_v4   ;;  %v11900_v4 = vadd.f32 %v11632_v11, %v11887_v61  ;;  %v11916_v11 = vadd.f32 %v11636_v45, %v11881_v37  ;;  %vm1359_vm3 = vcmp.gt.f32.partialorder %v11896_v39, 0.0 }
 0x26d   : > { %9211 = vmatmul.msk.f32.gmra.mxu1 %vm1226_vm5, %v11561_v54  ;;  %v1376_v12 = vmin.f32 %v11900_v4, 0.0  ;;  %vm1360_vm4 = vcmp.gt.f32.partialorder %v11900_v4, 0.0  ;;  %vm1358_vm1 = vcmp.gt.f32.partialorder %v11916_v11, 0.0 }
 0x26e   : > { %9207 = vmatmul.msk.f32.gmra.mxu0 %vm1226_vm5, %v11561_v54 }
 0x26f   : > { %v10113_v27 = vpop.eup %10112 }
 0x270   : > { %v10115_v1 = vpop.eup %10114  ;;  %v9188_v18 = vadd.f32 -1.0, %v10113_v27 }
 0x271   : > { %v9189_v2 = vadd.f32 -1.0, %v10115_v1 }
 0x272   : > { %v2087_v17 = vsel %vm2047_vm8, %v2039_v55, %v9188_v18  ;;  %v2084_v55 = vsel %vm2044_vm11, %v11794_v19, %v9185_v33  ;;  %v11843_v19 = vld [vmem:[%s11835_s2 + $0x4] sm:$0xf]  ;;  %v11907_v18 = vpop.permute.xlu2 %1223  ;;  %v1375_v33 = vmin.f32 %v11896_v39, 0.0 }
 0x273   : > { %2178 = vmatpush.msrb.mxu2 %v2087_v17  ;;  %v2088_v51 = vsel %vm2048_vm9, %v2040_v56, %v9189_v2  ;;  %v4484_v56 = vld [vmem:[%s17086_s20 + $0x18] sm:$0xff]  ;;  %v2336_v36 = vadd.f32 %v11843_v19, %v11840_v47  ;;  %v11921_v17 = vadd.f32 %v11642_v15, %v11887_v61 }
 0x274   : > { %2207 = vmatpush.msrb.mxu3 %v2088_v51  ;;  %4502 = vperm.xlu2 %10067, %v4484_v56   ;;  %v1373_v51 = vmin.f32 %v11904_v7, 0.0  ;;  %v1395_v45 = vmul.f32 1.442695, %v1375_v33 }
 0x275   : > { %2179 = vmatpush.msrb.mxu2 %v2083_v52  ;;  %9212 = vmatmul.msk.f32.gmra.mxu1 %vm1226_vm5, %v11577_v35  ;;  %v2337_v6 = vadd.f32 %v11857_v57, %v2336_v36  ;;  %v11926_v52 = vadd.f32 %v11644_v16, %v11887_v61  ;;  %v1374_v36 = vmin.f32 %v11916_v11, 0.0  ;;  %v1377_v15 = vmin.f32 %v11921_v17, 0.0 }
 0x276   : > { %2208 = vmatpush.msrb.mxu3 %v2084_v55  ;;  %9214 = vmatmul.msk.f32.vlgmr.msrb.gmra.mxu2 %vm1226_vm5, %v11542_v30  ;;  %v11935_v16 = vadd.f32 %v11646_v21, %v11907_v18  ;;  %vm1361_vm6 = vcmp.gt.f32.partialorder %v11921_v17, 0.0 }
 0x277   : > { %9218 = vmatmul.msk.f32.vlgmr.msrb.gmra.mxu3 %vm1226_vm5, %v11542_v30  ;;  %9208 = vmatmul.msk.f32.gmra.mxu0 %vm1226_vm5, %v11577_v35  ;;  %v4481_v30 = vld [vmem:[%s17086_s20] sm:$0xff]  ;;  %v2338_v25 = vadd.f32 1e-08, %v2337_v6  ;;  %v1397_v6 = vmul.f32 1.442695, %v1376_v12  ;;  %vm1362_vm7 = vcmp.gt.f32.partialorder %v11926_v52, 0.0 }
 0x278   : > { %vm1367_vm8 = vcmp.gt.f32.partialorder %v11935_v16, 0.0 }
 0x279   : > { %10116 = vrcp.f32 %v2338_v25  ;;  %v2350_v1 = vand.u32 2147483648, %v2338_v25  ;;  %v2348_v2 = vand.u32 2147483647, %v2338_v25 }
 0x27a   : > { %10118 = vpow2.f32 %v1387_v40 }
 0x27b   : > { %v2351_v56 = vor.u32 1.1754944e-38, %v2350_v1  ;;  %vm2349_vm14 = vcmp.eq.f32.partialorder %v2348_v2, 8.507059e+37 }
 0x27c   : > { %4487 = vperm.xlu2 %10067, %v4481_v30  }
 0x27d   : > { %9213 = vmatmul.msk.f32.gmra.mxu1 %vm1226_vm5, %v11593_v0 }
 0x27e   : > { %9215 = vmatmul.msk.f32.gmra.mxu2 %vm1226_vm5, %v11561_v54 }
 0x27f   : > { %9219 = vmatmul.msk.f32.gmra.mxu3 %vm1226_vm5, %v11561_v54  ;;  %9209 = vmatmul.msk.f32.gmra.mxu0 %vm1226_vm5, %v11593_v0  ;;  %v8671_v54 = vld [vmem:[%s17091_s25 + $0x8] sm:$0xff]  ;;  %v10117_v3 = vpop.eup %10116 }
 0x280   : > { %v2340_v63 = vmul.f32 %v10117_v3, %v2338_v25  ;;  %vm2345_vm12 = vweird.f32 %v10117_v3 }
 0x282   : > { %v2341_v31 = vsub.f32 1.0, %v2340_v63  ;;  %v1393_v63 = vmul.f32 1.442695, %v1374_v36  ;;  %v11974_v36 = vadd.f32 %v11659_v32, %v11907_v18 }
 0x284   : > { %8681 = vperm.xlu2 %10067, %v8671_v54   ;;  %v2342_v34 = vmul.f32 %v10117_v3, %v2341_v31  ;;  %v1391_v54 = vmul.f32 1.442695, %v1373_v51  ;;  %v11943_v31 = vpop.permute.xlu2 %1218 }
 0x285   : > { %v11955_v9 = vadd.f32 %v11652_v24, %v11943_v31 }
 0x286   : > { %9216 = vmatmul.msk.f32.gmra.mxu2 %vm1226_vm5, %v11577_v35  ;;  %v2343_v27 = vadd.f32 %v10117_v3, %v2342_v34  ;;  %v10119_v34 = vpop.eup %10118 }
 0x287   : > { %9220 = vmatmul.msk.f32.gmra.mxu3 %vm1226_vm5, %v11577_v35  ;;  %v8733_v35 = vld [vmem:[%s17092_s26 + $0x18] sm:$0xff]  ;;  %v9079_v40 = vadd.f32 -1.0, %v10119_v34  ;;  %vm1366_vm11 = vcmp.gt.f32.partialorder %v11955_v9, 0.0 }
 0x28c   : > { %8736 = vperm.xlu2 %10067, %v8730_v58  }
 0x28e   : > { %9217 = vmatmul.msk.f32.gmra.mxu2 %vm1226_vm5, %v11593_v0 }
 0x28f   : > { %9221 = vmatmul.msk.f32.gmra.mxu3 %vm1226_vm5, %v11593_v0  ;;  %v11891_v0 = vadd.f32 %v11628_v8, %v11881_v37  ;;  %vm2344_vm5 = vweird.f32 %v2338_v25  ;;  %v1378_v25 = vmin.f32 %v11926_v52, 0.0 }
 0x290   : > { %vm11909_vm13 = vmor %vm2344_vm5, %vm2345_vm12  ;;  %vm1370_vm12 = vcmp.gt.f32.partialorder %v11974_v36, 0.0 }
 0x291   : > { %v1372_v8 = vmin.f32 %v11891_v0, 0.0  ;;  %v2347_v55 = vsel %vm11909_vm13, %v10117_v3, %v2343_v27  ;;  %v11941_v3 = vadd.f32 %v11648_v22, %v11907_v18  ;;  %v1401_v21 = vmul.f32 1.442695, %v1378_v25 }
 0x292   : > { %v11937_v58 = vsel %vm2349_vm14, %v2351_v56, %v2347_v55  ;;  %v1383_v27 = vmin.f32 %v11935_v16, 0.0  ;;  %v11951_v22 = vadd.f32 %v11650_v23, %v11943_v31  ;;  %vm1356_vm2 = vcmp.gt.f32.partialorder %v11891_v0, 0.0 }
 0x293   : > { %v1389_v30 = vmul.f32 1.442695, %v1372_v8  ;;  %v2354_v26 = vmul.f32 %v11937_v58, %v11840_v47  ;;  %v1384_v1 = vmin.f32 %v11941_v3, 0.0  ;;  %v1382_v25 = vmin.f32 %v11955_v9, 0.0 }
 0x294   : > { %8751 = vperm.xlu2 %10067, %v8733_v35   ;;  %v1399_v35 = vmul.f32 1.442695, %v1377_v15  ;;  %v1411_v12 = vmul.f32 1.442695, %v1383_v27  ;;  %v1435_v15 = vsel %vm1355_vm15, %v11885_v5, %v9079_v40  ;;  %vm1368_vm9 = vcmp.gt.f32.partialorder %v11941_v3, 0.0 }
 0x295   : > { %10120 = vpow2.f32 %v1389_v30  ;;  %v11957_v2 = vperm.slane %v2354_v26, 0  ;;  %v11959_v33 = vperm.slane %v2354_v26, 1  ;;  %v11961_v55 = vperm.slane %v2354_v26, 2 }
 0x296   : > { %10122 = vpow2.f32 %v1395_v45  ;;  %v11963_v23 = vperm.slane %v2354_v26, 3  ;;  %v1413_v56 = vmul.f32 1.442695, %v1384_v1  ;;  %v11967_v30 = vadd.f32 %v11656_v29, %v11907_v18 }
 0x297   : > { %10124 = vpow2.f32 %v1397_v6  ;;  %17432 = vst [vmem:[#allocation18_spill] sm:$0xff] %v11957_v2  ;;  %v1381_v45 = vmin.f32 %v11951_v22, 0.0  ;;  %v1182_v6 = vld [vmem:[%s11345_s24] sm:$0xff]  ;;  %v11981_v29 = vadd.f32 %v11638_v13, %v11943_v31  ;;  %v1386_v1 = vmin.f32 %v11974_v36, 0.0 }
 0x298   : > { %10126 = vpow2.f32 %v1391_v54  ;;  %17433 = vst [vmem:[#allocation19_spill] sm:$0xff] %v11959_v33  ;;  %v1385_v5 = vmin.f32 %v11967_v30, 0.0  ;;  %v11986_v13 = vadd.f32 %v1435_v15, %v1182_v6  ;;  %v1184_v15 = vld [vmem:[%s11345_s24 + $0x10] sm:$0xff]  ;;  %vm1365_vm10 = vcmp.gt.f32.partialorder %v11951_v22, 0.0 }
 0x299   : > { %10128 = vpow2.f32 %v1393_v63  ;;  %17434 = vst [vmem:[#allocation20_spill] sm:$0xff] %v11961_v55  ;;  %v1407_v27 = vmul.f32 1.442695, %v1381_v45  ;;  %vm1369_vm5 = vcmp.gt.f32.partialorder %v11967_v30, 0.0  ;;  %vm1363_vm13 = vcmp.gt.f32.partialorder %v11981_v29, 0.0 }
 0x29a   : > { %10130 = vpow2.f32 %v1399_v35  ;;  %17435 = vst [vmem:[#allocation21_spill] sm:$0xff] %v11963_v23 }
 0x29b   : > { %v10121_v8 = vpop.eup %10120  ;;  %10132 = vpow2.f32 %v1401_v21  ;;  %17436 = vst [vmem:[#allocation22_spill] sm:$0xff] %v11986_v13 }
 0x29c   : > { %v10123_v47 = vpop.eup %10122  ;;  %v9080_v54 = vadd.f32 -1.0, %v10121_v8  ;;  %10134 = vpow2.f32 %v1411_v12  ;;  %v1183_v8 = vld [vmem:[%s11345_s24 + $0x8] sm:$0xff]  ;;  %v1379_v12 = vmin.f32 %v11981_v29, 0.0 }
 0x29d   : > { %v10125_v51 = vpop.eup %10124  ;;  %v9083_v35 = vadd.f32 -1.0, %v10123_v47  ;;  %10136 = vpow2.f32 %v1413_v56  ;;  %v1409_v47 = vmul.f32 1.442695, %v1382_v25  ;;  %v1186_v56 = vld [vmem:[%s11345_s24 + $0x20] sm:$0xff] }
 0x29e   : > { %v10127_v24 = vpop.eup %10126  ;;  %v9084_v34 = vadd.f32 -1.0, %v10125_v51  ;;  %v1436_v40 = vsel %vm1356_vm2, %v11891_v0, %v9080_v54  ;;  %v11997_v51 = vadd.f32 %v11640_v14, %v11943_v31  ;;  %v1187_v0 = vld [vmem:[%s11345_s24 + $0x28] sm:$0xff]  ;;  %v1415_v14 = vmul.f32 1.442695, %v1385_v5 }
 0x29f   : > { %v10129_v63 = vpop.eup %10128  ;;  %v9081_v26 = vadd.f32 -1.0, %v10127_v24  ;;  %v1439_v24 = vsel %vm1359_vm3, %v11896_v39, %v9083_v35  ;;  %v12010_v62 = vadd.f32 %v1436_v40, %v1183_v8  ;;  %10138 = vpow2.f32 %v1407_v27  ;;  %v1189_v8 = vld [vmem:[%s11345_s24 + $0x38] sm:$0xff] }
 0x2a0   : > { %v10131_v32 = vpop.eup %10130  ;;  %v1440_v45 = vsel %vm1360_vm4, %v11900_v4, %v9084_v34  ;;  %v9082_v6 = vadd.f32 -1.0, %v10129_v63  ;;  %v1417_v39 = vmul.f32 1.442695, %v1386_v1  ;;  %v12013_v35 = vadd.f32 %v1439_v24, %v1186_v56  ;;  %v1188_v1 = vld [vmem:[%s11345_s24 + $0x30] sm:$0xff] }
 0x2a1   : > { %v10133_v21 = vpop.eup %10132  ;;  %v1437_v54 = vsel %vm1357_vm0, %v11904_v7, %v9081_v26  ;;  %v9085_v25 = vadd.f32 -1.0, %v10131_v32  ;;  %17437 = vst [vmem:[#allocation23_spill] sm:$0xff] %v12010_v62  ;;  %10140 = vpow2.f32 %v1409_v47  ;;  %v1403_v63 = vmul.f32 1.442695, %v1379_v12  ;;  %v1185_v26 = vld [vmem:[%s11345_s24 + $0x18] sm:$0xff] }
 0x2a2   : > { %v9086_v57 = vadd.f32 -1.0, %v10133_v21  ;;  %v10135_v28 = vpop.eup %10134  ;;  %17438 = vst [vmem:[#allocation24_spill] sm:$0xff] %v12013_v35  ;;  %v1380_v7 = vmin.f32 %v11997_v51, 0.0  ;;  %v12016_v34 = vadd.f32 %v1440_v45, %v1187_v0  ;;  %v12018_v32 = vadd.f32 %v1437_v54, %v1184_v15  ;;  %v1194_v15 = vld [vmem:[%s11345_s24 + $0x60] sm:$0xff] }
 0x2a3   : > { %v10137_v4 = vpop.eup %10136  ;;  %v1438_v5 = vsel %vm1358_vm1, %v11916_v11, %v9082_v6  ;;  %v1441_v21 = vsel %vm1361_vm6, %v11921_v17, %v9085_v25  ;;  %10142 = vpow2.f32 %v1415_v14  ;;  %v9091_v40 = vadd.f32 -1.0, %v10135_v28  ;;  %v1195_v25 = vld [vmem:[%s11345_s24 + $0x68] sm:$0xff] }
 0x2a4   : > { %17439 = vst [vmem:[#allocation25_spill] sm:$0xff] %v12016_v34  ;;  %v1442_v27 = vsel %vm1362_vm7, %v11926_v52, %v9086_v57  ;;  %v9092_v47 = vadd.f32 -1.0, %v10137_v4  ;;  %10144 = vpow2.f32 %v1417_v39  ;;  %v12032_v12 = vadd.f32 %v11736_v46, %v11881_v37 }
 0x2a5   : > { %17440 = vst [vmem:[#allocation26_spill] sm:$0xff] %v12018_v32  ;;  %v12037_v11 = vadd.f32 %v11738_v53, %v11881_v37  ;;  %10146 = vpow2.f32 %v1403_v63  ;;  %v1405_v57 = vmul.f32 1.442695, %v1380_v7  ;;  %v10139_v17 = vpop.eup %10138  ;;  %v12041_v28 = vmul.f32 %v11957_v2, %v11986_v13 }
 0x2a6   : > { %v12045_v52 = vmul.f32 %v11959_v33, %v12010_v62  ;;  %v12049_v46 = vmul.f32 %v11957_v2, %v12013_v35  ;;  %v12051_v56 = vadd.f32 %v1438_v5, %v1185_v26  ;;  %v12055_v53 = vmul.f32 %v11959_v33, %v12016_v34  ;;  %v1190_v34 = vld [vmem:[%s11345_s24 + $0x40] sm:$0xff]  ;;  %v9123_v35 = vld [vmem:[%s11345_s24 + $0xa8] sm:$0xff] }
 0x2a7   : > { %v10141_v24 = vpop.eup %10140  ;;  %v12059_v45 = vmul.f32 %v11961_v55, %v12018_v32  ;;  %v12061_v6 = vadd.f32 %v1441_v21, %v1188_v1  ;;  %v12063_v0 = vadd.f32 %v1442_v27, %v1189_v8  ;;  %v1447_v54 = vsel %vm1367_vm8, %v11935_v16, %v9091_v40  ;;  %v1192_v32 = vld [vmem:[%s11345_s24 + $0x50] sm:$0xff] }
 0x2a8   : > { %17441 = vst [vmem:[#allocation27_spill] sm:$0xff] %v12051_v56  ;;  %v1448_v14 = vsel %vm1368_vm9, %v11941_v3, %v9092_v47  ;;  %v1804_v39 = vmin.f32 %v12032_v12, 0.0  ;;  %v12076_v4 = vadd.f32 %v11740_v38, %v11887_v61  ;;  %v9089_v7 = vadd.f32 -1.0, %v10139_v17 }
 0x2a9   : > { %17442 = vst [vmem:[#allocation28_spill] sm:$0xff] %v12061_v6  ;;  %v10143_v63 = vpop.eup %10142  ;;  %v1805_v26 = vmin.f32 %v12037_v11, 0.0  ;;  %10148 = vpow2.f32 %v1405_v57  ;;  %v12082_v16 = vmul.f32 %v11963_v23, %v12051_v56  ;;  %v9090_v3 = vadd.f32 -1.0, %v10141_v24 }
 0x2aa   : > { %17443 = vst [vmem:[#allocation29_spill] sm:$0xff] %v12063_v0  ;;  %v10145_v5 = vpop.eup %10144  ;;  %v12087_v38 = vadd.f32 %v11742_v60, %v11887_v61  ;;  %v12091_v27 = vmul.f32 %v11961_v55, %v12061_v6  ;;  %v12095_v1 = vmul.f32 %v11963_v23, %v12063_v0  ;;  %v12097_v8 = vadd.f32 %v1447_v54, %v1194_v15  ;;  %v1193_v15 = vld [vmem:[%s11345_s24 + $0x58] sm:$0xff] }
 0x2ab   : > { %v10147_v21 = vpop.eup %10146  ;;  %v12099_v40 = vadd.f32 %v1448_v14, %v1195_v25  ;;  %v9093_v47 = vadd.f32 -1.0, %v10143_v63  ;;  %v1820_v57 = vmul.f32 1.442695, %v1804_v39  ;;  %v1808_v60 = vmin.f32 %v12076_v4, 0.0  ;;  %v1197_v6 = vld [vmem:[%s11345_s24 + $0x78] sm:$0xff] }
 0x2ac   : > { %17444 = vst [vmem:[#allocation30_spill] sm:$0xff] %v12097_v8  ;;  %v1445_v17 = vsel %vm1365_vm10, %v11951_v22, %v9089_v7  ;;  %v9094_v24 = vadd.f32 -1.0, %v10145_v5  ;;  %v1822_v56 = vmul.f32 1.442695, %v1805_v26  ;;  %v1446_v54 = vsel %vm1366_vm11, %v11955_v9, %v9090_v3  ;;  %v1196_v26 = vld [vmem:[%s11345_s24 + $0x70] sm:$0xff] }
 0x2ad   : > { %17445 = vst [vmem:[#allocation31_spill] sm:$0xff] %v12099_v40  ;;  %v1809_v25 = vmin.f32 %v12087_v38, 0.0  ;;  %v9087_v14 = vadd.f32 -1.0, %v10147_v21  ;;  %v12115_v39 = vadd.f32 %v11744_v41, %v11943_v31  ;;  %v12119_v22 = vmul.f32 %v11957_v2, %v12097_v8 }
 0x2ae   : > { %v12123_v7 = vmul.f32 %v11959_v33, %v12099_v40  ;;  %v12128_v9 = vadd.f32 %v11746_v42, %v11881_v37  ;;  %v1449_v41 = vsel %vm1369_vm5, %v11967_v30, %v9093_v47  ;;  %10150 = vpow2.f32 %v1820_v57 }
 0x2af   : > { %v10149_v63 = vpop.eup %10148  ;;  %v1828_v5 = vmul.f32 1.442695, %v1808_v60  ;;  %v12136_v3 = vadd.f32 %v11748_v20, %v11943_v31  ;;  %v12138_v21 = vadd.f32 %v1445_v17, %v1192_v32  ;;  %v12140_v0 = vadd.f32 %v1446_v54, %v1193_v15 }
 0x2b0   : > { %v1450_v42 = vsel %vm1370_vm12, %v11974_v36, %v9094_v24  ;;  %10152 = vpow2.f32 %v1822_v56  ;;  %v1830_v62 = vmul.f32 1.442695, %v1809_v25  ;;  %v1443_v30 = vsel %vm1363_vm13, %v11981_v29, %v9087_v14  ;;  %v1191_v25 = vld [vmem:[%s11345_s24 + $0x48] sm:$0xff] }
 0x2b1   : > { %17446 = vst [vmem:[#allocation32_spill] sm:$0xff] %v12138_v21  ;;  %v1812_v47 = vmin.f32 %v12115_v39, 0.0  ;;  %v9088_v57 = vadd.f32 -1.0, %v10149_v63  ;;  %v12149_v20 = vadd.f32 %v1449_v41, %v1196_v26  ;;  %vm1364_vm14 = vcmp.gt.f32.partialorder %v11997_v51, 0.0 }
 0x2b2   : > { %17447 = vst [vmem:[#allocation33_spill] sm:$0xff] %v12140_v0  ;;  %v1806_v32 = vmin.f32 %v12128_v9, 0.0  ;;  %v12155_v60 = vadd.f32 %v11750_v10, %v11881_v37  ;;  %v12157_v36 = vadd.f32 %v1450_v42, %v1197_v6  ;;  %10154 = vpow2.f32 %v1828_v5 }
 0x2b3   : > { %17448 = vst [vmem:[#allocation34_spill] sm:$0xff] %v12149_v20  ;;  %v1813_v56 = vmin.f32 %v12136_v3, 0.0  ;;  %v12162_v29 = vadd.f32 %v11752_v43, %v11907_v18  ;;  %v12166_v17 = vmul.f32 %v11961_v55, %v12138_v21  ;;  %v12170_v24 = vmul.f32 %v11963_v23, %v12140_v0  ;;  %v9118_v21 = vld [vmem:[%s11345_s24 + $0x80] sm:$0xff] }
 0x2b4   : > { %17449 = vst [vmem:[#allocation35_spill] sm:$0xff] %v12157_v36  ;;  %v12174_v10 = vmul.f32 %v11843_v19, %v11937_v58  ;;  %v12176_v6 = vadd.f32 %v1443_v30, %v1190_v34  ;;  %v10151_v15 = vpop.eup %10150  ;;  %10156 = vpow2.f32 %v1830_v62  ;;  %v1836_v54 = vmul.f32 1.442695, %v1812_v47 }
 0x2b5   : > { %v1444_v43 = vsel %vm1364_vm14, %v11997_v51, %v9088_v57  ;;  %v12182_v14 = vadd.f32 %v11754_v48, %v11887_v61  ;;  %v12186_v26 = vmul.f32 %v11961_v55, %v12149_v20  ;;  %v1824_v41 = vmul.f32 1.442695, %v1806_v32  ;;  %v9119_v20 = vld [vmem:[%s11345_s24 + $0x88] sm:$0xff] }
 0x2b6   : > { %17450 = vst [vmem:[#allocation36_spill] sm:$0xff] %v12176_v6  ;;  %v10153_v63 = vpop.eup %10152  ;;  %v1807_v19 = vmin.f32 %v12155_v60, 0.0  ;;  %v12191_v34 = vadd.f32 %v11759_v44, %v11907_v18  ;;  %v12195_v62 = vmul.f32 %v11963_v23, %v12157_v36  ;;  %v1838_v51 = vmul.f32 1.442695, %v1813_v56 }
 0x2b7   : > { %v1816_v48 = vmin.f32 %v12162_v29, 0.0  ;;  %v12200_v5 = vadd.f32 %v11761_v50, %v11887_v61  ;;  %v9150_v42 = vadd.f32 -1.0, %v10151_v15  ;;  %v12203_v30 = vperm.slane %v12174_v10, 0 }
 0x2b8   : > { %v12207_v47 = vmul.f32 %v11957_v2, %v12176_v6  ;;  %v12209_v44 = vadd.f32 %v1444_v43, %v1191_v25  ;;  %v10155_v57 = vpop.eup %10154  ;;  %v9151_v32 = vadd.f32 -1.0, %v10153_v63  ;;  %10158 = vpow2.f32 %v1836_v54 }
 0x2b9   : > { %17451 = vst [vmem:[#allocation37_spill] sm:$0xff] %v12203_v30  ;;  %v1810_v56 = vmin.f32 %v12182_v14, 0.0  ;;  %v12214_v50 = vadd.f32 %v11763_v49, %v11943_v31  ;;  %10160 = vpow2.f32 %v1824_v41  ;;  %v1826_v15 = vmul.f32 1.442695, %v1807_v19  ;;  %v17452_v41 = vld [vmem:[#allocation15_spill] sm:$0xff] }
 0x2ba   : > { %v1817_v0 = vmin.f32 %v12191_v34, 0.0  ;;  %v12219_v23 = vadd.f32 %v11768_v59, %v11943_v31  ;;  %v10157_v25 = vpop.eup %10156  ;;  %vm1788_vm15 = vcmp.gt.f32.partialorder %v12032_v12, 0.0  ;;  %10162 = vpow2.f32 %v1838_v51  ;;  %v17453_v51 = vld [vmem:[#allocation16_spill] sm:$0xff] }
 0x2bb   : > { %v1844_v54 = vmul.f32 1.442695, %v1816_v48  ;;  %v1811_v43 = vmin.f32 %v12200_v5, 0.0  ;;  %v1868_v63 = vsel %vm1788_vm15, %v12032_v12, %v9150_v42  ;;  %vm1789_vm2 = vcmp.gt.f32.partialorder %v12037_v11, 0.0 }
 0x2bc   : > { %v9154_v49 = vadd.f32 -1.0, %v10155_v57  ;;  %v12227_v19 = vadd.f32 %v17452_v41, %v11907_v18  ;;  %v1869_v59 = vsel %vm1789_vm2, %v12037_v11, %v9151_v32  ;;  %v1832_v55 = vmul.f32 1.442695, %v1810_v56 }
 0x2bd   : > { %v1814_v36 = vmin.f32 %v12214_v50, 0.0  ;;  %v12234_v48 = vadd.f32 %v17453_v51, %v11907_v18  ;;  %v9155_v12 = vadd.f32 -1.0, %v10157_v25  ;;  %10164 = vpow2.f32 %v1826_v15  ;;  %v9122_v51 = vld [vmem:[%s11345_s24 + $0xa0] sm:$0xff] }
 0x2be   : > { %v1846_v42 = vmul.f32 1.442695, %v1817_v0  ;;  %v1815_v57 = vmin.f32 %v12219_v23, 0.0  ;;  %v10159_v40 = vpop.eup %10158  ;;  %v12239_v41 = vperm.slane %v12174_v10, 1  ;;  %vm1792_vm3 = vcmp.gt.f32.partialorder %v12076_v4, 0.0 }
 0x2bf   : > { %10166 = vpow2.f32 %v1844_v54  ;;  %v1834_v11 = vmul.f32 1.442695, %v1811_v43  ;;  %v10161_v32 = vpop.eup %10160  ;;  %v12242_v56 = vadd.f32 %v9118_v21, %v1868_v63  ;;  %v1872_v2 = vsel %vm1792_vm3, %v12076_v4, %v9154_v49 }
 0x2c0   : > { %17454 = vst [vmem:[#allocation15_spill] sm:$0xff] %v12239_v41  ;;  %vm1793_vm4 = vcmp.gt.f32.partialorder %v12087_v38, 0.0  ;;  %v1818_v0 = vmin.f32 %v12227_v19, 0.0  ;;  %v10163_v15 = vpop.eup %10162  ;;  %v12248_v25 = vadd.f32 %v9119_v20, %v1869_v59  ;;  %10168 = vpow2.f32 %v1832_v55 }
 0x2c1   : > { %17455 = vst [vmem:[#allocation16_spill] sm:$0xff] %v12242_v56  ;;  %v1840_v8 = vmul.f32 1.442695, %v1814_v36  ;;  %v1819_v6 = vmin.f32 %v12234_v48, 0.0  ;;  %v1873_v54 = vsel %vm1793_vm4, %v12087_v38, %v9155_v12  ;;  %v9158_v43 = vadd.f32 -1.0, %v10159_v40 }
 0x2c2   : > { %17456 = vst [vmem:[#allocation38_spill] sm:$0xff] %v12248_v25  ;;  %10170 = vpow2.f32 %v1846_v42  ;;  %v1842_v21 = vmul.f32 1.442695, %v1815_v57  ;;  %v12253_v63 = vadd.f32 %v9122_v51, %v1872_v2  ;;  %vm1796_vm0 = vcmp.gt.f32.partialorder %v12115_v39, 0.0  ;;  %v9126_v42 = vld [vmem:[%s11345_s24 + $0xc0] sm:$0xff] }
 0x2c3   : > { %v9152_v4 = vadd.f32 -1.0, %v10161_v32  ;;  %10172 = vpow2.f32 %v1834_v11  ;;  %v10165_v49 = vpop.eup %10164  ;;  %v2391_v55 = vmul.f32 %v12203_v30, %v12242_v56  ;;  %v9159_v20 = vadd.f32 -1.0, %v10163_v15  ;;  %v9127_v15 = vld [vmem:[%s11345_s24 + $0xc8] sm:$0xff] }
 0x2c4   : > { %17457 = vst [vmem:[#allocation39_spill] sm:$0xff] %v12253_v63  ;;  %v12260_v36 = vmul.f32 %v11959_v33, %v12209_v44  ;;  %v1848_v38 = vmul.f32 1.442695, %v1818_v0  ;;  %v12262_v59 = vadd.f32 %v9123_v35, %v1873_v54  ;;  %vm1797_vm1 = vcmp.gt.f32.partialorder %v12136_v3, 0.0  ;;  %v9120_v35 = vld [vmem:[%s11345_s24 + $0x90] sm:$0xff] }
 0x2c5   : > { %v10167_v40 = vpop.eup %10166  ;;  %10174 = vpow2.f32 %v1840_v8  ;;  %v1850_v2 = vmul.f32 1.442695, %v1819_v6  ;;  %v2392_v12 = vmul.f32 %v12239_v41, %v12248_v25  ;;  %v1876_v57 = vsel %vm1796_vm0, %v12115_v39, %v9158_v43 }
 0x2c6   : > { %17458 = vst [vmem:[#allocation40_spill] sm:$0xff] %v12262_v59  ;;  %vm1790_vm6 = vcmp.gt.f32.partialorder %v12128_v9, 0.0  ;;  %10176 = vpow2.f32 %v1842_v21  ;;  %v10169_v11 = vpop.eup %10168  ;;  %v2395_v32 = vmul.f32 %v12203_v30, %v12253_v63  ;;  %v12275_v0 = vperm.slane %v12174_v10, 2 }
 0x2c7   : > { %v1870_v51 = vsel %vm1790_vm6, %v12128_v9, %v9152_v4  ;;  %v12278_v8 = vperm.slane %v12174_v10, 3  ;;  %v1877_v39 = vsel %vm1797_vm1, %v12136_v3, %v9159_v20  ;;  %v9153_v54 = vadd.f32 -1.0, %v10165_v49 }
 0x2c8   : > { %17459 = vst [vmem:[#allocation41_spill] sm:$0xff] %v12275_v0  ;;  %v10171_v6 = vpop.eup %10170  ;;  %v9162_v43 = vadd.f32 -1.0, %v10167_v40  ;;  %10178 = vpow2.f32 %v1848_v38  ;;  %v2396_v9 = vmul.f32 %v12239_v41, %v12262_v59  ;;  %v12286_v4 = vadd.f32 %v9126_v42, %v1876_v57 }
 0x2c9   : > { %17460 = vst [vmem:[#allocation42_spill] sm:$0xff] %v12278_v8  ;;  %v10173_v21 = vpop.eup %10172  ;;  %vm1800_vm7 = vcmp.gt.f32.partialorder %v12162_v29, 0.0  ;;  %10180 = vpow2.f32 %v1850_v2  ;;  %v12290_v10 = vadd.f32 %v2391_v55, %v12041_v28  ;;  %v12293_v25 = vadd.f32 %v2392_v12, %v12045_v52  ;;  %v9121_v28 = vld [vmem:[%s11345_s24 + $0x98] sm:$0xff]  ;;  %v9130_v52 = vld [vmem:[%s11345_s24 + $0xe0] sm:$0xff] }
 0x2ca   : > { %17461 = vst [vmem:[#allocation43_spill] sm:$0xff] %v12286_v4  ;;  %v12295_v3 = vadd.f32 %v9120_v35, %v1870_v51  ;;  %v9156_v49 = vadd.f32 -1.0, %v10169_v11  ;;  %v12298_v38 = vadd.f32 %v2395_v32, %v12049_v46  ;;  %v12300_v40 = vadd.f32 %v9127_v15, %v1877_v39 }
 0x2cb   : > { %v10175_v20 = vpop.eup %10174  ;;  %vm1791_vm8 = vcmp.gt.f32.partialorder %v12155_v60, 0.0  ;;  %vm1794_vm9 = vcmp.gt.f32.partialorder %v12182_v14, 0.0  ;;  %v1880_v12 = vsel %vm1800_vm7, %v12162_v29, %v9162_v43  ;;  %v9163_v42 = vadd.f32 -1.0, %v10171_v6  ;;  %v9124_v29 = vld [vmem:[%s11345_s24 + $0xb0] sm:$0xff] }
 0x2cc   : > { %17462 = vst [vmem:[#allocation44_spill] sm:$0xff] %v12295_v3  ;;  %v10177_v2 = vpop.eup %10176  ;;  %v1871_v55 = vsel %vm1791_vm8, %v12155_v60, %v9153_v54  ;;  %v9157_v57 = vadd.f32 -1.0, %v10173_v21  ;;  %v12309_v11 = vadd.f32 %v2396_v9, %v12055_v53  ;;  %v2399_v46 = vmul.f32 %v12203_v30, %v12286_v4 }
 0x2cd   : > { %17463 = vst [vmem:[#allocation45_spill] sm:$0xff] %v12300_v40  ;;  %vm1801_vm10 = vcmp.gt.f32.partialorder %v12191_v34, 0.0  ;;  %vm1795_vm11 = vcmp.gt.f32.partialorder %v12200_v5, 0.0  ;;  %v2393_v60 = vmul.f32 %v12275_v0, %v12295_v3  ;;  %v1874_v53 = vsel %vm1794_vm9, %v12182_v14, %v9156_v49  ;;  %v9131_v3 = vld [vmem:[%s11345_s24 + $0xe8] sm:$0xff]  ;;  %v9125_v49 = vld [vmem:[%s11345_s24 + $0xb8] sm:$0xff] }
 0x2ce   : > { %v10179_v35 = vpop.eup %10178  ;;  %v9160_v51 = vadd.f32 -1.0, %v10175_v20  ;;  %v2400_v39 = vmul.f32 %v12239_v41, %v12300_v40  ;;  %v12326_v54 = vadd.f32 %v9121_v28, %v1871_v55  ;;  %v12328_v43 = vadd.f32 %v9130_v52, %v1880_v12  ;;  %v9128_v52 = vld [vmem:[%s11345_s24 + $0xd0] sm:$0xff] }
 0x2cf   : > { %v10181_v15 = vpop.eup %10180  ;;  %v9161_v21 = vadd.f32 -1.0, %v10177_v2  ;;  %v1881_v14 = vsel %vm1801_vm10, %v12191_v34, %v9163_v42  ;;  %v1875_v20 = vsel %vm1795_vm11, %v12200_v5, %v9157_v57  ;;  %v12342_v55 = vadd.f32 %v9124_v29, %v1874_v53  ;;  %v9129_v53 = vld [vmem:[%s11345_s24 + $0xd8] sm:$0xff] }
 0x2d0   : > { %17464 = vst [vmem:[#allocation46_spill] sm:$0xff] %v12326_v54  ;;  %vm1798_vm5 = vcmp.gt.f32.partialorder %v12214_v50, 0.0  ;;  %vm1799_vm12 = vcmp.gt.f32.partialorder %v12219_v23, 0.0  ;;  %v9164_v2 = vadd.f32 -1.0, %v10179_v35  ;;  %v9165_v12 = vadd.f32 -1.0, %v10181_v15 }
 0x2d1   : > { %17465 = vst [vmem:[#allocation47_spill] sm:$0xff] %v12328_v43  ;;  %v1878_v34 = vsel %vm1798_vm5, %v12214_v50, %v9160_v51  ;;  %v2394_v57 = vmul.f32 %v12278_v8, %v12326_v54  ;;  %v12353_v29 = vadd.f32 %v9125_v49, %v1875_v20  ;;  %v1879_v56 = vsel %vm1799_vm12, %v12219_v23, %v9161_v21  ;;  %v9133_v23 = vld [vmem:[%s11345_s24 + $0xf8] sm:$0xff] }
 0x2d2   : > { %17466 = vst [vmem:[#allocation48_spill] sm:$0xff] %v12342_v55  ;;  %v2403_v35 = vmul.f32 %v12203_v30, %v12328_v43  ;;  %vm1802_vm13 = vcmp.gt.f32.partialorder %v12227_v19, 0.0  ;;  %v2397_v51 = vmul.f32 %v12275_v0, %v12342_v55  ;;  %v12362_v15 = vadd.f32 %v9128_v52, %v1878_v34 }
 0x2d3   : > { %17468 = vst [vmem:[#allocation50_spill] sm:$0xff] %v12353_v29  ;;  %vm1803_vm14 = vcmp.gt.f32.partialorder %v12234_v48, 0.0  ;;  %v12367_v49 = vadd.f32 %v9129_v53, %v1879_v56  ;;  %v12378_v52 = vadd.f32 %v2393_v60, %v12059_v45  ;;  %v2398_v56 = vmul.f32 %v12278_v8, %v12353_v29 }
 0x2d4   : > { %17469 = vst [vmem:[#allocation51_spill] sm:$0xff] %v12362_v15  ;;  %v1883_v21 = vsel %vm1803_vm14, %v12234_v48, %v9165_v12  ;;  %v12385_v34 = vadd.f32 %v2400_v39, %v12260_v36  ;;  %v12394_v45 = vadd.f32 %v2394_v57, %v12082_v16  ;;  %v2401_v60 = vmul.f32 %v12275_v0, %v12362_v15 }
 0x2d5   : > { %17470 = vst [vmem:[#allocation52_spill] sm:$0xff] %v12367_v49  ;;  %v12404_v39 = vadd.f32 %v2397_v51, %v12091_v27  ;;  %v2402_v53 = vmul.f32 %v12278_v8, %v12367_v49  ;;  %v9190_v51 = vld [vmem:[%s11345_s24 + $0x100] sm:$0xff] }
 0x2e2   : > { %v2152_v9 = vpop.f32.mrf.mxu1 }
 0x2e3   : > { %v2123_v32 = vpop.f32.mrf.mxu0  ;;  %v12340_v28 = vadd.f32 %v2152_v9, %v11881_v37  ;;  %v12351_v9 = vadd.f32 %v9131_v3, %v1881_v14  ;;  %v1882_v3 = vsel %vm1802_vm13, %v12227_v19, %v9164_v2 }
 0x2e4   : > { %v12322_v6 = vadd.f32 %v2123_v32, %v11881_v37 }
 0x2e5   : > { %v2239_v5 = vmin.f32 %v12340_v28, 0.0  ;;  %17467 = vst [vmem:[#allocation49_spill] sm:$0xff] %v12351_v9  ;;  %v2404_v19 = vmul.f32 %v12239_v41, %v12351_v9  ;;  %vm2223_vm2 = vcmp.gt.f32.partialorder %v12340_v28, 0.0 }
 0x2e6   : > { %v2238_v32 = vmin.f32 %v12322_v6, 0.0  ;;  %vm2222_vm15 = vcmp.gt.f32.partialorder %v12322_v6, 0.0 }
 0x2e7   : > { %v2256_v50 = vmul.f32 1.442695, %v2239_v5  ;;  %v12401_v5 = vadd.f32 %v9133_v23, %v1883_v21  ;;  %v12410_v57 = vadd.f32 %v2404_v19, %v12123_v7  ;;  %v12422_v21 = vadd.f32 %v2401_v60, %v12166_v17  ;;  %v9191_v19 = vld [vmem:[%s11345_s24 + $0x108] sm:$0xff] }
 0x2e8   : > { %v2254_v42 = vmul.f32 1.442695, %v2238_v32  ;;  %v9132_v32 = vld [vmem:[%s11345_s24 + $0xf0] sm:$0xff] }
 0x2e9   : > { %v12387_v48 = vadd.f32 %v9132_v32, %v1882_v3  ;;  %17472 = vst [vmem:[#allocation54_spill] sm:$0xff] %v12401_v5  ;;  %v17473_v32 = vld [vmem:[#allocation17_spill] sm:$0xff] }
 0x2ea   : > { %10182 = vpow2.f32 %v2254_v42  ;;  %v12375_v42 = vadd.f32 %v2399_v46, %v12207_v47  ;;  %v2155_v2 = vpop.f32.mrf.mxu1  ;;  %v12397_v46 = vadd.f32 %v2403_v35, %v12119_v22  ;;  %v12413_v22 = vadd.f32 %v2398_v56, %v12095_v1 }
 0x2eb   : > { %v2126_v14 = vpop.f32.mrf.mxu0  ;;  %10184 = vpow2.f32 %v2256_v50  ;;  %17471 = vst [vmem:[#allocation53_spill] sm:$0xff] %v12387_v48  ;;  %v12391_v47 = vadd.f32 %v2155_v2, %v11887_v61  ;;  %v2356_v3 = vmul.f32 %v17473_v32, %v11937_v58  ;;  %v2405_v27 = vmul.f32 %v12275_v0, %v12387_v48 }
 0x2ec   : > { %v12372_v20 = vadd.f32 %v2126_v14, %v11887_v61  ;;  %v2406_v1 = vmul.f32 %v12278_v8, %v12401_v5  ;;  %v12429_v2 = vadd.f32 %v2402_v53, %v12170_v24 }
 0x2ed   : > { %v2243_v16 = vmin.f32 %v12391_v47, 0.0  ;;  %v12437_v60 = vperm.slane %v2356_v3, 0  ;;  %v12444_v53 = vadd.f32 %v2405_v27, %v12186_v26  ;;  %v12448_v32 = vperm.slane %v2356_v3, 1 }
 0x2ee   : > { %v2242_v12 = vmin.f32 %v12372_v20, 0.0  ;;  %vm2226_vm3 = vcmp.gt.f32.partialorder %v12372_v20, 0.0  ;;  %vm2227_vm4 = vcmp.gt.f32.partialorder %v12391_v47, 0.0  ;;  %v12463_v27 = vperm.slane %v2356_v3, 2 }
 0x2ef   : > { %v2264_v23 = vmul.f32 1.442695, %v2243_v16  ;;  %17475 = vst [vmem:[#allocation55_spill] sm:$0xff] %v12437_v60 }
 0x2f0   : > { %v10183_v36 = vpop.eup %10182  ;;  %v2262_v50 = vmul.f32 1.442695, %v2242_v12  ;;  %17477 = vst [vmem:[#allocation57_spill] sm:$0xff] %v12448_v32 }
 0x2f1   : > { %v9222_v35 = vadd.f32 -1.0, %v10183_v36  ;;  %v10185_v14 = vpop.eup %10184  ;;  %17478 = vst [vmem:[#allocation58_spill] sm:$0xff] %v12463_v27 }
 0x2f2   : > { %10186 = vpow2.f32 %v2262_v50  ;;  %v9223_v56 = vadd.f32 -1.0, %v10185_v14 }
 0x2f3   : > { %v2302_v7 = vsel %vm2222_vm15, %v12322_v6, %v9222_v35  ;;  %10188 = vpow2.f32 %v2264_v23  ;;  %v2158_v6 = vpop.f32.mrf.mxu1  ;;  %vm2656_vm15 = vcmask 261120  }
 0x2f4   : > { %v2129_v58 = vpop.f32.mrf.mxu0  ;;  %v12435_v17 = vadd.f32 %v9190_v51, %v2302_v7  ;;  %v2303_v50 = vsel %vm2223_vm2, %v12340_v28, %v9223_v56  ;;  %v12452_v51 = vadd.f32 %v2406_v1, %v12195_v62  ;;  %v12455_v28 = vadd.f32 %v2158_v6, %v11943_v31  ;;  %v9194_v1 = vld [vmem:[%s11345_s24 + $0x120] sm:$0xff] }
 0x2f5   : > { %v12433_v12 = vadd.f32 %v2129_v58, %v11943_v31  ;;  %v12446_v35 = vadd.f32 %v9191_v19, %v2303_v50 }
 0x2f6   : > { %17474 = vst [vmem:[#allocation17_spill] sm:$0xff] %v12435_v17  ;;  %v2432_v62 = vmul.f32 %v12437_v60, %v12435_v17  ;;  %v2247_v58 = vmin.f32 %v12455_v28, 0.0  ;;  %vm2231_vm1 = vcmp.gt.f32.partialorder %v12455_v28, 0.0 }
 0x2f7   : > { %17476 = vst [vmem:[#allocation56_spill] sm:$0xff] %v12446_v35  ;;  %v2246_v14 = vmin.f32 %v12433_v12, 0.0  ;;  %vm2230_vm0 = vcmp.gt.f32.partialorder %v12433_v12, 0.0 }
 0x2f8   : > { %v10187_v56 = vpop.eup %10186  ;;  %v2272_v29 = vmul.f32 1.442695, %v2247_v58 }
 0x2f9   : > { %v2181_v36 = vpop.f32.mrf.mxu2  ;;  %v2270_v26 = vmul.f32 1.442695, %v2246_v14  ;;  %v9226_v19 = vadd.f32 -1.0, %v10187_v56  ;;  %v10189_v50 = vpop.eup %10188 }
 0x2fa   : > { %v12441_v16 = vadd.f32 %v2181_v36, %v11881_v37  ;;  %v2210_v24 = vpop.f32.mrf.mxu3  ;;  %v9227_v54 = vadd.f32 -1.0, %v10189_v50 }
 0x2fb   : > { %v12459_v7 = vadd.f32 %v2210_v24, %v11881_v37  ;;  %v2433_v37 = vmul.f32 %v12448_v32, %v12446_v35  ;;  %10190 = vpow2.f32 %v2270_v26  ;;  %v12472_v24 = vperm.slane %v2356_v3, 3  ;;  %v9195_v3 = vld [vmem:[%s11345_s24 + $0x128] sm:$0xff] }
 0x2fc   : > { %v2240_v23 = vmin.f32 %v12441_v16, 0.0  ;;  %v2306_v14 = vsel %vm2226_vm3, %v12372_v20, %v9226_v19  ;;  %v2132_v55 = vpop.f32.mrf.mxu0  ;;  %v12482_v26 = vadd.f32 %v2432_v62, %v12290_v10  ;;  %v2307_v20 = vsel %vm2227_vm4, %v12391_v47, %v9227_v54  ;;  %v2161_v19 = vpop.f32.mrf.mxu1 }
 0x2fd   : > { %v2241_v6 = vmin.f32 %v12459_v7, 0.0  ;;  %17479 = vst [vmem:[#allocation59_spill] sm:$0xff] %v12472_v24  ;;  %v12475_v56 = vadd.f32 %v9194_v1, %v2306_v14  ;;  %vm2224_vm6 = vcmp.gt.f32.partialorder %v12441_v16, 0.0  ;;  %v12497_v62 = vadd.f32 %v2433_v37, %v12293_v25  ;;  %v9198_v14 = vld [vmem:[%s11345_s24 + $0x140] sm:$0xff] }
 0x2fe   : > { %v2258_v36 = vmul.f32 1.442695, %v2240_v23  ;;  %v12479_v23 = vadd.f32 %v2132_v55, %v11907_v18  ;;  %v12500_v54 = vadd.f32 %v2161_v19, %v11907_v18  ;;  %v12503_v47 = vadd.f32 %v9195_v3, %v2307_v20  ;;  %v9192_v20 = vld [vmem:[%s11345_s24 + $0x110] sm:$0xff] }
 0x2ff   : > { %17480 = vst [vmem:[#allocation60_spill] sm:$0xff] %v12475_v56  ;;  %v2260_v49 = vmul.f32 1.442695, %v2241_v6  ;;  %v2436_v55 = vmul.f32 %v12437_v60, %v12475_v56  ;;  %vm2225_vm7 = vcmp.gt.f32.partialorder %v12459_v7, 0.0 }
 0x300   : > { %10192 = vpow2.f32 %v2258_v36  ;;  %v2250_v10 = vmin.f32 %v12479_v23, 0.0  ;;  %17481 = vst [vmem:[#allocation61_spill] sm:$0xff] %v12503_v47  ;;  %v2251_v37 = vmin.f32 %v12500_v54, 0.0  ;;  %vm2234_vm8 = vcmp.gt.f32.partialorder %v12479_v23, 0.0 }
 0x301   : > { %v2184_v8 = vpop.f32.mrf.mxu2  ;;  %10194 = vpow2.f32 %v2272_v29  ;;  %v10191_v29 = vpop.eup %10190  ;;  %v12516_v3 = vadd.f32 %v2436_v55, %v12298_v38  ;;  %v2437_v38 = vmul.f32 %v12448_v32, %v12503_v47  ;;  %vm2235_vm10 = vcmp.gt.f32.partialorder %v12500_v54, 0.0 }
 0x302   : > { %v12489_v1 = vadd.f32 %v2184_v8, %v11887_v61  ;;  %v2213_v58 = vpop.f32.mrf.mxu3  ;;  %10196 = vpow2.f32 %v2260_v49  ;;  %v2278_v36 = vmul.f32 1.442695, %v2250_v10  ;;  %v9230_v25 = vadd.f32 -1.0, %v10191_v29 }
 0x303   : > { %v12507_v50 = vadd.f32 %v2213_v58, %v11887_v61  ;;  %v12513_v49 = vsub.f32 %v11986_v13, %v12482_v26  ;;  %v2280_v29 = vmul.f32 1.442695, %v2251_v37 }
 0x304   : > { %v2244_v8 = vmin.f32 %v12489_v1, 0.0  ;;  %10198 = vpow2.f32 %v2278_v36  ;;  %v2310_v10 = vsel %vm2230_vm0, %v12433_v12, %v9230_v25  ;;  %vm2228_vm9 = vcmp.gt.f32.partialorder %v12489_v1, 0.0  ;;  %v9199_v36 = vld [vmem:[%s11345_s24 + $0x148] sm:$0xff] }
 0x305   : > { %v12527_v55 = vadd.f32 %v9198_v14, %v2310_v10  ;;  %v9193_v10 = vld [vmem:[%s11345_s24 + $0x118] sm:$0xff]  ;;  %vm2229_vm11 = vcmp.gt.f32.partialorder %v12507_v50, 0.0 }
 0x306   : > { %v10193_v6 = vpop.eup %10192  ;;  %v2266_v19 = vmul.f32 1.442695, %v2244_v8  ;;  %v2245_v8 = vmin.f32 %v12507_v50, 0.0 }
 0x307   : > { %v9224_v61 = vadd.f32 -1.0, %v10193_v6  ;;  %v10195_v58 = vpop.eup %10194  ;;  %17482 = vst [vmem:[#allocation62_spill] sm:$0xff] %v12527_v55  ;;  %v2440_v14 = vmul.f32 %v12437_v60, %v12527_v55 }
 0x308   : > { %10200 = vpow2.f32 %v2266_v19  ;;  %v9231_v13 = vadd.f32 -1.0, %v10195_v58  ;;  %v10197_v12 = vpop.eup %10196  ;;  %v2268_v37 = vmul.f32 1.442695, %v2245_v8  ;;  %v12553_v8 = vadd.f32 %v2437_v38, %v12309_v11  ;;  %v9196_v11 = vld [vmem:[%s11345_s24 + $0x130] sm:$0xff] }
 0x309   : > { %v2304_v6 = vsel %vm2224_vm6, %v12441_v16, %v9224_v61  ;;  %v2187_v15 = vpop.f32.mrf.mxu2  ;;  %10202 = vpow2.f32 %v2280_v29  ;;  %v9225_v16 = vadd.f32 -1.0, %v10197_v12 }
 0x30a   : > { %v12533_v25 = vadd.f32 %v9192_v20, %v2304_v6  ;;  %v12536_v19 = vadd.f32 %v2187_v15, %v11943_v31  ;;  %v2216_v0 = vpop.f32.mrf.mxu3  ;;  %v2311_v58 = vsel %vm2231_vm1, %v12455_v28, %v9231_v13  ;;  %10204 = vpow2.f32 %v2268_v37  ;;  %v10199_v29 = vpop.eup %10198  ;;  %v9202_v6 = vld [vmem:[%s11345_s24 + $0x160] sm:$0xff] }
 0x30b   : > { %v12545_v61 = vadd.f32 %v2216_v0, %v11943_v31  ;;  %v12547_v20 = vadd.f32 %v9199_v36, %v2311_v58  ;;  %v12556_v13 = vadd.f32 %v2440_v14, %v12375_v42  ;;  %v2305_v31 = vsel %vm2225_vm7, %v12459_v7, %v9225_v16  ;;  %v17486_v7 = vld [vmem:[#allocation24_spill] sm:$0xff] }
 0x30c   : > { %17483 = vst [vmem:[#allocation63_spill] sm:$0xff] %v12533_v25  ;;  %v2434_v15 = vmul.f32 %v12463_v27, %v12533_v25  ;;  %v2248_v0 = vmin.f32 %v12536_v19, 0.0  ;;  %v9234_v12 = vadd.f32 -1.0, %v10199_v29  ;;  %v12565_v37 = vadd.f32 %v9193_v10, %v2305_v31  ;;  %v17488_v31 = vld [vmem:[#allocation36_spill] sm:$0xff] }
 0x30d   : > { %17484 = vst [vmem:[#allocation64_spill] sm:$0xff] %v12547_v20  ;;  %v2441_v36 = vmul.f32 %v12448_v32, %v12547_v20  ;;  %v2249_v14 = vmin.f32 %v12545_v61, 0.0  ;;  %v12572_v58 = vsub.f32 %v17486_v7, %v12516_v3  ;;  %v9203_v7 = vld [vmem:[%s11345_s24 + $0x168] sm:$0xff]  ;;  %vm2232_vm5 = vcmp.gt.f32.partialorder %v12536_v19, 0.0 }
 0x30e   : > { %v10201_v28 = vpop.eup %10200  ;;  %17485 = vst [vmem:[#allocation65_spill] sm:$0xff] %v12565_v37  ;;  %v2274_v38 = vmul.f32 1.442695, %v2248_v0  ;;  %v2314_v25 = vsel %vm2234_vm8, %v12479_v23, %v9234_v12  ;;  %v12578_v29 = vadd.f32 %v2434_v15, %v12378_v52  ;;  %v2435_v10 = vmul.f32 %v12472_v24, %v12565_v37 }
 0x30f   : > { %v9228_v42 = vadd.f32 -1.0, %v10201_v28  ;;  %v10203_v16 = vpop.eup %10202  ;;  %v12584_v0 = vsub.f32 %v17488_v31, %v12556_v13  ;;  %v12586_v28 = vadd.f32 %v9202_v6, %v2314_v25  ;;  %v12594_v15 = vadd.f32 %v2441_v36, %v12385_v34 }
 0x310   : > { %17487 = vst [vmem:[#allocation66_spill] sm:$0xff] %v12578_v29  ;;  %v9235_v5 = vadd.f32 -1.0, %v10203_v16  ;;  %10206 = vpow2.f32 %v2274_v38  ;;  %v10205_v23 = vpop.eup %10204  ;;  %v2276_v37 = vmul.f32 1.442695, %v2249_v14  ;;  %vm2233_vm12 = vcmp.gt.f32.partialorder %v12545_v61, 0.0 }
 0x311   : > { %17489 = vst [vmem:[#allocation36_spill] sm:$0xff] %v12586_v28  ;;  %v2308_v48 = vsel %vm2228_vm9, %v12489_v1, %v9228_v42  ;;  %v2190_v52 = vpop.f32.mrf.mxu2  ;;  %v2444_v16 = vmul.f32 %v12437_v60, %v12586_v28  ;;  %v9197_v42 = vld [vmem:[%s11345_s24 + $0x138] sm:$0xff]  ;;  %v9229_v38 = vadd.f32 -1.0, %v10205_v23  ;;  %v2520_v36 = vsub.f32 %v12286_v4, %v12556_v13 }
 0x312   : > { %v12596_v12 = vadd.f32 %v9196_v11, %v2308_v48  ;;  %v12599_v25 = vadd.f32 %v2190_v52, %v11907_v18  ;;  %v2219_v6 = vpop.f32.mrf.mxu3  ;;  %v2315_v1 = vsel %vm2235_vm10, %v12500_v54, %v9235_v5  ;;  %10208 = vpow2.f32 %v2276_v37  ;;  %v17494_v23 = vld [vmem:[#allocation30_spill] sm:$0xff] }
 0x313   : > { %v12608_v29 = vadd.f32 %v2219_v6, %v11907_v18  ;;  %v12610_v34 = vadd.f32 %v9203_v7, %v2315_v1  ;;  %v12618_v11 = vadd.f32 %v2444_v16, %v12397_v46  ;;  %v12621_v5 = vadd.f32 %v2435_v10, %v12394_v45  ;;  %v9200_v1 = vld [vmem:[%s11345_s24 + $0x150] sm:$0xff] }
 0x314   : > { %17490 = vst [vmem:[#allocation67_spill] sm:$0xff] %v12596_v12  ;;  %v2438_v48 = vmul.f32 %v12463_v27, %v12596_v12  ;;  %v2309_v18 = vsel %vm2229_vm11, %v12507_v50, %v9229_v38  ;;  %v2252_v54 = vmin.f32 %v12599_v25, 0.0  ;;  %vm2236_vm13 = vcmp.gt.f32.partialorder %v12599_v25, 0.0 }
 0x315   : > { %17491 = vst [vmem:[#allocation68_spill] sm:$0xff] %v12610_v34  ;;  %v2445_v14 = vmul.f32 %v12448_v32, %v12610_v34  ;;  %v12632_v7 = vadd.f32 %v9197_v42, %v2309_v18  ;;  %v2253_v46 = vmin.f32 %v12608_v29, 0.0  ;;  %v2588_v45 = vsub.f32 %v12586_v28, %v12618_v11 }
 0x316   : > { %17492 = vst [vmem:[#allocation69_spill] sm:$0xff] %v12621_v5  ;;  %v12630_v37 = vadd.f32 %v2438_v48, %v12404_v39  ;;  %v10207_v52 = vpop.eup %10206  ;;  %v2282_v10 = vmul.f32 1.442695, %v2252_v54  ;;  %v2476_v50 = vsub.f32 %v17494_v23, %v12618_v11  ;;  %v2524_v6 = vsub.f32 %v12328_v43, %v12618_v11 }
 0x317   : > { %17493 = vst [vmem:[#allocation70_spill] sm:$0xff] %v12632_v7  ;;  %v12642_v16 = vadd.f32 %v2445_v14, %v12410_v57  ;;  %v2439_v39 = vmul.f32 %v12472_v24, %v12632_v7  ;;  %v9232_v42 = vadd.f32 -1.0, %v10207_v52  ;;  %v2284_v38 = vmul.f32 1.442695, %v2253_v46  ;;  %v9201_v52 = vld [vmem:[%s11345_s24 + $0x158] sm:$0xff] }
 0x318   : > { %10210 = vpow2.f32 %v2282_v10  ;;  %v2492_v48 = vmul.f32 %v2476_v50, %v2476_v50  ;;  %v2540_v18 = vmul.f32 %v2524_v6, %v2524_v6  ;;  %v2604_v54 = vmul.f32 %v2588_v45, %v2588_v45  ;;  %v10209_v28 = vpop.eup %10208  ;;  %v17496_v50 = vld [vmem:[#allocation18_spill] sm:$0xff] }
 0x319   : > { %v2589_v4 = vsub.f32 %v12610_v34, %v12642_v16  ;;  %v12651_v57 = vadd.f32 %v2439_v39, %v12413_v22  ;;  %v2312_v14 = vsel %vm2232_vm5, %v12536_v19, %v9232_v42  ;;  %vm2237_vm14 = vcmp.gt.f32.partialorder %v12608_v29, 0.0  ;;  %v17497_v22 = vld [vmem:[#allocation31_spill] sm:$0xff] }
 0x31a   : > { %10212 = vpow2.f32 %v2284_v38  ;;  %v12657_v46 = vadd.f32 %v9200_v1, %v2312_v14  ;;  %v9233_v10 = vadd.f32 -1.0, %v10209_v28  ;;  %v2508_v45 = vmul.f32 %v2492_v48, %v17496_v50 }
 0x31b   : > { %v2556_v6 = vmul.f32 %v2540_v18, %v12203_v30  ;;  %v2620_v34 = vmul.f32 %v2604_v54, %v12437_v60  ;;  %v2477_v39 = vsub.f32 %v17497_v22, %v12642_v16  ;;  %v2525_v43 = vsub.f32 %v12351_v9, %v12642_v16 }
 0x31c   : > { %17495 = vst [vmem:[#allocation30_spill] sm:$0xff] %v12657_v46  ;;  %v2605_v19 = vmul.f32 %v2589_v4, %v2589_v4  ;;  %v2442_v1 = vmul.f32 %v12463_v27, %v12657_v46  ;;  %v2313_v28 = vsel %vm2233_vm12, %v12545_v61, %v9233_v10  ;;  %v2488_v38 = vmul.f32 %v12584_v0, %v12584_v0  ;;  %v9204_v0 = vld [vmem:[%s11345_s24 + $0x170] sm:$0xff] }
 0x31d   : > { %v2572_v42 = vadd.f32 %v2556_v6, %v2508_v45  ;;  %v12674_v48 = vadd.f32 %v9201_v52, %v2313_v28  ;;  %v2493_v18 = vmul.f32 %v2477_v39, %v2477_v39  ;;  %v2541_v54 = vmul.f32 %v2525_v43, %v2525_v43  ;;  %v9205_v6 = vld [vmem:[%s11345_s24 + $0x178] sm:$0xff]  ;;  %s17656_s24 = smov %s17655_s8 }
 0x31e   : > { %v2621_v14 = vmul.f32 %v2605_v19, %v12448_v32  ;;  %v10211_v4 = vpop.eup %10210  ;;  %v12678_v9 = vadd.f32 %v2442_v1, %v12422_v21  ;;  %v2504_v22 = vmul.f32 %v2488_v38, %v17496_v50  ;;  %v2536_v7 = vmul.f32 %v2520_v36, %v2520_v36 }
 0x31f   : > { %17498 = vst [vmem:[#allocation71_spill] sm:$0xff] %v12674_v48  ;;  %v2636_v5 = vadd.f32 %v2620_v34, %v2572_v42  ;;  %v2443_v10 = vmul.f32 %v12472_v24, %v12674_v48  ;;  %v9236_v45 = vadd.f32 -1.0, %v10211_v4  ;;  %v2509_v52 = vmul.f32 %v2493_v18, %v11959_v33 }
 0x320   : > { %v10213_v61 = vpop.eup %10212  ;;  %v2557_v43 = vmul.f32 %v2541_v54, %v12239_v41  ;;  %v2552_v21 = vmul.f32 %v2536_v7, %v12203_v30  ;;  %v2584_v34 = vsub.f32 %v12527_v55, %v12556_v13  ;;  %v2473_v36 = vsub.f32 %v12209_v44, %v12594_v15  ;;  %v17517_v55 = vld [vmem:[#allocation52_spill] sm:$0xff] }
 0x321   : > { %v9237_v39 = vadd.f32 -1.0, %v10213_v61  ;;  %2693 = vmatpush.msra.mxu0 %v2636_v5  ;;  %v12693_v19 = vadd.f32 %v2443_v10, %v12429_v2  ;;  %v2316_v1 = vsel %vm2236_vm13, %v12599_v25, %v9236_v45  ;;  %v2521_v42 = vsub.f32 %v12300_v40, %v12594_v15 }
 0x322   : > { %v2573_v28 = vadd.f32 %v2557_v43, %v2509_v52  ;;  %v12700_v5 = vadd.f32 %v9204_v0, %v2316_v1  ;;  %v2568_v38 = vadd.f32 %v2552_v21, %v2504_v22  ;;  %v2600_v18 = vmul.f32 %v2584_v34, %v2584_v34 }
 0x323   : > { %v2317_v7 = vsel %vm2237_vm14, %v12608_v29, %v9237_v39  ;;  %v2489_v4 = vmul.f32 %v2473_v36, %v2473_v36  ;;  %v2537_v61 = vmul.f32 %v2521_v42, %v2521_v42  ;;  %v2585_v0 = vsub.f32 %v12547_v20, %v12594_v15 }
 0x324   : > { %17499 = vst [vmem:[#allocation72_spill] sm:$0xff] %v12700_v5  ;;  %v12705_v54 = vadd.f32 %v9205_v6, %v2317_v7  ;;  %v2637_v2 = vadd.f32 %v2621_v14, %v2573_v28  ;;  %v2446_v25 = vmul.f32 %v12463_v27, %v12700_v5  ;;  %v2616_v10 = vmul.f32 %v2600_v18, %v12437_v60 }
 0x325   : > { %v2484_v45 = vmul.f32 %v12572_v58, %v12572_v58  ;;  %v2505_v22 = vmul.f32 %v2489_v4, %v11959_v33  ;;  %v2553_v14 = vmul.f32 %v2537_v61, %v12239_v41  ;;  %v2516_v52 = vsub.f32 %v12253_v63, %v12516_v3 }
 0x326   : > { %17500 = vst [vmem:[#allocation73_spill] sm:$0xff] %v12705_v54  ;;  %v2447_v29 = vmul.f32 %v12472_v24, %v12705_v54  ;;  %2734 = vmatpush.msra.mxu1 %v2637_v2  ;;  %v12721_v43 = vadd.f32 %v2446_v25, %v12444_v53  ;;  %v2632_v6 = vadd.f32 %v2616_v10, %v2568_v38  ;;  %v17501_v53 = vld [vmem:[#allocation25_spill] sm:$0xff] }
 0x327   : > { %v2601_v39 = vmul.f32 %v2585_v0, %v2585_v0  ;;  %v2500_v21 = vmul.f32 %v2484_v45, %v17496_v50  ;;  %v2569_v34 = vadd.f32 %v2553_v14, %v2505_v22  ;;  %v2532_v36 = vmul.f32 %v2516_v52, %v2516_v52  ;;  %v17502_v14 = vld [vmem:[#allocation16_spill] sm:$0xff] }
 0x328   : > { %v12725_v58 = vadd.f32 %v2447_v29, %v12452_v51  ;;  %v2580_v1 = vsub.f32 %v12475_v56, %v12516_v3  ;;  %v2590_v28 = vsub.f32 %v12700_v5, %v12721_v43  ;;  %2694 = vmatpush.msra.mxu0 %v2632_v6  ;;  %v2469_v7 = vsub.f32 %v17501_v53, %v12553_v8  ;;  %v17506_v5 = vld [vmem:[#allocation53_spill] sm:$0xff] }
 0x329   : > { %v2617_v42 = vmul.f32 %v2601_v39, %v12448_v32  ;;  %v2517_v38 = vsub.f32 %v12262_v59, %v12553_v8  ;;  %v2548_v18 = vmul.f32 %v2532_v36, %v12203_v30  ;;  %v2581_v4 = vsub.f32 %v12503_v47, %v12553_v8  ;;  %v17513_v47 = vld [vmem:[#allocation51_spill] sm:$0xff] }
 0x32a   : > { %v2591_v51 = vsub.f32 %v12705_v54, %v12725_v58  ;;  %v2596_v2 = vmul.f32 %v2580_v1, %v2580_v1  ;;  %v2485_v25 = vmul.f32 %v2469_v7, %v2469_v7  ;;  %v2480_v0 = vmul.f32 %v12513_v49, %v12513_v49 }
 0x32b   : > { %v2633_v61 = vadd.f32 %v2617_v42, %v2569_v34  ;;  %v2533_v10 = vmul.f32 %v2517_v38, %v2517_v38  ;;  %v2564_v45 = vadd.f32 %v2548_v18, %v2500_v21  ;;  %v2597_v22 = vmul.f32 %v2581_v4, %v2581_v4  ;;  %v17503_v42 = vld [vmem:[#allocation23_spill] sm:$0xff] }
 0x32c   : > { %v2612_v29 = vmul.f32 %v2596_v2, %v12437_v60  ;;  %v2512_v52 = vsub.f32 %v17502_v14, %v12482_v26  ;;  %v2501_v6 = vmul.f32 %v2485_v25, %v11959_v33  ;;  %v2496_v36 = vmul.f32 %v2480_v0, %v17496_v50  ;;  %v17504_v2 = vld [vmem:[#allocation38_spill] sm:$0xff] }
 0x32d   : > { %2735 = vmatpush.msra.mxu1 %v2633_v61  ;;  %v2549_v39 = vmul.f32 %v2533_v10, %v12239_v41  ;;  %v2576_v34 = vsub.f32 %v12435_v17, %v12482_v26  ;;  %v2613_v49 = vmul.f32 %v2597_v22, %v12448_v32  ;;  %v2465_v7 = vsub.f32 %v17503_v42, %v12497_v62  ;;  %v17505_v0 = vld [vmem:[#allocation34_spill] sm:$0xff]  ;;  %v17507_v17 = vld [vmem:[#allocation35_spill] sm:$0xff] }
 0x32e   : > { %v2628_v1 = vadd.f32 %v2612_v29, %v2564_v45  ;;  %v2528_v21 = vmul.f32 %v2512_v52, %v2512_v52  ;;  %v2513_v4 = vsub.f32 %v17504_v2, %v12497_v62  ;;  %v2577_v61 = vsub.f32 %v12446_v35, %v12497_v62 }
 0x32f   : > { %v2565_v38 = vadd.f32 %v2549_v39, %v2501_v6  ;;  %v2592_v18 = vmul.f32 %v2576_v34, %v2576_v34  ;;  %v2481_v10 = vmul.f32 %v2465_v7, %v2465_v7  ;;  %v2478_v45 = vsub.f32 %v17505_v0, %v12721_v43 }
 0x330   : > { %2695 = vmatpush.msra.mxu0 %v2628_v1  ;;  %v2544_v25 = vmul.f32 %v2528_v21, %v12203_v30  ;;  %v2529_v52 = vmul.f32 %v2513_v4, %v2513_v4  ;;  %v2593_v6 = vmul.f32 %v2577_v61, %v2577_v61  ;;  %v2526_v35 = vsub.f32 %v17506_v5, %v12721_v43 }
 0x331   : > { %v2629_v29 = vadd.f32 %v2613_v49, %v2565_v38  ;;  %v2608_v22 = vmul.f32 %v2592_v18, %v12437_v60  ;;  %v2497_v34 = vmul.f32 %v2481_v10, %v11959_v33  ;;  %v2494_v54 = vmul.f32 %v2478_v45, %v2478_v45  ;;  %v17509_v18 = vld [vmem:[#allocation20_spill] sm:$0xff] }
 0x332   : > { %v2560_v39 = vadd.f32 %v2544_v25, %v2496_v36  ;;  %v2545_v1 = vmul.f32 %v2529_v52, %v12239_v41  ;;  %v2609_v21 = vmul.f32 %v2593_v6, %v12448_v32  ;;  %v2606_v7 = vmul.f32 %v2590_v28, %v2590_v28  ;;  %v12772_v36 = vld [vmem:[%s17508_s3] sm:$0xff] }
 0x333   : > { %2736 = vmatpush.msra.mxu1 %v2629_v29  ;;  %v2479_v49 = vsub.f32 %v17507_v17, %v12725_v58  ;;  %v2510_v4 = vmul.f32 %v2494_v54, %v17509_v18  ;;  %v2542_v61 = vmul.f32 %v2526_v35, %v2526_v35  ;;  %v17510_v25 = vld [vmem:[#allocation54_spill] sm:$0xff]  ;;  %v2607_v28 = vmul.f32 %v2591_v51, %v2591_v51  ;;  %v17511_v6 = vld [vmem:[#allocation41_spill] sm:$0xff] }
 0x334   : > { %v2624_v38 = vadd.f32 %v2608_v22, %v2560_v39  ;;  %v2527_v10 = vsub.f32 %v17510_v25, %v12725_v58  ;;  %v2561_v45 = vadd.f32 %v2545_v1, %v2497_v34  ;;  %v2622_v29 = vmul.f32 %v2606_v7, %v12463_v27  ;;  %v17512_v39 = vld [vmem:[#allocation32_spill] sm:$0xff]  ;;  %v17514_v35 = vld [vmem:[#allocation21_spill] sm:$0xff] }
 0x335   : > { %v2495_v52 = vmul.f32 %v2479_v49, %v2479_v49  ;;  %v2558_v32 = vmul.f32 %v2542_v61, %v17511_v6  ;;  %v2474_v60 = vsub.f32 %v17512_v39, %v12678_v9  ;;  %v2522_v56 = vsub.f32 %v17513_v47, %v12678_v9  ;;  %v17515_v49 = vld [vmem:[#allocation42_spill] sm:$0xff] }
 0x336   : > { %2696 = vmatpush.msra.mxu0 %v2624_v38  ;;  %v2543_v22 = vmul.f32 %v2527_v10, %v2527_v10  ;;  %v2625_v54 = vadd.f32 %v2609_v21, %v2561_v45  ;;  %v2623_v1 = vmul.f32 %v2607_v28, %v12472_v24  ;;  %v2586_v51 = vsub.f32 %v12657_v46, %v12678_v9  ;;  %v17516_v21 = vld [vmem:[#allocation33_spill] sm:$0xff]  ;;  %v17518_v46 = vld [vmem:[#allocation28_spill] sm:$0xff] }
 0x337   : > { %9239 = vmatmul.msk.f32.vlgmr.msra.gmra.mxu0 %vm2656_vm15, %v12772_v36  ;;  %v2511_v34 = vmul.f32 %v2495_v52, %v17514_v35  ;;  %v2574_v7 = vadd.f32 %v2558_v32, %v2510_v4  ;;  %v2490_v61 = vmul.f32 %v2474_v60, %v2474_v60  ;;  %v2538_v10 = vmul.f32 %v2522_v56, %v2522_v56 }
 0x338   : > { %2881 = vmatpush.msrb.mxu0 %v12618_v11  ;;  %v2559_v38 = vmul.f32 %v2543_v22, %v17515_v49  ;;  %2737 = vmatpush.msra.mxu1 %v2625_v54  ;;  %v2602_v20 = vmul.f32 %v2586_v51, %v2586_v51  ;;  %v2475_v45 = vsub.f32 %v17516_v21, %v12693_v19 }
 0x339   : > { %v2523_v52 = vsub.f32 %v17517_v55, %v12693_v19  ;;  %v2587_v28 = vsub.f32 %v12674_v48, %v12693_v19  ;;  %9247 = vmatmul.msk.f32.vlgmr.msra.gmra.mxu1 %vm2656_vm15, %v12772_v36  ;;  %v2638_v32 = vadd.f32 %v2622_v29, %v2574_v7  ;;  %v2506_v60 = vmul.f32 %v2490_v61, %v17509_v18 }
 0x33a   : > { %2882 = vmatpush.msrb.mxu0 %v12556_v13  ;;  %v2575_v11 = vadd.f32 %v2559_v38, %v2511_v34  ;;  %2922 = vmatpush.msrb.mxu1 %v12642_v16  ;;  %v2554_v56 = vmul.f32 %v2538_v10, %v17511_v6  ;;  %v2618_v4 = vmul.f32 %v2602_v20, %v12463_v27  ;;  %v12811_v16 = vld [vmem:[%s17508_s3 + $0x8] sm:$0xff] }
 0x33b   : > { %v2491_v22 = vmul.f32 %v2475_v45, %v2475_v45  ;;  %v2539_v54 = vmul.f32 %v2523_v52, %v2523_v52  ;;  %2775 = vmatpush.msra.mxu2 %v2638_v32  ;;  %v2603_v48 = vmul.f32 %v2587_v28, %v2587_v28  ;;  %v2470_v13 = vsub.f32 %v17518_v46, %v12630_v37  ;;  %v17520_v28 = vld [vmem:[#allocation29_spill] sm:$0xff]  ;;  %v17521_v32 = vld [vmem:[#allocation50_spill] sm:$0xff] }
 0x33c   : > { %2883 = vmatpush.msrb.mxu0 %v12516_v3  ;;  %v2639_v51 = vadd.f32 %v2623_v1, %v2575_v11  ;;  %2923 = vmatpush.msrb.mxu1 %v12594_v15  ;;  %v2570_v29 = vadd.f32 %v2554_v56, %v2506_v60  ;;  %v17519_v3 = vld [vmem:[#allocation48_spill] sm:$0xff]  ;;  %v2582_v15 = vsub.f32 %v12596_v12, %v12630_v37  ;;  %v17522_v60 = vld [vmem:[#allocation70_spill] sm:$0xff] }
 0x33d   : > { %v2507_v20 = vmul.f32 %v2491_v22, %v17514_v35  ;;  %v2555_v34 = vmul.f32 %v2539_v54, %v17515_v49  ;;  %v2518_v7 = vsub.f32 %v17519_v3, %v12630_v37  ;;  %v2619_v1 = vmul.f32 %v2603_v48, %v12472_v24 }
 0x33e   : > { %2884 = vmatpush.msrb.mxu0 %v12482_v26  ;;  %2816 = vmatpush.msra.mxu3 %v2639_v51  ;;  %v2486_v38 = vmul.f32 %v2470_v13, %v2470_v13  ;;  %v2634_v61 = vadd.f32 %v2618_v4, %v2570_v29  ;;  %v2598_v26 = vmul.f32 %v2582_v15, %v2582_v15  ;;  %v17523_v4 = vld [vmem:[#allocation31_spill] sm:$0xff]  ;;  %v17524_v13 = vld [vmem:[#allocation24_spill] sm:$0xff]  ;;  %v17525_v29 = vld [vmem:[#allocation66_spill] sm:$0xff] }
 0x33f   : > { %2924 = vmatpush.msrb.mxu1 %v12553_v8  ;;  %v2571_v10 = vadd.f32 %v2555_v34, %v2507_v20  ;;  %v2534_v45 = vmul.f32 %v2518_v7, %v2518_v7  ;;  %9240 = vmatmul.msk.f32.gmra.mxu0 %vm2656_vm15, %v12811_v16  ;;  %v2471_v48 = vsub.f32 %v17520_v28, %v12651_v57  ;;  %v17526_v20 = vld [vmem:[#allocation26_spill] sm:$0xff] }
 0x340   : > { %3157 = vmatpush.msra.mxu0 %v17494_v23  ;;  %v2502_v52 = vmul.f32 %v2486_v38, %v17509_v18  ;;  %v2519_v11 = vsub.f32 %v17521_v32, %v12651_v57  ;;  %v2583_v56 = vsub.f32 %v17522_v60, %v12651_v57  ;;  %2776 = vmatpush.msra.mxu2 %v2634_v61  ;;  %v17527_v38 = vld [vmem:[#allocation44_spill] sm:$0xff]  ;;  %v17528_v61 = vld [vmem:[#allocation22_spill] sm:$0xff] }
 0x341   : > { %2925 = vmatpush.msrb.mxu1 %v12497_v62  ;;  %v2635_v8 = vadd.f32 %v2619_v1, %v2571_v10  ;;  %v2550_v23 = vmul.f32 %v2534_v45, %v17511_v6  ;;  %v2614_v22 = vmul.f32 %v2598_v26, %v12463_v27  ;;  %v2487_v54 = vmul.f32 %v2471_v48, %v2471_v48  ;;  %v12851_v10 = vld [vmem:[%s17508_s3 + $0x10] sm:$0xff] }
 0x342   : > { %3158 = vmatpush.msra.mxu0 %v17488_v31  ;;  %v2535_v51 = vmul.f32 %v2519_v11, %v2519_v11  ;;  %9248 = vmatmul.msk.f32.gmra.mxu1 %vm2656_vm15, %v12811_v16  ;;  %v2599_v31 = vmul.f32 %v2583_v56, %v2583_v56  ;;  %v2466_v34 = vsub.f32 %v17526_v20, %v17525_v29  ;;  %v17531_v56 = vld [vmem:[#allocation27_spill] sm:$0xff] }
 0x343   : > { %3198 = vmatpush.msra.mxu1 %v17523_v4  ;;  %v2566_v62 = vadd.f32 %v2550_v23, %v2502_v52  ;;  %2817 = vmatpush.msra.mxu3 %v2635_v8  ;;  %v2503_v7 = vmul.f32 %v2487_v54, %v17514_v35  ;;  %v2514_v15 = vsub.f32 %v17527_v38, %v17525_v29  ;;  %v17530_v23 = vld [vmem:[#allocation69_spill] sm:$0xff]  ;;  %v17532_v54 = vld [vmem:[#allocation46_spill] sm:$0xff] }
 0x344   : > { %3159 = vmatpush.msra.mxu0 %v17524_v13  ;;  %v2551_v1 = vmul.f32 %v2535_v51, %v17515_v49  ;;  %v2615_v52 = vmul.f32 %v2599_v31, %v12472_v24  ;;  %v2482_v26 = vmul.f32 %v2466_v34, %v2466_v34  ;;  %v2467_v4 = vsub.f32 %v17531_v56, %v17530_v23 }
 0x345   : > { %3199 = vmatpush.msra.mxu1 %v12209_v44  ;;  %v2630_v45 = vadd.f32 %v2614_v22, %v2566_v62  ;;  %v17529_v44 = vld [vmem:[#allocation63_spill] sm:$0xff]  ;;  %v2530_v8 = vmul.f32 %v2514_v15, %v2514_v15  ;;  %v2515_v51 = vsub.f32 %v17532_v54, %v17530_v23  ;;  %v17533_v62 = vld [vmem:[#allocation65_spill] sm:$0xff] }
 0x346   : > { %3160 = vmatpush.msra.mxu0 %v17528_v61  ;;  %v2578_v48 = vsub.f32 %v17529_v44, %v17525_v29  ;;  %v2567_v11 = vadd.f32 %v2551_v1, %v2503_v7  ;;  %v2498_v13 = vmul.f32 %v2482_v26, %v17509_v18  ;;  %v2579_v31 = vsub.f32 %v17533_v62, %v17530_v23 }
 0x347   : > { %3200 = vmatpush.msra.mxu1 %v17501_v53  ;;  %2777 = vmatpush.msra.mxu2 %v2630_v45  ;;  %v2546_v34 = vmul.f32 %v2530_v8, %v17511_v6  ;;  %v2483_v7 = vmul.f32 %v2467_v4, %v2467_v4  ;;  %v2531_v1 = vmul.f32 %v2515_v51, %v2515_v51  ;;  %v2652_v4 = vld [vmem:[%s17508_s3 + $0x20] sm:$0xff] }
 0x348   : > { %v2594_v22 = vmul.f32 %v2578_v48, %v2578_v48  ;;  %9241 = vmatmul.msk.f32.gmra.mxu0 %vm2656_vm15, %v12851_v10  ;;  %v2631_v53 = vadd.f32 %v2615_v52, %v2567_v11  ;;  %v2595_v15 = vmul.f32 %v2579_v31, %v2579_v31  ;;  %v2651_v11 = vld [vmem:[%s17508_s3 + $0x18] sm:$0xff] }
 0x349   : > { %3201 = vmatpush.msra.mxu1 %v17503_v42  ;;  %v2562_v61 = vadd.f32 %v2546_v34, %v2498_v13  ;;  %v2499_v26 = vmul.f32 %v2483_v7, %v17514_v35  ;;  %v2547_v42 = vmul.f32 %v2531_v1, %v17515_v49  ;;  %v3117_v7 = vld [vmem:[%s17535_s21 + $0x20] sm:$0xff] }
 0x34a   : > { %2818 = vmatpush.msra.mxu3 %v2631_v53  ;;  %v2610_v45 = vmul.f32 %v2594_v22, %v12463_v27  ;;  %9249 = vmatmul.msk.f32.gmra.mxu1 %vm2656_vm15, %v12851_v10  ;;  %v2611_v52 = vmul.f32 %v2595_v15, %v12472_v24  ;;  %v3116_v22 = vld [vmem:[%s17535_s21 + $0x18] sm:$0xff] }
 0x34b   : > { %v2563_v62 = vadd.f32 %v2547_v42, %v2499_v26 }
 0x34c   : > { %v2626_v48 = vadd.f32 %v2610_v45, %v2562_v61  ;;  %v3118_v45 = vld [vmem:[%s17535_s21 + $0x28] sm:$0xff] }
 0x34d   : > { %v2627_v8 = vadd.f32 %v2611_v52, %v2563_v62 }
 0x34e   : > { %2778 = vmatpush.msra.mxu2 %v2626_v48 }
 0x34f   : > { %9255 = vmatmul.msk.f32.vlgmr.msra.gmra.mxu2 %vm2656_vm15, %v12772_v36  ;;  %2819 = vmatpush.msra.mxu3 %v2627_v8 }
 0x350   : > { %9242 = vmatmul.msk.f32.gmra.mxu0 %vm2656_vm15, %v2651_v11  ;;  %2963 = vmatpush.msrb.mxu2 %v12721_v43  ;;  %v2643_v43 = vld [vmem:[%s17534_s4 + $0x18] sm:$0xff] }
 0x351   : > { %9263 = vmatmul.msk.f32.vlgmr.msra.gmra.mxu3 %vm2656_vm15, %v12772_v36  ;;  %v2646_v36 = vld [vmem:[%s17534_s4 + $0x30] sm:$0xff] }
 0x352   : > { %2964 = vmatpush.msrb.mxu2 %v12678_v9  ;;  %9250 = vmatmul.msk.f32.gmra.mxu1 %vm2656_vm15, %v2651_v11  ;;  %v2653_v9 = vld [vmem:[%s17508_s3 + $0x28] sm:$0xff] }
 0x353   : > { %3004 = vmatpush.msrb.mxu3 %v12725_v58  ;;  %v2644_v58 = vld [vmem:[%s17534_s4 + $0x20] sm:$0xff] }
 0x354   : > { %2965 = vmatpush.msrb.mxu2 %v12630_v37  ;;  %v2655_v37 = vld [vmem:[%s17508_s3 + $0x38] sm:$0xff] }
 0x355   : > { %3005 = vmatpush.msrb.mxu3 %v12693_v19  ;;  %v2642_v19 = vld [vmem:[%s17534_s4 + $0x10] sm:$0xff] }
 0x356   : > { %2966 = vmatpush.msrb.mxu2 %v17525_v29 }
 0x357   : > { %3006 = vmatpush.msrb.mxu3 %v12651_v57  ;;  %9256 = vmatmul.msk.f32.gmra.mxu2 %vm2656_vm15, %v12811_v16  ;;  %v2640_v57 = vld [vmem:[%s17534_s4] sm:$0xff] }
 0x358   : > { %3239 = vmatpush.msra.mxu2 %v17505_v0  ;;  %9243 = vmatmul.msk.f32.gmra.mxu0 %vm2656_vm15, %v2652_v4  ;;  %v2645_v0 = vld [vmem:[%s17534_s4 + $0x28] sm:$0xff] }
 0x359   : > { %3007 = vmatpush.msrb.mxu3 %v17530_v23 }
 0x35a   : > { %3240 = vmatpush.msra.mxu2 %v17512_v39  ;;  %9251 = vmatmul.msk.f32.gmra.mxu1 %vm2656_vm15, %v2652_v4  ;;  %v2647_v39 = vld [vmem:[%s17534_s4 + $0x38] sm:$0xff] }
 0x35b   : > { %3280 = vmatpush.msra.mxu3 %v17507_v17  ;;  %v2654_v17 = vld [vmem:[%s17508_s3 + $0x30] sm:$0xff] }
 0x35c   : > { %9264 = vmatmul.msk.f32.gmra.mxu3 %vm2656_vm15, %v12811_v16  ;;  %3241 = vmatpush.msra.mxu2 %v17518_v46  ;;  %v2641_v46 = vld [vmem:[%s17534_s4 + $0x8] sm:$0xff]  ;;  %v3113_v16 = vld [vmem:[%s17535_s21] sm:$0xff] }
 0x35d   : > { %3281 = vmatpush.msra.mxu3 %v17516_v21 }
 0x35e   : > { %3242 = vmatpush.msra.mxu2 %v17526_v20  ;;  %v3114_v20 = vld [vmem:[%s17535_s21 + $0x8] sm:$0xff] }
 0x35f   : > { %3282 = vmatpush.msra.mxu3 %v17520_v28  ;;  %9257 = vmatmul.msk.f32.gmra.mxu2 %vm2656_vm15, %v12851_v10 }
 0x360   : > { %9244 = vmatmul.msk.f32.gmra.mxu0 %vm2656_vm15, %v2653_v9 }
 0x361   : > { %3283 = vmatpush.msra.mxu3 %v17531_v56  ;;  %v3115_v56 = vld [vmem:[%s17535_s21 + $0x10] sm:$0xff] }
 0x362   : > { %9252 = vmatmul.msk.f32.gmra.mxu1 %vm2656_vm15, %v2653_v9 }
 0x364   : > { %9265 = vmatmul.msk.f32.gmra.mxu3 %vm2656_vm15, %v12851_v10 }
 0x367   : > { %9258 = vmatmul.msk.f32.gmra.mxu2 %vm2656_vm15, %v2651_v11 }
 0x368   : > { %9245 = vmatmul.msk.f32.gmra.mxu0 %vm2656_vm15, %v2654_v17 }
 0x36a   : > { %9253 = vmatmul.msk.f32.gmra.mxu1 %vm2656_vm15, %v2654_v17 }
 0x36c   : > { %9266 = vmatmul.msk.f32.gmra.mxu3 %vm2656_vm15, %v2651_v11  ;;  %v3119_v11 = vld [vmem:[%s17535_s21 + $0x30] sm:$0xff] }
 0x36f   : > { %9259 = vmatmul.msk.f32.gmra.mxu2 %vm2656_vm15, %v2652_v4 }
 0x370   : > { %9246 = vmatmul.msk.f32.gmra.mxu0 %vm2656_vm15, %v2655_v37 }
 0x372   : > { %9254 = vmatmul.msk.f32.gmra.mxu1 %vm2656_vm15, %v2655_v37 }
 0x374   : > { %9267 = vmatmul.msk.f32.gmra.mxu3 %vm2656_vm15, %v2652_v4 }
 0x377   : > { %9260 = vmatmul.msk.f32.gmra.mxu2 %vm2656_vm15, %v2653_v9 }
 0x378   : > { %9271 = vmatmul.msk.f32.vlgmr.msrb.gmra.mxu0 %vm2656_vm15, %v2640_v57 }
 0x37a   : > { %9279 = vmatmul.msk.f32.vlgmr.msrb.gmra.mxu1 %vm2656_vm15, %v2640_v57 }
 0x37c   : > { %9268 = vmatmul.msk.f32.gmra.mxu3 %vm2656_vm15, %v2653_v9 }
 0x37f   : > { %9261 = vmatmul.msk.f32.gmra.mxu2 %vm2656_vm15, %v2654_v17 }
 0x380   : > { %9272 = vmatmul.msk.f32.gmra.mxu0 %vm2656_vm15, %v2641_v46 }
 0x382   : > { %9280 = vmatmul.msk.f32.gmra.mxu1 %vm2656_vm15, %v2641_v46 }
 0x384   : > { %9269 = vmatmul.msk.f32.gmra.mxu3 %vm2656_vm15, %v2654_v17 }
 0x387   : > { %9262 = vmatmul.msk.f32.gmra.mxu2 %vm2656_vm15, %v2655_v37 }
 0x388   : > { %9273 = vmatmul.msk.f32.gmra.mxu0 %vm2656_vm15, %v2642_v19 }
 0x38a   : > { %9281 = vmatmul.msk.f32.gmra.mxu1 %vm2656_vm15, %v2642_v19 }
 0x38c   : > { %9270 = vmatmul.msk.f32.gmra.mxu3 %vm2656_vm15, %v2655_v37  ;;  %v3120_v37 = vld [vmem:[%s17535_s21 + $0x38] sm:$0xff] }
 0x38f   : > { %9287 = vmatmul.msk.f32.vlgmr.msrb.gmra.mxu2 %vm2656_vm15, %v2640_v57 }
 0x390   : > { %9274 = vmatmul.msk.f32.gmra.mxu0 %vm2656_vm15, %v2643_v43 }
 0x392   : > { %9282 = vmatmul.msk.f32.gmra.mxu1 %vm2656_vm15, %v2643_v43 }
 0x394   : > { %9295 = vmatmul.msk.f32.vlgmr.msrb.gmra.mxu3 %vm2656_vm15, %v2640_v57 }
 0x397   : > { %9288 = vmatmul.msk.f32.gmra.mxu2 %vm2656_vm15, %v2641_v46 }
 0x398   : > { %9275 = vmatmul.msk.f32.gmra.mxu0 %vm2656_vm15, %v2644_v58 }
 0x39a   : > { %9283 = vmatmul.msk.f32.gmra.mxu1 %vm2656_vm15, %v2644_v58 }
 0x39c   : > { %9296 = vmatmul.msk.f32.gmra.mxu3 %vm2656_vm15, %v2641_v46 }
 0x39f   : > { %9289 = vmatmul.msk.f32.gmra.mxu2 %vm2656_vm15, %v2642_v19 }
 0x3a0   : > { %9276 = vmatmul.msk.f32.gmra.mxu0 %vm2656_vm15, %v2645_v0 }
 0x3a2   : > { %9284 = vmatmul.msk.f32.gmra.mxu1 %vm2656_vm15, %v2645_v0 }
 0x3a4   : > { %9297 = vmatmul.msk.f32.gmra.mxu3 %vm2656_vm15, %v2642_v19 }
 0x3a7   : > { %9290 = vmatmul.msk.f32.gmra.mxu2 %vm2656_vm15, %v2643_v43 }
 0x3a8   : > { %9277 = vmatmul.msk.f32.gmra.mxu0 %vm2656_vm15, %v2646_v36 }
 0x3aa   : > { %9285 = vmatmul.msk.f32.gmra.mxu1 %vm2656_vm15, %v2646_v36 }
 0x3ac   : > { %9298 = vmatmul.msk.f32.gmra.mxu3 %vm2656_vm15, %v2643_v43 }
 0x3af   : > { %9291 = vmatmul.msk.f32.gmra.mxu2 %vm2656_vm15, %v2644_v58 }
 0x3b0   : > { %9278 = vmatmul.msk.f32.gmra.mxu0 %vm2656_vm15, %v2647_v39 }
 0x3b2   : > { %9286 = vmatmul.msk.f32.gmra.mxu1 %vm2656_vm15, %v2647_v39 }
 0x3b4   : > { %9299 = vmatmul.msk.f32.gmra.mxu3 %vm2656_vm15, %v2644_v58  ;;  %v12987_v21 = vpop.f32.mrf.mxu0 }
 0x3b6   : > { %v12992_v28 = vpop.f32.mrf.mxu1 }
 0x3b7   : > { %9292 = vmatmul.msk.f32.gmra.mxu2 %vm2656_vm15, %v2645_v0 }
 0x3b8   : > { %9303 = vmatmul.msk.f32.vlgmr.msra.gmra.mxu0 %vm2656_vm15, %v3113_v16 }
 0x3ba   : > { %9311 = vmatmul.msk.f32.vlgmr.msra.gmra.mxu1 %vm2656_vm15, %v3113_v16 }
 0x3bc   : > { %9300 = vmatmul.msk.f32.gmra.mxu3 %vm2656_vm15, %v2645_v0  ;;  %v12998_v29 = vpop.f32.mrf.mxu0 }
 0x3bf   : > { %v13003_v10 = vpop.f32.mrf.mxu1  ;;  %9293 = vmatmul.msk.f32.gmra.mxu2 %vm2656_vm15, %v2646_v36 }
 0x3c0   : > { %9304 = vmatmul.msk.f32.gmra.mxu0 %vm2656_vm15, %v3114_v20 }
 0x3c2   : > { %9312 = vmatmul.msk.f32.gmra.mxu1 %vm2656_vm15, %v3114_v20 }
 0x3c4   : > { %9301 = vmatmul.msk.f32.gmra.mxu3 %vm2656_vm15, %v2646_v36 }
 0x3c5   : > { %v13009_v23 = vpop.f32.mrf.mxu0 }
 0x3c7   : > { %v13014_v51 = vpop.f32.mrf.mxu1  ;;  %9294 = vmatmul.msk.f32.gmra.mxu2 %vm2656_vm15, %v2647_v39 }
 0x3c8   : > { %9305 = vmatmul.msk.f32.gmra.mxu0 %vm2656_vm15, %v3115_v56 }
 0x3ca   : > { %9313 = vmatmul.msk.f32.gmra.mxu1 %vm2656_vm15, %v3115_v56 }
 0x3cc   : > { %9302 = vmatmul.msk.f32.gmra.mxu3 %vm2656_vm15, %v2647_v39 }
 0x3cd   : > { %v13020_v13 = vpop.f32.mrf.mxu0 }
 0x3cf   : > { %v13025_v62 = vpop.f32.mrf.mxu1  ;;  %9319 = vmatmul.msk.f32.vlgmr.msra.gmra.mxu2 %vm2656_vm15, %v3113_v16 }
 0x3d0   : > { %9306 = vmatmul.msk.f32.gmra.mxu0 %vm2656_vm15, %v3116_v22 }
 0x3d2   : > { %v13029_v31 = vpop.f32.mrf.mxu2  ;;  %9314 = vmatmul.msk.f32.gmra.mxu1 %vm2656_vm15, %v3116_v22 }
 0x3d4   : > { %9327 = vmatmul.msk.f32.vlgmr.msra.gmra.mxu3 %vm2656_vm15, %v3113_v16  ;;  %v13033_v53 = vpop.f32.mrf.mxu3 }
 0x3d5   : > { %v13035_v34 = vpop.f32.mrf.mxu0 }
 0x3d7   : > { %v13040_v1 = vpop.f32.mrf.mxu1  ;;  %9320 = vmatmul.msk.f32.gmra.mxu2 %vm2656_vm15, %v3114_v20 }
 0x3d8   : > { %9307 = vmatmul.msk.f32.gmra.mxu0 %vm2656_vm15, %v3117_v7 }
 0x3da   : > { %9315 = vmatmul.msk.f32.gmra.mxu1 %vm2656_vm15, %v3117_v7  ;;  %v13046_v15 = vpop.f32.mrf.mxu2 }
 0x3dc   : > { %9328 = vmatmul.msk.f32.gmra.mxu3 %vm2656_vm15, %v3114_v20 }
 0x3dd   : > { %v13048_v61 = vpop.f32.mrf.mxu0 }
 0x3df   : > { %v13053_v26 = vpop.f32.mrf.mxu3  ;;  %v13055_v42 = vpop.f32.mrf.mxu1  ;;  %9321 = vmatmul.msk.f32.gmra.mxu2 %vm2656_vm15, %v3115_v56 }
 0x3e0   : > { %9308 = vmatmul.msk.f32.gmra.mxu0 %vm2656_vm15, %v3118_v45 }
 0x3e2   : > { %9316 = vmatmul.msk.f32.gmra.mxu1 %vm2656_vm15, %v3118_v45  ;;  %v13061_v48 = vpop.f32.mrf.mxu2 }
 0x3e4   : > { %9329 = vmatmul.msk.f32.gmra.mxu3 %vm2656_vm15, %v3115_v56 }
 0x3e5   : > { %v13063_v52 = vpop.f32.mrf.mxu0 }
 0x3e7   : > { %v13068_v8 = vpop.f32.mrf.mxu3  ;;  %v13070_v4 = vpop.f32.mrf.mxu1  ;;  %9322 = vmatmul.msk.f32.gmra.mxu2 %vm2656_vm15, %v3116_v22 }
 0x3e8   : > { %9309 = vmatmul.msk.f32.gmra.mxu0 %vm2656_vm15, %v3119_v11 }
 0x3ea   : > { %9317 = vmatmul.msk.f32.gmra.mxu1 %vm2656_vm15, %v3119_v11  ;;  %v13076_v9 = vpop.f32.mrf.mxu2 }
 0x3ec   : > { %9330 = vmatmul.msk.f32.gmra.mxu3 %vm2656_vm15, %v3116_v22 }
 0x3ed   : > { %v13078_v17 = vpop.f32.mrf.mxu0 }
 0x3ef   : > { %v13083_v57 = vpop.f32.mrf.mxu3  ;;  %v13085_v46 = vpop.f32.mrf.mxu1  ;;  %9323 = vmatmul.msk.f32.gmra.mxu2 %vm2656_vm15, %v3117_v7 }
 0x3f0   : > { %17536 = vst [vmem:[#allocation25_spill] sm:$0xff] %v13083_v57  ;;  %9310 = vmatmul.msk.f32.gmra.mxu0 %vm2656_vm15, %v3120_v37 }
 0x3f2   : > { %9318 = vmatmul.msk.f32.gmra.mxu1 %vm2656_vm15, %v3120_v37  ;;  %v13091_v19 = vpop.f32.mrf.mxu2 }
 0x3f3   : > { %17537 = vst [vmem:[#allocation23_spill] sm:$0xff] %v13091_v19 }
 0x3f4   : > { %9331 = vmatmul.msk.f32.gmra.mxu3 %vm2656_vm15, %v3117_v7 }
 0x3f5   : > { %v2886_v43 = vpop.f32.mrf.mxu0 }
 0x3f7   : > { %v13093_v58 = vpop.f32.mrf.mxu3  ;;  %v2927_v0 = vpop.f32.mrf.mxu1  ;;  %9324 = vmatmul.msk.f32.gmra.mxu2 %vm2656_vm15, %v3118_v45 }
 0x3f8   : > { %17538 = vst [vmem:[#allocation34_spill] sm:$0xff] %v13093_v58 }
 0x3fa   : > { %v13097_v36 = vpop.f32.mrf.mxu2 }
 0x3fb   : > { %17539 = vst [vmem:[#allocation35_spill] sm:$0xff] %v13097_v36  ;;  %v13153_v36 = vpop.permute.xlu2 %3078 }
 0x3fc   : > { %9332 = vmatmul.msk.f32.gmra.mxu3 %vm2656_vm15, %v3118_v45  ;;  %17556 = vst [vmem:[#allocation79_spill] sm:$0xff] %v13153_v36 }
 0x3fd   : > { %v2889_v39 = vpop.f32.mrf.mxu0 }
 0x3ff   : > { %v13099_v16 = vpop.f32.mrf.mxu3  ;;  %v2930_v20 = vpop.f32.mrf.mxu1  ;;  %9325 = vmatmul.msk.f32.gmra.mxu2 %vm2656_vm15, %v3119_v11 }
 0x400   : > { %17540 = vst [vmem:[#allocation32_spill] sm:$0xff] %v13099_v16  ;;  %v13151_v16 = vpop.permute.xlu0 %3073 }
 0x402   : > { %v13103_v56 = vpop.f32.mrf.mxu2 }
 0x403   : > { %17541 = vst [vmem:[#allocation33_spill] sm:$0xff] %v13103_v56  ;;  %v13167_v19 = vpop.permute.xlu2 %3063 }
 0x404   : > { %9333 = vmatmul.msk.f32.gmra.mxu3 %vm2656_vm15, %v3119_v11 }
 0x405   : > { %v2892_v22 = vpop.f32.mrf.mxu0 }
 0x407   : > { %v13105_v7 = vpop.f32.mrf.mxu3  ;;  %v2933_v24 = vpop.f32.mrf.mxu1  ;;  %9326 = vmatmul.msk.f32.gmra.mxu2 %vm2656_vm15, %v3120_v37 }
 0x408   : > { %17542 = vst [vmem:[#allocation28_spill] sm:$0xff] %v13105_v7 }
 0x40a   : > { %v13109_v45 = vpop.f32.mrf.mxu2 }
 0x40b   : > { %17543 = vst [vmem:[#allocation29_spill] sm:$0xff] %v13109_v45 }
 0x40c   : > { %9334 = vmatmul.msk.f32.gmra.mxu3 %vm2656_vm15, %v3120_v37 }
 0x40d   : > { %v2895_v27 = vpop.f32.mrf.mxu0 }
 0x40f   : > { %v13111_v44 = vpop.f32.mrf.mxu3  ;;  %v2936_v60 = vpop.f32.mrf.mxu1 }
 0x410   : > { %17544 = vst [vmem:[#allocation31_spill] sm:$0xff] %v13111_v44 }
 0x412   : > { %v2968_v12 = vpop.f32.mrf.mxu2 }
 0x415   : > { %v2898_v49 = vpop.f32.mrf.mxu0 }
 0x417   : > { %v3009_v6 = vpop.f32.mrf.mxu3  ;;  %v2939_v11 = vpop.f32.mrf.mxu1 }
 0x41a   : > { %v13113_v41 = vpop.f32.mrf.mxu2 }
 0x41d   : > { %v2901_v30 = vpop.f32.mrf.mxu0 }
 0x41f   : > { %v13115_v54 = vpop.f32.mrf.mxu3  ;;  %v13117_v38 = vpop.f32.mrf.mxu1 }
 0x422   : > { %v13119_v32 = vpop.f32.mrf.mxu2 }
 0x425   : > { %v2904_v37 = vpop.f32.mrf.mxu0 }
 0x427   : > { %v13121_v3 = vpop.f32.mrf.mxu3  ;;  %v13123_v55 = vpop.f32.mrf.mxu1 }
 0x42a   : > { %v13125_v47 = vpop.f32.mrf.mxu2 }
 0x42d   : > { %v13127_v25 = vpop.f32.mrf.mxu0 }
 0x42f   : > { %v13129_v5 = vpop.f32.mrf.mxu3  ;;  %v13131_v2 = vpop.f32.mrf.mxu1 }
 0x430   : > { %17545 = vst [vmem:[#allocation24_spill] sm:$0xff] %v13129_v5  ;;  %v2934_v5 = vadd.f32 %v2933_v24, %v13014_v51 }
 0x431   : > { %17546 = vst [vmem:[#allocation66_spill] sm:$0xff] %v13131_v2 }
 0x432   : > { %v13133_v14 = vpop.f32.mrf.mxu2 }
 0x433   : > { %17547 = vst [vmem:[#allocation26_spill] sm:$0xff] %v13133_v14  ;;  %v13163_v14 = vpop.permute.xlu0 %3058 }
 0x435   : > { %v3162_v59 = vpop.f32.mrf.mxu0 }
 0x437   : > { %v13135_v63 = vpop.f32.mrf.mxu3  ;;  %v3203_v40 = vpop.f32.mrf.mxu1 }
 0x438   : > { %17548 = vst [vmem:[#allocation22_spill] sm:$0xff] %v13135_v63 }
 0x43a   : > { %v13137_v35 = vpop.f32.mrf.mxu2 }
 0x43b   : > { %17549 = vst [vmem:[#allocation69_spill] sm:$0xff] %v13137_v35  ;;  %v3044_v2 = vpop.permute.xlu0 %3043 }
 0x43d   : > { %v3165_v18 = vpop.f32.mrf.mxu0 }
 0x43f   : > { %v13139_v33 = vpop.f32.mrf.mxu3  ;;  %v13141_v50 = vpop.f32.mrf.mxu1 }
 0x440   : > { %17550 = vst [vmem:[#allocation27_spill] sm:$0xff] %v13139_v33 }
 0x441   : > { %17551 = vst [vmem:[#allocation74_spill] sm:$0xff] %v13141_v50 }
 0x442   : > { %v13143_v44 = vpop.f32.mrf.mxu2 }
 0x443   : > { %17552 = vst [vmem:[#allocation75_spill] sm:$0xff] %v13143_v44 }
 0x445   : > { %v13145_v45 = vpop.f32.mrf.mxu0 }
 0x446   : > { %17553 = vst [vmem:[#allocation76_spill] sm:$0xff] %v13145_v45 }
 0x447   : > { %v13147_v7 = vpop.f32.mrf.mxu3  ;;  %v13149_v56 = vpop.f32.mrf.mxu1 }
 0x448   : > { %17554 = vst [vmem:[#allocation77_spill] sm:$0xff] %v13147_v7 }
 0x449   : > { %17555 = vst [vmem:[#allocation78_spill] sm:$0xff] %v13149_v56  ;;  %v13169_v56 = vpop.permute.xlu1 %3068 }
 0x44a   : > { %v13155_v63 = vpop.f32.mrf.mxu2 }
 0x44b   : > { %17557 = vst [vmem:[#allocation80_spill] sm:$0xff] %v13155_v63  ;;  %v2887_v63 = vadd.f32 %v2886_v43, %v12987_v21  ;;  %v2969_v21 = vadd.f32 %v2968_v12, %v13029_v31  ;;  %v2905_v12 = vadd.f32 %v2904_v37, %v13063_v52  ;;  %v2972_v31 = vadd.f32 %v13113_v41, %v13046_v15 }
 0x44d   : > { %v13157_v35 = vpop.f32.mrf.mxu0 }
 0x44e   : > { %17558 = vst [vmem:[#allocation81_spill] sm:$0xff] %v13157_v35  ;;  %v2928_v35 = vadd.f32 %v2927_v0, %v12992_v28  ;;  %v3049_v28 = vpop.permute.xlu2 %3048  ;;  %v3010_v0 = vadd.f32 %v3009_v6, %v13033_v53  ;;  %v2943_v53 = vadd.f32 %v13117_v38, %v13055_v42  ;;  %v3016_v42 = vadd.f32 %v13121_v3, %v13068_v8 }
 0x44f   : > { %v13159_v58 = vpop.f32.mrf.mxu3  ;;  %v13161_v33 = vpop.f32.mrf.mxu1  ;;  %v2908_v3 = vadd.f32 %v13127_v25, %v13078_v17 }
 0x450   : > { %17559 = vst [vmem:[#allocation82_spill] sm:$0xff] %v13159_v58  ;;  %v2890_v58 = vadd.f32 %v2889_v39, %v12998_v29  ;;  %v13188_v29 = vadd.f32 %v3044_v2, %v2887_v63 }
 0x451   : > { %17560 = vst [vmem:[#allocation83_spill] sm:$0xff] %v13161_v33  ;;  %v2931_v33 = vadd.f32 %v2930_v20, %v13003_v10  ;;  %v13190_v10 = vadd.f32 %v3044_v2, %v2928_v35  ;;  %v3054_v24 = vpop.permute.xlu1 %3053  ;;  %v2902_v35 = vadd.f32 %v2901_v30, %v13048_v61  ;;  %v2946_v30 = vadd.f32 %v13123_v55, %v13070_v4 }
 0x452   : > { %v13165_v44 = vpop.f32.mrf.mxu2  ;;  %17564 = vst [vmem:[#allocation87_spill] sm:$0xff] %v13188_v29  ;;  %v13194_v51 = vadd.f32 %v3049_v28, %v2890_v58  ;;  %v13202_v63 = vadd.f32 %v3054_v24, %v2934_v5  ;;  %v13206_v6 = vadd.f32 %v3162_v59, %v13188_v29  ;;  %v3013_v55 = vadd.f32 %v13115_v54, %v13053_v26 }
 0x453   : > { %17561 = vst [vmem:[#allocation84_spill] sm:$0xff] %v13165_v44  ;;  %v2893_v44 = vadd.f32 %v2892_v22, %v13009_v23  ;;  %v2899_v23 = vadd.f32 %v2898_v49, %v13035_v34  ;;  %v13196_v39 = vadd.f32 %v3049_v28, %v2931_v33  ;;  %v13226_v59 = vadd.f32 %v3203_v40, %v13190_v10 }
 0x454   : > { %17565 = vst [vmem:[#allocation88_spill] sm:$0xff] %v13190_v10  ;;  %v13234_v34 = vadd.f32 %v13151_v16, %v2905_v12  ;;  %v13237_v41 = vadd.f32 %v3165_v18, %v13194_v51  ;;  %v13244_v40 = vadd.f32 %v13169_v56, %v2902_v35  ;;  %v13250_v61 = vadd.f32 %v3049_v28, %v2972_v31  ;;  %v17587_v12 = vld [vmem:[#allocation79_spill] sm:$0xff] }
 0x455   : > { %v3174_v7 = vpop.f32.mrf.mxu0  ;;  %17566 = vst [vmem:[#allocation89_spill] sm:$0xff] %v13194_v51  ;;  %v13221_v5 = vadd.f32 %v13167_v19, %v2899_v23  ;;  %v2975_v18 = vadd.f32 %v13119_v32, %v13061_v48  ;;  %v13262_v26 = vadd.f32 %v13151_v16, %v2946_v30  ;;  %v2978_v4 = vadd.f32 %v13125_v47, %v13076_v9  ;;  %v17580_v48 = vld [vmem:[#allocation66_spill] sm:$0xff] }
 0x456   : > { %17567 = vst [vmem:[#allocation90_spill] sm:$0xff] %v13196_v39  ;;  %v3374_v58 = vmin.f32 %v13226_v59, 0.0  ;;  %v13271_v32 = vadd.f32 %v13169_v56, %v2943_v53  ;;  %v2949_v8 = vadd.f32 %v17580_v48, %v13085_v46  ;;  %v3377_v22 = vmin.f32 %v13237_v41, 0.0 }
 0x457   : > { %v13171_v50 = vpop.f32.mrf.mxu3  ;;  %v13173_v45 = vpop.f32.mrf.mxu1  ;;  %17569 = vst [vmem:[#allocation92_spill] sm:$0xff] %v13202_v63  ;;  %v13248_v15 = vadd.f32 %v3174_v7, %v13221_v5  ;;  %v13286_v37 = vadd.f32 %v3054_v24, %v3016_v42  ;;  %v13293_v46 = vadd.f32 %v13163_v14, %v2978_v4  ;;  %v13299_v35 = vadd.f32 %v17587_v12, %v2908_v3  ;;  %v17592_v4 = vld [vmem:[#allocation76_spill] sm:$0xff] }
 0x458   : > { %17562 = vst [vmem:[#allocation85_spill] sm:$0xff] %v13171_v50  ;;  %v2896_v50 = vadd.f32 %v2895_v27, %v13020_v13  ;;  %v2940_v27 = vadd.f32 %v2939_v11, %v13040_v1  ;;  %v13200_v13 = vadd.f32 %v3054_v24, %v2893_v44  ;;  %v13218_v44 = vadd.f32 %v3044_v2, %v3010_v0 }
 0x459   : > { %17563 = vst [vmem:[#allocation86_spill] sm:$0xff] %v13173_v45  ;;  %v2937_v45 = vadd.f32 %v2936_v60, %v13025_v62  ;;  %v13214_v62 = vadd.f32 %v3044_v2, %v2969_v21  ;;  %v3373_v1 = vmin.f32 %v13206_v6, 0.0  ;;  %v3389_v9 = vmin.f32 %v13248_v15, 0.0  ;;  %v17585_v21 = vld [vmem:[#allocation25_spill] sm:$0xff] }
 0x45a   : > { %v13179_v36 = vpop.f32.mrf.mxu2  ;;  %17568 = vst [vmem:[#allocation91_spill] sm:$0xff] %v13200_v13  ;;  %v13209_v49 = vadd.f32 %v13163_v14, %v2896_v50  ;;  %v13229_v50 = vadd.f32 %v13167_v19, %v2940_v27  ;;  %v13284_v11 = vadd.f32 %v3054_v24, %v2975_v18  ;;  %v3407_v23 = vmul.f32 1.442695, %v3374_v58 }
 0x45b   : > { %v13212_v33 = vadd.f32 %v13163_v14, %v2937_v45  ;;  %17572 = vst [vmem:[#allocation95_spill] sm:$0xff] %v13214_v62  ;;  %v13278_v45 = vadd.f32 %v3049_v28, %v3013_v55  ;;  %v3405_v47 = vmul.f32 1.442695, %v3373_v1  ;;  %v17586_v28 = vld [vmem:[#allocation24_spill] sm:$0xff]  ;;  %v13302_v24 = vadd.f32 %v17587_v12, %v2949_v8 }
 0x45c   : > { %17570 = vst [vmem:[#allocation93_spill] sm:$0xff] %v13209_v49  ;;  %v3019_v0 = vadd.f32 %v17586_v28, %v17585_v21  ;;  %v3413_v31 = vmul.f32 1.442695, %v3377_v22  ;;  %v3437_v55 = vmul.f32 1.442695, %v3389_v9  ;;  %v13317_v58 = vadd.f32 %v17592_v4, %v13200_v13  ;;  %v17594_v9 = vld [vmem:[#allocation83_spill] sm:$0xff] }
 0x45d   : > { %v3177_v57 = vpop.f32.mrf.mxu0  ;;  %17571 = vst [vmem:[#allocation94_spill] sm:$0xff] %v13212_v33  ;;  %10214 = vpow2.f32 %v3405_v47  ;;  %v13331_v21 = vadd.f32 %v17594_v9, %v13212_v33  ;;  %v17599_v33 = vld [vmem:[#allocation22_spill] sm:$0xff]  ;;  %vm3341_vm2 = vcmp.gt.f32.partialorder %v13206_v6, 0.0  ;;  %vm3342_vm3 = vcmp.gt.f32.partialorder %v13226_v59, 0.0 }
 0x45e   : > { %17573 = vst [vmem:[#allocation96_spill] sm:$0xff] %v13218_v44  ;;  %v13268_v20 = vadd.f32 %v3177_v57, %v13244_v40  ;;  %10216 = vpow2.f32 %v3407_v23  ;;  %v3381_v9 = vmin.f32 %v13317_v58, 0.0  ;;  %vm3349_vm1 = vcmp.gt.f32.partialorder %v13317_v58, 0.0 }
 0x45f   : > { %v13186_v43 = vpop.f32.mrf.mxu3  ;;  %v3218_v60 = vpop.f32.mrf.mxu1  ;;  %17574 = vst [vmem:[#allocation97_spill] sm:$0xff] %v13221_v5  ;;  %10218 = vpow2.f32 %v3413_v31  ;;  %v3386_v51 = vmin.f32 %v13331_v21, 0.0  ;;  %v17602_v5 = vld [vmem:[#allocation32_spill] sm:$0xff]  ;;  %vm3345_vm8 = vcmp.gt.f32.partialorder %v13237_v41, 0.0  ;;  %vm3357_vm10 = vcmp.gt.f32.partialorder %v13248_v15, 0.0 }
 0x460   : > { %17575 = vst [vmem:[#allocation98_spill] sm:$0xff] %v13229_v50  ;;  %v13289_v25 = vadd.f32 %v3218_v60, %v13271_v32  ;;  %v3393_v27 = vmin.f32 %v13268_v20, 0.0  ;;  %v17590_v60 = vld [vmem:[#allocation81_spill] sm:$0xff]  ;;  %v17591_v1 = vld [vmem:[#allocation86_spill] sm:$0xff]  ;;  %10220 = vpow2.f32 %v3437_v55  ;;  %vm3361_vm7 = vcmp.gt.f32.partialorder %v13268_v20, 0.0 }
 0x461   : > { %17576 = vst [vmem:[#allocation99_spill] sm:$0xff] %v13234_v34  ;;  %v13306_v30 = vadd.f32 %v17590_v60, %v13209_v49  ;;  %v17595_v60 = vld [vmem:[#allocation78_spill] sm:$0xff]  ;;  %v17601_v49 = vld [vmem:[#allocation69_spill] sm:$0xff]  ;;  %vm3354_vm14 = vcmp.gt.f32.partialorder %v13331_v21, 0.0 }
 0x462   : > { %v13239_v2 = vpop.f32.mrf.mxu2  ;;  %17577 = vst [vmem:[#allocation100_spill] sm:$0xff] %v13250_v61  ;;  %v3394_v3 = vmin.f32 %v13289_v25, 0.0  ;;  %v3445_v28 = vmul.f32 1.442695, %v3393_v27  ;;  %vm3362_vm5 = vcmp.gt.f32.partialorder %v13289_v25, 0.0 }
 0x463   : > { %17578 = vst [vmem:[#allocation101_spill] sm:$0xff] %v13262_v26  ;;  %vm3353_vm12 = vcmp.gt.f32.partialorder %v13306_v30, 0.0 }
 0x464   : > { %17579 = vst [vmem:[#allocation102_spill] sm:$0xff] %v13271_v32  ;;  %v3447_v27 = vmul.f32 1.442695, %v3394_v3  ;;  %v17603_v32 = vld [vmem:[#allocation27_spill] sm:$0xff] }
 0x465   : > { %v3180_v38 = vpop.f32.mrf.mxu0  ;;  %17581 = vst [vmem:[#allocation66_spill] sm:$0xff] %v13278_v45 }
 0x466   : > { %v13259_v54 = vadd.f32 %v3180_v38, %v13234_v34  ;;  %17582 = vst [vmem:[#allocation103_spill] sm:$0xff] %v13284_v11  ;;  %v13312_v38 = vadd.f32 %v17591_v1, %v13229_v50  ;;  %v13335_v1 = vadd.f32 %v17595_v60, %v13202_v63  ;;  %v17596_v60 = vld [vmem:[#allocation23_spill] sm:$0xff]  ;;  %v17597_v63 = vld [vmem:[#allocation26_spill] sm:$0xff] }
 0x467   : > { %v13256_v52 = vpop.f32.mrf.mxu3  ;;  %v3221_v7 = vpop.f32.mrf.mxu1  ;;  %17583 = vst [vmem:[#allocation104_spill] sm:$0xff] %v13286_v37  ;;  %v2981_v13 = vadd.f32 %v17597_v63, %v17596_v60 }
 0x468   : > { %v13282_v57 = vadd.f32 %v3221_v7, %v13262_v26  ;;  %v3397_v17 = vmin.f32 %v13259_v54, 0.0  ;;  %17584 = vst [vmem:[#allocation105_spill] sm:$0xff] %v13293_v46  ;;  %v17593_v7 = vld [vmem:[#allocation74_spill] sm:$0xff]  ;;  %v3390_v23 = vmin.f32 %v13312_v38, 0.0  ;;  %v13363_v26 = vadd.f32 %v13163_v14, %v3019_v0 }
 0x469   : > { %17588 = vst [vmem:[#allocation25_spill] sm:$0xff] %v13299_v35  ;;  %v13327_v47 = vadd.f32 %v17593_v7, %v13196_v39  ;;  %v10215_v39 = vpop.eup %10214  ;;  %vm3365_vm0 = vcmp.gt.f32.partialorder %v13259_v54, 0.0  ;;  %vm3358_vm13 = vcmp.gt.f32.partialorder %v13312_v38, 0.0 }
 0x46a   : > { %17589 = vst [vmem:[#allocation24_spill] sm:$0xff] %v13302_v24  ;;  %v13308_v53 = vpop.f32.mrf.mxu2  ;;  %v3398_v18 = vmin.f32 %v13282_v57, 0.0  ;;  %v3453_v48 = vmul.f32 1.442695, %v3397_v17  ;;  %v3385_v17 = vmin.f32 %v13306_v30, 0.0  ;;  %v10217_v3 = vpop.eup %10216  ;;  %vm3366_vm9 = vcmp.gt.f32.partialorder %v13282_v57, 0.0 }
 0x46b   : > { %v13354_v60 = vpop.eup %10218  ;;  %17604 = vst [vmem:[#allocation79_spill] sm:$0xff] %v13363_v26  ;;  %vm3346_vm11 = vcmp.gt.f32.partialorder %v13327_v47, 0.0 }
 0x46c   : > { %v3455_v7 = vmul.f32 1.442695, %v3398_v18  ;;  %10222 = vpow2.f32 %v3453_v48  ;;  %v3382_v48 = vmin.f32 %v13335_v1, 0.0 }
 0x46d   : > { %v3183_v42 = vpop.f32.mrf.mxu0  ;;  %10224 = vpow2.f32 %v3445_v28  ;;  %v17600_v28 = vld [vmem:[#allocation35_spill] sm:$0xff] }
 0x46e   : > { %v13323_v22 = vadd.f32 %v3183_v42, %v13299_v35  ;;  %v17598_v35 = vld [vmem:[#allocation34_spill] sm:$0xff]  ;;  %v2984_v50 = vadd.f32 %v17601_v49, %v17600_v28  ;;  %v9335_v49 = vadd.f32 -1.0, %v10215_v39  ;;  %v3423_v14 = vmul.f32 1.442695, %v3382_v48  ;;  %v17612_v48 = vld [vmem:[#allocation77_spill] sm:$0xff] }
 0x46f   : > { %v13320_v8 = vpop.f32.mrf.mxu3  ;;  %v3224_v4 = vpop.f32.mrf.mxu1  ;;  %v3022_v18 = vadd.f32 %v17599_v33, %v17598_v35  ;;  %v3025_v33 = vadd.f32 %v17603_v32, %v17602_v5  ;;  %v3421_v35 = vmul.f32 1.442695, %v3381_v9  ;;  %v17607_v9 = vld [vmem:[#allocation33_spill] sm:$0xff] }
 0x470   : > { %v3401_v42 = vmin.f32 %v13323_v22, 0.0  ;;  %v13341_v10 = vadd.f32 %v3224_v4, %v13302_v24  ;;  %v3378_v4 = vmin.f32 %v13327_v47, 0.0  ;;  %v3429_v24 = vmul.f32 1.442695, %v3385_v17 }
 0x471   : > { %v13370_v32 = vadd.f32 %v13167_v19, %v3022_v18  ;;  %v9336_v18 = vadd.f32 -1.0, %v10217_v3  ;;  %vm3369_vm4 = vcmp.gt.f32.partialorder %v13323_v22, 0.0 }
 0x472   : > { %v3461_v31 = vmul.f32 1.442695, %v3401_v42  ;;  %v3402_v55 = vmin.f32 %v13341_v10, 0.0  ;;  %v13351_v29 = vpop.f32.mrf.mxu2  ;;  %v3439_v42 = vmul.f32 1.442695, %v3390_v23  ;;  %v13366_v23 = vadd.f32 %v13167_v19, %v2981_v13 }
 0x473   : > { %v3415_v34 = vmul.f32 1.442695, %v3378_v4  ;;  %17606 = vst [vmem:[#allocation86_spill] sm:$0xff] %v13370_v32  ;;  %v13375_v13 = vadd.f32 %v13169_v56, %v2984_v50  ;;  %vm3370_vm6 = vcmp.gt.f32.partialorder %v13341_v10, 0.0 }
 0x474   : > { %10226 = vpow2.f32 %v3461_v31  ;;  %v3463_v63 = vmul.f32 1.442695, %v3402_v55  ;;  %v10221_v31 = vpop.eup %10220  ;;  %17605 = vst [vmem:[#allocation81_spill] sm:$0xff] %v13366_v23 }
 0x475   : > { %10228 = vpow2.f32 %v3455_v7  ;;  %v3431_v7 = vmul.f32 1.442695, %v3386_v51  ;;  %v10223_v55 = vpop.eup %10222  ;;  %17609 = vst [vmem:[#allocation76_spill] sm:$0xff] %v13375_v13  ;;  %v13378_v51 = vadd.f32 %v13169_v56, %v3025_v33  ;;  %v13387_v56 = vsel %vm3341_vm2, %v13206_v6, %v9335_v49 }
 0x476   : > { %10230 = vpow2.f32 %v3447_v27  ;;  %v10225_v5 = vpop.eup %10224  ;;  %v17608_v27 = vld [vmem:[#allocation75_spill] sm:$0xff]  ;;  %v9359_v19 = vadd.f32 -1.0, %v10223_v55  ;;  %v9351_v49 = vadd.f32 -1.0, %v10221_v31  ;;  %vm3350_vm2 = vcmp.gt.f32.partialorder %v13335_v1, 0.0 }
 0x477   : > { %v13360_v17 = vpop.f32.mrf.mxu3  ;;  %10232 = vpow2.f32 %v3463_v63  ;;  %v2987_v28 = vadd.f32 %v17608_v27, %v17607_v9  ;;  %17610 = vst [vmem:[#allocation74_spill] sm:$0xff] %v13378_v51  ;;  %v17611_v63 = vld [vmem:[#allocation28_spill] sm:$0xff] }
 0x478   : > { %10234 = vpow2.f32 %v3429_v24  ;;  %v3525_v6 = vsel %vm3365_vm0, %v13259_v54, %v9359_v19  ;;  %v17615_v54 = vld [vmem:[#allocation84_spill] sm:$0xff] }
 0x479   : > { %10236 = vpow2.f32 %v3439_v42  ;;  %v3028_v42 = vadd.f32 %v17612_v48, %v17611_v63  ;;  %v13390_v33 = vadd.f32 %v13151_v16, %v2987_v28  ;;  %v13410_v31 = vadd.f32 %v17615_v54, %v13214_v62 }
 0x47a   : > { %v10227_v0 = vpop.eup %10226  ;;  %10238 = vpow2.f32 %v3421_v35  ;;  %v3259_v9 = vpop.f32.mrf.mxu2  ;;  %v9355_v35 = vadd.f32 -1.0, %v10225_v5  ;;  %v13420_v48 = vadd.f32 %v13351_v29, %v13366_v23 }
 0x47b   : > { %v10229_v39 = vpop.eup %10228  ;;  %10240 = vpow2.f32 %v3431_v7  ;;  %v9363_v24 = vadd.f32 -1.0, %v10227_v0  ;;  %17613 = vst [vmem:[#allocation83_spill] sm:$0xff] %v13390_v33  ;;  %v13403_v28 = vadd.f32 %v13151_v16, %v3028_v42 }
 0x47c   : > { %v10231_v4 = vpop.eup %10230  ;;  %10242 = vpow2.f32 %v3415_v34  ;;  %v9360_v27 = vadd.f32 -1.0, %v10229_v39 }
 0x47d   : > { %v10233_v50 = vpop.eup %10232  ;;  %10244 = vpow2.f32 %v3423_v14  ;;  %v3529_v3 = vsel %vm3369_vm4, %v13323_v22, %v9363_v24  ;;  %v13400_v22 = vsel %vm3342_vm3, %v13226_v59, %v9336_v18  ;;  %17614 = vst [vmem:[#allocation78_spill] sm:$0xff] %v13403_v28  ;;  %v9356_v39 = vadd.f32 -1.0, %v10231_v4 }
 0x47e   : > { %v10235_v34 = vpop.eup %10234  ;;  %3582 = vmatpush.msrb.mxu0 %v3529_v3  ;;  %v9364_v55 = vadd.f32 -1.0, %v10233_v50  ;;  %v3521_v59 = vsel %vm3361_vm7, %v13268_v20, %v9355_v35  ;;  %v9339_v4 = vadd.f32 -1.0, %v13354_v60  ;;  %v3517_v20 = vsel %vm3357_vm10, %v13248_v15, %v9351_v49 }
 0x47f   : > { %v3300_v7 = vpop.f32.mrf.mxu3  ;;  %v10237_v0 = vpop.eup %10236  ;;  %v9347_v16 = vadd.f32 -1.0, %v10235_v34  ;;  %v3522_v50 = vsel %vm3362_vm5, %v13289_v25, %v9356_v39  ;;  %v3375_v35 = vmin.f32 %v13410_v31, 0.0  ;;  %v17616_v34 = vld [vmem:[#allocation29_spill] sm:$0xff]  ;;  %v3391_v49 = vmin.f32 %v13420_v48, 0.0  ;;  %v17619_v39 = vld [vmem:[#allocation82_spill] sm:$0xff] }
 0x480   : > { %v10239_v5 = vpop.eup %10238  ;;  %v3530_v14 = vsel %vm3370_vm6, %v13341_v10, %v9364_v55  ;;  %3583 = vmatpush.msrb.mxu0 %v3525_v6  ;;  %v3526_v10 = vsel %vm3366_vm9, %v13282_v57, %v9360_v27  ;;  %v9352_v18 = vadd.f32 -1.0, %v10237_v0  ;;  %v13425_v57 = vadd.f32 %v3259_v9, %v13375_v13  ;;  %v17617_v9 = vld [vmem:[#allocation80_spill] sm:$0xff] }
 0x481   : > { %v10241_v24 = vpop.eup %10240  ;;  %3611 = vmatpush.msrb.mxu1 %v3530_v14  ;;  %v9343_v42 = vadd.f32 -1.0, %v10239_v5  ;;  %v3513_v15 = vsel %vm3353_vm12, %v13306_v30, %v9347_v16  ;;  %v2990_v55 = vadd.f32 %v17617_v9, %v17616_v34  ;;  %v17618_v14 = vld [vmem:[#allocation31_spill] sm:$0xff]  ;;  %v13450_v54 = vadd.f32 %v3300_v7, %v13378_v51 }
 0x482   : > { %v10243_v19 = vpop.eup %10242  ;;  %3584 = vmatpush.msrb.mxu0 %v3521_v59  ;;  %v3262_v3 = vpop.f32.mrf.mxu2  ;;  %v9348_v60 = vadd.f32 -1.0, %v10241_v24  ;;  %v3518_v25 = vsel %vm3358_vm13, %v13312_v38, %v9352_v18  ;;  %v3031_v24 = vadd.f32 %v17619_v39, %v17618_v14  ;;  %v3395_v38 = vmin.f32 %v13425_v57, 0.0 }
 0x483   : > { %v10245_v63 = vpop.eup %10244  ;;  %3612 = vmatpush.msrb.mxu1 %v3526_v10  ;;  %v13431_v29 = vadd.f32 %v3262_v3, %v13390_v33  ;;  %v9340_v6 = vadd.f32 -1.0, %v10243_v19  ;;  %v3509_v30 = vsel %vm3349_vm1, %v13317_v58, %v9343_v42  ;;  %v3409_v16 = vmul.f32 1.442695, %v3375_v35 }
 0x484   : > { %3585 = vmatpush.msrb.mxu0 %v3517_v20  ;;  %v9344_v0 = vadd.f32 -1.0, %v10245_v63  ;;  %v3514_v59 = vsel %vm3354_vm14, %v13331_v21, %v9348_v60  ;;  %v3505_v58 = vsel %vm3345_vm8, %v13237_v41, %v9339_v4  ;;  %v13460_v10 = vadd.f32 %v13308_v53, %v13293_v46  ;;  %v13467_v21 = vld [vmem:[%s17620_s13] sm:$0xff] }
 0x485   : > { %3613 = vmatpush.msrb.mxu1 %v3522_v50  ;;  %v3399_v19 = vmin.f32 %v13431_v29, 0.0  ;;  %vm3561_vm3 = vcmask 523264   ;;  %v13470_v63 = vadd.f32 %v17587_v12, %v2990_v55  ;;  %v3441_v20 = vmul.f32 1.442695, %v3391_v49 }
 0x486   : > { %3586 = vmatpush.msrb.mxu0 %v3513_v15  ;;  %v3510_v18 = vsel %vm3350_vm2, %v13335_v1, %v9344_v0  ;;  %v13474_v41 = vadd.f32 %v13360_v17, %v13370_v32  ;;  %v3506_v53 = vsel %vm3346_vm11, %v13327_v47, %v9340_v6  ;;  %v13480_v1 = vadd.f32 %v17587_v12, %v3031_v24  ;;  %v17623_v6 = vld [vmem:[#allocation85_spill] sm:$0xff] }
 0x487   : > { %v3303_v27 = vpop.f32.mrf.mxu3  ;;  %3614 = vmatpush.msrb.mxu1 %v3518_v25  ;;  %17621 = vst [vmem:[#allocation23_spill] sm:$0xff] %v13470_v63  ;;  %v13484_v4 = vadd.f32 %v13239_v2, %v13284_v11  ;;  %v3449_v42 = vmul.f32 1.442695, %v3395_v38  ;;  %v3396_v50 = vmin.f32 %v13450_v54, 0.0  ;;  %10246 = vpow2.f32 %v3409_v16 }
 0x488   : > { %v13440_v5 = vadd.f32 %v3303_v27, %v13403_v28  ;;  %3587 = vmatpush.msrb.mxu0 %v3509_v30  ;;  %17622 = vst [vmem:[#allocation26_spill] sm:$0xff] %v13480_v1  ;;  %v13490_v17 = vadd.f32 %v13320_v8, %v13363_v26  ;;  %v3457_v60 = vmul.f32 1.442695, %v3399_v19  ;;  %v13497_v2 = vadd.f32 %v13179_v36, %v13250_v61  ;;  %v13526_v30 = vld [vmem:[%s17620_s13 + $0x8] sm:$0xff] }
 0x489   : > { %3615 = vmatpush.msrb.mxu1 %v3514_v59  ;;  %v13501_v47 = vadd.f32 %v13256_v52, %v13286_v37  ;;  %10248 = vpow2.f32 %v3441_v20  ;;  %v3392_v15 = vmin.f32 %v13474_v41, 0.0  ;;  %v13511_v36 = vadd.f32 %v13186_v43, %v13278_v45 }
 0x48a   : > { %v3400_v7 = vmin.f32 %v13440_v5, 0.0  ;;  %3588 = vmatpush.msrb.mxu0 %v3505_v58  ;;  %v3265_v3 = vpop.f32.mrf.mxu2  ;;  %v3383_v52 = vmin.f32 %v13484_v4, 0.0  ;;  %10250 = vpow2.f32 %v3449_v42  ;;  %v3451_v55 = vmul.f32 1.442695, %v3396_v50 }
 0x48b   : > { %3616 = vmatpush.msrb.mxu1 %v3510_v18  ;;  %v3339_v12 = vadd.f32 %v3265_v3, %v13470_v63  ;;  %v3388_v27 = vmin.f32 %v13490_v17, 0.0  ;;  %10252 = vpow2.f32 %v3457_v60  ;;  %v3379_v43 = vmin.f32 %v13497_v2, 0.0 }
 0x48c   : > { %3589 = vmatpush.msrb.mxu0 %v13387_v56  ;;  %v3387_v56 = vmin.f32 %v13460_v10, 0.0  ;;  %v3459_v35 = vmul.f32 1.442695, %v3400_v7  ;;  %v3384_v39 = vmin.f32 %v13501_v47, 0.0  ;;  %v3443_v24 = vmul.f32 1.442695, %v3392_v15 }
 0x48d   : > { %3617 = vmatpush.msrb.mxu1 %v3506_v53  ;;  %9367 = vmatmul.msk.f32.vlgmr.msrb.gmra.mxu0 %vm3561_vm3, %v13467_v21  ;;  %v3403_v34 = vmin.f32 %v3339_v12, 0.0  ;;  %v13528_v14 = vpop.eup %10246  ;;  %v3425_v59 = vmul.f32 1.442695, %v3383_v52  ;;  %v3380_v19 = vmin.f32 %v13511_v36, 0.0  ;;  %v3435_v58 = vmul.f32 1.442695, %v3388_v27 }
 0x48e   : > { %v3433_v49 = vmul.f32 1.442695, %v3387_v56  ;;  %10254 = vpow2.f32 %v3459_v35  ;;  %v3417_v18 = vmul.f32 1.442695, %v3379_v43  ;;  %v3427_v42 = vmul.f32 1.442695, %v3384_v39 }
 0x48f   : > { %v3306_v8 = vpop.f32.mrf.mxu3  ;;  %3618 = vmatpush.msrb.mxu1 %v13400_v22  ;;  %v3465_v25 = vmul.f32 1.442695, %v3403_v34  ;;  %v13520_v22 = vadd.f32 %v17623_v6, %v13218_v44  ;;  %v10249_v16 = vpop.eup %10248  ;;  %v3419_v60 = vmul.f32 1.442695, %v3380_v19  ;;  %vm3371_vm4 = vcmp.gt.f32.partialorder %v3339_v12, 0.0 }
 0x490   : > { %v13506_v9 = vadd.f32 %v3306_v8, %v13480_v1  ;;  %9371 = vmatmul.msk.f32.vlgmr.msrb.gmra.mxu1 %vm3561_vm3, %v13467_v21  ;;  %v10251_v7 = vpop.eup %10250  ;;  %v13540_v8 = vld [vmem:[%s17620_s13 + $0x10] sm:$0xff]  ;;  %vm3367_vm1 = vcmp.gt.f32.partialorder %v13431_v29, 0.0  ;;  %vm3368_vm6 = vcmp.gt.f32.partialorder %v13440_v5, 0.0  ;;  %vm3363_vm7 = vcmp.gt.f32.partialorder %v13425_v57, 0.0 }
 0x491   : > { %10256 = vpow2.f32 %v3465_v25  ;;  %v10253_v20 = vpop.eup %10252  ;;  %v3376_v53 = vmin.f32 %v13520_v22, 0.0  ;;  %v9357_v6 = vadd.f32 -1.0, %v10251_v7  ;;  %vm3364_vm8 = vcmp.gt.f32.partialorder %v13450_v54, 0.0 }
 0x492   : > { %v3404_v0 = vmin.f32 %v13506_v9, 0.0  ;;  %10258 = vpow2.f32 %v3451_v55  ;;  %v9361_v15 = vadd.f32 -1.0, %v10253_v20  ;;  %vm3372_vm0 = vcmp.gt.f32.partialorder %v13506_v9, 0.0 }
 0x493   : > { %v3411_v52 = vmul.f32 1.442695, %v3376_v53  ;;  %vm3359_vm9 = vcmp.gt.f32.partialorder %v13420_v48, 0.0  ;;  %vm3360_vm10 = vcmp.gt.f32.partialorder %v13474_v41, 0.0  ;;  %vm3355_vm11 = vcmp.gt.f32.partialorder %v13460_v10, 0.0 }
 0x494   : > { %v3467_v38 = vmul.f32 1.442695, %v3404_v0  ;;  %v10255_v50 = vpop.eup %10254  ;;  %vm3356_vm5 = vcmp.gt.f32.partialorder %v13490_v17, 0.0  ;;  %vm3351_vm12 = vcmp.gt.f32.partialorder %v13484_v4, 0.0  ;;  %vm3352_vm13 = vcmp.gt.f32.partialorder %v13501_v47, 0.0 }
 0x495   : > { %9368 = vmatmul.msk.f32.gmra.mxu0 %vm3561_vm3, %v13526_v30  ;;  %v9362_v0 = vadd.f32 -1.0, %v10255_v50  ;;  %vm3347_vm14 = vcmp.gt.f32.partialorder %v13497_v2, 0.0  ;;  %vm3348_vm2 = vcmp.gt.f32.partialorder %v13511_v36, 0.0 }
 0x496   : > { %10260 = vpow2.f32 %v3467_v38 }
 0x497   : > { %10262 = vpow2.f32 %v3433_v49  ;;  %v10257_v3 = vpop.eup %10256 }
 0x498   : > { %10264 = vpow2.f32 %v3443_v24  ;;  %9372 = vmatmul.msk.f32.gmra.mxu1 %vm3561_vm3, %v13526_v30  ;;  %v10259_v56 = vpop.eup %10258  ;;  %v9365_v35 = vadd.f32 -1.0, %v10257_v3  ;;  %v3527_v24 = vsel %vm3367_vm1, %v13431_v29, %v9361_v15 }
 0x499   : > { %10266 = vpow2.f32 %v3425_v59  ;;  %v9358_v38 = vadd.f32 -1.0, %v10259_v56 }
 0x49a   : > { %10268 = vpow2.f32 %v3435_v58  ;;  %v3531_v27 = vsel %vm3371_vm4, %v3339_v12, %v9365_v35  ;;  %v9353_v12 = vadd.f32 -1.0, %v10249_v16  ;;  %v3528_v58 = vsel %vm3368_vm6, %v13440_v5, %v9362_v0 }
 0x49b   : > { %10270 = vpow2.f32 %v3417_v18  ;;  %3640 = vmatpush.msrb.mxu2 %v3531_v27  ;;  %v3524_v16 = vsel %vm3364_vm8, %v13450_v54, %v9358_v38  ;;  %vm3343_vm4 = vcmp.gt.f32.partialorder %v13410_v31, 0.0  ;;  %v13605_v27 = vpop.permute.xlu2 %3553 }
 0x49c   : > { %v10261_v34 = vpop.eup %10260  ;;  %10272 = vpow2.f32 %v3427_v42  ;;  %v3519_v20 = vsel %vm3359_vm9, %v13420_v48, %v9353_v12  ;;  %17627 = vst [vmem:[#allocation69_spill] sm:$0xff] %v13605_v27 }
 0x49d   : > { %v10263_v55 = vpop.eup %10262  ;;  %v9366_v25 = vadd.f32 -1.0, %v10261_v34  ;;  %10274 = vpow2.f32 %v3419_v60  ;;  %9369 = vmatmul.msk.f32.gmra.mxu0 %vm3561_vm3, %v13540_v8  ;;  %3641 = vmatpush.msrb.mxu2 %v3527_v24 }
 0x49e   : > { %v10265_v43 = vpop.eup %10264  ;;  %10276 = vpow2.f32 %v3411_v52  ;;  %v9349_v29 = vadd.f32 -1.0, %v10263_v55  ;;  %v13600_v55 = vpop.permute.xlu0 %3548 }
 0x49f   : > { %v10267_v49 = vpop.eup %10266  ;;  %v3532_v39 = vsel %vm3372_vm0, %v13506_v9, %v9366_v25  ;;  %v3523_v9 = vsel %vm3363_vm7, %v13425_v57, %v9357_v6  ;;  %v9354_v7 = vadd.f32 -1.0, %v10265_v43  ;;  %v3536_v57 = vld [vmem:[%s17620_s13 + $0x18] sm:$0xff]  ;;  %vm3344_vm0 = vcmp.gt.f32.partialorder %v13520_v22, 0.0  ;;  %17626 = vst [vmem:[#allocation35_spill] sm:$0xff] %v13600_v55 }
 0x4a0   : > { %v10269_v59 = vpop.eup %10268  ;;  %3669 = vmatpush.msrb.mxu3 %v3532_v39  ;;  %9373 = vmatmul.msk.f32.gmra.mxu1 %vm3561_vm3, %v13540_v8  ;;  %v9345_v42 = vadd.f32 -1.0, %v10267_v49  ;;  %v3515_v3 = vsel %vm3355_vm11, %v13460_v10, %v9349_v29 }
 0x4a1   : > { %v10271_v19 = vpop.eup %10270  ;;  %3642 = vmatpush.msrb.mxu2 %v3523_v9  ;;  %v9350_v53 = vadd.f32 -1.0, %v10269_v59  ;;  %v3520_v5 = vsel %vm3360_vm10, %v13474_v41, %v9354_v7  ;;  %v9337_v41 = vadd.f32 -1.0, %v13528_v14 }
 0x4a2   : > { %v10273_v18 = vpop.eup %10272  ;;  %3670 = vmatpush.msrb.mxu3 %v3528_v58  ;;  %v9341_v60 = vadd.f32 -1.0, %v10271_v19  ;;  %v3511_v35 = vsel %vm3351_vm12, %v13484_v4, %v9345_v42 }
 0x4a3   : > { %v10275_v50 = vpop.eup %10274  ;;  %3643 = vmatpush.msrb.mxu2 %v3519_v20  ;;  %v9346_v54 = vadd.f32 -1.0, %v10273_v18  ;;  %v3516_v56 = vsel %vm3356_vm5, %v13490_v17, %v9350_v53  ;;  %v3503_v14 = vsel %vm3343_vm4, %v13410_v31, %v9337_v41 }
 0x4a4   : > { %3671 = vmatpush.msrb.mxu3 %v3524_v16  ;;  %v10277_v48 = vpop.eup %10276  ;;  %v9342_v15 = vadd.f32 -1.0, %v10275_v50  ;;  %v3507_v34 = vsel %vm3347_vm14, %v13497_v2, %v9341_v60 }
 0x4a5   : > { %3644 = vmatpush.msrb.mxu2 %v3515_v3  ;;  %9370 = vmatmul.msk.f32.gmra.mxu0 %vm3561_vm3, %v3536_v57  ;;  %v3512_v10 = vsel %vm3352_vm13, %v13501_v47, %v9346_v54  ;;  %v9338_v17 = vadd.f32 -1.0, %v10277_v48  ;;  %v13596_v47 = vpop.permute.xlu1 %3558 }
 0x4a6   : > { %3672 = vmatpush.msrb.mxu3 %v3520_v5  ;;  %v3508_v4 = vsel %vm3348_vm2, %v13511_v36, %v9342_v15  ;;  %17624 = vst [vmem:[#allocation34_spill] sm:$0xff] %v13596_v47 }
 0x4a7   : > { %3645 = vmatpush.msrb.mxu2 %v3511_v35  ;;  %v3504_v52 = vsel %vm3344_vm0, %v13520_v22, %v9338_v17 }
 0x4a8   : > { %3673 = vmatpush.msrb.mxu3 %v3516_v56  ;;  %9374 = vmatmul.msk.f32.gmra.mxu1 %vm3561_vm3, %v3536_v57 }
 0x4a9   : > { %3646 = vmatpush.msrb.mxu2 %v3507_v34 }
 0x4aa   : > { %3674 = vmatpush.msrb.mxu3 %v3512_v10 }
 0x4ab   : > { %3647 = vmatpush.msrb.mxu2 %v3503_v14 }
 0x4ac   : > { %3675 = vmatpush.msrb.mxu3 %v3508_v4  ;;  %9375 = vmatmul.msk.f32.vlgmr.msrb.gmra.mxu2 %vm3561_vm3, %v13467_v21 }
 0x4ad   : > { %v13598_v22 = vpop.permute.xlu1 %3543 }
 0x4ae   : > { %3676 = vmatpush.msrb.mxu3 %v3504_v52  ;;  %17625 = vst [vmem:[#allocation22_spill] sm:$0xff] %v13598_v22 }
 0x4af   : > { %9379 = vmatmul.msk.f32.vlgmr.msrb.gmra.mxu3 %vm3561_vm3, %v13467_v21 }
 0x4b4   : > { %9376 = vmatmul.msk.f32.gmra.mxu2 %vm3561_vm3, %v13526_v30 }
 0x4b7   : > { %9380 = vmatmul.msk.f32.gmra.mxu3 %vm3561_vm3, %v13526_v30 }
 0x4bc   : > { %9377 = vmatmul.msk.f32.gmra.mxu2 %vm3561_vm3, %v13540_v8 }
 0x4bf   : > { %9381 = vmatmul.msk.f32.gmra.mxu3 %vm3561_vm3, %v13540_v8 }
 0x4c4   : > { %9378 = vmatmul.msk.f32.gmra.mxu2 %vm3561_vm3, %v3536_v57 }
 0x4c7   : > { %9382 = vmatmul.msk.f32.gmra.mxu3 %vm3561_vm3, %v3536_v57 }
 0x50a   : > { %v3591_v31 = vpop.f32.mrf.mxu0 }
 0x50b   : > { %v13603_v30 = vadd.f32 %v3591_v31, %v13598_v22 }
 0x50d   : > { %v3620_v2 = vpop.f32.mrf.mxu1  ;;  %v3706_v6 = vmin.f32 %v13603_v30, 0.0  ;;  %vm3690_vm10 = vcmp.gt.f32.partialorder %v13603_v30, 0.0 }
 0x50e   : > { %v13617_v38 = vadd.f32 %v3620_v2, %v13598_v22 }
 0x50f   : > { %v3722_v19 = vmul.f32 1.442695, %v3706_v6 }
 0x510   : > { %v3707_v7 = vmin.f32 %v13617_v38, 0.0  ;;  %vm3691_vm5 = vcmp.gt.f32.partialorder %v13617_v38, 0.0 }
 0x511   : > { %10278 = vpow2.f32 %v3722_v19 }
 0x512   : > { %v3594_v21 = vpop.f32.mrf.mxu0  ;;  %v3724_v5 = vmul.f32 1.442695, %v3707_v7 }
 0x513   : > { %v13608_v25 = vadd.f32 %v3594_v21, %v13600_v55 }
 0x515   : > { %v3623_v36 = vpop.f32.mrf.mxu1  ;;  %v3710_v12 = vmin.f32 %v13608_v25, 0.0  ;;  %vm3694_vm7 = vcmp.gt.f32.partialorder %v13608_v25, 0.0 }
 0x516   : > { %v13613_v43 = vadd.f32 %v3623_v36, %v13600_v55 }
 0x517   : > { %v3730_v29 = vmul.f32 1.442695, %v3710_v12  ;;  %v10279_v48 = vpop.eup %10278  ;;  %v17628_v12 = vld [vmem:[#allocation18_spill] sm:$0xff] }
 0x518   : > { %v3711_v58 = vmin.f32 %v13613_v43, 0.0  ;;  %v9383_v36 = vadd.f32 -1.0, %v10279_v48  ;;  %vm3695_vm11 = vcmp.gt.f32.partialorder %v13613_v43, 0.0 }
 0x51a   : > { %v3597_v8 = vpop.f32.mrf.mxu0  ;;  %v3732_v53 = vmul.f32 1.442695, %v3711_v58 }
 0x51b   : > { %v3598_v0 = vadd.f32 %v3597_v8, %v13605_v27 }
 0x51d   : > { %v3626_v49 = vpop.f32.mrf.mxu1  ;;  %v3714_v39 = vmin.f32 %v3598_v0, 0.0  ;;  %vm3698_vm1 = vcmp.gt.f32.partialorder %v3598_v0, 0.0 }
 0x51e   : > { %v3627_v24 = vadd.f32 %v3626_v49, %v13605_v27 }
 0x51f   : > { %v3738_v9 = vmul.f32 1.442695, %v3714_v39 }
 0x520   : > { %v3715_v59 = vmin.f32 %v3627_v24, 0.0  ;;  %vm3699_vm8 = vcmp.gt.f32.partialorder %v3627_v24, 0.0 }
 0x521   : > { %10280 = vpow2.f32 %v3738_v9 }
 0x522   : > { %v3600_v18 = vpop.f32.mrf.mxu0  ;;  %v3740_v16 = vmul.f32 1.442695, %v3715_v59  ;;  %10282 = vpow2.f32 %v3730_v29 }
 0x523   : > { %v3601_v20 = vadd.f32 %v3600_v18, %v13596_v47 }
 0x524   : > { %10284 = vpow2.f32 %v3740_v16 }
 0x525   : > { %v3629_v42 = vpop.f32.mrf.mxu1  ;;  %v3718_v50 = vmin.f32 %v3601_v20, 0.0  ;;  %10286 = vpow2.f32 %v3732_v53  ;;  %vm3702_vm6 = vcmp.gt.f32.partialorder %v3601_v20, 0.0 }
 0x526   : > { %v3630_v57 = vadd.f32 %v3629_v42, %v13596_v47 }
 0x527   : > { %v3746_v3 = vmul.f32 1.442695, %v3718_v50  ;;  %v10281_v56 = vpop.eup %10280 }
 0x528   : > { %v3719_v54 = vmin.f32 %v3630_v57, 0.0  ;;  %v10283_v35 = vpop.eup %10282  ;;  %v9391_v10 = vadd.f32 -1.0, %v10281_v56  ;;  %vm3703_vm9 = vcmp.gt.f32.partialorder %v3630_v57, 0.0 }
 0x529   : > { %10288 = vpow2.f32 %v3746_v3  ;;  %v9387_v14 = vadd.f32 -1.0, %v10283_v35 }
 0x52a   : > { %v3748_v60 = vmul.f32 1.442695, %v3719_v54  ;;  %10290 = vpow2.f32 %v3724_v5  ;;  %v10285_v15 = vpop.eup %10284  ;;  %v13626_v39 = vsel %vm3698_vm1, %v3598_v0, %v9391_v10  ;;  %v17629_v0 = vld [vmem:[#allocation19_spill] sm:$0xff] }
 0x52b   : > { %v10287_v41 = vpop.eup %10286  ;;  %v9392_v52 = vadd.f32 -1.0, %v10285_v15  ;;  %v13636_v7 = vsel %vm3694_vm7, %v13608_v25, %v9387_v14  ;;  %v3794_v18 = vmul.f32 %v13626_v39, %v17628_v12  ;;  %v13690_v10 = vld [vmem:[%s17630_s15 + $0x8] sm:$0xff] }
 0x52c   : > { %10292 = vpow2.f32 %v3748_v60  ;;  %v9388_v8 = vadd.f32 -1.0, %v10287_v41  ;;  %v3790_v53 = vmul.f32 %v13636_v7, %v17628_v12 }
 0x52d   : > { %v13633_v9 = vsel %vm3699_vm8, %v3627_v24, %v9392_v52  ;;  %v13648_v24 = vsel %vm3690_vm10, %v13603_v30, %v9383_v36 }
 0x52e   : > { %v3795_v25 = vmul.f32 %v13633_v9, %v17629_v0 }
 0x52f   : > { %v3649_v34 = vpop.f32.mrf.mxu2  ;;  %v10289_v17 = vpop.eup %10288 }
 0x530   : > { %v10291_v4 = vpop.eup %10290  ;;  %v9395_v31 = vadd.f32 -1.0, %v10289_v17 }
 0x531   : > { %v9384_v19 = vadd.f32 -1.0, %v10291_v4 }
 0x532   : > { %v3678_v2 = vpop.f32.mrf.mxu3  ;;  %v10293_v21 = vpop.eup %10292  ;;  %v13624_v6 = vsel %vm3702_vm6, %v3601_v20, %v9395_v31  ;;  %v13645_v20 = vsel %vm3695_vm11, %v13613_v43, %v9388_v8  ;;  %v3786_v43 = vmul.f32 %v13648_v24, %v17628_v12 }
 0x533   : > { %v9396_v49 = vadd.f32 -1.0, %v10293_v21  ;;  %v3798_v59 = vmul.f32 %v13624_v6, %v17628_v12  ;;  %v13656_v50 = vsel %vm3691_vm5, %v13617_v38, %v9384_v19  ;;  %v3791_v30 = vmul.f32 %v13645_v20, %v17629_v0 }
 0x534   : > { %v3787_v5 = vmul.f32 %v13656_v50, %v17629_v0  ;;  %v13670_v38 = vadd.f32 %v3649_v34, %v13598_v22  ;;  %v13693_v34 = vadd.f32 %v3678_v2, %v13598_v22 }
 0x535   : > { %v13631_v58 = vsel %vm3703_vm9, %v3630_v57, %v9396_v49  ;;  %3854 = vmatpush.msra.mxu0 %v3798_v59  ;;  %v13665_v57 = vld [vmem:[%s17630_s15] sm:$0xff] }
 0x536   : > { %v3799_v29 = vmul.f32 %v13631_v58, %v17629_v0  ;;  %v3708_v48 = vmin.f32 %v13670_v38, 0.0  ;;  %v3709_v21 = vmin.f32 %v13693_v34, 0.0  ;;  %vm3692_vm0 = vcmp.gt.f32.partialorder %v13670_v38, 0.0 }
 0x537   : > { %v3652_v16 = vpop.f32.mrf.mxu2  ;;  %3855 = vmatpush.msra.mxu0 %v3794_v18  ;;  %vm3693_vm6 = vcmp.gt.f32.partialorder %v13693_v34, 0.0 }
 0x538   : > { %3883 = vmatpush.msra.mxu1 %v3799_v29  ;;  %v13675_v3 = vadd.f32 %v3652_v16, %v13600_v55  ;;  %v3726_v14 = vmul.f32 1.442695, %v3708_v48  ;;  %v13708_v29 = vld [vmem:[%s17630_s15 + $0x10] sm:$0xff]  ;;  %v3728_v18 = vmul.f32 1.442695, %v3709_v21 }
 0x539   : > { %3856 = vmatpush.msra.mxu0 %v3790_v53 }
 0x53a   : > { %v3681_v42 = vpop.f32.mrf.mxu3  ;;  %3884 = vmatpush.msra.mxu1 %v3795_v25  ;;  %v3712_v17 = vmin.f32 %v13675_v3, 0.0  ;;  %10294 = vpow2.f32 %v3726_v14  ;;  %vm3696_vm14 = vcmp.gt.f32.partialorder %v13675_v3, 0.0 }
 0x53b   : > { %3857 = vmatpush.msra.mxu0 %v3786_v43  ;;  %v13682_v56 = vadd.f32 %v3681_v42, %v13600_v55 }
 0x53c   : > { %3885 = vmatpush.msra.mxu1 %v3791_v30  ;;  %9399 = vmatmul.msk.f32.vlgmr.msra.gmra.mxu0 %vm2656_vm15, %v13665_v57  ;;  %v3734_v36 = vmul.f32 1.442695, %v3712_v17 }
 0x53d   : > { %v3713_v52 = vmin.f32 %v13682_v56, 0.0  ;;  %vm3697_vm1 = vcmp.gt.f32.partialorder %v13682_v56, 0.0 }
 0x53e   : > { %3886 = vmatpush.msra.mxu1 %v3787_v5 }
 0x53f   : > { %9403 = vmatmul.msk.f32.vlgmr.msra.gmra.mxu1 %vm2656_vm15, %v13665_v57  ;;  %v3655_v54 = vpop.f32.mrf.mxu2  ;;  %v3736_v12 = vmul.f32 1.442695, %v3713_v52 }
 0x540   : > { %v3656_v60 = vadd.f32 %v3655_v54, %v13605_v27  ;;  %v10295_v42 = vpop.eup %10294  ;;  %v3805_v54 = vld [vmem:[%s17630_s15 + $0x18] sm:$0xff] }
 0x541   : > { %v9385_v21 = vadd.f32 -1.0, %v10295_v42 }
 0x542   : > { %v3684_v35 = vpop.f32.mrf.mxu3  ;;  %v3716_v15 = vmin.f32 %v3656_v60, 0.0  ;;  %vm3700_vm12 = vcmp.gt.f32.partialorder %v3656_v60, 0.0 }
 0x543   : > { %v13685_v41 = vadd.f32 %v3684_v35, %v13605_v27 }
 0x544   : > { %9400 = vmatmul.msk.f32.gmra.mxu0 %vm2656_vm15, %v13690_v10  ;;  %v3742_v31 = vmul.f32 1.442695, %v3716_v15 }
 0x545   : > { %v3717_v4 = vmin.f32 %v13685_v41, 0.0  ;;  %vm3701_vm2 = vcmp.gt.f32.partialorder %v13685_v41, 0.0 }
 0x546   : > { %10296 = vpow2.f32 %v3742_v31 }
 0x547   : > { %9404 = vmatmul.msk.f32.gmra.mxu1 %vm2656_vm15, %v13690_v10  ;;  %v3658_v8 = vpop.f32.mrf.mxu2  ;;  %v3744_v2 = vmul.f32 1.442695, %v3717_v4  ;;  %10298 = vpow2.f32 %v3734_v36 }
 0x548   : > { %v3659_v49 = vadd.f32 %v3658_v8, %v13596_v47 }
 0x549   : > { %10300 = vpow2.f32 %v3744_v2 }
 0x54a   : > { %v3687_v59 = vpop.f32.mrf.mxu3  ;;  %v3720_v19 = vmin.f32 %v3659_v49, 0.0  ;;  %10302 = vpow2.f32 %v3736_v12  ;;  %vm3704_vm13 = vcmp.gt.f32.partialorder %v3659_v49, 0.0 }
 0x54b   : > { %v3688_v0 = vadd.f32 %v3687_v59, %v13596_v47  ;;  %v17631_v59 = vld [vmem:[#allocation20_spill] sm:$0xff] }
 0x54c   : > { %v3750_v16 = vmul.f32 1.442695, %v3720_v19  ;;  %9401 = vmatmul.msk.f32.gmra.mxu0 %vm2656_vm15, %v13708_v29  ;;  %v10297_v30 = vpop.eup %10296 }
 0x54d   : > { %v3721_v25 = vmin.f32 %v3688_v0, 0.0  ;;  %v10299_v43 = vpop.eup %10298  ;;  %v9393_v35 = vadd.f32 -1.0, %v10297_v30  ;;  %vm3705_vm4 = vcmp.gt.f32.partialorder %v3688_v0, 0.0 }
 0x54e   : > { %10304 = vpow2.f32 %v3750_v16  ;;  %v9389_v4 = vadd.f32 -1.0, %v10299_v43 }
 0x54f   : > { %v3752_v53 = vmul.f32 1.442695, %v3721_v25  ;;  %10306 = vpow2.f32 %v3728_v18  ;;  %9405 = vmatmul.msk.f32.gmra.mxu1 %vm2656_vm15, %v13708_v29  ;;  %v10301_v5 = vpop.eup %10300  ;;  %v13721_v12 = vsel %vm3700_vm12, %v3656_v60, %v9393_v35  ;;  %v17632_v60 = vld [vmem:[#allocation21_spill] sm:$0xff]  ;;  %v13775_v35 = vpop.permute.xlu2 %3827 }
 0x550   : > { %v10303_v48 = vpop.eup %10302  ;;  %v9394_v14 = vadd.f32 -1.0, %v10301_v5  ;;  %v3796_v42 = vmul.f32 %v13721_v12, %v17631_v59  ;;  %17633 = vst [vmem:[#allocation32_spill] sm:$0xff] %v13775_v35 }
 0x551   : > { %10308 = vpow2.f32 %v3752_v53  ;;  %v9390_v36 = vadd.f32 -1.0, %v10303_v48 }
 0x552   : > { %v13730_v25 = vsel %vm3701_vm2, %v13685_v41, %v9394_v14  ;;  %v13745_v41 = vsel %vm3692_vm0, %v13670_v38, %v9385_v21  ;;  %v13784_v14 = vpop.permute.xlu0 %3822 }
 0x553   : > { %v3788_v38 = vmul.f32 %v13745_v41, %v17631_v59  ;;  %17636 = vst [vmem:[#allocation75_spill] sm:$0xff] %v13784_v14 }
 0x554   : > { %v10305_v15 = vpop.eup %10304  ;;  %9402 = vmatmul.msk.f32.gmra.mxu0 %vm2656_vm15, %v3805_v54 }
 0x555   : > { %v10307_v17 = vpop.eup %10306  ;;  %v9397_v52 = vadd.f32 -1.0, %v10305_v15 }
 0x556   : > { %v9386_v18 = vadd.f32 -1.0, %v10307_v17 }
 0x557   : > { %v10309_v31 = vpop.eup %10308  ;;  %v13718_v8 = vsel %vm3704_vm13, %v3659_v49, %v9397_v52  ;;  %9406 = vmatmul.msk.f32.gmra.mxu1 %vm2656_vm15, %v3805_v54  ;;  %v13733_v49 = vsel %vm3696_vm14, %v13675_v3, %v9389_v4  ;;  %v3797_v3 = vmul.f32 %v13730_v25, %v17632_v60  ;;  %v13777_v17 = vpop.permute.xlu2 %3812 }
 0x558   : > { %v9398_v2 = vadd.f32 -1.0, %v10309_v31  ;;  %v3800_v19 = vmul.f32 %v13718_v8, %v17631_v59  ;;  %v3792_v30 = vmul.f32 %v13733_v49, %v17631_v59  ;;  %v13753_v43 = vsel %vm3693_vm6, %v13693_v34, %v9386_v18  ;;  %17634 = vst [vmem:[#allocation27_spill] sm:$0xff] %v13777_v17  ;;  %v13779_v4 = vpop.permute.xlu1 %3817 }
 0x559   : > { %v3789_v5 = vmul.f32 %v13753_v43, %v17632_v60  ;;  %17635 = vst [vmem:[#allocation33_spill] sm:$0xff] %v13779_v4 }
 0x55a   : > { %v13727_v16 = vsel %vm3705_vm4, %v3688_v0, %v9398_v2  ;;  %3912 = vmatpush.msra.mxu2 %v3800_v19  ;;  %v13742_v0 = vsel %vm3697_vm1, %v13682_v56, %v9390_v36 }
 0x55b   : > { %v3801_v53 = vmul.f32 %v13727_v16, %v17632_v60  ;;  %v3793_v56 = vmul.f32 %v13742_v0, %v17632_v60 }
 0x55c   : > { %3913 = vmatpush.msra.mxu2 %v3796_v42 }
 0x55d   : > { %3941 = vmatpush.msra.mxu3 %v3801_v53 }
 0x55e   : > { %3914 = vmatpush.msra.mxu2 %v3792_v30 }
 0x55f   : > { %3942 = vmatpush.msra.mxu3 %v3797_v3 }
 0x560   : > { %3915 = vmatpush.msra.mxu2 %v3788_v38 }
 0x561   : > { %3943 = vmatpush.msra.mxu3 %v3793_v56  ;;  %9407 = vmatmul.msk.f32.vlgmr.msra.gmra.mxu2 %vm2656_vm15, %v13665_v57 }
 0x563   : > { %3944 = vmatpush.msra.mxu3 %v3789_v5 }
 0x564   : > { %9411 = vmatmul.msk.f32.vlgmr.msra.gmra.mxu3 %vm2656_vm15, %v13665_v57 }
 0x569   : > { %9408 = vmatmul.msk.f32.gmra.mxu2 %vm2656_vm15, %v13690_v10 }
 0x56c   : > { %9412 = vmatmul.msk.f32.gmra.mxu3 %vm2656_vm15, %v13690_v10 }
 0x571   : > { %9409 = vmatmul.msk.f32.gmra.mxu2 %vm2656_vm15, %v13708_v29 }
 0x574   : > { %9413 = vmatmul.msk.f32.gmra.mxu3 %vm2656_vm15, %v13708_v29 }
 0x579   : > { %9410 = vmatmul.msk.f32.gmra.mxu2 %vm2656_vm15, %v3805_v54 }
 0x57c   : > { %9414 = vmatmul.msk.f32.gmra.mxu3 %vm2656_vm15, %v3805_v54 }
 0x5b9   : > { %v3859_v34 = vpop.f32.mrf.mxu0 }
 0x5ba   : > { %v13782_v10 = vadd.f32 %v3859_v34, %v13777_v17 }
 0x5bc   : > { %v3888_v48 = vpop.f32.mrf.mxu1  ;;  %v3974_v21 = vmin.f32 %v13782_v10, 0.0  ;;  %vm3958_vm12 = vcmp.gt.f32.partialorder %v13782_v10, 0.0 }
 0x5bd   : > { %v13797_v53 = vadd.f32 %v3888_v48, %v13777_v17 }
 0x5be   : > { %v3990_v60 = vmul.f32 1.442695, %v3974_v21 }
 0x5bf   : > { %vm3959_vm13 = vcmp.gt.f32.partialorder %v13797_v53, 0.0 }
 0x5c0   : > { %10310 = vpow2.f32 %v3990_v60 }
 0x5c1   : > { %v3862_v57 = vpop.f32.mrf.mxu0 }
 0x5c2   : > { %v13787_v29 = vadd.f32 %v3862_v57, %v13779_v4  ;;  %v3975_v57 = vmin.f32 %v13797_v53, 0.0 }
 0x5c4   : > { %v3891_v15 = vpop.f32.mrf.mxu1  ;;  %v3978_v2 = vmin.f32 %v13787_v29, 0.0  ;;  %vm3962_vm11 = vcmp.gt.f32.partialorder %v13787_v29, 0.0 }
 0x5c5   : > { %v13794_v59 = vadd.f32 %v3891_v15, %v13779_v4 }
 0x5c6   : > { %v3998_v42 = vmul.f32 1.442695, %v3978_v2  ;;  %v3992_v2 = vmul.f32 1.442695, %v3975_v57 }
 0x5c7   : > { %v3979_v3 = vmin.f32 %v13794_v59, 0.0  ;;  %vm3963_vm5 = vcmp.gt.f32.partialorder %v13794_v59, 0.0 }
 0x5c8   : > { %10312 = vpow2.f32 %v3998_v42 }
 0x5c9   : > { %v3865_v52 = vpop.f32.mrf.mxu0 }
 0x5ca   : > { %v3866_v54 = vadd.f32 %v3865_v52, %v13784_v14 }
 0x5cc   : > { %v3894_v31 = vpop.f32.mrf.mxu1  ;;  %v3982_v19 = vmin.f32 %v3866_v54, 0.0  ;;  %vm3966_vm9 = vcmp.gt.f32.partialorder %v3866_v54, 0.0 }
 0x5cd   : > { %v3895_v36 = vadd.f32 %v3894_v31, %v13784_v14  ;;  %v4000_v31 = vmul.f32 1.442695, %v3979_v3 }
 0x5ce   : > { %v4006_v56 = vmul.f32 1.442695, %v3982_v19  ;;  %v10311_v19 = vpop.eup %10310 }
 0x5cf   : > { %v3983_v18 = vmin.f32 %v3895_v36, 0.0  ;;  %vm3967_vm10 = vcmp.gt.f32.partialorder %v3895_v36, 0.0 }
 0x5d0   : > { %10314 = vpow2.f32 %v4006_v56 }
 0x5d1   : > { %v3868_v30 = vpop.f32.mrf.mxu0  ;;  %v4008_v5 = vmul.f32 1.442695, %v3983_v18  ;;  %v10313_v18 = vpop.eup %10312 }
 0x5d2   : > { %v3869_v38 = vadd.f32 %v3868_v30, %v13775_v35 }
 0x5d3   : > { %10316 = vpow2.f32 %v4008_v5  ;;  %v9419_v5 = vadd.f32 -1.0, %v10313_v18 }
 0x5d4   : > { %v3897_v34 = vpop.f32.mrf.mxu1  ;;  %v3986_v15 = vmin.f32 %v3869_v38, 0.0  ;;  %vm3970_vm7 = vcmp.gt.f32.partialorder %v3869_v38, 0.0 }
 0x5d5   : > { %v3898_v52 = vadd.f32 %v3897_v34, %v13775_v35 }
 0x5d6   : > { %v4014_v48 = vmul.f32 1.442695, %v3986_v15  ;;  %v10315_v30 = vpop.eup %10314 }
 0x5d7   : > { %v3987_v21 = vmin.f32 %v3898_v52, 0.0  ;;  %v9423_v34 = vadd.f32 -1.0, %v10315_v30  ;;  %vm3971_vm8 = vcmp.gt.f32.partialorder %v3898_v52, 0.0 }
 0x5d8   : > { %10318 = vpow2.f32 %v4014_v48 }
 0x5d9   : > { %v4016_v47 = vmul.f32 1.442695, %v3987_v21  ;;  %10320 = vpow2.f32 %v4000_v31  ;;  %v10317_v60 = vpop.eup %10316  ;;  %v4046_v48 = vsel %vm3966_vm9, %v3866_v54, %v9423_v34 }
 0x5da   : > { %v9424_v15 = vadd.f32 -1.0, %v10317_v60 }
 0x5db   : > { %10322 = vpow2.f32 %v4016_v47 }
 0x5dc   : > { %10324 = vpow2.f32 %v3992_v2  ;;  %v9415_v2 = vadd.f32 -1.0, %v10311_v19  ;;  %v4047_v30 = vsel %vm3967_vm10, %v3895_v36, %v9424_v15 }
 0x5de   : > { %v10319_v27 = vpop.eup %10318 }
 0x5df   : > { %v10321_v55 = vpop.eup %10320  ;;  %v9427_v22 = vadd.f32 -1.0, %v10319_v27 }
 0x5e0   : > { %v9420_v21 = vadd.f32 -1.0, %v10321_v55  ;;  %v13810_v55 = vld [vmem:[%s17083_s17] sm:$0xff] }
 0x5e1   : > { %v10323_v42 = vpop.eup %10322  ;;  %v4050_v3 = vsel %vm3970_vm7, %v3869_v38, %v9427_v22  ;;  %v4042_v22 = vsel %vm3962_vm11, %v13787_v29, %v9419_v5 }
 0x5e2   : > { %v9428_v56 = vadd.f32 -1.0, %v10323_v42  ;;  %v10325_v57 = vpop.eup %10324  ;;  %4116 = vmatpush.msrb.mxu0 %v4050_v3  ;;  %v4043_v54 = vsel %vm3963_vm5, %v13794_v59, %v9420_v21  ;;  %v13823_v59 = vld [vmem:[%s17083_s17 + $0x8] sm:$0xff] }
 0x5e3   : > { %v9416_v38 = vadd.f32 -1.0, %v10325_v57 }
 0x5e4   : > { %v4051_v31 = vsel %vm3971_vm8, %v3898_v52, %v9428_v56  ;;  %v3917_v47 = vpop.f32.mrf.mxu2  ;;  %4117 = vmatpush.msrb.mxu0 %v4046_v48  ;;  %v4038_v52 = vsel %vm3958_vm12, %v13782_v10, %v9415_v2  ;;  %v13843_v56 = vld [vmem:[%s17083_s17 + $0x10] sm:$0xff] }
 0x5e5   : > { %4148 = vmatpush.msrb.mxu1 %v4051_v31  ;;  %v4039_v29 = vsel %vm3959_vm13, %v13797_v53, %v9416_v38  ;;  %v13828_v10 = vadd.f32 %v3917_v47, %v13777_v17 }
 0x5e6   : > { %4118 = vmatpush.msrb.mxu0 %v4042_v22 }
 0x5e7   : > { %v3946_v27 = vpop.f32.mrf.mxu3  ;;  %4149 = vmatpush.msrb.mxu1 %v4047_v30  ;;  %v3976_v42 = vmin.f32 %v13828_v10, 0.0  ;;  %vm3960_vm7 = vcmp.gt.f32.partialorder %v13828_v10, 0.0 }
 0x5e8   : > { %4119 = vmatpush.msrb.mxu0 %v4038_v52  ;;  %v13853_v48 = vadd.f32 %v3946_v27, %v13777_v17  ;;  %v13864_v27 = vld [vmem:[%s17083_s17 + $0x18] sm:$0xff] }
 0x5e9   : > { %4150 = vmatpush.msrb.mxu1 %v4043_v54  ;;  %9431 = vmatmul.msk.f32.vlgmr.msrb.gmra.mxu0 %vm2656_vm15, %v13810_v55  ;;  %v3994_v47 = vmul.f32 1.442695, %v3976_v42 }
 0x5ea   : > { %vm3961_vm8 = vcmp.gt.f32.partialorder %v13853_v48, 0.0 }
 0x5eb   : > { %4151 = vmatpush.msrb.mxu1 %v4039_v29  ;;  %10326 = vpow2.f32 %v3994_v47  ;;  %v3977_v29 = vmin.f32 %v13853_v48, 0.0 }
 0x5ec   : > { %9436 = vmatmul.msk.f32.vlgmr.msrb.gmra.mxu1 %vm2656_vm15, %v13810_v55  ;;  %v3920_v36 = vpop.f32.mrf.mxu2 }
 0x5ed   : > { %v13831_v53 = vadd.f32 %v3920_v36, %v13779_v4 }
 0x5ef   : > { %v3949_v19 = vpop.f32.mrf.mxu3  ;;  %v3980_v15 = vmin.f32 %v13831_v53, 0.0  ;;  %vm3964_vm1 = vcmp.gt.f32.partialorder %v13831_v53, 0.0 }
 0x5f0   : > { %v13847_v5 = vadd.f32 %v3949_v19, %v13779_v4 }
 0x5f1   : > { %9432 = vmatmul.msk.f32.gmra.mxu0 %vm2656_vm15, %v13823_v59  ;;  %v4002_v21 = vmul.f32 1.442695, %v3980_v15  ;;  %v3996_v15 = vmul.f32 1.442695, %v3977_v29 }
 0x5f2   : > { %v3981_v2 = vmin.f32 %v13847_v5, 0.0  ;;  %vm3965_vm6 = vcmp.gt.f32.partialorder %v13847_v5, 0.0 }
 0x5f3   : > { %10328 = vpow2.f32 %v4002_v21  ;;  %v4058_v21 = vld [vmem:[%s17083_s17 + $0x20] sm:$0x1] }
 0x5f4   : > { %9437 = vmatmul.msk.f32.gmra.mxu1 %vm2656_vm15, %v13823_v59  ;;  %v3923_v18 = vpop.f32.mrf.mxu2 }
 0x5f5   : > { %v3924_v60 = vadd.f32 %v3923_v18, %v13784_v14  ;;  %v4004_v18 = vmul.f32 1.442695, %v3981_v2 }
 0x5f7   : > { %v3952_v34 = vpop.f32.mrf.mxu3  ;;  %v3984_v57 = vmin.f32 %v3924_v60, 0.0  ;;  %vm3968_vm4 = vcmp.gt.f32.partialorder %v3924_v60, 0.0 }
 0x5f8   : > { %v13838_v3 = vadd.f32 %v3952_v34, %v13784_v14 }
 0x5f9   : > { %9433 = vmatmul.msk.f32.gmra.mxu0 %vm2656_vm15, %v13843_v56  ;;  %v4010_v22 = vmul.f32 1.442695, %v3984_v57 }
 0x5fa   : > { %v3985_v31 = vmin.f32 %v13838_v3, 0.0  ;;  %vm3969_vm0 = vcmp.gt.f32.partialorder %v13838_v3, 0.0 }
 0x5fb   : > { %10330 = vpow2.f32 %v4010_v22 }
 0x5fc   : > { %9438 = vmatmul.msk.f32.gmra.mxu1 %vm2656_vm15, %v13843_v56  ;;  %v3926_v30 = vpop.f32.mrf.mxu2  ;;  %v4012_v54 = vmul.f32 1.442695, %v3985_v31  ;;  %v10327_v31 = vpop.eup %10326 }
 0x5fd   : > { %v3927_v38 = vadd.f32 %v3926_v30, %v13775_v35  ;;  %v10329_v47 = vpop.eup %10328  ;;  %v9417_v4 = vadd.f32 -1.0, %v10327_v31  ;;  %v13906_v31 = vpop.permute.xlu1 %4081 }
 0x5fe   : > { %10332 = vpow2.f32 %v4012_v54 }
 0x5ff   : > { %v3955_v52 = vpop.f32.mrf.mxu3  ;;  %v3988_v36 = vmin.f32 %v3927_v38, 0.0  ;;  %vm3972_vm14 = vcmp.gt.f32.partialorder %v3927_v38, 0.0 }
 0x600   : > { %v3956_v19 = vadd.f32 %v3955_v52, %v13775_v35 }
 0x601   : > { %v4018_v34 = vmul.f32 1.442695, %v3988_v36  ;;  %9434 = vmatmul.msk.f32.gmra.mxu0 %vm2656_vm15, %v13864_v27  ;;  %v10331_v30 = vpop.eup %10330 }
 0x602   : > { %v3989_v42 = vmin.f32 %v3956_v19, 0.0  ;;  %v9425_v29 = vadd.f32 -1.0, %v10331_v30  ;;  %vm3973_vm2 = vcmp.gt.f32.partialorder %v3956_v19, 0.0 }
 0x603   : > { %10334 = vpow2.f32 %v4018_v34 }
 0x604   : > { %v4020_v57 = vmul.f32 1.442695, %v3989_v42  ;;  %10336 = vpow2.f32 %v4004_v18  ;;  %9439 = vmatmul.msk.f32.gmra.mxu1 %vm2656_vm15, %v13864_v27  ;;  %v10333_v2 = vpop.eup %10332  ;;  %v4048_v17 = vsel %vm3968_vm4, %v3924_v60, %v9425_v29 }
 0x605   : > { %v9426_v42 = vadd.f32 -1.0, %v10333_v2  ;;  %v13909_v29 = vpop.permute.xlu1 %4066 }
 0x606   : > { %10338 = vpow2.f32 %v4020_v57  ;;  %v9421_v57 = vadd.f32 -1.0, %v10329_v47 }
 0x607   : > { %10340 = vpow2.f32 %v3996_v15  ;;  %v4049_v30 = vsel %vm3969_vm0, %v13838_v3, %v9426_v42 }
 0x609   : > { %v10335_v22 = vpop.eup %10334  ;;  %9435 = vmatmul.msk.f32.gmra.mxu0 %vm2656_vm15, %v4058_v21 }
 0x60a   : > { %v10337_v54 = vpop.eup %10336  ;;  %v9429_v52 = vadd.f32 -1.0, %v10335_v22 }
 0x60b   : > { %v9422_v14 = vadd.f32 -1.0, %v10337_v54 }
 0x60c   : > { %v10339_v36 = vpop.eup %10338  ;;  %9440 = vmatmul.msk.f32.gmra.mxu1 %vm2656_vm15, %v4058_v21  ;;  %v4052_v18 = vsel %vm3972_vm14, %v3927_v38, %v9429_v52  ;;  %v4044_v38 = vsel %vm3964_vm1, %v13831_v53, %v9421_v57 }
 0x60d   : > { %v9430_v34 = vadd.f32 -1.0, %v10339_v36  ;;  %v10341_v15 = vpop.eup %10340  ;;  %4180 = vmatpush.msrb.mxu2 %v4052_v18  ;;  %v4045_v60 = vsel %vm3965_vm6, %v13847_v5, %v9422_v14 }
 0x60e   : > { %v9418_v2 = vadd.f32 -1.0, %v10341_v15 }
 0x60f   : > { %v4053_v35 = vsel %vm3973_vm2, %v3956_v19, %v9430_v34  ;;  %4181 = vmatpush.msrb.mxu2 %v4048_v17 }
 0x610   : > { %4212 = vmatpush.msrb.mxu3 %v4053_v35  ;;  %v4040_v35 = vsel %vm3960_vm7, %v13828_v10, %v9417_v4  ;;  %v4041_v17 = vsel %vm3961_vm8, %v13853_v48, %v9418_v2  ;;  %v13903_v48 = vpop.permute.xlu0 %4086 }
 0x611   : > { %4182 = vmatpush.msrb.mxu2 %v4044_v38 }
 0x612   : > { %4213 = vmatpush.msrb.mxu3 %v4049_v30 }
 0x613   : > { %4183 = vmatpush.msrb.mxu2 %v4040_v35 }
 0x614   : > { %4214 = vmatpush.msrb.mxu3 %v4045_v60  ;;  %9441 = vmatmul.msk.f32.vlgmr.msrb.gmra.mxu2 %vm2656_vm15, %v13810_v55 }
 0x616   : > { %4215 = vmatpush.msrb.mxu3 %v4041_v17 }
 0x617   : > { %9446 = vmatmul.msk.f32.vlgmr.msrb.gmra.mxu3 %vm2656_vm15, %v13810_v55 }
 0x618   : > { %v13917_v60 = vpop.permute.xlu0 %4071 }
 0x61c   : > { %9442 = vmatmul.msk.f32.gmra.mxu2 %vm2656_vm15, %v13823_v59 }
 0x61f   : > { %9447 = vmatmul.msk.f32.gmra.mxu3 %vm2656_vm15, %v13823_v59 }
 0x624   : > { %9443 = vmatmul.msk.f32.gmra.mxu2 %vm2656_vm15, %v13843_v56 }
 0x627   : > { %9448 = vmatmul.msk.f32.gmra.mxu3 %vm2656_vm15, %v13843_v56 }
 0x62c   : > { %9444 = vmatmul.msk.f32.gmra.mxu2 %vm2656_vm15, %v13864_v27 }
 0x62f   : > { %9449 = vmatmul.msk.f32.gmra.mxu3 %vm2656_vm15, %v13864_v27 }
 0x634   : > { %9445 = vmatmul.msk.f32.gmra.mxu2 %vm2656_vm15, %v4058_v21 }
 0x637   : > { %9450 = vmatmul.msk.f32.gmra.mxu3 %vm2656_vm15, %v4058_v21 }
 0x666   : > { %v4121_v4 = vpop.f32.mrf.mxu0 }
 0x667   : > { %v13912_v18 = vadd.f32 %v4121_v4, %v13909_v29 }
 0x669   : > { %v4153_v14 = vpop.f32.mrf.mxu1  ;;  %v4252_v38 = vmin.f32 %v13912_v18, 0.0  ;;  %vm4232_vm11 = vcmp.gt.f32.partialorder %v13912_v18, 0.0 }
 0x66e   : > { %v4124_v55 = vpop.f32.mrf.mxu0 }
 0x671   : > { %v4156_v59 = vpop.f32.mrf.mxu1 }
 0x676   : > { %v4127_v10 = vpop.f32.mrf.mxu0 }
 0x679   : > { %v4159_v53 = vpop.f32.mrf.mxu1 }
 0x67e   : > { %v4130_v3 = vpop.f32.mrf.mxu0 }
 0x681   : > { %v4162_v5 = vpop.f32.mrf.mxu1 }
 0x686   : > { %v4133_v56 = vpop.f32.mrf.mxu0 }
 0x687   : > { %v4134_v19 = vadd.f32 %v4133_v56, %v13903_v48  ;;  %v13922_v56 = vadd.f32 %v4124_v55, %v13917_v60 }
 0x689   : > { %v4165_v27 = vpop.f32.mrf.mxu1  ;;  %v4268_v47 = vmin.f32 %v4134_v19, 0.0  ;;  %vm4248_vm9 = vcmp.gt.f32.partialorder %v4134_v19, 0.0  ;;  %vm4236_vm12 = vcmp.gt.f32.partialorder %v13922_v56, 0.0 }
 0x68a   : > { %v4166_v22 = vadd.f32 %v4165_v27, %v13903_v48  ;;  %v13924_v27 = vpop.permute.xlu2 %4076 }
 0x68b   : > { %v4304_v21 = vmul.f32 1.442695, %v4268_v47  ;;  %v4272_v47 = vmul.f32 1.442695, %v4252_v38  ;;  %v13937_v55 = vadd.f32 %v4159_v53, %v13924_v27 }
 0x68c   : > { %v4269_v54 = vmin.f32 %v4166_v22, 0.0  ;;  %vm4249_vm10 = vcmp.gt.f32.partialorder %v4166_v22, 0.0 }
 0x68d   : > { %10342 = vpow2.f32 %v4304_v21  ;;  %v13930_v21 = vadd.f32 %v4127_v10, %v13924_v27 }
 0x68e   : > { %v4306_v52 = vmul.f32 1.442695, %v4269_v54  ;;  %v13933_v54 = vadd.f32 %v4162_v5, %v13906_v31 }
 0x68f   : > { %v4260_v10 = vmin.f32 %v13930_v21, 0.0  ;;  %vm4240_vm5 = vcmp.gt.f32.partialorder %v13930_v21, 0.0 }
 0x690   : > { %10344 = vpow2.f32 %v4306_v52  ;;  %v4265_v5 = vmin.f32 %v13933_v54, 0.0 }
 0x692   : > { %v4298_v45 = vmul.f32 1.442695, %v4265_v5 }
 0x693   : > { %v10343_v36 = vpop.eup %10342 }
 0x694   : > { %v9467_v34 = vadd.f32 -1.0, %v10343_v36 }
 0x696   : > { %v10345_v42 = vpop.eup %10344  ;;  %v4348_v57 = vsel %vm4248_vm9, %v4134_v19, %v9467_v34  ;;  %v13927_v19 = vadd.f32 %v4130_v3, %v13906_v31  ;;  %v13943_v3 = vadd.f32 %v4153_v14, %v13909_v29  ;;  %vm4245_vm9 = vcmp.gt.f32.partialorder %v13933_v54, 0.0 }
 0x697   : > { %v9468_v15 = vadd.f32 -1.0, %v10345_v42  ;;  %v13914_v30 = vpop.f32.mrf.mxu2  ;;  %v9471_v2 = vmul.f32 -1.442695, %v4348_v57  ;;  %v13947_v42 = vadd.f32 %v4156_v59, %v13917_v60 }
 0x698   : > { %v4264_v52 = vmin.f32 %v13927_v19, 0.0  ;;  %vm4244_vm13 = vcmp.gt.f32.partialorder %v13927_v19, 0.0 }
 0x699   : > { %v4349_v35 = vsel %vm4249_vm10, %v4166_v22, %v9468_v15  ;;  %10346 = vpow2.f32 %v9471_v2  ;;  %v4256_v22 = vmin.f32 %v13922_v56, 0.0  ;;  %v4261_v2 = vmin.f32 %v13937_v55, 0.0 }
 0x69a   : > { %v13919_v17 = vpop.f32.mrf.mxu3  ;;  %v9472_v4 = vmul.f32 -1.442695, %v4349_v35  ;;  %v4296_v35 = vmul.f32 1.442695, %v4264_v52  ;;  %v4257_v59 = vmin.f32 %v13947_v42, 0.0  ;;  %vm4237_vm2 = vcmp.gt.f32.partialorder %v13947_v42, 0.0 }
 0x69b   : > { %v4280_v38 = vmul.f32 1.442695, %v4256_v22  ;;  %v4290_v61 = vmul.f32 1.442695, %v4261_v2 }
 0x69c   : > { %10348 = vpow2.f32 %v9472_v4  ;;  %v4253_v4 = vmin.f32 %v13943_v3, 0.0 }
 0x69d   : > { %10350 = vpow2.f32 %v4272_v47  ;;  %v4288_v47 = vmul.f32 1.442695, %v4260_v10 }
 0x69e   : > { %v4274_v1 = vmul.f32 1.442695, %v4253_v4 }
 0x69f   : > { %v13940_v36 = vpop.f32.mrf.mxu2  ;;  %v10347_v34 = vpop.eup %10346 }
 0x6a0   : > { %v13950_v57 = vadd.f32 1.0, %v10347_v34 }
 0x6a2   : > { %v13952_v53 = vpop.f32.mrf.mxu3  ;;  %v10349_v15 = vpop.eup %10348  ;;  %10352 = vrcp.f32 %v13950_v57  ;;  %vm4373_vm4 = vweird.f32 %v13950_v57 }
 0x6a3   : > { %v13956_v14 = vadd.f32 1.0, %v10349_v15  ;;  %v10351_v34 = vpop.eup %10350  ;;  %v4282_v15 = vmul.f32 1.442695, %v4257_v59  ;;  %v4379_v59 = vand.u32 2147483648, %v13950_v57 }
 0x6a4   : > { %v9451_v37 = vadd.f32 -1.0, %v10351_v34 }
 0x6a5   : > { %10354 = vrcp.f32 %v13956_v14  ;;  %v4394_v26 = vand.u32 2147483648, %v13956_v14  ;;  %v4392_v46 = vand.u32 2147483647, %v13956_v14  ;;  %vm4388_vm1 = vweird.f32 %v13956_v14 }
 0x6a6   : > { %10356 = vpow2.f32 %v4280_v38  ;;  %v13969_v4 = vsel %vm4232_vm11, %v13912_v18, %v9451_v37  ;;  %v4377_v37 = vand.u32 2147483647, %v13950_v57  ;;  %vm4241_vm11 = vcmp.gt.f32.partialorder %v13937_v55, 0.0 }
 0x6a7   : > { %10358 = vpow2.f32 %v4296_v35  ;;  %v13961_v22 = vpop.f32.mrf.mxu2  ;;  %vm4393_vm10 = vcmp.eq.f32.partialorder %v4392_v46, 8.507059e+37 }
 0x6a8   : > { %10360 = vpow2.f32 %v4288_v47  ;;  %v10353_v52 = vpop.eup %10352  ;;  %vm4378_vm7 = vcmp.eq.f32.partialorder %v4377_v37, 8.507059e+37 }
 0x6a9   : > { %10362 = vpow2.f32 %v4298_v45  ;;  %v4369_v10 = vmul.f32 %v10353_v52, %v13950_v57  ;;  %vm4374_vm14 = vweird.f32 %v10353_v52 }
 0x6aa   : > { %v13963_v63 = vpop.f32.mrf.mxu3  ;;  %10364 = vpow2.f32 %v4290_v61  ;;  %vm4375_vm6 = vmor %vm4373_vm4, %vm4374_vm14 }
 0x6ab   : > { %v10355_v11 = vpop.eup %10354  ;;  %10366 = vpow2.f32 %v4274_v1  ;;  %v4370_v38 = vsub.f32 1.0, %v4369_v10 }
 0x6ac   : > { %v10357_v5 = vpop.eup %10356  ;;  %v4384_v2 = vmul.f32 %v10355_v11, %v13956_v14  ;;  %10368 = vpow2.f32 %v4282_v15  ;;  %vm4389_vm0 = vweird.f32 %v10355_v11 }
 0x6ad   : > { %v10359_v35 = vpop.eup %10358  ;;  %v4371_v45 = vmul.f32 %v10353_v52, %v4370_v38  ;;  %v9455_v1 = vadd.f32 -1.0, %v10357_v5  ;;  %v13984_v5 = vld [vmem:[%s11835_s2] sm:$0xf]  ;;  %vm4390_vm8 = vmor %vm4388_vm1, %vm4389_vm0 }
 0x6ae   : > { %v10361_v47 = vpop.eup %10360  ;;  %v4385_v34 = vsub.f32 1.0, %v4384_v2  ;;  %v9463_v18 = vadd.f32 -1.0, %v10359_v35  ;;  %17637 = vst [vmem:[#allocation28_spill] sm:$0xff] %v13984_v5  ;;  %v17302_v33 = vperm.slane %v13984_v5, 1  ;;  %v17638_v14 = vperm.slane %v13984_v5, 0 }
 0x6af   : > { %v10363_v61 = vpop.eup %10362  ;;  %v13975_v10 = vpop.f32.mrf.mxu2  ;;  %v4372_v38 = vadd.f32 %v10353_v52, %v4371_v45  ;;  %v9459_v35 = vadd.f32 -1.0, %v10361_v47  ;;  %v4380_v45 = vor.u32 1.1754944e-38, %v4379_v59  ;;  %v4395_v47 = vor.u32 1.1754944e-38, %v4394_v26 }
 0x6b0   : > { %v4386_v15 = vmul.f32 %v10355_v11, %v4385_v34  ;;  %v10365_v44 = vpop.eup %10364  ;;  %v9464_v34 = vadd.f32 -1.0, %v10363_v61  ;;  %v4344_v62 = vsel %vm4244_vm13, %v13927_v19, %v9463_v18  ;;  %v4336_v46 = vsel %vm4236_vm12, %v13922_v56, %v9455_v1 }
 0x6b1   : > { %v10367_v32 = vpop.eup %10366  ;;  %v4376_v28 = vsel %vm4375_vm6, %v10353_v52, %v4372_v38  ;;  %v9460_v51 = vadd.f32 -1.0, %v10365_v44  ;;  %v4340_v44 = vsel %vm4240_vm5, %v13930_v21, %v9459_v35  ;;  %vm4233_vm5 = vcmp.gt.f32.partialorder %v13943_v3, 0.0 }
 0x6b2   : > { %v13981_v2 = vpop.f32.mrf.mxu3  ;;  %v10369_v23 = vpop.eup %10368  ;;  %v4387_v57 = vadd.f32 %v10355_v11, %v4386_v15  ;;  %v4381_v13 = vsel %vm4378_vm7, %v4380_v45, %v4376_v28  ;;  %v4345_v37 = vsel %vm4245_vm9, %v13933_v54, %v9464_v34  ;;  %v14004_v28 = vadd.f32 %v4344_v62, %v13624_v6 }
 0x6b3   : > { %v4437_v59 = vmul.f32 %v17638_v14, %v4381_v13  ;;  %v9456_v52 = vadd.f32 -1.0, %v10369_v23  ;;  %v4341_v23 = vsel %vm4241_vm11, %v13937_v55, %v9460_v51  ;;  %v14014_v54 = vadd.f32 %v4340_v44, %v13626_v39 }
 0x6b4   : > { %v4391_v61 = vsel %vm4390_vm8, %v10355_v11, %v4387_v57  ;;  %17639 = vst [vmem:[#allocation77_spill] sm:$0xff] %v14004_v28  ;;  %v9452_v11 = vadd.f32 -1.0, %v10367_v32  ;;  %v14017_v62 = vadd.f32 %v4345_v37, %v13631_v58  ;;  %v14026_v55 = vadd.f32 %v4336_v46, %v13636_v7 }
 0x6b5   : > { %v4396_v15 = vsel %vm4393_vm10, %v4395_v47, %v4391_v61  ;;  %v4457_v19 = vperm.slane %v4437_v59, 0  ;;  %17640 = vst [vmem:[#allocation84_spill] sm:$0xff] %v14014_v54  ;;  %v4337_v32 = vsel %vm4237_vm2, %v13947_v42, %v9456_v52  ;;  %v14029_v39 = vadd.f32 %v4341_v23, %v13633_v9 }
 0x6b6   : > { %v4438_v13 = vmul.f32 %v17302_v33, %v4396_v15  ;;  %17641 = vst [vmem:[#allocation29_spill] sm:$0xff] %v14017_v62  ;;  %v14035_v35 = vadd.f32 %v13969_v4, %v13648_v24  ;;  %v4333_v42 = vsel %vm4233_vm5, %v13943_v3, %v9452_v11  ;;  %v14039_v57 = vadd.f32 %v4337_v32, %v13645_v20  ;;  %v14051_v20 = vld [vmem:[%s17085_s19] sm:$0xff]  ;;  %v14065_v15 = vld [vmem:[%s17085_s19 + $0x8] sm:$0xff] }
 0x6b7   : > { %v4197_v26 = vpop.f32.mrf.mxu2  ;;  %v4473_v18 = vmul.f32 %v4457_v19, %v14004_v28  ;;  %17642 = vst [vmem:[#allocation80_spill] sm:$0xff] %v14026_v55  ;;  %v4469_v1 = vmul.f32 %v4457_v19, %v14014_v54  ;;  %v4465_v7 = vmul.f32 %v4457_v19, %v14026_v55  ;;  %v14044_v14 = vadd.f32 %v4333_v42, %v13656_v50  ;;  %v17691_v55 = vld [vmem:[#allocation88_spill] sm:$0xff] }
 0x6b8   : > { %v4198_v21 = vadd.f32 %v4197_v26, %v13903_v48  ;;  %v4458_v38 = vperm.slane %v4438_v13, 0  ;;  %17643 = vst [vmem:[#allocation31_spill] sm:$0xff] %v14029_v39  ;;  %v4461_v3 = vmul.f32 %v4457_v19, %v14035_v35  ;;  %v14060_v52 = vadd.f32 %v13914_v30, %v13909_v29 }
 0x6b9   : > { %4529 = vmatpush.msra.mxu0 %v4473_v18  ;;  %17644 = vst [vmem:[#allocation82_spill] sm:$0xff] %v14035_v35  ;;  %v14069_v26 = vadd.f32 %v13940_v36, %v13917_v60  ;;  %v14074_v30 = vadd.f32 %v13975_v10, %v13906_v31  ;;  %v14080_v23 = vadd.f32 %v13961_v22, %v13924_v27 }
 0x6ba   : > { %v4229_v6 = vpop.f32.mrf.mxu3  ;;  %v4270_v56 = vmin.f32 %v4198_v21, 0.0  ;;  %v4474_v58 = vmul.f32 %v4458_v38, %v14017_v62  ;;  %17645 = vst [vmem:[#allocation85_spill] sm:$0xff] %v14039_v57  ;;  %v4470_v9 = vmul.f32 %v4458_v38, %v14029_v39  ;;  %v4466_v24 = vmul.f32 %v4458_v38, %v14039_v57 }
 0x6bb   : > { %v4230_v51 = vadd.f32 %v4229_v6, %v13903_v48  ;;  %4530 = vmatpush.msra.mxu0 %v4469_v1  ;;  %17646 = vst [vmem:[#allocation18_spill] sm:$0xff] %v14044_v14  ;;  %v4462_v4 = vmul.f32 %v4458_v38, %v14044_v14  ;;  %vm4250_vm12 = vcmp.gt.f32.partialorder %v4198_v21, 0.0  ;;  %v4254_v11 = vmin.f32 %v14060_v52, 0.0 }
 0x6bc   : > { %v4308_v34 = vmul.f32 1.442695, %v4270_v56  ;;  %4558 = vmatpush.msra.mxu1 %v4474_v58  ;;  %v4258_v36 = vmin.f32 %v14069_v26, 0.0  ;;  %v14091_v6 = vadd.f32 %v13963_v63, %v13924_v27  ;;  %v4266_v18 = vmin.f32 %v14074_v30, 0.0 }
 0x6bd   : > { %v4271_v45 = vmin.f32 %v4230_v51, 0.0  ;;  %4531 = vmatpush.msra.mxu0 %v4465_v7  ;;  %vm4251_vm13 = vcmp.gt.f32.partialorder %v4230_v51, 0.0  ;;  %v4276_v10 = vmul.f32 1.442695, %v4254_v11  ;;  %v14096_v22 = vadd.f32 %v13919_v17, %v13909_v29 }
 0x6be   : > { %10370 = vpow2.f32 %v4308_v34  ;;  %4559 = vmatpush.msra.mxu1 %v4470_v9  ;;  %v4262_v38 = vmin.f32 %v14080_v23, 0.0  ;;  %v4284_v56 = vmul.f32 1.442695, %v4258_v36  ;;  %v4263_v17 = vmin.f32 %v14091_v6, 0.0 }
 0x6bf   : > { %v4310_v47 = vmul.f32 1.442695, %v4271_v45  ;;  %4532 = vmatpush.msra.mxu0 %v4461_v3  ;;  %v4300_v42 = vmul.f32 1.442695, %v4266_v18  ;;  %v4255_v34 = vmin.f32 %v14096_v22, 0.0  ;;  %v14125_v3 = vld [vmem:[%s17085_s19 + $0x18] sm:$0xff] }
 0x6c0   : > { %4560 = vmatpush.msra.mxu1 %v4466_v24  ;;  %9475 = vmatmul.msk.f32.vlgmr.msra.gmra.mxu0 %vm2656_vm15, %v14051_v20  ;;  %v4292_v45 = vmul.f32 1.442695, %v4262_v38  ;;  %vm4242_vm14 = vcmp.gt.f32.partialorder %v14080_v23, 0.0  ;;  %vm4246_vm2 = vcmp.gt.f32.partialorder %v14074_v30, 0.0  ;;  %vm4234_vm4 = vcmp.gt.f32.partialorder %v14060_v52, 0.0 }
 0x6c1   : > { %10372 = vpow2.f32 %v4310_v47  ;;  %v4294_v47 = vmul.f32 1.442695, %v4263_v17  ;;  %v4278_v24 = vmul.f32 1.442695, %v4255_v34  ;;  %vm4238_vm0 = vcmp.gt.f32.partialorder %v14069_v26, 0.0 }
 0x6c2   : > { %4561 = vmatpush.msra.mxu1 %v4462_v4 }
 0x6c3   : > { %9479 = vmatmul.msk.f32.vlgmr.msra.gmra.mxu1 %vm2656_vm15, %v14051_v20 }
 0x6c4   : > { %v10371_v50 = vpop.eup %10370 }
 0x6c5   : > { %v9469_v59 = vadd.f32 -1.0, %v10371_v50 }
 0x6c7   : > { %v10373_v61 = vpop.eup %10372  ;;  %v4350_v44 = vsel %vm4250_vm12, %v4198_v21, %v9469_v59  ;;  %v14085_v21 = vadd.f32 %v13981_v2, %v13906_v31  ;;  %v14102_v2 = vld [vmem:[%s17085_s19 + $0x10] sm:$0xff] }
 0x6c8   : > { %v9470_v37 = vadd.f32 -1.0, %v10373_v61  ;;  %v9473_v19 = vmul.f32 -1.442695, %v4350_v44  ;;  %9476 = vmatmul.msk.f32.gmra.mxu0 %vm2656_vm15, %v14065_v15 }
 0x6c9   : > { %v4267_v63 = vmin.f32 %v14085_v21, 0.0  ;;  %vm4247_vm12 = vcmp.gt.f32.partialorder %v14085_v21, 0.0 }
 0x6ca   : > { %v4351_v13 = vsel %vm4251_vm13, %v4230_v51, %v9470_v37  ;;  %10374 = vpow2.f32 %v9473_v19  ;;  %v14106_v51 = vadd.f32 %v13952_v53, %v13917_v60 }
 0x6cb   : > { %v9474_v46 = vmul.f32 -1.442695, %v4351_v13  ;;  %9480 = vmatmul.msk.f32.gmra.mxu1 %vm2656_vm15, %v14065_v15  ;;  %v4302_v7 = vmul.f32 1.442695, %v4267_v63 }
 0x6cc   : > { %v4259_v53 = vmin.f32 %v14106_v51, 0.0  ;;  %vm4239_vm7 = vcmp.gt.f32.partialorder %v14106_v51, 0.0 }
 0x6cd   : > { %10376 = vpow2.f32 %v9474_v46 }
 0x6ce   : > { %10378 = vpow2.f32 %v4276_v10  ;;  %v4286_v50 = vmul.f32 1.442695, %v4259_v53 }
 0x6d0   : > { %v10375_v32 = vpop.eup %10374  ;;  %9477 = vmatmul.msk.f32.gmra.mxu0 %vm2656_vm15, %v14102_v2 }
 0x6d1   : > { %v14109_v58 = vadd.f32 1.0, %v10375_v32 }
 0x6d3   : > { %v10377_v1 = vpop.eup %10376  ;;  %10380 = vrcp.f32 %v14109_v58  ;;  %9481 = vmatmul.msk.f32.gmra.mxu1 %vm2656_vm15, %v14102_v2  ;;  %v4409_v18 = vand.u32 2147483648, %v14109_v58  ;;  %v4407_v63 = vand.u32 2147483647, %v14109_v58  ;;  %vm4403_vm6 = vweird.f32 %v14109_v58 }
 0x6d4   : > { %v14116_v9 = vadd.f32 1.0, %v10377_v1  ;;  %10382 = vpow2.f32 %v4284_v56  ;;  %v10379_v4 = vpop.eup %10378 }
 0x6d5   : > { %v9453_v13 = vadd.f32 -1.0, %v10379_v4  ;;  %vm4408_vm11 = vcmp.eq.f32.partialorder %v4407_v63, 8.507059e+37 }
 0x6d6   : > { %10384 = vrcp.f32 %v14116_v9  ;;  %v4424_v17 = vand.u32 2147483648, %v14116_v9  ;;  %vm4418_vm10 = vweird.f32 %v14116_v9 }
 0x6d7   : > { %10386 = vpow2.f32 %v4300_v42  ;;  %v17301_v42 = vperm.slane %v13984_v5, 2 }
 0x6d8   : > { %10388 = vpow2.f32 %v4292_v45  ;;  %9478 = vmatmul.msk.f32.gmra.mxu0 %vm2656_vm15, %v14125_v3 }
 0x6d9   : > { %10390 = vpow2.f32 %v4302_v7  ;;  %v10381_v59 = vpop.eup %10380  ;;  %v4422_v7 = vand.u32 2147483647, %v14116_v9 }
 0x6da   : > { %v10383_v61 = vpop.eup %10382  ;;  %10392 = vpow2.f32 %v4294_v47  ;;  %v4399_v44 = vmul.f32 %v10381_v59, %v14109_v58  ;;  %vm4404_vm1 = vweird.f32 %v10381_v59  ;;  %v17300_v58 = vperm.slane %v13984_v5, 3 }
 0x6db   : > { %10394 = vpow2.f32 %v4278_v24  ;;  %9482 = vmatmul.msk.f32.gmra.mxu1 %vm2656_vm15, %v14125_v3  ;;  %v9457_v10 = vadd.f32 -1.0, %v10383_v61  ;;  %vm4405_vm9 = vmor %vm4403_vm6, %vm4404_vm1  ;;  %vm4423_vm13 = vcmp.eq.f32.partialorder %v4422_v7, 8.507059e+37 }
 0x6dc   : > { %v10385_v37 = vpop.eup %10384  ;;  %10396 = vpow2.f32 %v4286_v50  ;;  %v4400_v11 = vsub.f32 1.0, %v4399_v44  ;;  %v4410_v50 = vor.u32 1.1754944e-38, %v4409_v18 }
 0x6dd   : > { %v10387_v19 = vpop.eup %10386  ;;  %v4414_v46 = vmul.f32 %v10385_v37, %v14116_v9  ;;  %vm4419_vm8 = vweird.f32 %v10385_v37 }
 0x6de   : > { %v10389_v36 = vpop.eup %10388  ;;  %v4401_v32 = vmul.f32 %v10381_v59, %v4400_v11  ;;  %v9465_v1 = vadd.f32 -1.0, %v10387_v19  ;;  %vm4420_vm5 = vmor %vm4418_vm10, %vm4419_vm8 }
 0x6df   : > { %v10391_v38 = vpop.eup %10390  ;;  %v4415_v56 = vsub.f32 1.0, %v4414_v46  ;;  %v9461_v24 = vadd.f32 -1.0, %v10389_v36  ;;  %v4425_v36 = vor.u32 1.1754944e-38, %v4424_v17 }
 0x6e0   : > { %v10393_v34 = vpop.eup %10392  ;;  %v4402_v53 = vadd.f32 %v10381_v59, %v4401_v32  ;;  %v9466_v4 = vadd.f32 -1.0, %v10391_v38  ;;  %v4346_v46 = vsel %vm4246_vm2, %v14074_v30, %v9465_v1  ;;  %vm4243_vm2 = vcmp.gt.f32.partialorder %v14091_v6, 0.0 }
 0x6e1   : > { %v4416_v45 = vmul.f32 %v10385_v37, %v4415_v56  ;;  %v10395_v47 = vpop.eup %10394  ;;  %v9462_v11 = vadd.f32 -1.0, %v10393_v34  ;;  %v14160_v30 = vadd.f32 %v4346_v46, %v13718_v8 }
 0x6e2   : > { %v10397_v61 = vpop.eup %10396  ;;  %v4406_v44 = vsel %vm4405_vm9, %v10381_v59, %v4402_v53  ;;  %v4342_v59 = vsel %vm4242_vm14, %v14080_v23, %v9461_v24  ;;  %v4347_v56 = vsel %vm4247_vm12, %v14085_v21, %v9466_v4  ;;  %v9454_v34 = vadd.f32 -1.0, %v10395_v47 }
 0x6e3   : > { %v4417_v19 = vadd.f32 %v10385_v37, %v4416_v45  ;;  %v4411_v32 = vsel %vm4408_vm11, %v4410_v50, %v4406_v44  ;;  %v9458_v9 = vadd.f32 -1.0, %v10397_v61  ;;  %17647 = vst [vmem:[#allocation19_spill] sm:$0xff] %v14160_v30  ;;  %v4338_v23 = vsel %vm4238_vm0, %v14069_v26, %v9457_v10 }
 0x6e4   : > { %v4439_v18 = vmul.f32 %v17301_v42, %v4411_v32  ;;  %v4343_v21 = vsel %vm4243_vm2, %v14091_v6, %v9462_v11  ;;  %v14172_v45 = vadd.f32 %v4342_v59, %v13721_v12  ;;  %v14175_v8 = vadd.f32 %v4347_v56, %v13727_v16  ;;  %v17684_v42 = vld [vmem:[#allocation94_spill] sm:$0xff] }
 0x6e5   : > { %v4421_v38 = vsel %vm4420_vm5, %v10385_v37, %v4417_v19  ;;  %v4334_v37 = vsel %vm4234_vm4, %v14060_v52, %v9453_v13  ;;  %vm4235_vm14 = vcmp.gt.f32.partialorder %v14096_v22, 0.0  ;;  %v4339_v52 = vsel %vm4239_vm7, %v14106_v51, %v9458_v9 }
 0x6e6   : > { %v4426_v63 = vsel %vm4423_vm13, %v4425_v36, %v4421_v38  ;;  %v4459_v1 = vperm.slane %v4439_v18, 0  ;;  %17648 = vst [vmem:[#allocation20_spill] sm:$0xff] %v14172_v45  ;;  %v14183_v13 = vadd.f32 %v4338_v23, %v13733_v49  ;;  %v14186_v26 = vadd.f32 %v4343_v21, %v13730_v25 }
 0x6e7   : > { %v4440_v17 = vmul.f32 %v17300_v58, %v4426_v63  ;;  %17649 = vst [vmem:[#allocation21_spill] sm:$0xff] %v14175_v8  ;;  %v14191_v6 = vadd.f32 %v4334_v37, %v13745_v41  ;;  %v4335_v10 = vsel %vm4235_vm14, %v14096_v22, %v9454_v34  ;;  %v14195_v47 = vadd.f32 %v4339_v52, %v13742_v0  ;;  %v14221_v22 = vpop.permute.xlu2 %4502 }
 0x6e8   : > { %v4475_v53 = vmul.f32 %v4459_v1, %v14160_v30  ;;  %17650 = vst [vmem:[#allocation106_spill] sm:$0xff] %v14183_v13  ;;  %v4471_v16 = vmul.f32 %v4459_v1, %v14172_v45  ;;  %v4467_v25 = vmul.f32 %v4459_v1, %v14183_v13  ;;  %v14200_v51 = vadd.f32 %v4335_v10, %v13753_v43  ;;  %v17687_v13 = vld [vmem:[#allocation91_spill] sm:$0xff]  ;;  %v17688_v45 = vld [vmem:[#allocation92_spill] sm:$0xff] }
 0x6e9   : > { %v4460_v7 = vperm.slane %v4440_v17, 0  ;;  %17651 = vst [vmem:[#allocation107_spill] sm:$0xff] %v14186_v26  ;;  %v4463_v41 = vmul.f32 %v4459_v1, %v14191_v6  ;;  %v17689_v30 = vld [vmem:[#allocation24_spill] sm:$0xff] }
 0x6ea   : > { %4587 = vmatpush.msra.mxu2 %v4475_v53  ;;  %17652 = vst [vmem:[#allocation108_spill] sm:$0xff] %v14191_v6 }
 0x6eb   : > { %v4476_v12 = vmul.f32 %v4460_v7, %v14175_v8  ;;  %17653 = vst [vmem:[#allocation109_spill] sm:$0xff] %v14195_v47  ;;  %v4472_v49 = vmul.f32 %v4460_v7, %v14186_v26  ;;  %v4468_v24 = vmul.f32 %v4460_v7, %v14195_v47  ;;  %v4464_v0 = vmul.f32 %v4460_v7, %v14200_v51  ;;  %v17686_v47 = vld [vmem:[#allocation89_spill] sm:$0xff] }
 0x6ec   : > { %4588 = vmatpush.msra.mxu2 %v4471_v16  ;;  %17654 = vst [vmem:[#allocation110_spill] sm:$0xff] %v14200_v51  ;;  %v17685_v51 = vld [vmem:[#allocation25_spill] sm:$0xff] }
 0x6ed   : > { %4616 = vmatpush.msra.mxu3 %v4476_v12 }
 0x6ee   : > { %4589 = vmatpush.msra.mxu2 %v4467_v25 }
 0x6ef   : > { %4617 = vmatpush.msra.mxu3 %v4472_v49  ;;  %v14223_v61 = vpop.permute.xlu2 %4487 }
 0x6f0   : > { %4590 = vmatpush.msra.mxu2 %v4463_v41 }
 0x6f1   : > { %4618 = vmatpush.msra.mxu3 %v4468_v24  ;;  %9483 = vmatmul.msk.f32.vlgmr.msra.gmra.mxu2 %vm2656_vm15, %v14051_v20 }
 0x6f3   : > { %4619 = vmatpush.msra.mxu3 %v4464_v0 }
 0x6f4   : > { %9487 = vmatmul.msk.f32.vlgmr.msra.gmra.mxu3 %vm2656_vm15, %v14051_v20 }
 0x6f9   : > { %9484 = vmatmul.msk.f32.gmra.mxu2 %vm2656_vm15, %v14065_v15 }
 0x6fc   : > { %9488 = vmatmul.msk.f32.gmra.mxu3 %vm2656_vm15, %v14065_v15  ;;  %v14225_v15 = vpop.permute.xlu1 %4492 }
 0x701   : > { %9485 = vmatmul.msk.f32.gmra.mxu2 %vm2656_vm15, %v14102_v2 }
 0x704   : > { %9489 = vmatmul.msk.f32.gmra.mxu3 %vm2656_vm15, %v14102_v2  ;;  %v14230_v2 = vpop.permute.xlu0 %4497 }
 0x709   : > { %9486 = vmatmul.msk.f32.gmra.mxu2 %vm2656_vm15, %v14125_v3 }
 0x70c   : > { %9490 = vmatmul.msk.f32.gmra.mxu3 %vm2656_vm15, %v14125_v3 }
 0x73d   : > { %v4534_v43 = vpop.f32.mrf.mxu0 }
 0x73e   : > { %v14228_v44 = vadd.f32 %v4534_v43, %v14223_v61 }
 0x740   : > { %v4563_v20 = vpop.f32.mrf.mxu1  ;;  %v4649_v32 = vmin.f32 %v14228_v44, 0.0  ;;  %vm4633_vm9 = vcmp.gt.f32.partialorder %v14228_v44, 0.0 }
 0x741   : > { %v14243_v63 = vadd.f32 %v4563_v20, %v14223_v61 }
 0x742   : > { %v4665_v56 = vmul.f32 1.442695, %v4649_v32 }
 0x743   : > { %v4650_v7 = vmin.f32 %v14243_v63, 0.0  ;;  %vm4634_vm10 = vcmp.gt.f32.partialorder %v14243_v63, 0.0 }
 0x744   : > { %10398 = vpow2.f32 %v4665_v56 }
 0x745   : > { %v4537_v4 = vpop.f32.mrf.mxu0  ;;  %v4667_v25 = vmul.f32 1.442695, %v4650_v7 }
 0x746   : > { %v14233_v19 = vadd.f32 %v4537_v4, %v14225_v15 }
 0x748   : > { %v4566_v50 = vpop.f32.mrf.mxu1  ;;  %v4653_v18 = vmin.f32 %v14233_v19, 0.0  ;;  %vm4637_vm7 = vcmp.gt.f32.partialorder %v14233_v19, 0.0 }
 0x749   : > { %v14240_v38 = vadd.f32 %v4566_v50, %v14225_v15 }
 0x74a   : > { %v4673_v1 = vmul.f32 1.442695, %v4653_v18  ;;  %v10399_v41 = vpop.eup %10398 }
 0x74b   : > { %v4654_v17 = vmin.f32 %v14240_v38, 0.0  ;;  %vm4638_vm8 = vcmp.gt.f32.partialorder %v14240_v38, 0.0 }
 0x74c   : > { %10400 = vpow2.f32 %v4673_v1 }
 0x74d   : > { %v4540_v11 = vpop.f32.mrf.mxu0  ;;  %v4675_v16 = vmul.f32 1.442695, %v4654_v17 }
 0x74e   : > { %v4541_v3 = vadd.f32 %v4540_v11, %v14230_v2 }
 0x750   : > { %v4569_v46 = vpop.f32.mrf.mxu1  ;;  %v4657_v9 = vmin.f32 %v4541_v3, 0.0  ;;  %vm4641_vm1 = vcmp.gt.f32.partialorder %v4541_v3, 0.0 }
 0x751   : > { %v4570_v36 = vadd.f32 %v4569_v46, %v14230_v2 }
 0x752   : > { %v4681_v34 = vmul.f32 1.442695, %v4657_v9  ;;  %v10401_v0 = vpop.eup %10400 }
 0x753   : > { %v4658_v59 = vmin.f32 %v4570_v36, 0.0  ;;  %v9495_v56 = vadd.f32 -1.0, %v10401_v0  ;;  %vm4642_vm6 = vcmp.gt.f32.partialorder %v4570_v36, 0.0  ;;  %v17664_v0 = vld [vmem:[#allocation38_spill] sm:$0xff] }
 0x754   : > { %10402 = vpow2.f32 %v4681_v34 }
 0x755   : > { %v4543_v37 = vpop.f32.mrf.mxu0  ;;  %v4683_v21 = vmul.f32 1.442695, %v4658_v59  ;;  %v4717_v7 = vsel %vm4637_vm7, %v14233_v19, %v9495_v56 }
 0x756   : > { %v4544_v23 = vadd.f32 %v4543_v37, %v14221_v22 }
 0x757   : > { %10404 = vpow2.f32 %v4683_v21  ;;  %v9491_v21 = vadd.f32 -1.0, %v10399_v41  ;;  %v14276_v41 = vld [vmem:[%s17535_s21] sm:$0xff] }
 0x758   : > { %v4572_v53 = vpop.f32.mrf.mxu1  ;;  %v4661_v52 = vmin.f32 %v4544_v23, 0.0  ;;  %vm4645_vm4 = vcmp.gt.f32.partialorder %v4544_v23, 0.0 }
 0x759   : > { %v4573_v12 = vadd.f32 %v4572_v53, %v14221_v22 }
 0x75a   : > { %v4689_v10 = vmul.f32 1.442695, %v4661_v52  ;;  %v10403_v43 = vpop.eup %10402 }
 0x75b   : > { %v4662_v49 = vmin.f32 %v4573_v12, 0.0  ;;  %v9499_v46 = vadd.f32 -1.0, %v10403_v43  ;;  %vm4646_vm0 = vcmp.gt.f32.partialorder %v4573_v12, 0.0 }
 0x75c   : > { %10406 = vpow2.f32 %v4689_v10  ;;  %v17661_v10 = vld [vmem:[#allocation39_spill] sm:$0xff] }
 0x75d   : > { %v4691_v24 = vmul.f32 1.442695, %v4662_v49  ;;  %10408 = vpow2.f32 %v4675_v16  ;;  %v10405_v20 = vpop.eup %10404  ;;  %v4721_v37 = vsel %vm4641_vm1, %v4541_v3, %v9499_v46  ;;  %v14256_v3 = vld [vmem:[%s17655_s8] sm:$0x1]  ;;  %s8896_s8 = scalar_lea.hbm %s17874_s10, %s9992_s11 }
 0x75e   : > { %v9500_v59 = vadd.f32 -1.0, %v10405_v20  ;;  %v17658_v16 = vld [vmem:[#allocation49_spill] sm:$0xff]  ;;  %s8899_s3 = sshll.u32 %s8896_s8, 4  ;;  %s8900_s3 = int_to_ptr.hbm [resolvable:$true] %s8899_s3 }
 0x75f   : > { %10410 = vpow2.f32 %v4691_v24  ;;  %v17663_v24 = vld [vmem:[#allocation16_spill] sm:$0xff]  ;;  %s11049_s22 = sshra.s32 %s8900_s3, 4  ;;  %s11050_s22 = int_to_ptr.hbm [resolvable:$true] %s11049_s22 }
 0x760   : > { %10412 = vpow2.f32 %v4667_v25  ;;  %v4722_v53 = vsel %vm4642_vm6, %v4570_v36, %v9500_v59  ;;  %v17657_v36 = vld [vmem:[#allocation47_spill] sm:$0xff]  ;;  %v17662_v25 = vld [vmem:[#allocation40_spill] sm:$0xff]  ;;  %s11051_s11 = scalar_lea.hbm %s11050_s22, 128  ;;  %p11056_p8 = scmp.lt.s32.totalorder %s11050_s22, %s17874_s10 }
 0x761   : > { %p11052_p5 = scmp.ne.s32.totalorder %s11050_s22, %s11051_s11  ;;  %p11057_p10 = scmp.lt.s32.totalorder %s11055_s7, %s11051_s11 }
 0x762   : > { %v10407_v4 = vpop.eup %10406 }
 0x763   : > { %v10409_v50 = vpop.eup %10408  ;;  %v9503_v11 = vadd.f32 -1.0, %v10407_v4  ;;  %v14286_v4 = vld [vmem:[%s17535_s21 + $0x8] sm:$0xff]  ;;  %p11053_p6 = pnand %p11052_p5, %p11318_p9  ;;  %p11058_p13 = por %p11057_p10, %p11056_p8 }
 0x764   : > { %v9496_v34 = vadd.f32 -1.0, %v10409_v50 }
 0x765   : > { %v10411_v32 = vpop.eup %10410  ;;  %v4725_v18 = vsel %vm4645_vm4, %v4544_v23, %v9503_v11  ;;  %p11054_p7 = pneg %p11053_p6 }
 0x766   : > { %v9504_v9 = vadd.f32 -1.0, %v10411_v32  ;;  %v10413_v1 = vpop.eup %10412  ;;  %4752 = vmatpush.msrb.mxu0 %v4725_v18  ;;  %v4718_v52 = vsel %vm4638_vm8, %v14240_v38, %v9496_v34  ;;  %v17659_v38 = vld [vmem:[#allocation43_spill] sm:$0xff] }
 0x767   : > { %v9492_v23 = vadd.f32 -1.0, %v10413_v1  ;;  %p11059_p0 = pnand %p11058_p13, %p11054_p7 }
 0x768   : > { %v4726_v17 = vsel %vm4646_vm0, %v4573_v12, %v9504_v9  ;;  %4753 = vmatpush.msrb.mxu0 %v4721_v37  ;;  %v4713_v12 = vsel %vm4633_vm9, %v14228_v44, %v9491_v21  ;;  %v17660_v44 = vld [vmem:[#allocation45_spill] sm:$0xff]  ;;  %v14304_v9 = vld [vmem:[%s17535_s21 + $0x10] sm:$0xff] }
 0x769   : > { %4772 = vmatpush.msrb.mxu1 %v4726_v17  ;;  %v4714_v19 = vsel %vm4634_vm10, %v14243_v63, %v9492_v23 }
 0x76a   : > { %4754 = vmatpush.msrb.mxu0 %v4717_v7 }
 0x76b   : > { %4773 = vmatpush.msrb.mxu1 %v4722_v53 }
 0x76c   : > { %4755 = vmatpush.msrb.mxu0 %v4713_v12 }
 0x76d   : > { %4774 = vmatpush.msrb.mxu1 %v4718_v52  ;;  %9507 = vmatmul.msk.f32.vlgmr.msrb.gmra.mxu0 %vm2656_vm15, %v14256_v3 }
 0x76e   : > { %4912 = vmatpush.msra.mxu0 %v17657_v36 }
 0x76f   : > { %4775 = vmatpush.msrb.mxu1 %v4714_v19 }
 0x770   : > { %9508 = vmatmul.msk.f32.vlgmr.msrb.gmra.mxu1 %vm2656_vm15, %v14256_v3  ;;  %4913 = vmatpush.msra.mxu0 %v17659_v38 }
 0x771   : > { %4953 = vmatpush.msra.mxu1 %v17658_v16 }
 0x772   : > { %4914 = vmatpush.msra.mxu0 %v17661_v10  ;;  %v14330_v10 = vld [vmem:[%s17535_s21 + $0x18] sm:$0xff] }
 0x773   : > { %4954 = vmatpush.msra.mxu1 %v17660_v44 }
 0x774   : > { %v4592_v49 = vpop.f32.mrf.mxu2  ;;  %4915 = vmatpush.msra.mxu0 %v17663_v24 }
 0x775   : > { %4955 = vmatpush.msra.mxu1 %v17662_v25  ;;  %9515 = vmatmul.msk.f32.vlgmr.msra.gmra.mxu0 %vm2656_vm15, %v14276_v41  ;;  %v14316_v17 = vadd.f32 %v4592_v49, %v14223_v61 }
 0x777   : > { %v4621_v63 = vpop.f32.mrf.mxu3  ;;  %4956 = vmatpush.msra.mxu1 %v17664_v0  ;;  %v4651_v12 = vmin.f32 %v14316_v17, 0.0  ;;  %vm4635_vm4 = vcmp.gt.f32.partialorder %v14316_v17, 0.0 }
 0x778   : > { %9523 = vmatmul.msk.f32.vlgmr.msra.gmra.mxu1 %vm2656_vm15, %v14276_v41  ;;  %v14320_v34 = vadd.f32 %v4621_v63, %v14223_v61 }
 0x779   : > { %v4669_v24 = vmul.f32 1.442695, %v4651_v12 }
 0x77a   : > { %v4652_v16 = vmin.f32 %v14320_v34, 0.0  ;;  %vm4636_vm0 = vcmp.gt.f32.partialorder %v14320_v34, 0.0 }
 0x77c   : > { %v4595_v43 = vpop.f32.mrf.mxu2  ;;  %v4671_v0 = vmul.f32 1.442695, %v4652_v16 }
 0x77d   : > { %9516 = vmatmul.msk.f32.gmra.mxu0 %vm2656_vm15, %v14286_v4  ;;  %v14293_v50 = vadd.f32 %v4595_v43, %v14225_v15 }
 0x77f   : > { %v4624_v20 = vpop.f32.mrf.mxu3  ;;  %v4655_v59 = vmin.f32 %v14293_v50, 0.0  ;;  %vm4639_vm2 = vcmp.gt.f32.partialorder %v14293_v50, 0.0 }
 0x780   : > { %9524 = vmatmul.msk.f32.gmra.mxu1 %vm2656_vm15, %v14286_v4  ;;  %v14310_v56 = vadd.f32 %v4624_v20, %v14225_v15 }
 0x781   : > { %v4677_v21 = vmul.f32 1.442695, %v4655_v59 }
 0x782   : > { %v4656_v53 = vmin.f32 %v14310_v56, 0.0  ;;  %vm4640_vm14 = vcmp.gt.f32.partialorder %v14310_v56, 0.0 }
 0x783   : > { %10414 = vpow2.f32 %v4677_v21 }
 0x784   : > { %v4598_v11 = vpop.f32.mrf.mxu2  ;;  %v4679_v49 = vmul.f32 1.442695, %v4656_v53 }
 0x785   : > { %v14296_v46 = vadd.f32 %v4598_v11, %v14230_v2  ;;  %9517 = vmatmul.msk.f32.gmra.mxu0 %vm2656_vm15, %v14304_v9 }
 0x787   : > { %v4627_v32 = vpop.f32.mrf.mxu3  ;;  %v4659_v1 = vmin.f32 %v14296_v46, 0.0  ;;  %vm4643_vm12 = vcmp.gt.f32.partialorder %v14296_v46, 0.0 }
 0x788   : > { %v14299_v18 = vadd.f32 %v4627_v32, %v14230_v2  ;;  %9525 = vmatmul.msk.f32.gmra.mxu1 %vm2656_vm15, %v14304_v9  ;;  %v14339_v32 = vld [vmem:[%s17535_s21 + $0x20] sm:$0xff] }
 0x789   : > { %v4685_v23 = vmul.f32 1.442695, %v4659_v1  ;;  %v10415_v20 = vpop.eup %10414 }
 0x78a   : > { %v4660_v37 = vmin.f32 %v14299_v18, 0.0  ;;  %vm4644_vm13 = vcmp.gt.f32.partialorder %v14299_v18, 0.0 }
 0x78b   : > { %10416 = vpow2.f32 %v4685_v23 }
 0x78c   : > { %v4601_v7 = vpop.f32.mrf.mxu2  ;;  %v4687_v19 = vmul.f32 1.442695, %v4660_v37 }
 0x78d   : > { %v4602_v52 = vadd.f32 %v4601_v7, %v14221_v22  ;;  %9518 = vmatmul.msk.f32.gmra.mxu0 %vm2656_vm15, %v14330_v10 }
 0x78e   : > { %10418 = vpow2.f32 %v4687_v19 }
 0x78f   : > { %v4630_v36 = vpop.f32.mrf.mxu3  ;;  %v4663_v38 = vmin.f32 %v4602_v52, 0.0  ;;  %vm4647_vm11 = vcmp.gt.f32.partialorder %v4602_v52, 0.0 }
 0x790   : > { %v4631_v44 = vadd.f32 %v4630_v36, %v14221_v22  ;;  %9526 = vmatmul.msk.f32.gmra.mxu1 %vm2656_vm15, %v14330_v10 }
 0x791   : > { %v4693_v25 = vmul.f32 1.442695, %v4663_v38  ;;  %v10417_v11 = vpop.eup %10416  ;;  %v9497_v38 = vadd.f32 -1.0, %v10415_v20 }
 0x792   : > { %v4664_v63 = vmin.f32 %v4631_v44, 0.0  ;;  %v9501_v7 = vadd.f32 -1.0, %v10417_v11  ;;  %vm4648_vm5 = vcmp.gt.f32.partialorder %v4631_v44, 0.0  ;;  %v17667_v11 = vld [vmem:[#allocation51_spill] sm:$0xff] }
 0x793   : > { %10420 = vpow2.f32 %v4693_v25 }
 0x794   : > { %v4695_v43 = vmul.f32 1.442695, %v4664_v63  ;;  %10422 = vpow2.f32 %v4679_v49  ;;  %v10419_v59 = vpop.eup %10418  ;;  %v10956_v63 = vld [vmem:[%s17535_s21 + $0x28] sm:$0xff] }
 0x795   : > { %9519 = vmatmul.msk.f32.gmra.mxu0 %vm2656_vm15, %v14339_v32  ;;  %v9502_v36 = vadd.f32 -1.0, %v10419_v59  ;;  %v17669_v59 = vld [vmem:[#allocation48_spill] sm:$0xff] }
 0x796   : > { %10424 = vpow2.f32 %v4695_v43  ;;  %v4719_v43 = vsel %vm4639_vm2, %v14293_v50, %v9497_v38  ;;  %v17665_v50 = vld [vmem:[#allocation53_spill] sm:$0xff] }
 0x797   : > { %10426 = vpow2.f32 %v4669_v24  ;;  %v4723_v24 = vsel %vm4643_vm12, %v14296_v46, %v9501_v7 }
 0x798   : > { %10428 = vpow2.f32 %v4671_v0  ;;  %9527 = vmatmul.msk.f32.gmra.mxu1 %vm2656_vm15, %v14339_v32  ;;  %v4724_v0 = vsel %vm4644_vm13, %v14299_v18, %v9502_v36 }
 0x799   : > { %v10421_v1 = vpop.eup %10420 }
 0x79a   : > { %v10423_v37 = vpop.eup %10422  ;;  %v9505_v21 = vadd.f32 -1.0, %v10421_v1  ;;  %v17670_v1 = vld [vmem:[#allocation50_spill] sm:$0xff] }
 0x79b   : > { %v9498_v25 = vadd.f32 -1.0, %v10423_v37  ;;  %v17672_v37 = vld [vmem:[#allocation46_spill] sm:$0xff] }
 0x79c   : > { %v10425_v53 = vpop.eup %10424  ;;  %v4727_v12 = vsel %vm4647_vm11, %v4602_v52, %v9505_v21  ;;  %v10958_v21 = vld [vmem:[%s17535_s21 + $0x38] sm:$0xff] }
 0x79d   : > { %v10427_v23 = vpop.eup %10426  ;;  %v9506_v19 = vadd.f32 -1.0, %v10425_v53  ;;  %4792 = vmatpush.msrb.mxu2 %v4727_v12  ;;  %9520 = vmatmul.msk.f32.gmra.mxu0 %vm2656_vm15, %v10956_v63  ;;  %v4720_v20 = vsel %vm4640_vm14, %v14310_v56, %v9498_v25  ;;  %v17666_v56 = vld [vmem:[#allocation54_spill] sm:$0xff] }
 0x79e   : > { %v10429_v16 = vpop.eup %10428  ;;  %v9493_v52 = vadd.f32 -1.0, %v10427_v23 }
 0x79f   : > { %v4728_v49 = vsel %vm4648_vm5, %v4631_v44, %v9506_v19  ;;  %4793 = vmatpush.msrb.mxu2 %v4723_v24  ;;  %v9494_v44 = vadd.f32 -1.0, %v10429_v16  ;;  %v17675_v24 = vld [vmem:[#allocation99_spill] sm:$0xff] }
 0x7a0   : > { %4812 = vmatpush.msrb.mxu3 %v4728_v49  ;;  %9528 = vmatmul.msk.f32.gmra.mxu1 %vm2656_vm15, %v10956_v63  ;;  %v4715_v46 = vsel %vm4635_vm4, %v14316_v17, %v9493_v52  ;;  %v10957_v17 = vld [vmem:[%s17535_s21 + $0x30] sm:$0xff] }
 0x7a1   : > { %4794 = vmatpush.msrb.mxu2 %v4719_v43  ;;  %v4716_v18 = vsel %vm4636_vm0, %v14320_v34, %v9494_v44  ;;  %v17668_v34 = vld [vmem:[#allocation52_spill] sm:$0xff]  ;;  %v17676_v44 = vld [vmem:[#allocation101_spill] sm:$0xff] }
 0x7a2   : > { %4813 = vmatpush.msrb.mxu3 %v4724_v0 }
 0x7a3   : > { %4795 = vmatpush.msrb.mxu2 %v4715_v46  ;;  %v17677_v46 = vld [vmem:[#allocation102_spill] sm:$0xff] }
 0x7a4   : > { %4814 = vmatpush.msrb.mxu3 %v4720_v20  ;;  %9509 = vmatmul.msk.f32.vlgmr.msrb.gmra.mxu2 %vm2656_vm15, %v14256_v3 }
 0x7a5   : > { %4994 = vmatpush.msra.mxu2 %v17665_v50  ;;  %9521 = vmatmul.msk.f32.gmra.mxu0 %vm2656_vm15, %v10957_v17 }
 0x7a6   : > { %4815 = vmatpush.msrb.mxu3 %v4716_v18 }
 0x7a7   : > { %9510 = vmatmul.msk.f32.vlgmr.msrb.gmra.mxu3 %vm2656_vm15, %v14256_v3  ;;  %4995 = vmatpush.msra.mxu2 %v17667_v11  ;;  %v17671_v3 = vld [vmem:[#allocation44_spill] sm:$0xff]  ;;  %v17680_v11 = vld [vmem:[#allocation97_spill] sm:$0xff] }
 0x7a8   : > { %5035 = vmatpush.msra.mxu3 %v17666_v56  ;;  %9529 = vmatmul.msk.f32.gmra.mxu1 %vm2656_vm15, %v10957_v17 }
 0x7a9   : > { %4996 = vmatpush.msra.mxu2 %v17669_v59 }
 0x7aa   : > { %5036 = vmatpush.msra.mxu3 %v17668_v34 }
 0x7ab   : > { %4997 = vmatpush.msra.mxu2 %v17671_v3 }
 0x7ac   : > { %5037 = vmatpush.msra.mxu3 %v17670_v1  ;;  %9531 = vmatmul.msk.f32.vlgmr.msra.gmra.mxu2 %vm2656_vm15, %v14276_v41  ;;  %v17681_v1 = vld [vmem:[#allocation98_spill] sm:$0xff] }
 0x7ad   : > { %9522 = vmatmul.msk.f32.gmra.mxu0 %vm2656_vm15, %v10958_v21 }
 0x7ae   : > { %5038 = vmatpush.msra.mxu3 %v17672_v37  ;;  %v17682_v37 = vld [vmem:[#allocation93_spill] sm:$0xff] }
 0x7af   : > { %9539 = vmatmul.msk.f32.vlgmr.msra.gmra.mxu3 %vm2656_vm15, %v14276_v41 }
 0x7b0   : > { %9530 = vmatmul.msk.f32.gmra.mxu1 %vm2656_vm15, %v10958_v21 }
 0x7b4   : > { %9532 = vmatmul.msk.f32.gmra.mxu2 %vm2656_vm15, %v14286_v4 }
 0x7b7   : > { %9540 = vmatmul.msk.f32.gmra.mxu3 %vm2656_vm15, %v14286_v4 }
 0x7bc   : > { %9533 = vmatmul.msk.f32.gmra.mxu2 %vm2656_vm15, %v14304_v9 }
 0x7bf   : > { %9541 = vmatmul.msk.f32.gmra.mxu3 %vm2656_vm15, %v14304_v9 }
 0x7c4   : > { %9534 = vmatmul.msk.f32.gmra.mxu2 %vm2656_vm15, %v14330_v10 }
 0x7c7   : > { %9542 = vmatmul.msk.f32.gmra.mxu3 %vm2656_vm15, %v14330_v10 }
 0x7cc   : > { %9535 = vmatmul.msk.f32.gmra.mxu2 %vm2656_vm15, %v14339_v32 }
 0x7cf   : > { %9543 = vmatmul.msk.f32.gmra.mxu3 %vm2656_vm15, %v14339_v32 }
 0x7d4   : > { %9536 = vmatmul.msk.f32.gmra.mxu2 %vm2656_vm15, %v10956_v63 }
 0x7d7   : > { %9544 = vmatmul.msk.f32.gmra.mxu3 %vm2656_vm15, %v10956_v63 }
 0x7dc   : > { %9537 = vmatmul.msk.f32.gmra.mxu2 %vm2656_vm15, %v10957_v17 }
 0x7df   : > { %9545 = vmatmul.msk.f32.gmra.mxu3 %vm2656_vm15, %v10957_v17 }
 0x7e4   : > { %9538 = vmatmul.msk.f32.gmra.mxu2 %vm2656_vm15, %v10958_v21 }
 0x7e7   : > { %9546 = vmatmul.msk.f32.gmra.mxu3 %vm2656_vm15, %v10958_v21 }
 0x7ea   : > { %v14410_v41 = vpop.f32.mrf.mxu0 }
 0x7eb   : > { %17673 = vst [vmem:[#allocation47_spill] sm:$0xff] %v14410_v41 }
 0x7ed   : > { %v14412_v4 = vpop.f32.mrf.mxu1 }
 0x7ee   : > { %17674 = vst [vmem:[#allocation49_spill] sm:$0xff] %v14412_v4 }
 0x7f2   : > { %v4917_v9 = vpop.f32.mrf.mxu0 }
 0x7f5   : > { %v4958_v10 = vpop.f32.mrf.mxu1 }
 0x7fa   : > { %v4920_v53 = vpop.f32.mrf.mxu0 }
 0x7fd   : > { %v4961_v32 = vpop.f32.mrf.mxu1 }
 0x802   : > { %v4923_v7 = vpop.f32.mrf.mxu0 }
 0x805   : > { %v4964_v23 = vpop.f32.mrf.mxu1 }
 0x80a   : > { %v4926_v12 = vpop.f32.mrf.mxu0 }
 0x80b   : > { %v14440_v21 = vadd.f32 %v4926_v12, %v17682_v37  ;;  %v14456_v12 = vadd.f32 %v4923_v7, %v17687_v13 }
 0x80d   : > { %v4967_v19 = vpop.f32.mrf.mxu1  ;;  %v5140_v7 = vmin.f32 %v14440_v21, 0.0  ;;  %vm5108_vm12 = vcmp.gt.f32.partialorder %v14440_v21, 0.0  ;;  %vm5104_vm2 = vcmp.gt.f32.partialorder %v14456_v12, 0.0 }
 0x80e   : > { %v14447_v33 = vadd.f32 %v4967_v19, %v17684_v42 }
 0x810   : > { %vm5109_vm13 = vcmp.gt.f32.partialorder %v14447_v33, 0.0 }
 0x812   : > { %v4929_v36 = vpop.f32.mrf.mxu0 }
 0x813   : > { %v14433_v34 = vadd.f32 %v4929_v36, %v17680_v11 }
 0x815   : > { %v4970_v16 = vpop.f32.mrf.mxu1  ;;  %vm5112_vm11 = vcmp.gt.f32.partialorder %v14433_v34, 0.0 }
 0x816   : > { %v14437_v3 = vadd.f32 %v4970_v16, %v17681_v1  ;;  %v14453_v16 = vadd.f32 %v4920_v53, %v17686_v47 }
 0x818   : > { %v5145_v19 = vmin.f32 %v14437_v3, 0.0  ;;  %v5132_v54 = vmin.f32 %v14453_v16, 0.0  ;;  %vm5113_vm5 = vcmp.gt.f32.partialorder %v14437_v3, 0.0  ;;  %vm5100_vm4 = vcmp.gt.f32.partialorder %v14453_v16, 0.0 }
 0x81a   : > { %v4932_v38 = vpop.f32.mrf.mxu0 }
 0x81b   : > { %v14415_v25 = vadd.f32 %v4932_v38, %v13244_v40 }
 0x81d   : > { %v4973_v49 = vpop.f32.mrf.mxu1  ;;  %v5148_v20 = vmin.f32 %v14415_v25, 0.0  ;;  %vm5116_vm9 = vcmp.gt.f32.partialorder %v14415_v25, 0.0 }
 0x81e   : > { %v14425_v18 = vadd.f32 %v4973_v49, %v17677_v46 }
 0x81f   : > { %v5200_v38 = vmul.f32 1.442695, %v5148_v20  ;;  %v5144_v20 = vmin.f32 %v14433_v34, 0.0 }
 0x820   : > { %v5149_v49 = vmin.f32 %v14425_v18, 0.0  ;;  %vm5117_vm10 = vcmp.gt.f32.partialorder %v14425_v18, 0.0 }
 0x821   : > { %10430 = vpow2.f32 %v5200_v38  ;;  %v5192_v39 = vmul.f32 1.442695, %v5144_v20 }
 0x822   : > { %v4935_v63 = vpop.f32.mrf.mxu0 }
 0x823   : > { %v14418_v52 = vadd.f32 %v4935_v63, %v17675_v24 }
 0x825   : > { %v4976_v0 = vpop.f32.mrf.mxu1  ;;  %v5152_v56 = vmin.f32 %v14418_v52, 0.0  ;;  %vm5120_vm7 = vcmp.gt.f32.partialorder %v14418_v52, 0.0 }
 0x826   : > { %v14421_v43 = vadd.f32 %v4976_v0, %v17676_v44  ;;  %v17683_v0 = vld [vmem:[#allocation87_spill] sm:$0xff] }
 0x827   : > { %v14427_v50 = vpop.f32.mrf.mxu2  ;;  %v14444_v58 = vadd.f32 %v4917_v9, %v17683_v0  ;;  %v5208_v36 = vmul.f32 1.442695, %v5152_v56  ;;  %v14460_v9 = vadd.f32 %v4964_v23, %v17688_v45  ;;  %v10431_v5 = vpop.eup %10430 }
 0x828   : > { %17678 = vst [vmem:[#allocation43_spill] sm:$0xff] %v14427_v50  ;;  %v5153_v59 = vmin.f32 %v14421_v43, 0.0  ;;  %v5202_v50 = vmul.f32 1.442695, %v5149_v49  ;;  %v5194_v49 = vmul.f32 1.442695, %v5145_v19 }
 0x829   : > { %10432 = vpow2.f32 %v5208_v36  ;;  %v5137_v38 = vmin.f32 %v14460_v9, 0.0  ;;  %v5184_v36 = vmul.f32 1.442695, %v5140_v7  ;;  %vm5121_vm8 = vcmp.gt.f32.partialorder %v14421_v43, 0.0 }
 0x82a   : > { %v14430_v17 = vpop.f32.mrf.mxu3  ;;  %v4938_v63 = vpop.f32.mrf.mxu0  ;;  %v5210_v26 = vmul.f32 1.442695, %v5153_v59  ;;  %v5141_v59 = vmin.f32 %v14447_v33, 0.0  ;;  %vm5105_vm14 = vcmp.gt.f32.partialorder %v14460_v9, 0.0 }
 0x82b   : > { %17679 = vst [vmem:[#allocation45_spill] sm:$0xff] %v14430_v17  ;;  %v14450_v6 = vadd.f32 %v4938_v63, %v17685_v51  ;;  %v17690_v17 = vld [vmem:[#allocation90_spill] sm:$0xff]  ;;  %v5178_v41 = vmul.f32 1.442695, %v5137_v38 }
 0x82c   : > { %v14468_v53 = vadd.f32 %v4961_v32, %v17690_v17  ;;  %v5136_v32 = vmin.f32 %v14456_v12, 0.0  ;;  %10434 = vpow2.f32 %v5210_v26  ;;  %v5186_v28 = vmul.f32 1.442695, %v5141_v59 }
 0x82d   : > { %v4979_v8 = vpop.f32.mrf.mxu1  ;;  %v5156_v56 = vmin.f32 %v14450_v6, 0.0  ;;  %vm5124_vm1 = vcmp.gt.f32.partialorder %v14450_v6, 0.0 }
 0x82e   : > { %v14465_v63 = vadd.f32 %v4979_v8, %v17689_v30  ;;  %v14478_v8 = vadd.f32 %v4958_v10, %v17691_v55  ;;  %v5128_v10 = vmin.f32 %v14444_v58, 0.0  ;;  %v5176_v4 = vmul.f32 1.442695, %v5136_v32 }
 0x82f   : > { %v14471_v14 = vpop.f32.mrf.mxu2  ;;  %v5216_v23 = vmul.f32 1.442695, %v5156_v56  ;;  %v5133_v56 = vmin.f32 %v14468_v53, 0.0  ;;  %v10433_v20 = vpop.eup %10432  ;;  %vm5101_vm0 = vcmp.gt.f32.partialorder %v14468_v53, 0.0 }
 0x830   : > { %v5157_v35 = vmin.f32 %v14465_v63, 0.0  ;;  %v5129_v26 = vmin.f32 %v14478_v8, 0.0  ;;  %v5160_v17 = vmul.f32 1.442695, %v5128_v10  ;;  %v9571_v30 = vadd.f32 -1.0, %v10433_v20 }
 0x831   : > { %10436 = vpow2.f32 %v5216_v23  ;;  %v5170_v7 = vmul.f32 1.442695, %v5133_v56  ;;  %vm5125_vm6 = vcmp.gt.f32.partialorder %v14465_v63, 0.0  ;;  %v9567_v56 = vadd.f32 -1.0, %v10431_v5 }
 0x832   : > { %v14475_v57 = vpop.f32.mrf.mxu3  ;;  %v5218_v62 = vmul.f32 1.442695, %v5157_v35  ;;  %10438 = vpow2.f32 %v5202_v50  ;;  %v10435_v19 = vpop.eup %10434  ;;  %v5168_v35 = vmul.f32 1.442695, %v5132_v54 }
 0x834   : > { %10440 = vpow2.f32 %v5218_v62 }
 0x835   : > { %10442 = vpow2.f32 %v5192_v39  ;;  %v5162_v39 = vmul.f32 1.442695, %v5129_v26  ;;  %v5280_v26 = vsel %vm5120_vm7, %v14418_v52, %v9571_v30 }
 0x836   : > { %10444 = vpow2.f32 %v5194_v49  ;;  %v9572_v49 = vadd.f32 -1.0, %v10435_v19 }
 0x837   : > { %10446 = vpow2.f32 %v5184_v36  ;;  %v14486_v23 = vpop.f32.mrf.mxu2  ;;  %v10437_v50 = vpop.eup %10436 }
 0x838   : > { %10448 = vpow2.f32 %v5186_v28  ;;  %v10439_v62 = vpop.eup %10438  ;;  %v9575_v47 = vadd.f32 -1.0, %v10437_v50  ;;  %v5281_v5 = vsel %vm5121_vm8, %v14421_v43, %v9572_v49  ;;  %v5276_v50 = vsel %vm5116_vm9, %v14415_v25, %v9567_v56 }
 0x839   : > { %10450 = vpow2.f32 %v5176_v4  ;;  %v9568_v4 = vadd.f32 -1.0, %v10439_v62 }
 0x83a   : > { %v14488_v59 = vpop.f32.mrf.mxu3  ;;  %v10441_v32 = vpop.eup %10440  ;;  %10452 = vpow2.f32 %v5178_v41  ;;  %v5284_v28 = vsel %vm5124_vm1, %v14450_v6, %v9575_v47  ;;  %vm5096_vm1 = vcmp.gt.f32.partialorder %v14444_v58, 0.0 }
 0x83b   : > { %v10443_v38 = vpop.eup %10442  ;;  %10454 = vpow2.f32 %v5168_v35  ;;  %v9576_v54 = vadd.f32 -1.0, %v10441_v32  ;;  %5296 = vmatpush.msrb.mxu0 %v5284_v28 }
 0x83c   : > { %v10445_v36 = vpop.eup %10444  ;;  %10456 = vpow2.f32 %v5170_v7  ;;  %v9563_v19 = vadd.f32 -1.0, %v10443_v38  ;;  %v5277_v7 = vsel %vm5117_vm10, %v14425_v18, %v9568_v4 }
 0x83d   : > { %v10447_v10 = vpop.eup %10446  ;;  %10458 = vpow2.f32 %v5160_v17  ;;  %v5285_v41 = vsel %vm5125_vm6, %v14465_v63, %v9576_v54  ;;  %5297 = vmatpush.msrb.mxu0 %v5280_v26  ;;  %v9564_v17 = vadd.f32 -1.0, %v10445_v36  ;;  %vm5097_vm6 = vcmp.gt.f32.partialorder %v14478_v8, 0.0 }
 0x83e   : > { %v10449_v20 = vpop.eup %10448  ;;  %10460 = vpow2.f32 %v5162_v39  ;;  %5325 = vmatpush.msrb.mxu1 %v5285_v41  ;;  %v9559_v30 = vadd.f32 -1.0, %v10447_v10  ;;  %v5272_v32 = vsel %vm5112_vm11, %v14433_v34, %v9563_v19 }
 0x83f   : > { %v10451_v6 = vpop.eup %10450  ;;  %v14498_v47 = vpop.f32.mrf.mxu2  ;;  %5298 = vmatpush.msrb.mxu0 %v5276_v50  ;;  %v9560_v43 = vadd.f32 -1.0, %v10449_v20  ;;  %v5273_v25 = vsel %vm5113_vm5, %v14437_v3, %v9564_v17 }
 0x840   : > { %v10453_v63 = vpop.eup %10452  ;;  %5326 = vmatpush.msrb.mxu1 %v5281_v5  ;;  %v9555_v39 = vadd.f32 -1.0, %v10451_v6  ;;  %v5268_v18 = vsel %vm5108_vm12, %v14440_v21, %v9559_v30  ;;  %v14547_v6 = vld [vmem:[%s17620_s13 + $0x10] sm:$0xff] }
 0x841   : > { %v10455_v52 = vpop.eup %10454  ;;  %5299 = vmatpush.msrb.mxu0 %v5272_v32  ;;  %v9556_v54 = vadd.f32 -1.0, %v10453_v63  ;;  %v5269_v34 = vsel %vm5109_vm13, %v14447_v33, %v9560_v43  ;;  %v17692_v5 = vld [vmem:[#allocation76_spill] sm:$0xff]  ;;  %v17693_v63 = vld [vmem:[#allocation74_spill] sm:$0xff] }
 0x842   : > { %v14501_v35 = vpop.f32.mrf.mxu3  ;;  %v10457_v62 = vpop.eup %10456  ;;  %5327 = vmatpush.msrb.mxu1 %v5277_v7  ;;  %v9551_v36 = vadd.f32 -1.0, %v10455_v52  ;;  %v5264_v56 = vsel %vm5104_vm2, %v14456_v12, %v9555_v39  ;;  %v17694_v52 = vld [vmem:[#allocation83_spill] sm:$0xff] }
 0x843   : > { %v10459_v38 = vpop.eup %10458  ;;  %5300 = vmatpush.msrb.mxu0 %v5268_v18  ;;  %v9552_v28 = vadd.f32 -1.0, %v10457_v62  ;;  %v5265_v10 = vsel %vm5105_vm14, %v14460_v9, %v9556_v54  ;;  %v17695_v62 = vld [vmem:[#allocation78_spill] sm:$0xff]  ;;  %v14574_v18 = vld [vmem:[%s17620_s13 + $0x18] sm:$0xff] }
 0x844   : > { %v10461_v49 = vpop.eup %10460  ;;  %5328 = vmatpush.msrb.mxu1 %v5273_v25  ;;  %v9547_v3 = vadd.f32 -1.0, %v10459_v38  ;;  %v5260_v33 = vsel %vm5100_vm4, %v14453_v16, %v9551_v36  ;;  %v14529_v16 = vld [vmem:[%s17620_s13] sm:$0xff] }
 0x845   : > { %5301 = vmatpush.msrb.mxu0 %v5264_v56  ;;  %v9548_v21 = vadd.f32 -1.0, %v10461_v49  ;;  %v5261_v20 = vsel %vm5101_vm0, %v14468_v53, %v9552_v28  ;;  %v17696_v25 = vld [vmem:[#allocation81_spill] sm:$0xff]  ;;  %v17697_v36 = vld [vmem:[#allocation86_spill] sm:$0xff] }
 0x846   : > { %5329 = vmatpush.msrb.mxu1 %v5269_v34  ;;  %v5256_v12 = vsel %vm5096_vm1, %v14444_v58, %v9547_v3  ;;  %v14538_v58 = vld [vmem:[%s17620_s13 + $0x8] sm:$0xff]  ;;  %v17698_v56 = vld [vmem:[#allocation105_spill] sm:$0xff] }
 0x847   : > { %v5008_v41 = vpop.f32.mrf.mxu2  ;;  %5302 = vmatpush.msrb.mxu0 %v5260_v33  ;;  %v5257_v9 = vsel %vm5097_vm6, %v14478_v8, %v9548_v21  ;;  %v17699_v21 = vld [vmem:[#allocation95_spill] sm:$0xff] }
 0x848   : > { %5330 = vmatpush.msrb.mxu1 %v5265_v10  ;;  %v14585_v3 = vadd.f32 %v5008_v41, %v17698_v56  ;;  %v14589_v33 = vadd.f32 %v14471_v14, %v17699_v21  ;;  %v17704_v21 = vld [vmem:[#allocation104_spill] sm:$0xff] }
 0x849   : > { %5303 = vmatpush.msrb.mxu0 %v5256_v12 }
 0x84a   : > { %v5049_v4 = vpop.f32.mrf.mxu3  ;;  %5331 = vmatpush.msrb.mxu1 %v5261_v20  ;;  %9579 = vmatmul.msk.f32.vlgmr.msrb.gmra.mxu0 %vm3561_vm3, %v14529_v16  ;;  %v17700_v20 = vld [vmem:[#allocation96_spill] sm:$0xff]  ;;  %vm5110_vm2 = vcmp.gt.f32.partialorder %v14585_v3, 0.0 }
 0x84b   : > { %v14593_v12 = vadd.f32 %v14475_v57, %v17700_v20  ;;  %v17706_v20 = vld [vmem:[#allocation100_spill] sm:$0xff] }
 0x84c   : > { %5332 = vmatpush.msrb.mxu1 %v5257_v9  ;;  %v17701_v9 = vld [vmem:[#allocation79_spill] sm:$0xff] }
 0x84d   : > { %9583 = vmatmul.msk.f32.vlgmr.msrb.gmra.mxu1 %vm3561_vm3, %v14529_v16 }
 0x84f   : > { %v5011_v53 = vpop.f32.mrf.mxu2 }
 0x850   : > { %v14568_v54 = vadd.f32 %v5011_v53, %v17696_v25  ;;  %v14596_v53 = vadd.f32 %v5049_v4, %v17701_v9  ;;  %v17705_v9 = vld [vmem:[#allocation26_spill] sm:$0xff]  ;;  %v14612_v25 = vadd.f32 %v14486_v23, %v17706_v20 }
 0x852   : > { %v5052_v26 = vpop.f32.mrf.mxu3  ;;  %9580 = vmatmul.msk.f32.gmra.mxu0 %vm3561_vm3, %v14538_v58  ;;  %v5146_v41 = vmin.f32 %v14568_v54, 0.0  ;;  %vm5114_vm12 = vcmp.gt.f32.partialorder %v14568_v54, 0.0  ;;  %vm5111_vm14 = vcmp.gt.f32.partialorder %v14596_v53, 0.0  ;;  %vm5102_vm1 = vcmp.gt.f32.partialorder %v14612_v25, 0.0 }
 0x853   : > { %v14579_v34 = vadd.f32 %v5052_v26, %v17697_v36  ;;  %v14606_v36 = vadd.f32 %v14501_v35, %v17704_v21  ;;  %v5143_v35 = vmin.f32 %v14596_v53, 0.0 }
 0x855   : > { %9584 = vmatmul.msk.f32.gmra.mxu1 %vm3561_vm3, %v14538_v58  ;;  %v5147_v57 = vmin.f32 %v14579_v34, 0.0  ;;  %v5139_v23 = vmin.f32 %v14606_v36, 0.0  ;;  %vm5115_vm13 = vcmp.gt.f32.partialorder %v14579_v34, 0.0  ;;  %vm5107_vm0 = vcmp.gt.f32.partialorder %v14606_v36, 0.0 }
 0x857   : > { %v5014_v8 = vpop.f32.mrf.mxu2  ;;  %v5198_v20 = vmul.f32 1.442695, %v5147_v57 }
 0x858   : > { %v14554_v17 = vadd.f32 %v5014_v8, %v17692_v5 }
 0x85a   : > { %v5055_v19 = vpop.f32.mrf.mxu3  ;;  %9581 = vmatmul.msk.f32.gmra.mxu0 %vm3561_vm3, %v14547_v6  ;;  %v5150_v39 = vmin.f32 %v14554_v17, 0.0  ;;  %vm5118_vm11 = vcmp.gt.f32.partialorder %v14554_v17, 0.0 }
 0x85b   : > { %v14557_v50 = vadd.f32 %v5055_v19, %v17693_v63  ;;  %v17702_v19 = vld [vmem:[#allocation103_spill] sm:$0xff] }
 0x85c   : > { %v5204_v10 = vmul.f32 1.442695, %v5150_v39  ;;  %v17703_v39 = vld [vmem:[#allocation23_spill] sm:$0xff] }
 0x85d   : > { %9585 = vmatmul.msk.f32.gmra.mxu1 %vm3561_vm3, %v14547_v6  ;;  %v5151_v38 = vmin.f32 %v14557_v50, 0.0  ;;  %vm5119_vm5 = vcmp.gt.f32.partialorder %v14557_v50, 0.0 }
 0x85e   : > { %10462 = vpow2.f32 %v5204_v10  ;;  %v5134_v10 = vmin.f32 %v14612_v25, 0.0 }
 0x85f   : > { %v5017_v30 = vpop.f32.mrf.mxu2  ;;  %v5206_v26 = vmul.f32 1.442695, %v5151_v38 }
 0x860   : > { %v14560_v7 = vadd.f32 %v5017_v30, %v17694_v52  ;;  %v14600_v30 = vadd.f32 %v14498_v47, %v17702_v19  ;;  %v5142_v47 = vmin.f32 %v14585_v3, 0.0  ;;  %v17707_v19 = vld [vmem:[#allocation66_spill] sm:$0xff]  ;;  %v5130_v52 = vmin.f32 %v14589_v33, 0.0 }
 0x861   : > { %10464 = vpow2.f32 %v5206_v26 }
 0x862   : > { %v5058_v43 = vpop.f32.mrf.mxu3  ;;  %v5154_v49 = vmin.f32 %v14560_v7, 0.0  ;;  %9582 = vmatmul.msk.f32.gmra.mxu0 %vm3561_vm3, %v14574_v18  ;;  %v5164_v5 = vmul.f32 1.442695, %v5130_v52  ;;  %vm5122_vm9 = vcmp.gt.f32.partialorder %v14560_v7, 0.0  ;;  %vm5106_vm4 = vcmp.gt.f32.partialorder %v14600_v30, 0.0 }
 0x863   : > { %v14563_v32 = vadd.f32 %v5058_v43, %v17695_v62  ;;  %v5188_v62 = vmul.f32 1.442695, %v5142_v47 }
 0x864   : > { %v5212_v43 = vmul.f32 1.442695, %v5154_v49  ;;  %v10463_v26 = vpop.eup %10462 }
 0x865   : > { %v5155_v28 = vmin.f32 %v14563_v32, 0.0  ;;  %9586 = vmatmul.msk.f32.gmra.mxu1 %vm3561_vm3, %v14574_v18  ;;  %vm5123_vm10 = vcmp.gt.f32.partialorder %v14563_v32, 0.0 }
 0x866   : > { %10466 = vpow2.f32 %v5212_v43  ;;  %v5131_v43 = vmin.f32 %v14593_v12, 0.0 }
 0x867   : > { %v5020_v8 = vpop.f32.mrf.mxu2  ;;  %v5214_v4 = vmul.f32 1.442695, %v5155_v28  ;;  %v5138_v28 = vmin.f32 %v14600_v30, 0.0 }
 0x868   : > { %v5094_v56 = vadd.f32 %v5020_v8, %v17703_v39  ;;  %v14617_v8 = vadd.f32 %v14488_v59, %v17707_v19  ;;  %v5196_v39 = vmul.f32 1.442695, %v5146_v41  ;;  %v5190_v19 = vmul.f32 1.442695, %v5143_v35  ;;  %v10465_v41 = vpop.eup %10464 }
 0x869   : > { %10468 = vpow2.f32 %v5214_v4  ;;  %v5180_v63 = vmul.f32 1.442695, %v5138_v28  ;;  %v5166_v35 = vmul.f32 1.442695, %v5131_v43 }
 0x86a   : > { %v5061_v14 = vpop.f32.mrf.mxu3  ;;  %v5158_v49 = vmin.f32 %v5094_v56, 0.0  ;;  %v5135_v59 = vmin.f32 %v14617_v8, 0.0  ;;  %vm5126_vm7 = vcmp.gt.f32.partialorder %v5094_v56, 0.0  ;;  %vm5103_vm6 = vcmp.gt.f32.partialorder %v14617_v8, 0.0 }
 0x86b   : > { %v5095_v38 = vadd.f32 %v5061_v14, %v17705_v9 }
 0x86c   : > { %v5220_v14 = vmul.f32 1.442695, %v5158_v49  ;;  %v5182_v49 = vmul.f32 1.442695, %v5139_v23  ;;  %v10467_v57 = vpop.eup %10466  ;;  %v5174_v47 = vmul.f32 1.442695, %v5135_v59 }
 0x86d   : > { %v5159_v21 = vmin.f32 %v5095_v38, 0.0  ;;  %v9573_v28 = vadd.f32 -1.0, %v10467_v57  ;;  %vm5127_vm8 = vcmp.gt.f32.partialorder %v5095_v38, 0.0 }
 0x86e   : > { %10470 = vpow2.f32 %v5220_v14 }
 0x86f   : > { %v5222_v9 = vmul.f32 1.442695, %v5159_v21  ;;  %v5172_v21 = vmul.f32 1.442695, %v5134_v10  ;;  %v10469_v4 = vpop.eup %10468  ;;  %v5282_v43 = vsel %vm5122_vm9, %v14560_v7, %v9573_v28 }
 0x870   : > { %v9574_v23 = vadd.f32 -1.0, %v10469_v4 }
 0x871   : > { %10472 = vpow2.f32 %v5222_v9 }
 0x872   : > { %10474 = vpow2.f32 %v5196_v39 }
 0x873   : > { %10476 = vpow2.f32 %v5198_v20 }
 0x874   : > { %10478 = vpow2.f32 %v5188_v62  ;;  %v10471_v14 = vpop.eup %10470  ;;  %v9569_v62 = vadd.f32 -1.0, %v10463_v26 }
 0x875   : > { %10480 = vpow2.f32 %v5190_v19  ;;  %v9577_v45 = vadd.f32 -1.0, %v10471_v14 }
 0x876   : > { %10482 = vpow2.f32 %v5180_v63  ;;  %v9570_v63 = vadd.f32 -1.0, %v10465_v41 }
 0x877   : > { %v10473_v9 = vpop.eup %10472  ;;  %10484 = vpow2.f32 %v5182_v49  ;;  %v5286_v10 = vsel %vm5126_vm7, %v5094_v56, %v9577_v45  ;;  %v5283_v45 = vsel %vm5123_vm10, %v14563_v32, %v9574_v23  ;;  %vm5098_vm7 = vcmp.gt.f32.partialorder %v14589_v33, 0.0 }
 0x878   : > { %v10475_v39 = vpop.eup %10474  ;;  %10486 = vpow2.f32 %v5172_v21  ;;  %v9578_v51 = vadd.f32 -1.0, %v10473_v9  ;;  %5354 = vmatpush.msrb.mxu2 %v5286_v10  ;;  %v5279_v7 = vsel %vm5119_vm5, %v14557_v50, %v9570_v63  ;;  %v17710_v63 = vld [vmem:[#allocation69_spill] sm:$0xff] }
 0x879   : > { %v10477_v20 = vpop.eup %10476  ;;  %10488 = vpow2.f32 %v5174_v47  ;;  %v9565_v49 = vadd.f32 -1.0, %v10475_v39 }
 0x87a   : > { %v10479_v59 = vpop.eup %10478  ;;  %10490 = vpow2.f32 %v5164_v5  ;;  %v5287_v52 = vsel %vm5127_vm8, %v5095_v38, %v9578_v51  ;;  %5355 = vmatpush.msrb.mxu2 %v5282_v43  ;;  %v9566_v5 = vadd.f32 -1.0, %v10477_v20  ;;  %v5278_v51 = vsel %vm5118_vm11, %v14554_v17, %v9569_v62 }
 0x87b   : > { %v10481_v19 = vpop.eup %10480  ;;  %10492 = vpow2.f32 %v5166_v35  ;;  %5383 = vmatpush.msrb.mxu3 %v5287_v52  ;;  %v9561_v38 = vadd.f32 -1.0, %v10479_v59  ;;  %v5274_v32 = vsel %vm5114_vm12, %v14568_v54, %v9565_v49  ;;  %vm5099_vm8 = vcmp.gt.f32.partialorder %v14593_v12, 0.0 }
 0x87c   : > { %v10483_v57 = vpop.eup %10482  ;;  %5356 = vmatpush.msrb.mxu2 %v5278_v51  ;;  %v9562_v41 = vadd.f32 -1.0, %v10481_v19  ;;  %v5275_v17 = vsel %vm5115_vm13, %v14579_v34, %v9566_v5 }
 0x87d   : > { %v10485_v56 = vpop.eup %10484  ;;  %5384 = vmatpush.msrb.mxu3 %v5283_v45  ;;  %v9557_v4 = vadd.f32 -1.0, %v10483_v57  ;;  %v5270_v50 = vsel %vm5110_vm2, %v14585_v3, %v9561_v38 }
 0x87e   : > { %v10487_v26 = vpop.eup %10486  ;;  %5357 = vmatpush.msrb.mxu2 %v5274_v32  ;;  %v9558_v14 = vadd.f32 -1.0, %v10485_v56  ;;  %v5271_v54 = vsel %vm5111_vm14, %v14596_v53, %v9562_v41 }
 0x87f   : > { %v10489_v21 = vpop.eup %10488  ;;  %5385 = vmatpush.msrb.mxu3 %v5279_v7  ;;  %v9553_v35 = vadd.f32 -1.0, %v10487_v26  ;;  %v5266_v39 = vsel %vm5106_vm4, %v14600_v30, %v9557_v4  ;;  %v17711_v4 = vld [vmem:[#allocation34_spill] sm:$0xff] }
 0x880   : > { %v10491_v47 = vpop.eup %10490  ;;  %5358 = vmatpush.msrb.mxu2 %v5270_v50  ;;  %v9554_v28 = vadd.f32 -1.0, %v10489_v21  ;;  %v5267_v23 = vsel %vm5107_vm0, %v14606_v36, %v9558_v14 }
 0x881   : > { %v10493_v9 = vpop.eup %10492  ;;  %5386 = vmatpush.msrb.mxu3 %v5275_v17  ;;  %v9549_v34 = vadd.f32 -1.0, %v10491_v47  ;;  %v5262_v20 = vsel %vm5102_vm1, %v14612_v25, %v9553_v35 }
 0x882   : > { %5359 = vmatpush.msrb.mxu2 %v5266_v39  ;;  %v9550_v3 = vadd.f32 -1.0, %v10493_v9  ;;  %v5263_v53 = vsel %vm5103_vm6, %v14617_v8, %v9554_v28  ;;  %v17708_v8 = vld [vmem:[#allocation22_spill] sm:$0xff] }
 0x883   : > { %5387 = vmatpush.msrb.mxu3 %v5271_v54  ;;  %v5258_v30 = vsel %vm5098_vm7, %v14589_v33, %v9549_v34 }
 0x884   : > { %5360 = vmatpush.msrb.mxu2 %v5262_v20  ;;  %v5259_v36 = vsel %vm5099_vm8, %v14593_v12, %v9550_v3 }
 0x885   : > { %5388 = vmatpush.msrb.mxu3 %v5267_v23 }
 0x886   : > { %5361 = vmatpush.msrb.mxu2 %v5258_v30 }
 0x887   : > { %5389 = vmatpush.msrb.mxu3 %v5263_v53  ;;  %9587 = vmatmul.msk.f32.vlgmr.msrb.gmra.mxu2 %vm3561_vm3, %v14529_v16 }
 0x889   : > { %5390 = vmatpush.msrb.mxu3 %v5259_v36 }
 0x88a   : > { %9591 = vmatmul.msk.f32.vlgmr.msrb.gmra.mxu3 %vm3561_vm3, %v14529_v16 }
 0x88f   : > { %9588 = vmatmul.msk.f32.gmra.mxu2 %vm3561_vm3, %v14538_v58 }
 0x892   : > { %9592 = vmatmul.msk.f32.gmra.mxu3 %vm3561_vm3, %v14538_v58 }
 0x897   : > { %9589 = vmatmul.msk.f32.gmra.mxu2 %vm3561_vm3, %v14547_v6 }
 0x89a   : > { %9593 = vmatmul.msk.f32.gmra.mxu3 %vm3561_vm3, %v14547_v6  ;;  %v17709_v6 = vld [vmem:[#allocation35_spill] sm:$0xff] }
 0x89f   : > { %9590 = vmatmul.msk.f32.gmra.mxu2 %vm3561_vm3, %v14574_v18 }
 0x8a2   : > { %9594 = vmatmul.msk.f32.gmra.mxu3 %vm3561_vm3, %v14574_v18 }
 0x8c7   : > { %v5305_v25 = vpop.f32.mrf.mxu0 }
 0x8c8   : > { %v14671_v10 = vadd.f32 %v5305_v25, %v17708_v8 }
 0x8ca   : > { %v5334_v16 = vpop.f32.mrf.mxu1  ;;  %v5420_v59 = vmin.f32 %v14671_v10, 0.0  ;;  %vm5404_vm2 = vcmp.gt.f32.partialorder %v14671_v10, 0.0 }
 0x8cb   : > { %v14674_v58 = vadd.f32 %v5334_v16, %v17708_v8 }
 0x8cc   : > { %v5436_v56 = vmul.f32 1.442695, %v5420_v59 }
 0x8cd   : > { %v5421_v18 = vmin.f32 %v14674_v58, 0.0  ;;  %vm5405_vm14 = vcmp.gt.f32.partialorder %v14674_v58, 0.0 }
 0x8ce   : > { %10494 = vpow2.f32 %v5436_v56  ;;  %v17712_v56 = vld [vmem:[#allocation37_spill] sm:$0xff] }
 0x8cf   : > { %v5308_v33 = vpop.f32.mrf.mxu0  ;;  %v5438_v38 = vmul.f32 1.442695, %v5421_v18 }
 0x8d0   : > { %v5309_v52 = vadd.f32 %v5308_v33, %v17709_v6 }
 0x8d1   : > { %10496 = vpow2.f32 %v5438_v38 }
 0x8d2   : > { %v5337_v12 = vpop.f32.mrf.mxu1  ;;  %v5424_v51 = vmin.f32 %v5309_v52, 0.0  ;;  %vm5408_vm9 = vcmp.gt.f32.partialorder %v5309_v52, 0.0 }
 0x8d3   : > { %v5338_v49 = vadd.f32 %v5337_v12, %v17709_v6 }
 0x8d4   : > { %v5444_v32 = vmul.f32 1.442695, %v5424_v51  ;;  %v10495_v39 = vpop.eup %10494 }
 0x8d5   : > { %v5425_v26 = vmin.f32 %v5338_v49, 0.0  ;;  %v9595_v33 = vadd.f32 -1.0, %v10495_v39  ;;  %vm5409_vm13 = vcmp.gt.f32.partialorder %v5338_v49, 0.0 }
 0x8d7   : > { %v5311_v62 = vpop.f32.mrf.mxu0  ;;  %v5446_v14 = vmul.f32 1.442695, %v5425_v26  ;;  %v10497_v34 = vpop.eup %10496 }
 0x8d8   : > { %v5312_v19 = vadd.f32 %v5311_v62, %v17710_v63 }
 0x8da   : > { %v5340_v43 = vpop.f32.mrf.mxu1  ;;  %v5428_v45 = vmin.f32 %v5312_v19, 0.0  ;;  %vm5412_vm10 = vcmp.gt.f32.partialorder %v5312_v19, 0.0 }
 0x8db   : > { %v5341_v57 = vadd.f32 %v5340_v43, %v17710_v63 }
 0x8dc   : > { %v5452_v7 = vmul.f32 1.442695, %v5428_v45 }
 0x8dd   : > { %v5429_v5 = vmin.f32 %v5341_v57, 0.0  ;;  %vm5413_vm5 = vcmp.gt.f32.partialorder %v5341_v57, 0.0 }
 0x8de   : > { %10498 = vpow2.f32 %v5452_v7  ;;  %v17713_v7 = vld [vmem:[#allocation15_spill] sm:$0xff] }
 0x8df   : > { %v5454_v41 = vmul.f32 1.442695, %v5429_v5  ;;  %v5314_v21 = vpop.f32.mrf.mxu0  ;;  %v9596_v5 = vadd.f32 -1.0, %v10497_v34  ;;  %v14751_v34 = vld [vmem:[%s17630_s15 + $0x18] sm:$0xff] }
 0x8e0   : > { %v5315_v47 = vadd.f32 %v5314_v21, %v17711_v4 }
 0x8e1   : > { %10500 = vpow2.f32 %v5454_v41 }
 0x8e2   : > { %v5343_v17 = vpop.f32.mrf.mxu1  ;;  %v5432_v50 = vmin.f32 %v5315_v47, 0.0  ;;  %10502 = vpow2.f32 %v5444_v32  ;;  %vm5416_vm11 = vcmp.gt.f32.partialorder %v5315_v47, 0.0 }
 0x8e3   : > { %v5344_v9 = vadd.f32 %v5343_v17, %v17711_v4  ;;  %10504 = vpow2.f32 %v5446_v14  ;;  %v14713_v17 = vsel %vm5405_vm14, %v14674_v58, %v9596_v5  ;;  %v14733_v58 = vld [vmem:[%s17630_s15 + $0x8] sm:$0xff] }
 0x8e4   : > { %v5460_v54 = vmul.f32 1.442695, %v5432_v50  ;;  %v10499_v23 = vpop.eup %10498 }
 0x8e5   : > { %v5433_v35 = vmin.f32 %v5344_v9, 0.0  ;;  %v9603_v30 = vadd.f32 -1.0, %v10499_v23  ;;  %vm5417_vm12 = vcmp.gt.f32.partialorder %v5344_v9, 0.0 }
 0x8e6   : > { %10506 = vpow2.f32 %v5460_v54  ;;  %v14742_v54 = vld [vmem:[%s17630_s15 + $0x10] sm:$0xff] }
 0x8e7   : > { %v5462_v28 = vmul.f32 1.442695, %v5433_v35  ;;  %v10501_v3 = vpop.eup %10500  ;;  %v14686_v45 = vsel %vm5412_vm10, %v5312_v19, %v9603_v30 }
 0x8e8   : > { %v10503_v20 = vpop.eup %10502  ;;  %v9604_v25 = vadd.f32 -1.0, %v10501_v3  ;;  %v5508_v19 = vmul.f32 %v14686_v45, %v17712_v56 }
 0x8e9   : > { %10508 = vpow2.f32 %v5462_v28  ;;  %v10505_v53 = vpop.eup %10504  ;;  %v9599_v12 = vadd.f32 -1.0, %v10503_v20 }
 0x8ea   : > { %v9600_v59 = vadd.f32 -1.0, %v10505_v53  ;;  %v14692_v26 = vsel %vm5413_vm5, %v5341_v57, %v9604_v25 }
 0x8eb   : > { %v14697_v21 = vsel %vm5408_vm9, %v5309_v52, %v9599_v12  ;;  %v5509_v57 = vmul.f32 %v14692_v26, %v17713_v7 }
 0x8ec   : > { %v10507_v36 = vpop.eup %10506  ;;  %v14702_v32 = vsel %vm5409_vm13, %v5338_v49, %v9600_v59  ;;  %v5504_v52 = vmul.f32 %v14697_v21, %v17712_v56 }
 0x8ed   : > { %v9607_v62 = vadd.f32 -1.0, %v10507_v36  ;;  %v5505_v49 = vmul.f32 %v14702_v32, %v17713_v7 }
 0x8ef   : > { %v10509_v16 = vpop.eup %10508  ;;  %v14684_v18 = vsel %vm5416_vm11, %v5315_v47, %v9607_v62  ;;  %v14708_v47 = vsel %vm5404_vm2, %v14671_v10, %v9595_v33  ;;  %v5501_v10 = vmul.f32 %v14713_v17, %v17713_v7 }
 0x8f0   : > { %v9608_v43 = vadd.f32 -1.0, %v10509_v16  ;;  %v5512_v51 = vmul.f32 %v14684_v18, %v17712_v56  ;;  %v5500_v14 = vmul.f32 %v14708_v47, %v17712_v56 }
 0x8f2   : > { %v14690_v38 = vsel %vm5417_vm12, %v5344_v9, %v9608_v43  ;;  %5528 = vmatpush.msra.mxu0 %v5512_v51  ;;  %v14724_v9 = vld [vmem:[%s17630_s15] sm:$0xff] }
 0x8f3   : > { %v5513_v41 = vmul.f32 %v14690_v38, %v17713_v7 }
 0x8f4   : > { %5529 = vmatpush.msra.mxu0 %v5508_v19 }
 0x8f5   : > { %5557 = vmatpush.msra.mxu1 %v5513_v41 }
 0x8f6   : > { %5530 = vmatpush.msra.mxu0 %v5504_v52 }
 0x8f7   : > { %5558 = vmatpush.msra.mxu1 %v5509_v57 }
 0x8f8   : > { %5531 = vmatpush.msra.mxu0 %v5500_v14 }
 0x8f9   : > { %5559 = vmatpush.msra.mxu1 %v5505_v49  ;;  %9611 = vmatmul.msk.f32.vlgmr.msra.gmra.mxu0 %vm2656_vm15, %v14724_v9 }
 0x8fb   : > { %5560 = vmatpush.msra.mxu1 %v5501_v10 }
 0x8fc   : > { %9615 = vmatmul.msk.f32.vlgmr.msra.gmra.mxu1 %vm2656_vm15, %v14724_v9 }
 0x901   : > { %9612 = vmatmul.msk.f32.gmra.mxu0 %vm2656_vm15, %v14733_v58 }
 0x904   : > { %9616 = vmatmul.msk.f32.gmra.mxu1 %vm2656_vm15, %v14733_v58 }
 0x909   : > { %9613 = vmatmul.msk.f32.gmra.mxu0 %vm2656_vm15, %v14742_v54 }
 0x90a   : > { %v5363_v50 = vpop.f32.mrf.mxu2 }
 0x90b   : > { %v14758_v23 = vadd.f32 %v5363_v50, %v17708_v8 }
 0x90c   : > { %9617 = vmatmul.msk.f32.gmra.mxu1 %vm2656_vm15, %v14742_v54 }
 0x90d   : > { %v5392_v35 = vpop.f32.mrf.mxu3  ;;  %v5422_v53 = vmin.f32 %v14758_v23, 0.0  ;;  %vm5406_vm9 = vcmp.gt.f32.partialorder %v14758_v23, 0.0 }
 0x90e   : > { %v14761_v3 = vadd.f32 %v5392_v35, %v17708_v8 }
 0x90f   : > { %v5440_v43 = vmul.f32 1.442695, %v5422_v53 }
 0x910   : > { %v5423_v16 = vmin.f32 %v14761_v3, 0.0  ;;  %vm5407_vm10 = vcmp.gt.f32.partialorder %v14761_v3, 0.0 }
 0x911   : > { %9614 = vmatmul.msk.f32.gmra.mxu0 %vm2656_vm15, %v14751_v34  ;;  %10510 = vpow2.f32 %v5440_v43 }
 0x912   : > { %v5366_v28 = vpop.f32.mrf.mxu2  ;;  %v5442_v56 = vmul.f32 1.442695, %v5423_v16 }
 0x913   : > { %v5367_v30 = vadd.f32 %v5366_v28, %v17709_v6 }
 0x914   : > { %9618 = vmatmul.msk.f32.gmra.mxu1 %vm2656_vm15, %v14751_v34  ;;  %10512 = vpow2.f32 %v5442_v56 }
 0x915   : > { %v5395_v39 = vpop.f32.mrf.mxu3  ;;  %v5426_v5 = vmin.f32 %v5367_v30, 0.0  ;;  %vm5410_vm4 = vcmp.gt.f32.partialorder %v5367_v30, 0.0 }
 0x916   : > { %v5396_v33 = vadd.f32 %v5395_v39, %v17709_v6 }
 0x917   : > { %v5448_v57 = vmul.f32 1.442695, %v5426_v5 }
 0x918   : > { %v5427_v51 = vmin.f32 %v5396_v33, 0.0  ;;  %vm5411_vm8 = vcmp.gt.f32.partialorder %v5396_v33, 0.0 }
 0x91a   : > { %v5369_v20 = vpop.f32.mrf.mxu2  ;;  %v5450_v14 = vmul.f32 1.442695, %v5427_v51 }
 0x91b   : > { %v5370_v36 = vadd.f32 %v5369_v20, %v17710_v63  ;;  %v10511_v20 = vpop.eup %10510 }
 0x91c   : > { %v10513_v53 = vpop.eup %10512 }
 0x91d   : > { %v5398_v25 = vpop.f32.mrf.mxu3  ;;  %v5430_v62 = vmin.f32 %v5370_v36, 0.0  ;;  %vm5414_vm0 = vcmp.gt.f32.partialorder %v5370_v36, 0.0 }
 0x91e   : > { %v5399_v12 = vadd.f32 %v5398_v25, %v17710_v63 }
 0x91f   : > { %v5456_v7 = vmul.f32 1.442695, %v5430_v62 }
 0x920   : > { %v5431_v59 = vmin.f32 %v5399_v12, 0.0  ;;  %vm5415_vm6 = vcmp.gt.f32.partialorder %v5399_v12, 0.0 }
 0x921   : > { %10514 = vpow2.f32 %v5456_v7  ;;  %v9597_v7 = vadd.f32 -1.0, %v10511_v20 }
 0x922   : > { %v5458_v41 = vmul.f32 1.442695, %v5431_v59  ;;  %v5372_v19 = vpop.f32.mrf.mxu2 }
 0x923   : > { %v5373_v52 = vadd.f32 %v5372_v19, %v17711_v4 }
 0x924   : > { %10516 = vpow2.f32 %v5458_v41 }
 0x925   : > { %v5401_v49 = vpop.f32.mrf.mxu3  ;;  %v5434_v50 = vmin.f32 %v5373_v52, 0.0  ;;  %10518 = vpow2.f32 %v5448_v57  ;;  %vm5418_vm1 = vcmp.gt.f32.partialorder %v5373_v52, 0.0 }
 0x926   : > { %v5402_v10 = vadd.f32 %v5401_v49, %v17711_v4  ;;  %10520 = vpow2.f32 %v5450_v14 }
 0x927   : > { %v5464_v28 = vmul.f32 1.442695, %v5434_v50  ;;  %v10515_v25 = vpop.eup %10514 }
 0x928   : > { %v5435_v35 = vmin.f32 %v5402_v10, 0.0  ;;  %v9605_v43 = vadd.f32 -1.0, %v10515_v25  ;;  %vm5419_vm7 = vcmp.gt.f32.partialorder %v5402_v10, 0.0 }
 0x929   : > { %10522 = vpow2.f32 %v5464_v28  ;;  %v17714_v28 = vld [vmem:[#allocation41_spill] sm:$0xff] }
 0x92a   : > { %v5466_v39 = vmul.f32 1.442695, %v5435_v35  ;;  %v10517_v16 = vpop.eup %10516  ;;  %v14773_v50 = vsel %vm5414_vm0, %v5370_v36, %v9605_v43  ;;  %v9598_v35 = vadd.f32 -1.0, %v10513_v53 }
 0x92b   : > { %v10519_v62 = vpop.eup %10518  ;;  %v9606_v56 = vadd.f32 -1.0, %v10517_v16  ;;  %v17715_v16 = vld [vmem:[#allocation42_spill] sm:$0xff]  ;;  %v5510_v36 = vmul.f32 %v14773_v50, %v17714_v28 }
 0x92c   : > { %10524 = vpow2.f32 %v5466_v39  ;;  %v10521_v59 = vpop.eup %10520  ;;  %v9601_v41 = vadd.f32 -1.0, %v10519_v62  ;;  %v14800_v53 = vsel %vm5407_vm10, %v14761_v3, %v9598_v35 }
 0x92d   : > { %v9602_v57 = vadd.f32 -1.0, %v10521_v59  ;;  %v14779_v20 = vsel %vm5415_vm6, %v5399_v12, %v9606_v56 }
 0x92e   : > { %v14784_v59 = vsel %vm5410_vm4, %v5367_v30, %v9601_v41  ;;  %v5511_v12 = vmul.f32 %v14779_v20, %v17715_v16 }
 0x92f   : > { %v10523_v5 = vpop.eup %10522  ;;  %v5506_v30 = vmul.f32 %v14784_v59, %v17714_v28 }
 0x930   : > { %v9609_v19 = vadd.f32 -1.0, %v10523_v5 }
 0x932   : > { %v10525_v51 = vpop.eup %10524  ;;  %v14771_v14 = vsel %vm5418_vm1, %v5373_v52, %v9609_v19  ;;  %v14789_v52 = vsel %vm5411_vm8, %v5396_v33, %v9602_v57  ;;  %v17717_v19 = vld [vmem:[#allocation75_spill] sm:$0xff] }
 0x933   : > { %v9610_v49 = vadd.f32 -1.0, %v10525_v51  ;;  %v5514_v39 = vmul.f32 %v14771_v14, %v17714_v28  ;;  %v5507_v33 = vmul.f32 %v14789_v52, %v17715_v16  ;;  %v17716_v51 = vld [vmem:[#allocation33_spill] sm:$0xff] }
 0x935   : > { %v14777_v25 = vsel %vm5419_vm7, %v5402_v10, %v9610_v49  ;;  %5586 = vmatpush.msra.mxu2 %v5514_v39  ;;  %v14795_v10 = vsel %vm5406_vm9, %v14758_v23, %v9597_v7  ;;  %v5503_v23 = vmul.f32 %v14800_v53, %v17715_v16 }
 0x936   : > { %v5515_v62 = vmul.f32 %v14777_v25, %v17715_v16  ;;  %v5502_v43 = vmul.f32 %v14795_v10, %v17714_v28  ;;  %v17718_v28 = vld [vmem:[#allocation27_spill] sm:$0xff] }
 0x937   : > { %5587 = vmatpush.msra.mxu2 %v5510_v36 }
 0x938   : > { %5615 = vmatpush.msra.mxu3 %v5515_v62 }
 0x939   : > { %5588 = vmatpush.msra.mxu2 %v5506_v30 }
 0x93a   : > { %5616 = vmatpush.msra.mxu3 %v5511_v12 }
 0x93b   : > { %5589 = vmatpush.msra.mxu2 %v5502_v43 }
 0x93c   : > { %5617 = vmatpush.msra.mxu3 %v5507_v33  ;;  %9619 = vmatmul.msk.f32.vlgmr.msra.gmra.mxu2 %vm2656_vm15, %v14724_v9 }
 0x93e   : > { %5618 = vmatpush.msra.mxu3 %v5503_v23 }
 0x93f   : > { %9623 = vmatmul.msk.f32.vlgmr.msra.gmra.mxu3 %vm2656_vm15, %v14724_v9 }
 0x944   : > { %9620 = vmatmul.msk.f32.gmra.mxu2 %vm2656_vm15, %v14733_v58 }
 0x947   : > { %9624 = vmatmul.msk.f32.gmra.mxu3 %vm2656_vm15, %v14733_v58 }
 0x94c   : > { %9621 = vmatmul.msk.f32.gmra.mxu2 %vm2656_vm15, %v14742_v54 }
 0x94f   : > { %9625 = vmatmul.msk.f32.gmra.mxu3 %vm2656_vm15, %v14742_v54 }
 0x954   : > { %9622 = vmatmul.msk.f32.gmra.mxu2 %vm2656_vm15, %v14751_v34 }
 0x957   : > { %9626 = vmatmul.msk.f32.gmra.mxu3 %vm2656_vm15, %v14751_v34 }
 0x976   : > { %v5533_v3 = vpop.f32.mrf.mxu0 }
 0x977   : > { %v14835_v39 = vadd.f32 %v5533_v3, %v17718_v28 }
 0x979   : > { %v5562_v9 = vpop.f32.mrf.mxu1  ;;  %v5648_v43 = vmin.f32 %v14835_v39, 0.0  ;;  %vm5632_vm4 = vcmp.gt.f32.partialorder %v14835_v39, 0.0 }
 0x97a   : > { %v14838_v62 = vadd.f32 %v5562_v9, %v17718_v28 }
 0x97b   : > { %v5664_v6 = vmul.f32 1.442695, %v5648_v43 }
 0x97c   : > { %vm5633_vm0 = vcmp.gt.f32.partialorder %v14838_v62, 0.0 }
 0x97e   : > { %v5536_v5 = vpop.f32.mrf.mxu0 }
 0x97f   : > { %v14825_v7 = vadd.f32 %v5536_v5, %v17716_v51  ;;  %v17719_v5 = vld [vmem:[#allocation32_spill] sm:$0xff] }
 0x981   : > { %v5565_v56 = vpop.f32.mrf.mxu1  ;;  %v5652_v35 = vmin.f32 %v14825_v7, 0.0  ;;  %vm5636_vm2 = vcmp.gt.f32.partialorder %v14825_v7, 0.0 }
 0x982   : > { %v14828_v58 = vadd.f32 %v5565_v56, %v17716_v51 }
 0x983   : > { %v5672_v12 = vmul.f32 1.442695, %v5652_v35 }
 0x984   : > { %v5653_v34 = vmin.f32 %v14828_v58, 0.0  ;;  %vm5637_vm14 = vcmp.gt.f32.partialorder %v14828_v58, 0.0 }
 0x985   : > { %10526 = vpow2.f32 %v5672_v12 }
 0x986   : > { %v5539_v41 = vpop.f32.mrf.mxu0  ;;  %v5674_v30 = vmul.f32 1.442695, %v5653_v34 }
 0x987   : > { %v5540_v57 = vadd.f32 %v5539_v41, %v17717_v19 }
 0x988   : > { %10528 = vpow2.f32 %v5674_v30 }
 0x989   : > { %v5568_v54 = vpop.f32.mrf.mxu1  ;;  %v5656_v16 = vmin.f32 %v5540_v57, 0.0  ;;  %vm5640_vm12 = vcmp.gt.f32.partialorder %v5540_v57, 0.0 }
 0x98a   : > { %v5569_v49 = vadd.f32 %v5568_v54, %v17717_v19  ;;  %v5649_v54 = vmin.f32 %v14838_v62, 0.0 }
 0x98b   : > { %v5680_v23 = vmul.f32 1.442695, %v5656_v16  ;;  %v10527_v16 = vpop.eup %10526 }
 0x98c   : > { %v5657_v36 = vmin.f32 %v5569_v49, 0.0  ;;  %v5666_v34 = vmul.f32 1.442695, %v5649_v54  ;;  %vm5641_vm13 = vcmp.gt.f32.partialorder %v5569_v49, 0.0 }
 0x98d   : > { %10530 = vpow2.f32 %v5680_v23 }
 0x98e   : > { %v5542_v33 = vpop.f32.mrf.mxu0  ;;  %v5682_v4 = vmul.f32 1.442695, %v5657_v36 }
 0x98f   : > { %v5543_v56 = vadd.f32 %v5542_v33, %v17719_v5  ;;  %v10529_v33 = vpop.eup %10528 }
 0x990   : > { %10532 = vpow2.f32 %v5682_v4  ;;  %v9631_v4 = vadd.f32 -1.0, %v10527_v16 }
 0x991   : > { %v5571_v41 = vpop.f32.mrf.mxu1  ;;  %v5660_v63 = vmin.f32 %v5543_v56, 0.0  ;;  %vm5644_vm11 = vcmp.gt.f32.partialorder %v5543_v56, 0.0 }
 0x992   : > { %v5572_v3 = vadd.f32 %v5571_v41, %v17719_v5 }
 0x993   : > { %v5688_v35 = vmul.f32 1.442695, %v5660_v63  ;;  %v10531_v13 = vpop.eup %10530 }
 0x994   : > { %v5661_v9 = vmin.f32 %v5572_v3, 0.0  ;;  %v9635_v55 = vadd.f32 -1.0, %v10531_v13  ;;  %vm5645_vm5 = vcmp.gt.f32.partialorder %v5572_v3, 0.0  ;;  %v5716_v13 = vsel %vm5636_vm2, %v14825_v7, %v9631_v4  ;;  %v14855_v7 = vld [vmem:[%s17083_s17] sm:$0xff] }
 0x995   : > { %10534 = vpow2.f32 %v5688_v35 }
 0x996   : > { %v5690_v8 = vmul.f32 1.442695, %v5661_v9  ;;  %v10533_v36 = vpop.eup %10532  ;;  %v5720_v9 = vsel %vm5640_vm12, %v5540_v57, %v9635_v55 }
 0x997   : > { %v9636_v23 = vadd.f32 -1.0, %v10533_v36  ;;  %v14891_v36 = vld [vmem:[%s17083_s17 + $0x20] sm:$0x1] }
 0x998   : > { %10536 = vpow2.f32 %v5690_v8 }
 0x999   : > { %10538 = vpow2.f32 %v5664_v6  ;;  %v9632_v6 = vadd.f32 -1.0, %v10529_v33 }
 0x99a   : > { %10540 = vpow2.f32 %v5666_v34  ;;  %v5721_v34 = vsel %vm5641_vm13, %v5569_v49, %v9636_v23  ;;  %v14873_v49 = vld [vmem:[%s17083_s17 + $0x10] sm:$0xff] }
 0x99b   : > { %v10535_v42 = vpop.eup %10534 }
 0x99c   : > { %v9639_v12 = vadd.f32 -1.0, %v10535_v42 }
 0x99e   : > { %v10537_v41 = vpop.eup %10536  ;;  %v5724_v54 = vsel %vm5644_vm11, %v5543_v56, %v9639_v12  ;;  %v5717_v56 = vsel %vm5637_vm14, %v14828_v58, %v9632_v6  ;;  %v14864_v58 = vld [vmem:[%s17083_s17 + $0x8] sm:$0xff] }
 0x99f   : > { %v10539_v30 = vpop.eup %10538  ;;  %v9640_v43 = vadd.f32 -1.0, %v10537_v41  ;;  %5740 = vmatpush.msrb.mxu0 %v5724_v54 }
 0x9a0   : > { %v10541_v63 = vpop.eup %10540  ;;  %v9627_v35 = vadd.f32 -1.0, %v10539_v30 }
 0x9a1   : > { %v5725_v8 = vsel %vm5645_vm5, %v5572_v3, %v9640_v43  ;;  %5741 = vmatpush.msrb.mxu0 %v5720_v9  ;;  %v9628_v42 = vadd.f32 -1.0, %v10541_v63  ;;  %v14882_v3 = vld [vmem:[%s17083_s17 + $0x18] sm:$0xff] }
 0x9a2   : > { %5772 = vmatpush.msrb.mxu1 %v5725_v8  ;;  %v5712_v55 = vsel %vm5632_vm4, %v14835_v39, %v9627_v35 }
 0x9a3   : > { %5742 = vmatpush.msrb.mxu0 %v5716_v13  ;;  %v5713_v57 = vsel %vm5633_vm0, %v14838_v62, %v9628_v42 }
 0x9a4   : > { %5773 = vmatpush.msrb.mxu1 %v5721_v34 }
 0x9a5   : > { %5743 = vmatpush.msrb.mxu0 %v5712_v55 }
 0x9a6   : > { %5774 = vmatpush.msrb.mxu1 %v5717_v56  ;;  %9643 = vmatmul.msk.f32.vlgmr.msrb.gmra.mxu0 %vm2656_vm15, %v14855_v7 }
 0x9a8   : > { %5775 = vmatpush.msrb.mxu1 %v5713_v57 }
 0x9a9   : > { %9648 = vmatmul.msk.f32.vlgmr.msrb.gmra.mxu1 %vm2656_vm15, %v14855_v7 }
 0x9ae   : > { %9644 = vmatmul.msk.f32.gmra.mxu0 %vm2656_vm15, %v14864_v58 }
 0x9b1   : > { %9649 = vmatmul.msk.f32.gmra.mxu1 %vm2656_vm15, %v14864_v58 }
 0x9b6   : > { %9645 = vmatmul.msk.f32.gmra.mxu0 %vm2656_vm15, %v14873_v49 }
 0x9b9   : > { %9650 = vmatmul.msk.f32.gmra.mxu1 %vm2656_vm15, %v14873_v49 }
 0x9be   : > { %9646 = vmatmul.msk.f32.gmra.mxu0 %vm2656_vm15, %v14882_v3 }
 0x9bf   : > { %v5591_v39 = vpop.f32.mrf.mxu2 }
 0x9c0   : > { %v14908_v8 = vadd.f32 %v5591_v39, %v17718_v28 }
 0x9c1   : > { %9651 = vmatmul.msk.f32.gmra.mxu1 %vm2656_vm15, %v14882_v3 }
 0x9c2   : > { %v5620_v62 = vpop.f32.mrf.mxu3  ;;  %v5650_v56 = vmin.f32 %v14908_v8, 0.0  ;;  %vm5634_vm11 = vcmp.gt.f32.partialorder %v14908_v8, 0.0 }
 0x9c3   : > { %v14911_v9 = vadd.f32 %v5620_v62, %v17718_v28 }
 0x9c4   : > { %v5668_v28 = vmul.f32 1.442695, %v5650_v56 }
 0x9c5   : > { %vm5635_vm5 = vcmp.gt.f32.partialorder %v14911_v9, 0.0 }
 0x9c6   : > { %9647 = vmatmul.msk.f32.gmra.mxu0 %vm2656_vm15, %v14891_v36 }
 0x9c7   : > { %v5594_v16 = vpop.f32.mrf.mxu2 }
 0x9c8   : > { %v14898_v41 = vadd.f32 %v5594_v16, %v17716_v51 }
 0x9c9   : > { %9652 = vmatmul.msk.f32.gmra.mxu1 %vm2656_vm15, %v14891_v36 }
 0x9ca   : > { %v5623_v33 = vpop.f32.mrf.mxu3  ;;  %v5654_v54 = vmin.f32 %v14898_v41, 0.0  ;;  %vm5638_vm9 = vcmp.gt.f32.partialorder %v14898_v41, 0.0 }
 0x9cb   : > { %v14901_v12 = vadd.f32 %v5623_v33, %v17716_v51  ;;  %v5651_v33 = vmin.f32 %v14911_v9, 0.0 }
 0x9cc   : > { %v5676_v34 = vmul.f32 1.442695, %v5654_v54 }
 0x9cd   : > { %v5655_v4 = vmin.f32 %v14901_v12, 0.0  ;;  %vm5639_vm10 = vcmp.gt.f32.partialorder %v14901_v12, 0.0 }
 0x9ce   : > { %10542 = vpow2.f32 %v5676_v34 }
 0x9cf   : > { %v5597_v30 = vpop.f32.mrf.mxu2  ;;  %v5678_v42 = vmul.f32 1.442695, %v5655_v4  ;;  %v5670_v4 = vmul.f32 1.442695, %v5651_v33 }
 0x9d0   : > { %v5598_v43 = vadd.f32 %v5597_v30, %v17717_v19 }
 0x9d1   : > { %10544 = vpow2.f32 %v5678_v42 }
 0x9d2   : > { %v5626_v23 = vpop.f32.mrf.mxu3  ;;  %v5658_v6 = vmin.f32 %v5598_v43, 0.0  ;;  %vm5642_vm7 = vcmp.gt.f32.partialorder %v5598_v43, 0.0 }
 0x9d3   : > { %v5627_v63 = vadd.f32 %v5626_v23, %v17717_v19 }
 0x9d4   : > { %v5684_v55 = vmul.f32 1.442695, %v5658_v6  ;;  %v10543_v6 = vpop.eup %10542 }
 0x9d5   : > { %v5659_v35 = vmin.f32 %v5627_v63, 0.0  ;;  %vm5643_vm8 = vcmp.gt.f32.partialorder %v5627_v63, 0.0 }
 0x9d6   : > { %10546 = vpow2.f32 %v5684_v55 }
 0x9d7   : > { %v5600_v13 = vpop.f32.mrf.mxu2  ;;  %v5686_v30 = vmul.f32 1.442695, %v5659_v35 }
 0x9d8   : > { %v5601_v57 = vadd.f32 %v5600_v13, %v17719_v5  ;;  %v10545_v13 = vpop.eup %10544 }
 0x9d9   : > { %10548 = vpow2.f32 %v5686_v30  ;;  %v9633_v30 = vadd.f32 -1.0, %v10543_v6 }
 0x9da   : > { %v5629_v16 = vpop.f32.mrf.mxu3  ;;  %v5662_v23 = vmin.f32 %v5601_v57, 0.0  ;;  %vm5646_vm1 = vcmp.gt.f32.partialorder %v5601_v57, 0.0 }
 0x9db   : > { %v5630_v39 = vadd.f32 %v5629_v16, %v17719_v5 }
 0x9dc   : > { %v5692_v54 = vmul.f32 1.442695, %v5662_v23  ;;  %v10547_v51 = vpop.eup %10546 }
 0x9dd   : > { %v5663_v62 = vmin.f32 %v5630_v39, 0.0  ;;  %v9637_v5 = vadd.f32 -1.0, %v10547_v51  ;;  %vm5647_vm6 = vcmp.gt.f32.partialorder %v5630_v39, 0.0  ;;  %v5718_v51 = vsel %vm5638_vm9, %v14898_v41, %v9633_v30 }
 0x9de   : > { %10550 = vpow2.f32 %v5692_v54 }
 0x9df   : > { %v5694_v19 = vmul.f32 1.442695, %v5663_v62  ;;  %v10549_v35 = vpop.eup %10548  ;;  %v5722_v62 = vsel %vm5642_vm7, %v5598_v43, %v9637_v5 }
 0x9e0   : > { %v9638_v55 = vadd.f32 -1.0, %v10549_v35 }
 0x9e1   : > { %10552 = vpow2.f32 %v5694_v19 }
 0x9e2   : > { %10554 = vpow2.f32 %v5668_v28  ;;  %v9634_v28 = vadd.f32 -1.0, %v10545_v13 }
 0x9e3   : > { %10556 = vpow2.f32 %v5670_v4  ;;  %v5723_v4 = vsel %vm5643_vm8, %v5627_v63, %v9638_v55 }
 0x9e4   : > { %v10551_v0 = vpop.eup %10550 }
 0x9e5   : > { %v9641_v34 = vadd.f32 -1.0, %v10551_v0 }
 0x9e7   : > { %v10553_v16 = vpop.eup %10552  ;;  %v5726_v33 = vsel %vm5646_vm1, %v5601_v57, %v9641_v34  ;;  %v5719_v57 = vsel %vm5639_vm10, %v14901_v12, %v9634_v28 }
 0x9e8   : > { %v10555_v42 = vpop.eup %10554  ;;  %v9642_v56 = vadd.f32 -1.0, %v10553_v16  ;;  %5804 = vmatpush.msrb.mxu2 %v5726_v33 }
 0x9e9   : > { %v10557_v23 = vpop.eup %10556  ;;  %v9629_v54 = vadd.f32 -1.0, %v10555_v42 }
 0x9ea   : > { %v5727_v19 = vsel %vm5647_vm6, %v5630_v39, %v9642_v56  ;;  %5805 = vmatpush.msrb.mxu2 %v5722_v62  ;;  %v9630_v0 = vadd.f32 -1.0, %v10557_v23 }
 0x9eb   : > { %5836 = vmatpush.msrb.mxu3 %v5727_v19  ;;  %v5714_v5 = vsel %vm5634_vm11, %v14908_v8, %v9629_v54 }
 0x9ec   : > { %5806 = vmatpush.msrb.mxu2 %v5718_v51  ;;  %v5715_v43 = vsel %vm5635_vm5, %v14911_v9, %v9630_v0 }
 0x9ed   : > { %5837 = vmatpush.msrb.mxu3 %v5723_v4 }
 0x9ee   : > { %5807 = vmatpush.msrb.mxu2 %v5714_v5 }
 0x9ef   : > { %5838 = vmatpush.msrb.mxu3 %v5719_v57  ;;  %9653 = vmatmul.msk.f32.vlgmr.msrb.gmra.mxu2 %vm2656_vm15, %v14855_v7 }
 0x9f1   : > { %5839 = vmatpush.msrb.mxu3 %v5715_v43 }
 0x9f2   : > { %9658 = vmatmul.msk.f32.vlgmr.msrb.gmra.mxu3 %vm2656_vm15, %v14855_v7 }
 0x9f7   : > { %9654 = vmatmul.msk.f32.gmra.mxu2 %vm2656_vm15, %v14864_v58 }
 0x9fa   : > { %9659 = vmatmul.msk.f32.gmra.mxu3 %vm2656_vm15, %v14864_v58 }
 0x9ff   : > { %9655 = vmatmul.msk.f32.gmra.mxu2 %vm2656_vm15, %v14873_v49 }
 0xa02   : > { %9660 = vmatmul.msk.f32.gmra.mxu3 %vm2656_vm15, %v14873_v49 }
 0xa07   : > { %9656 = vmatmul.msk.f32.gmra.mxu2 %vm2656_vm15, %v14882_v3 }
 0xa0a   : > { %9661 = vmatmul.msk.f32.gmra.mxu3 %vm2656_vm15, %v14882_v3 }
 0xa0f   : > { %9657 = vmatmul.msk.f32.gmra.mxu2 %vm2656_vm15, %v14891_v36 }
 0xa12   : > { %9662 = vmatmul.msk.f32.gmra.mxu3 %vm2656_vm15, %v14891_v36 }
 0xa23   : > { %v5745_v7 = vpop.f32.mrf.mxu0 }
 0xa24   : > { %v14962_v5 = vadd.f32 %v5745_v7, %v13909_v29 }
 0xa26   : > { %v5777_v58 = vpop.f32.mrf.mxu1 }
 0xa2b   : > { %v5748_v41 = vpop.f32.mrf.mxu0 }
 0xa2c   : > { %v14948_v55 = vadd.f32 %v5748_v41, %v13917_v60 }
 0xa2e   : > { %v5780_v12 = vpop.f32.mrf.mxu1  ;;  %v5880_v54 = vmin.f32 %v14948_v55, 0.0  ;;  %vm5860_vm0 = vcmp.gt.f32.partialorder %v14948_v55, 0.0 }
 0xa30   : > { %v5904_v43 = vmul.f32 1.442695, %v5880_v54 }
 0xa33   : > { %v5751_v63 = vpop.f32.mrf.mxu0 }
 0xa34   : > { %v14951_v33 = vadd.f32 %v5751_v63, %v13924_v27  ;;  %v14968_v63 = vadd.f32 %v5777_v58, %v13909_v29 }
 0xa36   : > { %v5783_v8 = vpop.f32.mrf.mxu1  ;;  %v5884_v0 = vmin.f32 %v14951_v33, 0.0  ;;  %vm5864_vm2 = vcmp.gt.f32.partialorder %v14951_v33, 0.0 }
 0xa37   : > { %v14965_v41 = vadd.f32 %v5783_v8, %v13924_v27 }
 0xa3b   : > { %v5754_v9 = vpop.f32.mrf.mxu0 }
 0xa3c   : > { %v14956_v51 = vadd.f32 %v5754_v9, %v13906_v31  ;;  %v14972_v9 = vadd.f32 %v5780_v12, %v13917_v60 }
 0xa3e   : > { %v5786_v49 = vpop.f32.mrf.mxu1  ;;  %vm5868_vm14 = vcmp.gt.f32.partialorder %v14956_v51, 0.0 }
 0xa3f   : > { %v14959_v57 = vadd.f32 %v5786_v49, %v13906_v31 }
 0xa41   : > { %v5889_v49 = vmin.f32 %v14959_v57, 0.0  ;;  %vm5869_vm4 = vcmp.gt.f32.partialorder %v14959_v57, 0.0 }
 0xa43   : > { %v5757_v39 = vpop.f32.mrf.mxu0  ;;  %v5922_v12 = vmul.f32 1.442695, %v5889_v49 }
 0xa44   : > { %v5758_v6 = vadd.f32 %v5757_v39, %v13903_v48  ;;  %v5912_v39 = vmul.f32 1.442695, %v5884_v0 }
 0xa46   : > { %v5789_v13 = vpop.f32.mrf.mxu1  ;;  %v5892_v35 = vmin.f32 %v5758_v6, 0.0  ;;  %vm5872_vm12 = vcmp.gt.f32.partialorder %v5758_v6, 0.0 }
 0xa47   : > { %v5790_v3 = vadd.f32 %v5789_v13, %v13903_v48 }
 0xa48   : > { %v5928_v34 = vmul.f32 1.442695, %v5892_v35  ;;  %v5885_v35 = vmin.f32 %v14965_v41, 0.0 }
 0xa49   : > { %v5893_v16 = vmin.f32 %v5790_v3, 0.0  ;;  %vm5873_vm13 = vcmp.gt.f32.partialorder %v5790_v3, 0.0 }
 0xa4a   : > { %10558 = vpow2.f32 %v5928_v34 }
 0xa4b   : > { %v5930_v42 = vmul.f32 1.442695, %v5893_v16  ;;  %v5877_v16 = vmin.f32 %v14968_v63, 0.0 }
 0xa4d   : > { %10560 = vpow2.f32 %v5930_v42  ;;  %v5881_v42 = vmin.f32 %v14972_v9, 0.0 }
 0xa50   : > { %v10559_v36 = vpop.eup %10558 }
 0xa51   : > { %v9679_v23 = vadd.f32 -1.0, %v10559_v36 }
 0xa53   : > { %v10561_v56 = vpop.eup %10560  ;;  %v5972_v19 = vsel %vm5872_vm12, %v5758_v6, %v9679_v23  ;;  %v5888_v6 = vmin.f32 %v14956_v51, 0.0  ;;  %v5898_v23 = vmul.f32 1.442695, %v5877_v16  ;;  %vm5865_vm12 = vcmp.gt.f32.partialorder %v14965_v41, 0.0 }
 0xa54   : > { %v9680_v30 = vadd.f32 -1.0, %v10561_v56  ;;  %v9683_v28 = vmul.f32 -1.442695, %v5972_v19  ;;  %v5914_v56 = vmul.f32 1.442695, %v5885_v35 }
 0xa55   : > { %v5920_v58 = vmul.f32 1.442695, %v5888_v6  ;;  %v5906_v19 = vmul.f32 1.442695, %v5881_v42 }
 0xa56   : > { %v5973_v62 = vsel %vm5873_vm13, %v5790_v3, %v9680_v30  ;;  %10562 = vpow2.f32 %v9683_v28  ;;  %v5876_v3 = vmin.f32 %v14962_v5, 0.0  ;;  %vm5861_vm13 = vcmp.gt.f32.partialorder %v14972_v9, 0.0 }
 0xa57   : > { %v9684_v4 = vmul.f32 -1.442695, %v5973_v62 }
 0xa58   : > { %v5896_v36 = vmul.f32 1.442695, %v5876_v3 }
 0xa59   : > { %10564 = vpow2.f32 %v9684_v4 }
 0xa5a   : > { %10566 = vpow2.f32 %v5904_v43 }
 0xa5b   : > { %10568 = vpow2.f32 %v5912_v39 }
 0xa5c   : > { %v10563_v13 = vpop.eup %10562 }
 0xa5d   : > { %v5988_v8 = vadd.f32 1.0, %v10563_v13 }
 0xa5f   : > { %v10565_v7 = vpop.eup %10564  ;;  %10570 = vrcp.f32 %v5988_v8  ;;  %v6003_v3 = vand.u32 2147483648, %v5988_v8  ;;  %v6001_v42 = vand.u32 2147483647, %v5988_v8  ;;  %vm5997_vm7 = vweird.f32 %v5988_v8 }
 0xa60   : > { %v14978_v34 = vadd.f32 1.0, %v10565_v7  ;;  %v10567_v30 = vpop.eup %10566 }
 0xa61   : > { %v10569_v28 = vpop.eup %10568  ;;  %v9667_v39 = vadd.f32 -1.0, %v10567_v30  ;;  %vm6002_vm10 = vcmp.eq.f32.partialorder %v6001_v42, 8.507059e+37 }
 0xa62   : > { %10572 = vrcp.f32 %v14978_v34  ;;  %v9671_v13 = vadd.f32 -1.0, %v10569_v28  ;;  %vm6012_vm8 = vweird.f32 %v14978_v34 }
 0xa63   : > { %10574 = vpow2.f32 %v5920_v58  ;;  %v6018_v58 = vand.u32 2147483648, %v14978_v34 }
 0xa64   : > { %10576 = vpow2.f32 %v5922_v12 }
 0xa65   : > { %10578 = vpow2.f32 %v5896_v36  ;;  %v10571_v62 = vpop.eup %10570 }
 0xa66   : > { %10580 = vpow2.f32 %v5914_v56  ;;  %v5993_v4 = vmul.f32 %v10571_v62, %v5988_v8  ;;  %vm5998_vm1 = vweird.f32 %v10571_v62  ;;  %v6019_v8 = vor.u32 1.1754944e-38, %v6018_v58 }
 0xa67   : > { %10582 = vpow2.f32 %v5898_v23  ;;  %v6016_v23 = vand.u32 2147483647, %v14978_v34  ;;  %vm5999_vm9 = vmor %vm5997_vm7, %vm5998_vm1  ;;  %v5964_v58 = vsel %vm5864_vm2, %v14951_v33, %v9671_v13  ;;  %vm5856_vm2 = vcmp.gt.f32.partialorder %v14962_v5, 0.0 }
 0xa68   : > { %v10573_v54 = vpop.eup %10572  ;;  %10584 = vpow2.f32 %v5906_v19  ;;  %v5994_v6 = vsub.f32 1.0, %v5993_v4  ;;  %v14990_v4 = vld [vmem:[%s11835_s2 + $0x4] sm:$0xf] }
 0xa69   : > { %v6008_v0 = vmul.f32 %v10573_v54, %v14978_v34  ;;  %v10575_v43 = vpop.eup %10574  ;;  %vm6013_vm6 = vweird.f32 %v10573_v54  ;;  %vm6017_vm5 = vcmp.eq.f32.partialorder %v6016_v23, 8.507059e+37 }
 0xa6a   : > { %v10577_v49 = vpop.eup %10576  ;;  %v5995_v16 = vmul.f32 %v10571_v62, %v5994_v6  ;;  %v9675_v36 = vadd.f32 -1.0, %v10575_v43  ;;  %v6004_v6 = vor.u32 1.1754944e-38, %v6003_v3  ;;  %v17345_v43 = vperm.slane %v14990_v4, 1  ;;  %vm6014_vm11 = vmor %vm6012_vm8, %vm6013_vm6 }
 0xa6b   : > { %v6009_v7 = vsub.f32 1.0, %v6008_v0  ;;  %v10579_v35 = vpop.eup %10578  ;;  %v9676_v19 = vadd.f32 -1.0, %v10577_v49 }
 0xa6c   : > { %v10581_v12 = vpop.eup %10580  ;;  %v5996_v28 = vadd.f32 %v10571_v62, %v5995_v16  ;;  %v5968_v49 = vsel %vm5868_vm14, %v14956_v51, %v9675_v36  ;;  %vm5857_vm14 = vcmp.gt.f32.partialorder %v14968_v63, 0.0 }
 0xa6d   : > { %v6010_v56 = vmul.f32 %v10573_v54, %v6009_v7  ;;  %v10583_v30 = vpop.eup %10582  ;;  %v9672_v7 = vadd.f32 -1.0, %v10581_v12  ;;  %v5969_v3 = vsel %vm5869_vm4, %v14959_v57, %v9676_v19  ;;  %v15017_v57 = vadd.f32 %v5968_v49, %v14684_v18  ;;  %v15069_v49 = vld [vmem:[%s17085_s19 + $0x8] sm:$0xff] }
 0xa6e   : > { %v10585_v37 = vpop.eup %10584  ;;  %v6000_v11 = vsel %vm5999_vm9, %v10571_v62, %v5996_v28  ;;  %v17720_v62 = vperm.slane %v14990_v4, 0  ;;  %v9663_v28 = vadd.f32 -1.0, %v10579_v35  ;;  %v5960_v35 = vsel %vm5860_vm0, %v14948_v55, %v9667_v39 }
 0xa6f   : > { %v6011_v1 = vadd.f32 %v10573_v54, %v6010_v56  ;;  %v6005_v16 = vsel %vm6002_vm10, %v6004_v6, %v6000_v11  ;;  %v9668_v34 = vadd.f32 -1.0, %v10585_v37  ;;  %v9664_v37 = vadd.f32 -1.0, %v10583_v30  ;;  %17721 = vst [vmem:[#allocation39_spill] sm:$0xff] %v15017_v57 }
 0xa70   : > { %v6061_v42 = vmul.f32 %v17720_v62, %v6005_v16  ;;  %v5965_v51 = vsel %vm5865_vm12, %v14965_v41, %v9672_v7  ;;  %v15024_v33 = vadd.f32 %v5969_v3, %v14690_v38  ;;  %v15029_v41 = vadd.f32 %v5964_v58, %v14686_v45  ;;  %v15078_v3 = vld [vmem:[%s17085_s19 + $0x10] sm:$0xff] }
 0xa71   : > { %v6015_v0 = vsel %vm6014_vm11, %v10573_v54, %v6011_v1  ;;  %v5961_v36 = vsel %vm5861_vm13, %v14972_v9, %v9668_v34  ;;  %v5956_v23 = vsel %vm5856_vm2, %v14962_v5, %v9663_v28  ;;  %v15035_v55 = vadd.f32 %v5965_v51, %v14692_v26  ;;  %v15089_v51 = vld [vmem:[%s17085_s19 + $0x18] sm:$0xff] }
 0xa72   : > { %v15003_v56 = vpop.f32.mrf.mxu2  ;;  %v6020_v12 = vsel %vm6017_vm5, %v6019_v8, %v6015_v0  ;;  %v6081_v54 = vperm.slane %v6061_v42, 0  ;;  %17722 = vst [vmem:[#allocation40_spill] sm:$0xff] %v15024_v33  ;;  %v5957_v39 = vsel %vm5857_vm14, %v14968_v63, %v9664_v37  ;;  %v15040_v30 = vadd.f32 %v5960_v35, %v14697_v21 }
 0xa73   : > { %v6062_v1 = vmul.f32 %v17345_v43, %v6020_v12  ;;  %17723 = vst [vmem:[#allocation16_spill] sm:$0xff] %v15029_v41  ;;  %v15044_v9 = vadd.f32 %v5961_v36, %v14702_v32  ;;  %v15048_v19 = vadd.f32 %v5956_v23, %v14708_v47  ;;  %v15052_v63 = vadd.f32 %v5957_v39, %v14713_v17  ;;  %v15060_v47 = vld [vmem:[%s17085_s19] sm:$0xff] }
 0xa74   : > { %v6097_v18 = vmul.f32 %v6081_v54, %v15017_v57  ;;  %17724 = vst [vmem:[#allocation38_spill] sm:$0xff] %v15035_v55  ;;  %v6093_v45 = vmul.f32 %v6081_v54, %v15029_v41  ;;  %v6089_v0 = vmul.f32 %v6081_v54, %v15040_v30 }
 0xa75   : > { %v15011_v11 = vpop.f32.mrf.mxu3  ;;  %v6082_v13 = vperm.slane %v6062_v1, 0  ;;  %17725 = vst [vmem:[#allocation53_spill] sm:$0xff] %v15040_v30  ;;  %v6085_v32 = vmul.f32 %v6081_v54, %v15048_v19 }
 0xa76   : > { %6113 = vmatpush.msra.mxu0 %v6097_v18  ;;  %17726 = vst [vmem:[#allocation54_spill] sm:$0xff] %v15044_v9 }
 0xa77   : > { %v6098_v38 = vmul.f32 %v6082_v13, %v15024_v33  ;;  %v6094_v5 = vmul.f32 %v6082_v13, %v15035_v55  ;;  %17727 = vst [vmem:[#allocation51_spill] sm:$0xff] %v15048_v19  ;;  %v6090_v6 = vmul.f32 %v6082_v13, %v15044_v9  ;;  %v6086_v7 = vmul.f32 %v6082_v13, %v15052_v63 }
 0xa78   : > { %6114 = vmatpush.msra.mxu0 %v6093_v45  ;;  %17728 = vst [vmem:[#allocation52_spill] sm:$0xff] %v15052_v63  ;;  %v17359_v19 = vperm.slane %v14990_v4, 2 }
 0xa79   : > { %6142 = vmatpush.msra.mxu1 %v6098_v38 }
 0xa7a   : > { %v5812_v26 = vpop.f32.mrf.mxu2  ;;  %6115 = vmatpush.msra.mxu0 %v6089_v0 }
 0xa7b   : > { %6143 = vmatpush.msra.mxu1 %v6094_v5  ;;  %v15096_v36 = vadd.f32 %v5812_v26, %v13917_v60 }
 0xa7c   : > { %6116 = vmatpush.msra.mxu0 %v6085_v32 }
 0xa7d   : > { %v5844_v21 = vpop.f32.mrf.mxu3  ;;  %6144 = vmatpush.msra.mxu1 %v6090_v6  ;;  %9687 = vmatmul.msk.f32.vlgmr.msra.gmra.mxu0 %vm2656_vm15, %v15060_v47  ;;  %v5882_v0 = vmin.f32 %v15096_v36, 0.0  ;;  %vm5862_vm8 = vcmp.gt.f32.partialorder %v15096_v36, 0.0 }
 0xa7f   : > { %6145 = vmatpush.msra.mxu1 %v6086_v7 }
 0xa80   : > { %9691 = vmatmul.msk.f32.vlgmr.msra.gmra.mxu1 %vm2656_vm15, %v15060_v47 }
 0xa82   : > { %v5815_v17 = vpop.f32.mrf.mxu2 }
 0xa83   : > { %v15099_v23 = vadd.f32 %v5815_v17, %v13924_v27  ;;  %v15111_v17 = vadd.f32 %v15003_v56, %v13909_v29 }
 0xa85   : > { %v5847_v8 = vpop.f32.mrf.mxu3  ;;  %9688 = vmatmul.msk.f32.gmra.mxu0 %vm2656_vm15, %v15069_v49  ;;  %v5886_v32 = vmin.f32 %v15099_v23, 0.0  ;;  %v5878_v56 = vmin.f32 %v15111_v17, 0.0  ;;  %vm5866_vm1 = vcmp.gt.f32.partialorder %v15099_v23, 0.0 }
 0xa88   : > { %9692 = vmatmul.msk.f32.gmra.mxu1 %vm2656_vm15, %v15069_v49 }
 0xa8a   : > { %v5818_v16 = vpop.f32.mrf.mxu2 }
 0xa8b   : > { %v15104_v7 = vadd.f32 %v5818_v16, %v13906_v31 }
 0xa8d   : > { %v5850_v34 = vpop.f32.mrf.mxu3  ;;  %9689 = vmatmul.msk.f32.gmra.mxu0 %vm2656_vm15, %v15078_v3  ;;  %v5890_v16 = vmin.f32 %v15104_v7, 0.0  ;;  %vm5870_vm6 = vcmp.gt.f32.partialorder %v15104_v7, 0.0 }
 0xa8e   : > { %v15107_v26 = vadd.f32 %v5850_v34, %v13906_v31 }
 0xa90   : > { %9693 = vmatmul.msk.f32.gmra.mxu1 %vm2656_vm15, %v15078_v3  ;;  %v5891_v34 = vmin.f32 %v15107_v26, 0.0  ;;  %vm5871_vm7 = vcmp.gt.f32.partialorder %v15107_v26, 0.0 }
 0xa92   : > { %v5821_v62 = vpop.f32.mrf.mxu2 }
 0xa93   : > { %v5822_v42 = vadd.f32 %v5821_v62, %v13903_v48  ;;  %v5908_v62 = vmul.f32 1.442695, %v5882_v0 }
 0xa95   : > { %v5853_v12 = vpop.f32.mrf.mxu3  ;;  %v5894_v58 = vmin.f32 %v5822_v42, 0.0  ;;  %9690 = vmatmul.msk.f32.gmra.mxu0 %vm2656_vm15, %v15089_v51  ;;  %vm5874_vm4 = vcmp.gt.f32.partialorder %v5822_v42, 0.0 }
 0xa96   : > { %v5854_v28 = vadd.f32 %v5853_v12, %v13903_v48  ;;  %v15118_v12 = vadd.f32 %v15011_v11, %v13909_v29  ;;  %v5924_v11 = vmul.f32 1.442695, %v5890_v16 }
 0xa97   : > { %v5932_v37 = vmul.f32 1.442695, %v5894_v58  ;;  %v15122_v58 = vadd.f32 %v5844_v21, %v13917_v60  ;;  %v5900_v21 = vmul.f32 1.442695, %v5878_v56 }
 0xa98   : > { %v5895_v1 = vmin.f32 %v5854_v28, 0.0  ;;  %9694 = vmatmul.msk.f32.gmra.mxu1 %vm2656_vm15, %v15089_v51  ;;  %vm5875_vm0 = vcmp.gt.f32.partialorder %v5854_v28, 0.0 }
 0xa99   : > { %10586 = vpow2.f32 %v5932_v37 }
 0xa9a   : > { %v5934_v54 = vmul.f32 1.442695, %v5895_v1 }
 0xa9c   : > { %10588 = vpow2.f32 %v5934_v54 }
 0xa9f   : > { %v10587_v35 = vpop.eup %10586 }
 0xaa0   : > { %v9681_v18 = vadd.f32 -1.0, %v10587_v35  ;;  %v5879_v35 = vmin.f32 %v15118_v12, 0.0 }
 0xaa2   : > { %v10589_v13 = vpop.eup %10588  ;;  %v5974_v39 = vsel %vm5874_vm4, %v5822_v42, %v9681_v18  ;;  %v15114_v42 = vadd.f32 %v5847_v8, %v13924_v27  ;;  %v5883_v18 = vmin.f32 %v15122_v58, 0.0 }
 0xaa3   : > { %v9682_v38 = vadd.f32 -1.0, %v10589_v13  ;;  %v9685_v45 = vmul.f32 -1.442695, %v5974_v39 }
 0xaa4   : > { %v5887_v8 = vmin.f32 %v15114_v42, 0.0  ;;  %v5910_v0 = vmul.f32 1.442695, %v5883_v18  ;;  %vm5867_vm4 = vcmp.gt.f32.partialorder %v15114_v42, 0.0 }
 0xaa5   : > { %v5975_v5 = vsel %vm5875_vm0, %v5854_v28, %v9682_v38  ;;  %10590 = vpow2.f32 %v9685_v45  ;;  %v5916_v28 = vmul.f32 1.442695, %v5886_v32  ;;  %v5926_v38 = vmul.f32 1.442695, %v5891_v34 }
 0xaa6   : > { %v9686_v6 = vmul.f32 -1.442695, %v5975_v5  ;;  %v5918_v39 = vmul.f32 1.442695, %v5887_v8  ;;  %v5902_v45 = vmul.f32 1.442695, %v5879_v35 }
 0xaa7   : > { %vm5863_vm0 = vcmp.gt.f32.partialorder %v15122_v58, 0.0 }
 0xaa8   : > { %10592 = vpow2.f32 %v9686_v6 }
 0xaa9   : > { %10594 = vpow2.f32 %v5908_v62 }
 0xaaa   : > { %10596 = vpow2.f32 %v5916_v28 }
 0xaab   : > { %v10591_v1 = vpop.eup %10590 }
 0xaac   : > { %v5990_v54 = vadd.f32 1.0, %v10591_v1 }
 0xaae   : > { %v10593_v37 = vpop.eup %10592  ;;  %10598 = vrcp.f32 %v5990_v54  ;;  %v6033_v35 = vand.u32 2147483648, %v5990_v54  ;;  %vm6027_vm11 = vweird.f32 %v5990_v54 }
 0xaaf   : > { %v5991_v13 = vadd.f32 1.0, %v10593_v37  ;;  %v10595_v5 = vpop.eup %10594 }
 0xab0   : > { %v10597_v6 = vpop.eup %10596  ;;  %v9669_v34 = vadd.f32 -1.0, %v10595_v5 }
 0xab1   : > { %10600 = vrcp.f32 %v5991_v13  ;;  %v9673_v8 = vadd.f32 -1.0, %v10597_v6  ;;  %v6046_v43 = vand.u32 2147483647, %v5991_v13  ;;  %vm6042_vm5 = vweird.f32 %v5991_v13 }
 0xab2   : > { %10602 = vpow2.f32 %v5924_v11 }
 0xab3   : > { %10604 = vpow2.f32 %v5926_v38  ;;  %vm6047_vm14 = vcmp.eq.f32.partialorder %v6046_v43, 8.507059e+37 }
 0xab4   : > { %10606 = vpow2.f32 %v5900_v21  ;;  %v10599_v32 = vpop.eup %10598  ;;  %v6048_v21 = vand.u32 2147483648, %v5991_v13 }
 0xab5   : > { %10608 = vpow2.f32 %v5918_v39  ;;  %v6023_v28 = vmul.f32 %v10599_v32, %v5990_v54  ;;  %vm6028_vm9 = vweird.f32 %v10599_v32  ;;  %v6031_v39 = vand.u32 2147483647, %v5990_v54 }
 0xab6   : > { %10610 = vpow2.f32 %v5902_v45  ;;  %vm6029_vm12 = vmor %vm6027_vm11, %vm6028_vm9 }
 0xab7   : > { %v10601_v62 = vpop.eup %10600  ;;  %10612 = vpow2.f32 %v5910_v0  ;;  %v6024_v56 = vsub.f32 1.0, %v6023_v28  ;;  %vm6032_vm13 = vcmp.eq.f32.partialorder %v6031_v39, 8.507059e+37 }
 0xab8   : > { %v6038_v16 = vmul.f32 %v10601_v62, %v5991_v13  ;;  %v10603_v1 = vpop.eup %10602  ;;  %vm6043_vm10 = vweird.f32 %v10601_v62 }
 0xab9   : > { %v10605_v37 = vpop.eup %10604  ;;  %v6025_v38 = vmul.f32 %v10599_v32, %v6024_v56  ;;  %v9677_v5 = vadd.f32 -1.0, %v10603_v1  ;;  %v17358_v56 = vperm.slane %v14990_v4, 3  ;;  %vm6044_vm2 = vmor %vm6042_vm5, %vm6043_vm10  ;;  %v6049_v1 = vor.u32 1.1754944e-38, %v6048_v21 }
 0xaba   : > { %v6039_v11 = vsub.f32 1.0, %v6038_v16  ;;  %v10607_v18 = vpop.eup %10606  ;;  %v9678_v28 = vadd.f32 -1.0, %v10605_v37  ;;  %v6034_v16 = vor.u32 1.1754944e-38, %v6033_v35  ;;  %v5966_v21 = vsel %vm5866_vm1, %v15099_v23, %v9673_v8 }
 0xabb   : > { %v10609_v45 = vpop.eup %10608  ;;  %v6026_v6 = vadd.f32 %v10599_v32, %v6025_v38  ;;  %v5970_v54 = vsel %vm5870_vm6, %v15104_v7, %v9677_v5  ;;  %v9665_v39 = vadd.f32 -1.0, %v10607_v18  ;;  %vm5858_vm1 = vcmp.gt.f32.partialorder %v15111_v17, 0.0 }
 0xabc   : > { %v6040_v0 = vmul.f32 %v10601_v62, %v6039_v11  ;;  %v10611_v63 = vpop.eup %10610  ;;  %v9674_v55 = vadd.f32 -1.0, %v10609_v45  ;;  %v5971_v13 = vsel %vm5871_vm7, %v15107_v26, %v9678_v28  ;;  %v5962_v26 = vsel %vm5862_vm8, %v15096_v36, %v9669_v34 }
 0xabd   : > { %v10613_v9 = vpop.eup %10612  ;;  %v6030_v41 = vsel %vm6029_vm12, %v10599_v32, %v6026_v6  ;;  %v9666_v43 = vadd.f32 -1.0, %v10611_v63  ;;  %v15159_v23 = vadd.f32 %v5971_v13, %v14777_v25  ;;  %vm5859_vm6 = vcmp.gt.f32.partialorder %v15118_v12, 0.0 }
 0xabe   : > { %v6041_v30 = vadd.f32 %v10601_v62, %v6040_v0  ;;  %v6035_v37 = vsel %vm6032_vm13, %v6034_v16, %v6030_v41  ;;  %v9670_v38 = vadd.f32 -1.0, %v10613_v9  ;;  %v15152_v9 = vadd.f32 %v5970_v54, %v14771_v14 }
 0xabf   : > { %v6063_v35 = vmul.f32 %v17359_v19, %v6035_v37  ;;  %17730 = vst [vmem:[#allocation50_spill] sm:$0xff] %v15159_v23  ;;  %v5959_v34 = vsel %vm5859_vm6, %v15118_v12, %v9666_v43  ;;  %v15175_v8 = vadd.f32 %v5962_v26, %v14784_v59 }
 0xac0   : > { %v6045_v11 = vsel %vm6044_vm2, %v10601_v62, %v6041_v30  ;;  %v5967_v30 = vsel %vm5867_vm4, %v15114_v42, %v9674_v55  ;;  %17729 = vst [vmem:[#allocation48_spill] sm:$0xff] %v15152_v9  ;;  %v5963_v63 = vsel %vm5863_vm0, %v15122_v58, %v9670_v38  ;;  %v15164_v55 = vadd.f32 %v5966_v21, %v14773_v50 }
 0xac1   : > { %v6050_v32 = vsel %vm6047_vm14, %v6049_v1, %v6045_v11  ;;  %v6083_v7 = vperm.slane %v6063_v35, 0  ;;  %v5958_v42 = vsel %vm5858_vm1, %v15111_v17, %v9665_v39  ;;  %v15170_v36 = vadd.f32 %v5967_v30, %v14779_v20  ;;  %17733 = vst [vmem:[#allocation99_spill] sm:$0xff] %v15175_v8 }
 0xac2   : > { %v6064_v41 = vmul.f32 %v17358_v56, %v6050_v32  ;;  %17731 = vst [vmem:[#allocation44_spill] sm:$0xff] %v15164_v55  ;;  %v15179_v58 = vadd.f32 %v5963_v63, %v14789_v52  ;;  %v15183_v18 = vadd.f32 %v5958_v42, %v14795_v10  ;;  %v15187_v12 = vadd.f32 %v5959_v34, %v14800_v53  ;;  %v17782_v56 = vld [vmem:[#allocation66_spill] sm:$0xff] }
 0xac3   : > { %v6099_v14 = vmul.f32 %v6083_v7, %v15152_v9  ;;  %17732 = vst [vmem:[#allocation46_spill] sm:$0xff] %v15170_v36  ;;  %v6095_v50 = vmul.f32 %v6083_v7, %v15164_v55  ;;  %v6091_v20 = vmul.f32 %v6083_v7, %v15175_v8 }
 0xac4   : > { %v6084_v62 = vperm.slane %v6064_v41, 0  ;;  %17734 = vst [vmem:[#allocation101_spill] sm:$0xff] %v15179_v58  ;;  %v6087_v45 = vmul.f32 %v6083_v7, %v15183_v18 }
 0xac5   : > { %6171 = vmatpush.msra.mxu2 %v6099_v14  ;;  %17735 = vst [vmem:[#allocation102_spill] sm:$0xff] %v15183_v18 }
 0xac6   : > { %v6100_v25 = vmul.f32 %v6084_v62, %v15159_v23  ;;  %v6096_v17 = vmul.f32 %v6084_v62, %v15170_v36  ;;  %17736 = vst [vmem:[#allocation37_spill] sm:$0xff] %v15187_v12  ;;  %v6092_v59 = vmul.f32 %v6084_v62, %v15179_v58  ;;  %v6088_v52 = vmul.f32 %v6084_v62, %v15187_v12 }
 0xac7   : > { %6172 = vmatpush.msra.mxu2 %v6095_v50 }
 0xac8   : > { %6200 = vmatpush.msra.mxu3 %v6100_v25 }
 0xac9   : > { %6173 = vmatpush.msra.mxu2 %v6091_v20 }
 0xaca   : > { %6201 = vmatpush.msra.mxu3 %v6096_v17 }
 0xacb   : > { %6174 = vmatpush.msra.mxu2 %v6087_v45 }
 0xacc   : > { %6202 = vmatpush.msra.mxu3 %v6092_v59  ;;  %9695 = vmatmul.msk.f32.vlgmr.msra.gmra.mxu2 %vm2656_vm15, %v15060_v47 }
 0xace   : > { %6203 = vmatpush.msra.mxu3 %v6088_v52 }
 0xacf   : > { %9699 = vmatmul.msk.f32.vlgmr.msra.gmra.mxu3 %vm2656_vm15, %v15060_v47 }
 0xad4   : > { %9696 = vmatmul.msk.f32.gmra.mxu2 %vm2656_vm15, %v15069_v49 }
 0xad7   : > { %9700 = vmatmul.msk.f32.gmra.mxu3 %vm2656_vm15, %v15069_v49 }
 0xadc   : > { %9697 = vmatmul.msk.f32.gmra.mxu2 %vm2656_vm15, %v15078_v3 }
 0xadf   : > { %9701 = vmatmul.msk.f32.gmra.mxu3 %vm2656_vm15, %v15078_v3 }
 0xae4   : > { %9698 = vmatmul.msk.f32.gmra.mxu2 %vm2656_vm15, %v15089_v51 }
 0xae7   : > { %9702 = vmatmul.msk.f32.gmra.mxu3 %vm2656_vm15, %v15089_v51 }
 0xafa   : > { %v6118_v10 = vpop.f32.mrf.mxu0 }
 0xafb   : > { %v15219_v54 = vadd.f32 %v6118_v10, %v14223_v61 }
 0xafd   : > { %v6147_v53 = vpop.f32.mrf.mxu1  ;;  %v6233_v39 = vmin.f32 %v15219_v54, 0.0  ;;  %vm6217_vm12 = vcmp.gt.f32.partialorder %v15219_v54, 0.0 }
 0xafe   : > { %v15222_v11 = vadd.f32 %v6147_v53, %v14223_v61 }
 0xaff   : > { %v6249_v14 = vmul.f32 1.442695, %v6233_v39 }
 0xb00   : > { %v6234_v30 = vmin.f32 %v15222_v11, 0.0  ;;  %vm6218_vm13 = vcmp.gt.f32.partialorder %v15222_v11, 0.0 }
 0xb02   : > { %v6121_v47 = vpop.f32.mrf.mxu0  ;;  %v6251_v25 = vmul.f32 1.442695, %v6234_v30  ;;  %v17740_v30 = vld [vmem:[#allocation64_spill] sm:$0xff] }
 0xb03   : > { %v15209_v0 = vadd.f32 %v6121_v47, %v14225_v15 }
 0xb05   : > { %v6150_v5 = vpop.f32.mrf.mxu1  ;;  %v6237_v1 = vmin.f32 %v15209_v0, 0.0  ;;  %vm6221_vm11 = vcmp.gt.f32.partialorder %v15209_v0, 0.0 }
 0xb06   : > { %v15212_v49 = vadd.f32 %v6150_v5, %v14225_v15 }
 0xb07   : > { %v6257_v13 = vmul.f32 1.442695, %v6237_v1 }
 0xb08   : > { %v6238_v51 = vmin.f32 %v15212_v49, 0.0  ;;  %vm6222_vm5 = vcmp.gt.f32.partialorder %v15212_v49, 0.0 }
 0xb09   : > { %10614 = vpow2.f32 %v6257_v13 }
 0xb0a   : > { %v6124_v28 = vpop.f32.mrf.mxu0  ;;  %v6259_v35 = vmul.f32 1.442695, %v6238_v51 }
 0xb0b   : > { %v6125_v6 = vadd.f32 %v6124_v28, %v14230_v2 }
 0xb0c   : > { %10616 = vpow2.f32 %v6259_v35 }
 0xb0d   : > { %v6153_v3 = vpop.f32.mrf.mxu1  ;;  %v6241_v37 = vmin.f32 %v6125_v6, 0.0  ;;  %vm6225_vm9 = vcmp.gt.f32.partialorder %v6125_v6, 0.0 }
 0xb0e   : > { %v6154_v16 = vadd.f32 %v6153_v3, %v14230_v2 }
 0xb0f   : > { %v6265_v21 = vmul.f32 1.442695, %v6241_v37  ;;  %v10615_v50 = vpop.eup %10614 }
 0xb10   : > { %v6242_v38 = vmin.f32 %v6154_v16, 0.0  ;;  %v9707_v51 = vadd.f32 -1.0, %v10615_v50  ;;  %vm6226_vm10 = vcmp.gt.f32.partialorder %v6154_v16, 0.0 }
 0xb11   : > { %10618 = vpow2.f32 %v6265_v21 }
 0xb12   : > { %v6127_v32 = vpop.f32.mrf.mxu0  ;;  %v6267_v7 = vmul.f32 1.442695, %v6242_v38  ;;  %v10617_v17 = vpop.eup %10616  ;;  %v6301_v21 = vsel %vm6221_vm11, %v15209_v0, %v9707_v51  ;;  %v15239_v0 = vld [vmem:[%s17656_s24] sm:$0x1] }
 0xb13   : > { %v6128_v41 = vadd.f32 %v6127_v32, %v14221_v22  ;;  %v9708_v38 = vadd.f32 -1.0, %v10617_v17  ;;  %v15292_v17 = vld [vmem:[%s17535_s21 + $0x20] sm:$0xff] }
 0xb14   : > { %10620 = vpow2.f32 %v6267_v7  ;;  %v17742_v7 = vld [vmem:[#allocation61_spill] sm:$0xff] }
 0xb15   : > { %v6156_v43 = vpop.f32.mrf.mxu1  ;;  %v6245_v62 = vmin.f32 %v6128_v41, 0.0  ;;  %vm6229_vm7 = vcmp.gt.f32.partialorder %v6128_v41, 0.0 }
 0xb16   : > { %v6157_v26 = vadd.f32 %v6156_v43, %v14221_v22  ;;  %v17739_v43 = vld [vmem:[#allocation62_spill] sm:$0xff] }
 0xb17   : > { %v6273_v42 = vmul.f32 1.442695, %v6245_v62  ;;  %v10619_v20 = vpop.eup %10618  ;;  %v17744_v62 = vld [vmem:[#allocation56_spill] sm:$0xff] }
 0xb18   : > { %v6246_v63 = vmin.f32 %v6157_v26, 0.0  ;;  %v9711_v53 = vadd.f32 -1.0, %v10619_v20  ;;  %vm6230_vm8 = vcmp.gt.f32.partialorder %v6157_v26, 0.0 }
 0xb19   : > { %10622 = vpow2.f32 %v6273_v42  ;;  %v15274_v42 = vld [vmem:[%s17535_s21 + $0x10] sm:$0xff] }
 0xb1a   : > { %v6275_v34 = vmul.f32 1.442695, %v6246_v63  ;;  %v10621_v59 = vpop.eup %10620  ;;  %v6305_v13 = vsel %vm6225_vm9, %v6125_v6, %v9711_v53  ;;  %v15256_v63 = vld [vmem:[%s17535_s21] sm:$0xff] }
 0xb1b   : > { %v9712_v28 = vadd.f32 -1.0, %v10621_v59 }
 0xb1c   : > { %10624 = vpow2.f32 %v6275_v34 }
 0xb1d   : > { %10626 = vpow2.f32 %v6249_v14  ;;  %v6306_v32 = vsel %vm6226_vm10, %v6154_v16, %v9712_v28  ;;  %v15265_v14 = vld [vmem:[%s17535_s21 + $0x8] sm:$0xff] }
 0xb1e   : > { %10628 = vpow2.f32 %v6251_v25  ;;  %v15283_v25 = vld [vmem:[%s17535_s21 + $0x18] sm:$0xff] }
 0xb1f   : > { %v10623_v45 = vpop.eup %10622 }
 0xb20   : > { %v9715_v10 = vadd.f32 -1.0, %v10623_v45  ;;  %v15301_v45 = vld [vmem:[%s17535_s21 + $0x28] sm:$0xff] }
 0xb22   : > { %v10625_v52 = vpop.eup %10624  ;;  %v6309_v1 = vsel %vm6229_vm7, %v6128_v41, %v9715_v10  ;;  %v6302_v41 = vsel %vm6222_vm5, %v15212_v49, %v9708_v38  ;;  %v17737_v49 = vld [vmem:[#allocation36_spill] sm:$0xff] }
 0xb23   : > { %v10627_v47 = vpop.eup %10626  ;;  %v9716_v5 = vadd.f32 -1.0, %v10625_v52  ;;  %6325 = vmatpush.msrb.mxu0 %v6309_v1  ;;  %v15325_v38 = vld [vmem:[%s17535_s21 + $0x30] sm:$0xff] }
 0xb24   : > { %v10629_v3 = vpop.eup %10628  ;;  %v9703_v35 = vadd.f32 -1.0, %v10627_v47 }
 0xb25   : > { %v6310_v37 = vsel %vm6230_vm8, %v6157_v26, %v9716_v5  ;;  %6326 = vmatpush.msrb.mxu0 %v6305_v13  ;;  %v9704_v39 = vadd.f32 -1.0, %v10629_v3  ;;  %v17743_v26 = vld [vmem:[#allocation17_spill] sm:$0xff] }
 0xb26   : > { %6345 = vmatpush.msrb.mxu1 %v6310_v37  ;;  %v6297_v6 = vsel %vm6217_vm12, %v15219_v54, %v9703_v35  ;;  %v17738_v54 = vld [vmem:[#allocation68_spill] sm:$0xff] }
 0xb27   : > { %6327 = vmatpush.msrb.mxu0 %v6301_v21  ;;  %v6298_v16 = vsel %vm6218_vm13, %v15222_v11, %v9704_v39  ;;  %v17741_v11 = vld [vmem:[#allocation60_spill] sm:$0xff] }
 0xb28   : > { %6346 = vmatpush.msrb.mxu1 %v6306_v32 }
 0xb29   : > { %6328 = vmatpush.msrb.mxu0 %v6297_v6 }
 0xb2a   : > { %6347 = vmatpush.msrb.mxu1 %v6302_v41  ;;  %9719 = vmatmul.msk.f32.vlgmr.msrb.gmra.mxu0 %vm2656_vm15, %v15239_v0 }
 0xb2b   : > { %6485 = vmatpush.msra.mxu0 %v17737_v49 }
 0xb2c   : > { %6348 = vmatpush.msrb.mxu1 %v6298_v16 }
 0xb2d   : > { %9720 = vmatmul.msk.f32.vlgmr.msrb.gmra.mxu1 %vm2656_vm15, %v15239_v0  ;;  %6486 = vmatpush.msra.mxu0 %v17739_v43 }
 0xb2e   : > { %6526 = vmatpush.msra.mxu1 %v17738_v54 }
 0xb2f   : > { %6487 = vmatpush.msra.mxu0 %v17741_v11 }
 0xb30   : > { %6527 = vmatpush.msra.mxu1 %v17740_v30 }
 0xb31   : > { %6488 = vmatpush.msra.mxu0 %v17743_v26 }
 0xb32   : > { %6528 = vmatpush.msra.mxu1 %v17742_v7  ;;  %9727 = vmatmul.msk.f32.vlgmr.msra.gmra.mxu0 %vm2656_vm15, %v15256_v63 }
 0xb34   : > { %6529 = vmatpush.msra.mxu1 %v17744_v62 }
 0xb35   : > { %9735 = vmatmul.msk.f32.vlgmr.msra.gmra.mxu1 %vm2656_vm15, %v15256_v63 }
 0xb3a   : > { %9728 = vmatmul.msk.f32.gmra.mxu0 %vm2656_vm15, %v15265_v14 }
 0xb3d   : > { %9736 = vmatmul.msk.f32.gmra.mxu1 %vm2656_vm15, %v15265_v14 }
 0xb42   : > { %9729 = vmatmul.msk.f32.gmra.mxu0 %vm2656_vm15, %v15274_v42 }
 0xb45   : > { %9737 = vmatmul.msk.f32.gmra.mxu1 %vm2656_vm15, %v15274_v42 }
 0xb4a   : > { %9730 = vmatmul.msk.f32.gmra.mxu0 %vm2656_vm15, %v15283_v25 }
 0xb4d   : > { %9738 = vmatmul.msk.f32.gmra.mxu1 %vm2656_vm15, %v15283_v25 }
 0xb4f   : > { %v6176_v34 = vpop.f32.mrf.mxu2 }
 0xb50   : > { %v15320_v51 = vadd.f32 %v6176_v34, %v14223_v61  ;;  %v15342_v34 = vld [vmem:[%s17535_s21 + $0x38] sm:$0xff] }
 0xb52   : > { %v6205_v50 = vpop.f32.mrf.mxu3  ;;  %9731 = vmatmul.msk.f32.gmra.mxu0 %vm2656_vm15, %v15292_v17  ;;  %v6235_v41 = vmin.f32 %v15320_v51, 0.0  ;;  %vm6219_vm7 = vcmp.gt.f32.partialorder %v15320_v51, 0.0 }
 0xb53   : > { %v15330_v13 = vadd.f32 %v6205_v50, %v14223_v61 }
 0xb54   : > { %v6253_v26 = vmul.f32 1.442695, %v6235_v41 }
 0xb55   : > { %9739 = vmatmul.msk.f32.gmra.mxu1 %vm2656_vm15, %v15292_v17  ;;  %v6236_v54 = vmin.f32 %v15330_v13, 0.0  ;;  %vm6220_vm8 = vcmp.gt.f32.partialorder %v15330_v13, 0.0 }
 0xb57   : > { %v6179_v20 = vpop.f32.mrf.mxu2  ;;  %v6255_v50 = vmul.f32 1.442695, %v6236_v54 }
 0xb58   : > { %v15308_v52 = vadd.f32 %v6179_v20, %v14225_v15 }
 0xb5a   : > { %v6208_v59 = vpop.f32.mrf.mxu3  ;;  %9732 = vmatmul.msk.f32.gmra.mxu0 %vm2656_vm15, %v15301_v45  ;;  %v6239_v3 = vmin.f32 %v15308_v52, 0.0  ;;  %vm6223_vm1 = vcmp.gt.f32.partialorder %v15308_v52, 0.0 }
 0xb5b   : > { %v15311_v10 = vadd.f32 %v6208_v59, %v14225_v15 }
 0xb5c   : > { %v6261_v32 = vmul.f32 1.442695, %v6239_v3 }
 0xb5d   : > { %9740 = vmatmul.msk.f32.gmra.mxu1 %vm2656_vm15, %v15301_v45  ;;  %v6240_v1 = vmin.f32 %v15311_v10, 0.0  ;;  %vm6224_vm6 = vcmp.gt.f32.partialorder %v15311_v10, 0.0 }
 0xb5e   : > { %10630 = vpow2.f32 %v6261_v32 }
 0xb5f   : > { %v6182_v53 = vpop.f32.mrf.mxu2  ;;  %v6263_v39 = vmul.f32 1.442695, %v6240_v1 }
 0xb60   : > { %v6183_v47 = vadd.f32 %v6182_v53, %v14230_v2 }
 0xb61   : > { %10632 = vpow2.f32 %v6263_v39 }
 0xb62   : > { %v6211_v5 = vpop.f32.mrf.mxu3  ;;  %v6243_v37 = vmin.f32 %v6183_v47, 0.0  ;;  %9733 = vmatmul.msk.f32.gmra.mxu0 %vm2656_vm15, %v15325_v38  ;;  %vm6227_vm4 = vcmp.gt.f32.partialorder %v6183_v47, 0.0 }
 0xb63   : > { %v15315_v28 = vadd.f32 %v6211_v5, %v14230_v2 }
 0xb64   : > { %v6269_v6 = vmul.f32 1.442695, %v6243_v37  ;;  %v10631_v59 = vpop.eup %10630 }
 0xb65   : > { %v6244_v35 = vmin.f32 %v15315_v28, 0.0  ;;  %9741 = vmatmul.msk.f32.gmra.mxu1 %vm2656_vm15, %v15325_v38  ;;  %v9709_v54 = vadd.f32 -1.0, %v10631_v59  ;;  %vm6228_vm0 = vcmp.gt.f32.partialorder %v15315_v28, 0.0  ;;  %v17748_v59 = vld [vmem:[#allocation71_spill] sm:$0xff] }
 0xb66   : > { %10634 = vpow2.f32 %v6269_v6 }
 0xb67   : > { %v6185_v21 = vpop.f32.mrf.mxu2  ;;  %v6271_v43 = vmul.f32 1.442695, %v6244_v35  ;;  %v10633_v53 = vpop.eup %10632 }
 0xb68   : > { %v6186_v16 = vadd.f32 %v6185_v21, %v14221_v22 }
 0xb69   : > { %10636 = vpow2.f32 %v6271_v43 }
 0xb6a   : > { %v6214_v49 = vpop.f32.mrf.mxu3  ;;  %v6247_v11 = vmin.f32 %v6186_v16, 0.0  ;;  %9734 = vmatmul.msk.f32.gmra.mxu0 %vm2656_vm15, %v15342_v34  ;;  %vm6231_vm2 = vcmp.gt.f32.partialorder %v6186_v16, 0.0 }
 0xb6b   : > { %v6215_v30 = vadd.f32 %v6214_v49, %v14221_v22 }
 0xb6c   : > { %v6277_v62 = vmul.f32 1.442695, %v6247_v11  ;;  %v10635_v5 = vpop.eup %10634  ;;  %v9710_v11 = vadd.f32 -1.0, %v10633_v53  ;;  %v17750_v53 = vld [vmem:[#allocation70_spill] sm:$0xff] }
 0xb6d   : > { %v6248_v7 = vmin.f32 %v6215_v30, 0.0  ;;  %9742 = vmatmul.msk.f32.gmra.mxu1 %vm2656_vm15, %v15342_v34  ;;  %v9713_v32 = vadd.f32 -1.0, %v10635_v5  ;;  %vm6232_vm14 = vcmp.gt.f32.partialorder %v6215_v30, 0.0  ;;  %v17752_v5 = vld [vmem:[#allocation65_spill] sm:$0xff] }
 0xb6e   : > { %10638 = vpow2.f32 %v6277_v62 }
 0xb6f   : > { %v6279_v20 = vmul.f32 1.442695, %v6248_v7  ;;  %v10637_v3 = vpop.eup %10636  ;;  %v6307_v7 = vsel %vm6227_vm4, %v6183_v47, %v9713_v32 }
 0xb70   : > { %v9714_v41 = vadd.f32 -1.0, %v10637_v3 }
 0xb71   : > { %10640 = vpow2.f32 %v6279_v20  ;;  %v17747_v20 = vld [vmem:[#allocation30_spill] sm:$0xff] }
 0xb72   : > { %10642 = vpow2.f32 %v6253_v26  ;;  %v6308_v62 = vsel %vm6228_vm0, %v15315_v28, %v9714_v41 }
 0xb73   : > { %10644 = vpow2.f32 %v6255_v50 }
 0xb74   : > { %v10639_v1 = vpop.eup %10638 }
 0xb75   : > { %v9717_v35 = vadd.f32 -1.0, %v10639_v1 }
 0xb77   : > { %v10641_v37 = vpop.eup %10640  ;;  %v6311_v49 = vsel %vm6231_vm2, %v6186_v16, %v9717_v35  ;;  %v6303_v16 = vsel %vm6223_vm1, %v15308_v52, %v9709_v54  ;;  %v17745_v52 = vld [vmem:[#allocation72_spill] sm:$0xff] }
 0xb78   : > { %v10643_v39 = vpop.eup %10642  ;;  %v9718_v21 = vadd.f32 -1.0, %v10641_v37  ;;  %6365 = vmatpush.msrb.mxu2 %v6311_v49 }
 0xb79   : > { %v10645_v6 = vpop.eup %10644  ;;  %v9705_v26 = vadd.f32 -1.0, %v10643_v39 }
 0xb7a   : > { %v6312_v43 = vsel %vm6232_vm14, %v6215_v30, %v9718_v21  ;;  %6366 = vmatpush.msrb.mxu2 %v6307_v7  ;;  %v9706_v50 = vadd.f32 -1.0, %v10645_v6  ;;  %v6304_v30 = vsel %vm6224_vm6, %v15311_v10, %v9710_v11  ;;  %v17746_v10 = vld [vmem:[#allocation73_spill] sm:$0xff] }
 0xb7b   : > { %6385 = vmatpush.msrb.mxu3 %v6312_v43  ;;  %v6299_v47 = vsel %vm6219_vm7, %v15320_v51, %v9705_v26  ;;  %v17749_v51 = vld [vmem:[#allocation67_spill] sm:$0xff]  ;;  %v17753_v7 = vld [vmem:[#allocation97_spill] sm:$0xff] }
 0xb7c   : > { %6367 = vmatpush.msrb.mxu2 %v6303_v16  ;;  %v6300_v28 = vsel %vm6220_vm8, %v15330_v13, %v9706_v50  ;;  %v17751_v13 = vld [vmem:[#allocation63_spill] sm:$0xff] }
 0xb7d   : > { %6386 = vmatpush.msrb.mxu3 %v6308_v62  ;;  %v17754_v62 = vld [vmem:[#allocation98_spill] sm:$0xff] }
 0xb7e   : > { %6368 = vmatpush.msrb.mxu2 %v6299_v47 }
 0xb7f   : > { %6387 = vmatpush.msrb.mxu3 %v6304_v30  ;;  %9721 = vmatmul.msk.f32.vlgmr.msrb.gmra.mxu2 %vm2656_vm15, %v15239_v0 }
 0xb80   : > { %6567 = vmatpush.msra.mxu2 %v17745_v52 }
 0xb81   : > { %6388 = vmatpush.msrb.mxu3 %v6300_v28  ;;  %v17757_v28 = vld [vmem:[#allocation88_spill] sm:$0xff] }
 0xb82   : > { %9722 = vmatmul.msk.f32.vlgmr.msrb.gmra.mxu3 %vm2656_vm15, %v15239_v0  ;;  %6568 = vmatpush.msra.mxu2 %v17747_v20 }
 0xb83   : > { %6608 = vmatpush.msra.mxu3 %v17746_v10  ;;  %v17758_v10 = vld [vmem:[#allocation94_spill] sm:$0xff] }
 0xb84   : > { %6569 = vmatpush.msra.mxu2 %v17749_v51 }
 0xb85   : > { %6609 = vmatpush.msra.mxu3 %v17748_v59 }
 0xb86   : > { %6570 = vmatpush.msra.mxu2 %v17751_v13 }
 0xb87   : > { %6610 = vmatpush.msra.mxu3 %v17750_v53  ;;  %9743 = vmatmul.msk.f32.vlgmr.msra.gmra.mxu2 %vm2656_vm15, %v15256_v63  ;;  %v17759_v53 = vld [vmem:[#allocation91_spill] sm:$0xff] }
 0xb89   : > { %6611 = vmatpush.msra.mxu3 %v17752_v5 }
 0xb8a   : > { %9751 = vmatmul.msk.f32.vlgmr.msra.gmra.mxu3 %vm2656_vm15, %v15256_v63 }
 0xb8f   : > { %9744 = vmatmul.msk.f32.gmra.mxu2 %vm2656_vm15, %v15265_v14 }
 0xb92   : > { %9752 = vmatmul.msk.f32.gmra.mxu3 %vm2656_vm15, %v15265_v14 }
 0xb97   : > { %9745 = vmatmul.msk.f32.gmra.mxu2 %vm2656_vm15, %v15274_v42 }
 0xb9a   : > { %9753 = vmatmul.msk.f32.gmra.mxu3 %vm2656_vm15, %v15274_v42 }
 0xb9f   : > { %9746 = vmatmul.msk.f32.gmra.mxu2 %vm2656_vm15, %v15283_v25 }
 0xba2   : > { %9754 = vmatmul.msk.f32.gmra.mxu3 %vm2656_vm15, %v15283_v25 }
 0xba7   : > { %9747 = vmatmul.msk.f32.gmra.mxu2 %vm2656_vm15, %v15292_v17  ;;  %v15390_v0 = vpop.f32.mrf.mxu0 }
 0xbaa   : > { %9755 = vmatmul.msk.f32.gmra.mxu3 %vm2656_vm15, %v15292_v17  ;;  %v15392_v63 = vpop.f32.mrf.mxu1 }
 0xbaf   : > { %9748 = vmatmul.msk.f32.gmra.mxu2 %vm2656_vm15, %v15301_v45  ;;  %v6490_v14 = vpop.f32.mrf.mxu0 }
 0xbb2   : > { %9756 = vmatmul.msk.f32.gmra.mxu3 %vm2656_vm15, %v15301_v45  ;;  %v6531_v42 = vpop.f32.mrf.mxu1 }
 0xbb3   : > { %v15435_v52 = vadd.f32 %v6531_v42, %v17757_v28 }
 0xbb7   : > { %9749 = vmatmul.msk.f32.gmra.mxu2 %vm2656_vm15, %v15325_v38  ;;  %v6493_v25 = vpop.f32.mrf.mxu0 }
 0xbba   : > { %9757 = vmatmul.msk.f32.gmra.mxu3 %vm2656_vm15, %v15325_v38  ;;  %v6534_v17 = vpop.f32.mrf.mxu1 }
 0xbbf   : > { %9750 = vmatmul.msk.f32.gmra.mxu2 %vm2656_vm15, %v15342_v34  ;;  %v6496_v3 = vpop.f32.mrf.mxu0 }
 0xbc0   : > { %v15441_v13 = vadd.f32 %v6496_v3, %v17759_v53 }
 0xbc2   : > { %9758 = vmatmul.msk.f32.gmra.mxu3 %vm2656_vm15, %v15342_v34  ;;  %v6537_v1 = vpop.f32.mrf.mxu1  ;;  %vm6677_vm1 = vcmp.gt.f32.partialorder %v15441_v13, 0.0 }
 0xbc7   : > { %v6499_v37 = vpop.f32.mrf.mxu0 }
 0xbca   : > { %v6540_v45 = vpop.f32.mrf.mxu1 }
 0xbcb   : > { %v15438_v20 = vadd.f32 %v6540_v45, %v17758_v10 }
 0xbcd   : > { %vm6682_vm0 = vcmp.gt.f32.partialorder %v15438_v20, 0.0 }
 0xbcf   : > { %v6502_v35 = vpop.f32.mrf.mxu0 }
 0xbd0   : > { %v15421_v26 = vadd.f32 %v6502_v35, %v17753_v7 }
 0xbd2   : > { %v6543_v32 = vpop.f32.mrf.mxu1  ;;  %v6717_v5 = vmin.f32 %v15421_v26, 0.0  ;;  %vm6685_vm2 = vcmp.gt.f32.partialorder %v15421_v26, 0.0 }
 0xbd4   : > { %v6765_v28 = vmul.f32 1.442695, %v6717_v5 }
 0xbd7   : > { %v6505_v39 = vpop.f32.mrf.mxu0 }
 0xbd8   : > { %v15407_v41 = vadd.f32 %v6505_v39, %v13244_v40 }
 0xbda   : > { %v6546_v21 = vpop.f32.mrf.mxu1  ;;  %v6721_v43 = vmin.f32 %v15407_v41, 0.0  ;;  %vm6689_vm12 = vcmp.gt.f32.partialorder %v15407_v41, 0.0 }
 0xbdb   : > { %v15410_v38 = vadd.f32 %v6546_v21, %v17677_v46  ;;  %v15425_v46 = vadd.f32 %v6543_v32, %v17754_v62  ;;  %v17761_v21 = vld [vmem:[#allocation92_spill] sm:$0xff]  ;;  %v17764_v62 = vld [vmem:[#allocation90_spill] sm:$0xff] }
 0xbdc   : > { %v6773_v30 = vmul.f32 1.442695, %v6721_v43  ;;  %v17763_v43 = vld [vmem:[#allocation89_spill] sm:$0xff] }
 0xbdd   : > { %v6722_v11 = vmin.f32 %v15410_v38, 0.0  ;;  %v6718_v42 = vmin.f32 %v15425_v46, 0.0  ;;  %vm6690_vm13 = vcmp.gt.f32.partialorder %v15410_v38, 0.0  ;;  %vm6686_vm14 = vcmp.gt.f32.partialorder %v15425_v46, 0.0 }
 0xbde   : > { %10646 = vpow2.f32 %v6773_v30 }
 0xbdf   : > { %v6508_v6 = vpop.f32.mrf.mxu0  ;;  %v6775_v59 = vmul.f32 1.442695, %v6722_v11  ;;  %v15451_v11 = vadd.f32 %v6493_v25, %v17763_v43  ;;  %v6767_v25 = vmul.f32 1.442695, %v6718_v42 }
 0xbe0   : > { %v15413_v49 = vadd.f32 %v6508_v6, %v17675_v24  ;;  %v17755_v24 = vld [vmem:[#allocation93_spill] sm:$0xff] }
 0xbe1   : > { %v15429_v16 = vadd.f32 %v6499_v37, %v17755_v24  ;;  %v17760_v37 = vld [vmem:[#allocation25_spill] sm:$0xff]  ;;  %v6714_v24 = vmin.f32 %v15438_v20, 0.0  ;;  %10648 = vpow2.f32 %v6775_v59  ;;  %v6705_v30 = vmin.f32 %v15451_v11, 0.0 }
 0xbe2   : > { %v6549_v54 = vpop.f32.mrf.mxu1  ;;  %v6725_v40 = vmin.f32 %v15413_v49, 0.0  ;;  %vm6693_vm11 = vcmp.gt.f32.partialorder %v15413_v49, 0.0  ;;  %vm6673_vm7 = vcmp.gt.f32.partialorder %v15451_v11, 0.0 }
 0xbe3   : > { %v15416_v34 = vadd.f32 %v6549_v54, %v17676_v44  ;;  %v17756_v44 = vld [vmem:[#allocation87_spill] sm:$0xff]  ;;  %v17762_v54 = vld [vmem:[#allocation24_spill] sm:$0xff]  ;;  %v6713_v3 = vmin.f32 %v15429_v16, 0.0  ;;  %vm6681_vm4 = vcmp.gt.f32.partialorder %v15429_v16, 0.0 }
 0xbe4   : > { %v15432_v47 = vadd.f32 %v6490_v14, %v17756_v44  ;;  %v6781_v35 = vmul.f32 1.442695, %v6725_v40  ;;  %v15446_v14 = vadd.f32 %v6537_v1, %v17761_v21  ;;  %v15455_v40 = vadd.f32 %v6534_v17, %v17764_v62  ;;  %v10647_v59 = vpop.eup %10646 }
 0xbe5   : > { %v6726_v50 = vmin.f32 %v15416_v34, 0.0  ;;  %v6709_v44 = vmin.f32 %v15441_v13, 0.0  ;;  %v6757_v53 = vmul.f32 1.442695, %v6713_v3  ;;  %vm6694_vm5 = vcmp.gt.f32.partialorder %v15416_v34, 0.0 }
 0xbe6   : > { %10650 = vpow2.f32 %v6781_v35  ;;  %v6710_v10 = vmin.f32 %v15446_v14, 0.0  ;;  %v6706_v17 = vmin.f32 %v15455_v40, 0.0  ;;  %v6702_v35 = vmin.f32 %v15435_v52, 0.0 }
 0xbe7   : > { %v6511_v51 = vpop.f32.mrf.mxu0  ;;  %v6783_v6 = vmul.f32 1.442695, %v6726_v50  ;;  %v6749_v21 = vmul.f32 1.442695, %v6709_v44  ;;  %v10649_v5 = vpop.eup %10648  ;;  %vm6678_vm6 = vcmp.gt.f32.partialorder %v15446_v14, 0.0  ;;  %vm6674_vm8 = vcmp.gt.f32.partialorder %v15455_v40, 0.0 }
 0xbe8   : > { %v6665_v32 = vadd.f32 %v6511_v51, %v17760_v37  ;;  %v6759_v37 = vmul.f32 1.442695, %v6714_v24  ;;  %v6743_v3 = vmul.f32 1.442695, %v6706_v17 }
 0xbe9   : > { %10652 = vpow2.f32 %v6783_v6  ;;  %v6741_v6 = vmul.f32 1.442695, %v6705_v30 }
 0xbea   : > { %v6552_v39 = vpop.f32.mrf.mxu1  ;;  %v6729_v7 = vmin.f32 %v6665_v32, 0.0  ;;  %vm6697_vm9 = vcmp.gt.f32.partialorder %v6665_v32, 0.0 }
 0xbeb   : > { %v6666_v45 = vadd.f32 %v6552_v39, %v17762_v54  ;;  %v6701_v39 = vmin.f32 %v15432_v47, 0.0  ;;  %v6751_v54 = vmul.f32 1.442695, %v6710_v10 }
 0xbec   : > { %v6789_v50 = vmul.f32 1.442695, %v6729_v7  ;;  %v10651_v42 = vpop.eup %10650 }
 0xbed   : > { %v6730_v1 = vmin.f32 %v6666_v45, 0.0  ;;  %v6733_v62 = vmul.f32 1.442695, %v6701_v39  ;;  %v9783_v44 = vadd.f32 -1.0, %v10651_v42  ;;  %vm6698_vm10 = vcmp.gt.f32.partialorder %v6666_v45, 0.0 }
 0xbee   : > { %10654 = vpow2.f32 %v6789_v50  ;;  %v9780_v39 = vadd.f32 -1.0, %v10649_v5 }
 0xbef   : > { %v6791_v51 = vmul.f32 1.442695, %v6730_v1  ;;  %v10653_v43 = vpop.eup %10652  ;;  %v6735_v1 = vmul.f32 1.442695, %v6702_v35  ;;  %v6853_v35 = vsel %vm6693_vm11, %v15413_v49, %v9783_v44 }
 0xbf0   : > { %v9784_v10 = vadd.f32 -1.0, %v10653_v43  ;;  %v6850_v49 = vsel %vm6690_vm13, %v15410_v38, %v9780_v39  ;;  %v15517_v39 = vld [vmem:[%s17620_s13 + $0x10] sm:$0xff] }
 0xbf1   : > { %10656 = vpow2.f32 %v6791_v51 }
 0xbf2   : > { %10658 = vpow2.f32 %v6765_v28 }
 0xbf3   : > { %10660 = vpow2.f32 %v6767_v25 }
 0xbf4   : > { %10662 = vpow2.f32 %v6757_v53  ;;  %v10655_v7 = vpop.eup %10654  ;;  %v9779_v53 = vadd.f32 -1.0, %v10647_v59 }
 0xbf5   : > { %10664 = vpow2.f32 %v6759_v37  ;;  %v9787_v50 = vadd.f32 -1.0, %v10655_v7 }
 0xbf6   : > { %10666 = vpow2.f32 %v6749_v21 }
 0xbf7   : > { %v10657_v24 = vpop.eup %10656  ;;  %10668 = vpow2.f32 %v6751_v54  ;;  %v6857_v30 = vsel %vm6697_vm9, %v6665_v32, %v9787_v50  ;;  %v6854_v32 = vsel %vm6694_vm5, %v15416_v34, %v9784_v10  ;;  %vm6669_vm9 = vcmp.gt.f32.partialorder %v15432_v47, 0.0 }
 0xbf8   : > { %v10659_v28 = vpop.eup %10658  ;;  %10670 = vpow2.f32 %v6741_v6  ;;  %v9788_v51 = vadd.f32 -1.0, %v10657_v24  ;;  %6869 = vmatpush.msrb.mxu0 %v6857_v30 }
 0xbf9   : > { %v10661_v25 = vpop.eup %10660  ;;  %10672 = vpow2.f32 %v6743_v3  ;;  %v9775_v54 = vadd.f32 -1.0, %v10659_v28 }
 0xbfa   : > { %v10663_v17 = vpop.eup %10662  ;;  %10674 = vpow2.f32 %v6733_v62  ;;  %v6858_v37 = vsel %vm6698_vm10, %v6666_v45, %v9788_v51  ;;  %6870 = vmatpush.msrb.mxu0 %v6853_v35  ;;  %v9776_v59 = vadd.f32 -1.0, %v10661_v25  ;;  %v6849_v45 = vsel %vm6689_vm12, %v15407_v41, %v9779_v53 }
 0xbfb   : > { %v10665_v21 = vpop.eup %10664  ;;  %10676 = vpow2.f32 %v6735_v1  ;;  %6898 = vmatpush.msrb.mxu1 %v6858_v37  ;;  %v9771_v5 = vadd.f32 -1.0, %v10663_v17  ;;  %v6845_v34 = vsel %vm6685_vm2, %v15421_v26, %v9775_v54  ;;  %vm6670_vm10 = vcmp.gt.f32.partialorder %v15435_v52, 0.0  ;;  %v15526_v54 = vld [vmem:[%s17620_s13 + $0x18] sm:$0xff] }
 0xbfc   : > { %v10667_v42 = vpop.eup %10666  ;;  %6871 = vmatpush.msrb.mxu0 %v6849_v45  ;;  %v9772_v3 = vadd.f32 -1.0, %v10665_v21  ;;  %v6846_v41 = vsel %vm6686_vm14, %v15425_v46, %v9776_v59 }
 0xbfd   : > { %v10669_v6 = vpop.eup %10668  ;;  %6899 = vmatpush.msrb.mxu1 %v6854_v32  ;;  %v9767_v62 = vadd.f32 -1.0, %v10667_v42  ;;  %v6841_v38 = vsel %vm6681_vm4, %v15429_v16, %v9771_v5 }
 0xbfe   : > { %v10671_v43 = vpop.eup %10670  ;;  %6872 = vmatpush.msrb.mxu0 %v6845_v34  ;;  %v9768_v1 = vadd.f32 -1.0, %v10669_v6  ;;  %v6842_v26 = vsel %vm6682_vm0, %v15438_v20, %v9772_v3  ;;  %v17768_v3 = vld [vmem:[#allocation74_spill] sm:$0xff] }
 0xbff   : > { %v10673_v7 = vpop.eup %10672  ;;  %6900 = vmatpush.msrb.mxu1 %v6850_v49  ;;  %v9763_v44 = vadd.f32 -1.0, %v10671_v43  ;;  %v6837_v10 = vsel %vm6677_vm1, %v15441_v13, %v9767_v62  ;;  %v17767_v43 = vld [vmem:[#allocation76_spill] sm:$0xff]  ;;  %v17769_v62 = vld [vmem:[#allocation83_spill] sm:$0xff] }
 0xc00   : > { %v10675_v24 = vpop.eup %10674  ;;  %6873 = vmatpush.msrb.mxu0 %v6841_v38  ;;  %v9764_v51 = vadd.f32 -1.0, %v10673_v7  ;;  %v6838_v16 = vsel %vm6678_vm6, %v15446_v14, %v9768_v1  ;;  %v17770_v1 = vld [vmem:[#allocation78_spill] sm:$0xff] }
 0xc01   : > { %v10677_v50 = vpop.eup %10676  ;;  %6901 = vmatpush.msrb.mxu1 %v6846_v41  ;;  %v9759_v25 = vadd.f32 -1.0, %v10675_v24  ;;  %v6833_v20 = vsel %vm6673_vm7, %v15451_v11, %v9763_v44  ;;  %v15499_v11 = vld [vmem:[%s17620_s13] sm:$0xff] }
 0xc02   : > { %v15480_v28 = vpop.f32.mrf.mxu2  ;;  %6874 = vmatpush.msrb.mxu0 %v6837_v10  ;;  %v9760_v30 = vadd.f32 -1.0, %v10677_v50  ;;  %v6834_v53 = vsel %vm6674_vm8, %v15455_v40, %v9764_v51 }
 0xc03   : > { %17765 = vst [vmem:[#allocation15_spill] sm:$0xff] %v15480_v28  ;;  %6902 = vmatpush.msrb.mxu1 %v6842_v26  ;;  %v6829_v13 = vsel %vm6669_vm9, %v15432_v47, %v9759_v25  ;;  %v15508_v47 = vld [vmem:[%s17620_s13 + $0x8] sm:$0xff]  ;;  %v17771_v26 = vld [vmem:[#allocation81_spill] sm:$0xff] }
 0xc04   : > { %6875 = vmatpush.msrb.mxu0 %v6833_v20  ;;  %v6830_v14 = vsel %vm6670_vm10, %v15435_v52, %v9760_v30  ;;  %v17772_v25 = vld [vmem:[#allocation86_spill] sm:$0xff]  ;;  %v17773_v20 = vld [vmem:[#allocation105_spill] sm:$0xff] }
 0xc05   : > { %v15483_v46 = vpop.f32.mrf.mxu3  ;;  %6903 = vmatpush.msrb.mxu1 %v6838_v16 }
 0xc06   : > { %17766 = vst [vmem:[#allocation41_spill] sm:$0xff] %v15483_v46  ;;  %6876 = vmatpush.msrb.mxu0 %v6829_v13 }
 0xc07   : > { %6904 = vmatpush.msrb.mxu1 %v6834_v53  ;;  %9791 = vmatmul.msk.f32.vlgmr.msrb.gmra.mxu0 %vm3561_vm3, %v15499_v11 }
 0xc09   : > { %6905 = vmatpush.msrb.mxu1 %v6830_v14  ;;  %v17774_v14 = vld [vmem:[#allocation95_spill] sm:$0xff] }
 0xc0a   : > { %9795 = vmatmul.msk.f32.vlgmr.msrb.gmra.mxu1 %vm3561_vm3, %v15499_v11  ;;  %v6572_v40 = vpop.f32.mrf.mxu2 }
 0xc0d   : > { %v6613_v17 = vpop.f32.mrf.mxu3 }
 0xc0f   : > { %9792 = vmatmul.msk.f32.gmra.mxu0 %vm3561_vm3, %v15508_v47 }
 0xc12   : > { %9796 = vmatmul.msk.f32.gmra.mxu1 %vm3561_vm3, %v15508_v47  ;;  %v6575_v52 = vpop.f32.mrf.mxu2 }
 0xc15   : > { %v6616_v37 = vpop.f32.mrf.mxu3 }
 0xc17   : > { %9793 = vmatmul.msk.f32.gmra.mxu0 %vm3561_vm3, %v15517_v39 }
 0xc1a   : > { %9797 = vmatmul.msk.f32.gmra.mxu1 %vm3561_vm3, %v15517_v39  ;;  %v6578_v21 = vpop.f32.mrf.mxu2 }
 0xc1d   : > { %v6619_v35 = vpop.f32.mrf.mxu3 }
 0xc1f   : > { %9794 = vmatmul.msk.f32.gmra.mxu0 %vm3561_vm3, %v15526_v54 }
 0xc22   : > { %9798 = vmatmul.msk.f32.gmra.mxu1 %vm3561_vm3, %v15526_v54  ;;  %v6581_v42 = vpop.f32.mrf.mxu2 }
 0xc23   : > { %v15555_v53 = vadd.f32 %v6581_v42, %v17773_v20  ;;  %v17778_v42 = vld [vmem:[#allocation23_spill] sm:$0xff]  ;;  %v17779_v20 = vld [vmem:[#allocation104_spill] sm:$0xff] }
 0xc25   : > { %v6622_v32 = vpop.f32.mrf.mxu3  ;;  %vm6683_vm1 = vcmp.gt.f32.partialorder %v15555_v53, 0.0 }
 0xc2a   : > { %v6584_v59 = vpop.f32.mrf.mxu2 }
 0xc2b   : > { %v15547_v51 = vadd.f32 %v6584_v59, %v17771_v26 }
 0xc2d   : > { %v6625_v6 = vpop.f32.mrf.mxu3  ;;  %vm6687_vm4 = vcmp.gt.f32.partialorder %v15547_v51, 0.0 }
 0xc2e   : > { %v15551_v16 = vadd.f32 %v6625_v6, %v17772_v25 }
 0xc30   : > { %vm6688_vm0 = vcmp.gt.f32.partialorder %v15551_v16, 0.0 }
 0xc32   : > { %v6587_v45 = vpop.f32.mrf.mxu2 }
 0xc33   : > { %v15533_v49 = vadd.f32 %v6587_v45, %v17767_v43  ;;  %v15558_v45 = vadd.f32 %v6572_v40, %v17774_v14  ;;  %v15572_v40 = vadd.f32 %v6619_v35, %v17779_v20 }
 0xc35   : > { %v6628_v5 = vpop.f32.mrf.mxu3  ;;  %v6723_v38 = vmin.f32 %v15533_v49, 0.0  ;;  %v6703_v19 = vmin.f32 %v15558_v45, 0.0  ;;  %vm6691_vm2 = vcmp.gt.f32.partialorder %v15533_v49, 0.0  ;;  %vm6680_vm8 = vcmp.gt.f32.partialorder %v15572_v40, 0.0 }
 0xc36   : > { %v15536_v7 = vadd.f32 %v6628_v5, %v17768_v3  ;;  %v17775_v5 = vld [vmem:[#allocation96_spill] sm:$0xff]  ;;  %v17776_v3 = vld [vmem:[#allocation79_spill] sm:$0xff] }
 0xc37   : > { %v6777_v13 = vmul.f32 1.442695, %v6723_v38  ;;  %v15561_v43 = vadd.f32 %v6613_v17, %v17775_v5  ;;  %v15564_v59 = vadd.f32 %v6622_v32, %v17776_v3  ;;  %v6720_v17 = vmin.f32 %v15551_v16, 0.0  ;;  %v17780_v5 = vld [vmem:[#allocation26_spill] sm:$0xff]  ;;  %v17781_v3 = vld [vmem:[#allocation100_spill] sm:$0xff] }
 0xc38   : > { %v6724_v44 = vmin.f32 %v15536_v7, 0.0  ;;  %v6737_v18 = vmul.f32 1.442695, %v6703_v19  ;;  %vm6692_vm14 = vcmp.gt.f32.partialorder %v15536_v7, 0.0 }
 0xc39   : > { %10678 = vpow2.f32 %v6777_v13  ;;  %vm6684_vm6 = vcmp.gt.f32.partialorder %v15564_v59, 0.0 }
 0xc3a   : > { %v6590_v34 = vpop.f32.mrf.mxu2 }
 0xc3b   : > { %v15539_v24 = vadd.f32 %v6590_v34, %v17769_v62  ;;  %v6779_v34 = vmul.f32 1.442695, %v6724_v44  ;;  %v15577_v44 = vadd.f32 %v6575_v52, %v17781_v3  ;;  %v6771_v52 = vmul.f32 1.442695, %v6720_v17 }
 0xc3d   : > { %v6631_v41 = vpop.f32.mrf.mxu3  ;;  %v6727_v10 = vmin.f32 %v15539_v24, 0.0  ;;  %10680 = vpow2.f32 %v6779_v34  ;;  %v6707_v13 = vmin.f32 %v15577_v44, 0.0  ;;  %vm6695_vm12 = vcmp.gt.f32.partialorder %v15539_v24, 0.0 }
 0xc3e   : > { %v15542_v50 = vadd.f32 %v6631_v41, %v17770_v1  ;;  %v17777_v41 = vld [vmem:[#allocation103_spill] sm:$0xff]  ;;  %v6719_v1 = vmin.f32 %v15547_v51, 0.0  ;;  %vm6675_vm9 = vcmp.gt.f32.partialorder %v15577_v44, 0.0 }
 0xc3f   : > { %v15567_v6 = vadd.f32 %v6578_v21, %v17777_v41  ;;  %v6785_v26 = vmul.f32 1.442695, %v6727_v10  ;;  %v6715_v21 = vmin.f32 %v15555_v53, 0.0  ;;  %v15581_v10 = vadd.f32 %v6616_v37, %v17782_v56  ;;  %v10679_v34 = vpop.eup %10678 }
 0xc40   : > { %v6728_v30 = vmin.f32 %v15542_v50, 0.0  ;;  %v6769_v20 = vmul.f32 1.442695, %v6719_v1  ;;  %vm6696_vm13 = vcmp.gt.f32.partialorder %v15542_v50, 0.0 }
 0xc41   : > { %10682 = vpow2.f32 %v6785_v26  ;;  %v6761_v3 = vmul.f32 1.442695, %v6715_v21  ;;  %v6708_v56 = vmin.f32 %v15581_v10, 0.0  ;;  %v6704_v26 = vmin.f32 %v15561_v43, 0.0 }
 0xc42   : > { %v6593_v62 = vpop.f32.mrf.mxu2  ;;  %v6787_v14 = vmul.f32 1.442695, %v6728_v30  ;;  %vm6679_vm7 = vcmp.gt.f32.partialorder %v15567_v6, 0.0  ;;  %vm6676_vm10 = vcmp.gt.f32.partialorder %v15581_v10, 0.0 }
 0xc43   : > { %v6667_v25 = vadd.f32 %v6593_v62, %v17778_v42  ;;  %v6716_v62 = vmin.f32 %v15564_v59, 0.0  ;;  %v6711_v42 = vmin.f32 %v15567_v6, 0.0  ;;  %v10681_v1 = vpop.eup %10680  ;;  %v6747_v21 = vmul.f32 1.442695, %v6708_v56 }
 0xc44   : > { %10684 = vpow2.f32 %v6787_v14  ;;  %v6745_v14 = vmul.f32 1.442695, %v6707_v13 }
 0xc45   : > { %v6634_v38 = vpop.f32.mrf.mxu3  ;;  %v6731_v41 = vmin.f32 %v6667_v25, 0.0  ;;  %v6763_v37 = vmul.f32 1.442695, %v6716_v62  ;;  %v6753_v12 = vmul.f32 1.442695, %v6711_v42  ;;  %vm6699_vm11 = vcmp.gt.f32.partialorder %v6667_v25, 0.0 }
 0xc46   : > { %v6668_v32 = vadd.f32 %v6634_v38, %v17780_v5  ;;  %v6712_v38 = vmin.f32 %v15572_v40, 0.0 }
 0xc47   : > { %v6793_v30 = vmul.f32 1.442695, %v6731_v41  ;;  %v10683_v17 = vpop.eup %10682 }
 0xc48   : > { %v6732_v35 = vmin.f32 %v6668_v32, 0.0  ;;  %v6755_v41 = vmul.f32 1.442695, %v6712_v38  ;;  %v9785_v42 = vadd.f32 -1.0, %v10683_v17  ;;  %vm6700_vm5 = vcmp.gt.f32.partialorder %v6668_v32, 0.0 }
 0xc49   : > { %10686 = vpow2.f32 %v6793_v30 }
 0xc4a   : > { %v6795_v5 = vmul.f32 1.442695, %v6732_v35  ;;  %v10685_v35 = vpop.eup %10684 }
 0xc4b   : > { %v9786_v38 = vadd.f32 -1.0, %v10685_v35 }
 0xc4c   : > { %10688 = vpow2.f32 %v6795_v5  ;;  %v6739_v5 = vmul.f32 1.442695, %v6704_v26  ;;  %v6855_v26 = vsel %vm6695_vm12, %v15539_v24, %v9785_v42 }
 0xc4d   : > { %10690 = vpow2.f32 %v6769_v20 }
 0xc4e   : > { %10692 = vpow2.f32 %v6771_v52 }
 0xc4f   : > { %10694 = vpow2.f32 %v6761_v3  ;;  %v10687_v30 = vpop.eup %10686  ;;  %v9781_v3 = vadd.f32 -1.0, %v10679_v34 }
 0xc50   : > { %10696 = vpow2.f32 %v6763_v37  ;;  %v9789_v58 = vadd.f32 -1.0, %v10687_v30 }
 0xc51   : > { %10698 = vpow2.f32 %v6753_v12  ;;  %v9782_v12 = vadd.f32 -1.0, %v10681_v1 }
 0xc52   : > { %v10689_v62 = vpop.eup %10688  ;;  %10700 = vpow2.f32 %v6755_v41  ;;  %v6859_v13 = vsel %vm6699_vm11, %v6667_v25, %v9789_v58  ;;  %v6856_v58 = vsel %vm6696_vm13, %v15542_v50, %v9786_v38  ;;  %vm6671_vm11 = vcmp.gt.f32.partialorder %v15558_v45, 0.0 }
 0xc53   : > { %v10691_v20 = vpop.eup %10690  ;;  %10702 = vpow2.f32 %v6745_v14  ;;  %v9790_v8 = vadd.f32 -1.0, %v10689_v62  ;;  %6927 = vmatpush.msrb.mxu2 %v6859_v13  ;;  %v6852_v24 = vsel %vm6692_vm14, %v15536_v7, %v9782_v12  ;;  %v17785_v12 = vld [vmem:[#allocation69_spill] sm:$0xff] }
 0xc54   : > { %v10693_v52 = vpop.eup %10692  ;;  %10704 = vpow2.f32 %v6747_v21  ;;  %v9777_v41 = vadd.f32 -1.0, %v10691_v20 }
 0xc55   : > { %v10695_v56 = vpop.eup %10694  ;;  %10706 = vpow2.f32 %v6737_v18  ;;  %v6860_v19 = vsel %vm6700_vm5, %v6668_v32, %v9790_v8  ;;  %6928 = vmatpush.msrb.mxu2 %v6855_v26  ;;  %v9778_v18 = vadd.f32 -1.0, %v10693_v52  ;;  %v6851_v8 = vsel %vm6691_vm2, %v15533_v49, %v9781_v3 }
 0xc56   : > { %v10697_v37 = vpop.eup %10696  ;;  %10708 = vpow2.f32 %v6739_v5  ;;  %6956 = vmatpush.msrb.mxu3 %v6860_v19  ;;  %v9773_v32 = vadd.f32 -1.0, %v10695_v56  ;;  %v6847_v50 = vsel %vm6687_vm4, %v15547_v51, %v9777_v41  ;;  %vm6672_vm5 = vcmp.gt.f32.partialorder %v15561_v43, 0.0 }
 0xc57   : > { %v10699_v17 = vpop.eup %10698  ;;  %6929 = vmatpush.msrb.mxu2 %v6851_v8  ;;  %v9774_v1 = vadd.f32 -1.0, %v10697_v37  ;;  %v6848_v49 = vsel %vm6688_vm0, %v15551_v16, %v9778_v18 }
 0xc58   : > { %v10701_v25 = vpop.eup %10700  ;;  %6957 = vmatpush.msrb.mxu3 %v6856_v58  ;;  %v9769_v35 = vadd.f32 -1.0, %v10699_v17  ;;  %v6843_v7 = vsel %vm6683_vm1, %v15555_v53, %v9773_v32 }
 0xc59   : > { %v10703_v34 = vpop.eup %10702  ;;  %6930 = vmatpush.msrb.mxu2 %v6847_v50  ;;  %v9770_v30 = vadd.f32 -1.0, %v10701_v25  ;;  %v6844_v51 = vsel %vm6684_vm6, %v15564_v59, %v9774_v1 }
 0xc5a   : > { %v10705_v14 = vpop.eup %10704  ;;  %6958 = vmatpush.msrb.mxu3 %v6852_v24  ;;  %v9765_v5 = vadd.f32 -1.0, %v10703_v34  ;;  %v6839_v20 = vsel %vm6679_vm7, %v15567_v6, %v9769_v35  ;;  %v17786_v35 = vld [vmem:[#allocation34_spill] sm:$0xff] }
 0xc5b   : > { %v10707_v21 = vpop.eup %10706  ;;  %6931 = vmatpush.msrb.mxu2 %v6843_v7  ;;  %v9766_v42 = vadd.f32 -1.0, %v10705_v14  ;;  %v6840_v38 = vsel %vm6680_vm8, %v15572_v40, %v9770_v30 }
 0xc5c   : > { %v10709_v62 = vpop.eup %10708  ;;  %6959 = vmatpush.msrb.mxu3 %v6848_v49  ;;  %v9761_v16 = vadd.f32 -1.0, %v10707_v21  ;;  %v6835_v52 = vsel %vm6675_vm9, %v15577_v44, %v9765_v5 }
 0xc5d   : > { %6932 = vmatpush.msrb.mxu2 %v6839_v20  ;;  %v9762_v53 = vadd.f32 -1.0, %v10709_v62  ;;  %v6836_v59 = vsel %vm6676_vm10, %v15581_v10, %v9766_v42  ;;  %v17783_v10 = vld [vmem:[#allocation22_spill] sm:$0xff] }
 0xc5e   : > { %6960 = vmatpush.msrb.mxu3 %v6844_v51  ;;  %v6831_v6 = vsel %vm6671_vm11, %v15558_v45, %v9761_v16 }
 0xc5f   : > { %6933 = vmatpush.msrb.mxu2 %v6835_v52  ;;  %v6832_v40 = vsel %vm6672_vm5, %v15561_v43, %v9762_v53 }
 0xc60   : > { %6961 = vmatpush.msrb.mxu3 %v6840_v38 }
 0xc61   : > { %6934 = vmatpush.msrb.mxu2 %v6831_v6 }
 0xc62   : > { %6962 = vmatpush.msrb.mxu3 %v6836_v59  ;;  %9799 = vmatmul.msk.f32.vlgmr.msrb.gmra.mxu2 %vm3561_vm3, %v15499_v11 }
 0xc64   : > { %6963 = vmatpush.msrb.mxu3 %v6832_v40 }
 0xc65   : > { %9803 = vmatmul.msk.f32.vlgmr.msrb.gmra.mxu3 %vm3561_vm3, %v15499_v11 }
 0xc6a   : > { %9800 = vmatmul.msk.f32.gmra.mxu2 %vm3561_vm3, %v15508_v47 }
 0xc6d   : > { %9804 = vmatmul.msk.f32.gmra.mxu3 %vm3561_vm3, %v15508_v47 }
 0xc72   : > { %9801 = vmatmul.msk.f32.gmra.mxu2 %vm3561_vm3, %v15517_v39 }
 0xc75   : > { %9805 = vmatmul.msk.f32.gmra.mxu3 %vm3561_vm3, %v15517_v39  ;;  %v17784_v39 = vld [vmem:[#allocation35_spill] sm:$0xff] }
 0xc7a   : > { %9802 = vmatmul.msk.f32.gmra.mxu2 %vm3561_vm3, %v15526_v54 }
 0xc7d   : > { %9806 = vmatmul.msk.f32.gmra.mxu3 %vm3561_vm3, %v15526_v54 }
 0xc84   : > { %v6878_v45 = vpop.f32.mrf.mxu0 }
 0xc85   : > { %v15635_v13 = vadd.f32 %v6878_v45, %v17783_v10 }
 0xc87   : > { %v6907_v11 = vpop.f32.mrf.mxu1  ;;  %v6993_v56 = vmin.f32 %v15635_v13, 0.0  ;;  %vm6977_vm0 = vcmp.gt.f32.partialorder %v15635_v13, 0.0 }
 0xc88   : > { %v15638_v47 = vadd.f32 %v6907_v11, %v17783_v10 }
 0xc89   : > { %v7009_v25 = vmul.f32 1.442695, %v6993_v56 }
 0xc8a   : > { %v6994_v54 = vmin.f32 %v15638_v47, 0.0  ;;  %vm6978_vm1 = vcmp.gt.f32.partialorder %v15638_v47, 0.0 }
 0xc8b   : > { %10710 = vpow2.f32 %v7009_v25  ;;  %v17787_v25 = vld [vmem:[#allocation55_spill] sm:$0xff] }
 0xc8c   : > { %v6881_v43 = vpop.f32.mrf.mxu0  ;;  %v7011_v32 = vmul.f32 1.442695, %v6994_v54 }
 0xc8d   : > { %v6882_v19 = vadd.f32 %v6881_v43, %v17784_v39 }
 0xc8e   : > { %10712 = vpow2.f32 %v7011_v32 }
 0xc8f   : > { %v6910_v44 = vpop.f32.mrf.mxu1  ;;  %v6997_v8 = vmin.f32 %v6882_v19, 0.0  ;;  %vm6981_vm3 = vcmp.gt.f32.partialorder %v6882_v19, 0.0 }
 0xc90   : > { %v6911_v41 = vadd.f32 %v6910_v44, %v17784_v39 }
 0xc91   : > { %v7017_v50 = vmul.f32 1.442695, %v6997_v8  ;;  %v10711_v20 = vpop.eup %10710 }
 0xc92   : > { %v6998_v34 = vmin.f32 %v6911_v41, 0.0  ;;  %v9807_v43 = vadd.f32 -1.0, %v10711_v20  ;;  %vm6982_vm4 = vcmp.gt.f32.partialorder %v6911_v41, 0.0 }
 0xc94   : > { %v6884_v3 = vpop.f32.mrf.mxu0  ;;  %v7019_v30 = vmul.f32 1.442695, %v6998_v34  ;;  %v10713_v16 = vpop.eup %10712 }
 0xc95   : > { %v6885_v37 = vadd.f32 %v6884_v3, %v17785_v12 }
 0xc97   : > { %v6913_v26 = vpop.f32.mrf.mxu1  ;;  %v7001_v58 = vmin.f32 %v6885_v37, 0.0  ;;  %vm6985_vm12 = vcmp.gt.f32.partialorder %v6885_v37, 0.0 }
 0xc98   : > { %v6914_v17 = vadd.f32 %v6913_v26, %v17785_v12 }
 0xc99   : > { %v7025_v24 = vmul.f32 1.442695, %v7001_v58 }
 0xc9a   : > { %v7002_v18 = vmin.f32 %v6914_v17, 0.0  ;;  %vm6986_vm2 = vcmp.gt.f32.partialorder %v6914_v17, 0.0 }
 0xc9b   : > { %10714 = vpow2.f32 %v7025_v24  ;;  %v17788_v24 = vld [vmem:[#allocation57_spill] sm:$0xff] }
 0xc9c   : > { %v7027_v1 = vmul.f32 1.442695, %v7002_v18  ;;  %v6887_v14 = vpop.f32.mrf.mxu0  ;;  %v9808_v18 = vadd.f32 -1.0, %v10713_v16 }
 0xc9d   : > { %v6888_v21 = vadd.f32 %v6887_v14, %v17786_v35 }
 0xc9e   : > { %10716 = vpow2.f32 %v7027_v1 }
 0xc9f   : > { %v6916_v49 = vpop.f32.mrf.mxu1  ;;  %v7005_v7 = vmin.f32 %v6888_v21, 0.0  ;;  %10718 = vpow2.f32 %v7017_v50  ;;  %vm6989_vm13 = vcmp.gt.f32.partialorder %v6888_v21, 0.0 }
 0xca0   : > { %v6917_v62 = vadd.f32 %v6916_v49, %v17786_v35  ;;  %10720 = vpow2.f32 %v7019_v30  ;;  %v15677_v49 = vsel %vm6978_vm1, %v15638_v47, %v9808_v18  ;;  %v15697_v47 = vld [vmem:[%s17630_s15 + $0x8] sm:$0xff] }
 0xca1   : > { %v7033_v51 = vmul.f32 1.442695, %v7005_v7  ;;  %v10715_v38 = vpop.eup %10714  ;;  %v15706_v7 = vld [vmem:[%s17630_s15 + $0x10] sm:$0xff] }
 0xca2   : > { %v7006_v5 = vmin.f32 %v6917_v62, 0.0  ;;  %v9815_v6 = vadd.f32 -1.0, %v10715_v38  ;;  %vm6990_vm14 = vcmp.gt.f32.partialorder %v6917_v62, 0.0 }
 0xca3   : > { %10722 = vpow2.f32 %v7033_v51 }
 0xca4   : > { %v7035_v42 = vmul.f32 1.442695, %v7006_v5  ;;  %v10717_v53 = vpop.eup %10716  ;;  %v15650_v58 = vsel %vm6985_vm12, %v6885_v37, %v9815_v6  ;;  %v15715_v5 = vld [vmem:[%s17630_s15 + $0x18] sm:$0xff] }
 0xca5   : > { %v10719_v52 = vpop.eup %10718  ;;  %v9816_v45 = vadd.f32 -1.0, %v10717_v53  ;;  %v7081_v37 = vmul.f32 %v15650_v58, %v17787_v25 }
 0xca6   : > { %10724 = vpow2.f32 %v7035_v42  ;;  %v10721_v59 = vpop.eup %10720  ;;  %v9811_v44 = vadd.f32 -1.0, %v10719_v52 }
 0xca7   : > { %v9812_v56 = vadd.f32 -1.0, %v10721_v59  ;;  %v15656_v34 = vsel %vm6986_vm2, %v6914_v17, %v9816_v45 }
 0xca8   : > { %v15661_v14 = vsel %vm6981_vm3, %v6882_v19, %v9811_v44  ;;  %v7082_v17 = vmul.f32 %v15656_v34, %v17788_v24 }
 0xca9   : > { %v10723_v40 = vpop.eup %10722  ;;  %v15666_v50 = vsel %vm6982_vm4, %v6911_v41, %v9812_v56  ;;  %v7077_v19 = vmul.f32 %v15661_v14, %v17787_v25 }
 0xcaa   : > { %v9819_v3 = vadd.f32 -1.0, %v10723_v40  ;;  %v7078_v41 = vmul.f32 %v15666_v50, %v17788_v24 }
 0xcac   : > { %v10725_v11 = vpop.eup %10724  ;;  %v15648_v54 = vsel %vm6989_vm13, %v6888_v21, %v9819_v3  ;;  %v15672_v21 = vsel %vm6977_vm0, %v15635_v13, %v9807_v43  ;;  %v7074_v13 = vmul.f32 %v15677_v49, %v17788_v24 }
 0xcad   : > { %v9820_v26 = vadd.f32 -1.0, %v10725_v11  ;;  %v7085_v8 = vmul.f32 %v15648_v54, %v17787_v25  ;;  %v7073_v30 = vmul.f32 %v15672_v21, %v17787_v25 }
 0xcaf   : > { %v15654_v32 = vsel %vm6990_vm14, %v6917_v62, %v9820_v26  ;;  %7101 = vmatpush.msra.mxu0 %v7085_v8  ;;  %v15688_v62 = vld [vmem:[%s17630_s15] sm:$0xff] }
 0xcb0   : > { %v7086_v1 = vmul.f32 %v15654_v32, %v17788_v24 }
 0xcb1   : > { %7102 = vmatpush.msra.mxu0 %v7081_v37 }
 0xcb2   : > { %7130 = vmatpush.msra.mxu1 %v7086_v1 }
 0xcb3   : > { %7103 = vmatpush.msra.mxu0 %v7077_v19 }
 0xcb4   : > { %7131 = vmatpush.msra.mxu1 %v7082_v17 }
 0xcb5   : > { %7104 = vmatpush.msra.mxu0 %v7073_v30 }
 0xcb6   : > { %7132 = vmatpush.msra.mxu1 %v7078_v41  ;;  %9823 = vmatmul.msk.f32.vlgmr.msra.gmra.mxu0 %vm2656_vm15, %v15688_v62 }
 0xcb8   : > { %7133 = vmatpush.msra.mxu1 %v7074_v13 }
 0xcb9   : > { %9827 = vmatmul.msk.f32.vlgmr.msra.gmra.mxu1 %vm2656_vm15, %v15688_v62 }
 0xcbe   : > { %9824 = vmatmul.msk.f32.gmra.mxu0 %vm2656_vm15, %v15697_v47 }
 0xcc1   : > { %9828 = vmatmul.msk.f32.gmra.mxu1 %vm2656_vm15, %v15697_v47 }
 0xcc6   : > { %9825 = vmatmul.msk.f32.gmra.mxu0 %vm2656_vm15, %v15706_v7 }
 0xcc9   : > { %9829 = vmatmul.msk.f32.gmra.mxu1 %vm2656_vm15, %v15706_v7 }
 0xcce   : > { %9826 = vmatmul.msk.f32.gmra.mxu0 %vm2656_vm15, %v15715_v5 }
 0xcd1   : > { %9830 = vmatmul.msk.f32.gmra.mxu1 %vm2656_vm15, %v15715_v5 }
 0xce5   : > { %v6936_v51 = vpop.f32.mrf.mxu2 }
 0xce6   : > { %v15722_v38 = vadd.f32 %v6936_v51, %v17783_v10 }
 0xce8   : > { %v6965_v42 = vpop.f32.mrf.mxu3  ;;  %v6995_v59 = vmin.f32 %v15722_v38, 0.0  ;;  %vm6979_vm5 = vcmp.gt.f32.partialorder %v15722_v38, 0.0 }
 0xce9   : > { %v15725_v53 = vadd.f32 %v6965_v42, %v17783_v10 }
 0xcea   : > { %v7013_v26 = vmul.f32 1.442695, %v6995_v59 }
 0xceb   : > { %v6996_v11 = vmin.f32 %v15725_v53, 0.0  ;;  %vm6980_vm3 = vcmp.gt.f32.partialorder %v15725_v53, 0.0 }
 0xcec   : > { %10726 = vpow2.f32 %v7013_v26 }
 0xced   : > { %v6939_v20 = vpop.f32.mrf.mxu2  ;;  %v7015_v10 = vmul.f32 1.442695, %v6996_v11 }
 0xcee   : > { %v6940_v6 = vadd.f32 %v6939_v20, %v17784_v39 }
 0xcef   : > { %10728 = vpow2.f32 %v7015_v10 }
 0xcf0   : > { %v6968_v16 = vpop.f32.mrf.mxu3  ;;  %v6999_v18 = vmin.f32 %v6940_v6, 0.0  ;;  %vm6983_vm6 = vcmp.gt.f32.partialorder %v6940_v6, 0.0 }
 0xcf1   : > { %v6969_v43 = vadd.f32 %v6968_v16, %v17784_v39 }
 0xcf2   : > { %v7021_v37 = vmul.f32 1.442695, %v6999_v18  ;;  %v10727_v42 = vpop.eup %10726 }
 0xcf3   : > { %v7000_v25 = vmin.f32 %v6969_v43, 0.0  ;;  %v9809_v26 = vadd.f32 -1.0, %v10727_v42  ;;  %vm6984_vm11 = vcmp.gt.f32.partialorder %v6969_v43, 0.0 }
 0xcf5   : > { %v6942_v52 = vpop.f32.mrf.mxu2  ;;  %v7023_v41 = vmul.f32 1.442695, %v7000_v25  ;;  %v10729_v20 = vpop.eup %10728 }
 0xcf6   : > { %v6943_v40 = vadd.f32 %v6942_v52, %v17785_v12 }
 0xcf8   : > { %v6971_v45 = vpop.f32.mrf.mxu3  ;;  %v7003_v3 = vmin.f32 %v6943_v40, 0.0  ;;  %vm6987_vm7 = vcmp.gt.f32.partialorder %v6943_v40, 0.0 }
 0xcf9   : > { %v6972_v44 = vadd.f32 %v6971_v45, %v17785_v12 }
 0xcfa   : > { %v7029_v8 = vmul.f32 1.442695, %v7003_v3 }
 0xcfb   : > { %v7004_v56 = vmin.f32 %v6972_v44, 0.0  ;;  %vm6988_vm9 = vcmp.gt.f32.partialorder %v6972_v44, 0.0 }
 0xcfc   : > { %10730 = vpow2.f32 %v7029_v8 }
 0xcfd   : > { %v7031_v24 = vmul.f32 1.442695, %v7004_v56  ;;  %v6945_v1 = vpop.f32.mrf.mxu2 }
 0xcfe   : > { %v6946_v17 = vadd.f32 %v6945_v1, %v17786_v35 }
 0xcff   : > { %10732 = vpow2.f32 %v7031_v24 }
 0xd00   : > { %v6974_v19 = vpop.f32.mrf.mxu3  ;;  %v7007_v12 = vmin.f32 %v6946_v17, 0.0  ;;  %10734 = vpow2.f32 %v7021_v37  ;;  %vm6991_vm8 = vcmp.gt.f32.partialorder %v6946_v17, 0.0  ;;  %v9810_v37 = vadd.f32 -1.0, %v10729_v20 }
 0xd01   : > { %v6975_v39 = vadd.f32 %v6974_v19, %v17786_v35  ;;  %10736 = vpow2.f32 %v7023_v41  ;;  %v17789_v19 = vld [vmem:[#allocation58_spill] sm:$0xff] }
 0xd02   : > { %v7037_v13 = vmul.f32 1.442695, %v7007_v12  ;;  %v10731_v16 = vpop.eup %10730  ;;  %v15764_v20 = vsel %vm6980_vm3, %v15725_v53, %v9810_v37 }
 0xd03   : > { %v7008_v30 = vmin.f32 %v6975_v39, 0.0  ;;  %v9817_v11 = vadd.f32 -1.0, %v10731_v16  ;;  %vm6992_vm10 = vcmp.gt.f32.partialorder %v6975_v39, 0.0 }
 0xd04   : > { %10738 = vpow2.f32 %v7037_v13  ;;  %v17790_v13 = vld [vmem:[#allocation59_spill] sm:$0xff] }
 0xd05   : > { %v7039_v51 = vmul.f32 1.442695, %v7008_v30  ;;  %v10733_v52 = vpop.eup %10732  ;;  %v15737_v1 = vsel %vm6987_vm7, %v6943_v40, %v9817_v11 }
 0xd06   : > { %v10735_v59 = vpop.eup %10734  ;;  %v9818_v56 = vadd.f32 -1.0, %v10733_v52  ;;  %v7083_v40 = vmul.f32 %v15737_v1, %v17789_v19 }
 0xd07   : > { %10740 = vpow2.f32 %v7039_v51  ;;  %v10737_v45 = vpop.eup %10736  ;;  %v9813_v18 = vadd.f32 -1.0, %v10735_v59 }
 0xd08   : > { %v9814_v25 = vadd.f32 -1.0, %v10737_v45  ;;  %v15743_v30 = vsel %vm6988_vm9, %v6972_v44, %v9818_v56  ;;  %v17791_v45 = vld [vmem:[#allocation33_spill] sm:$0xff]  ;;  %v17792_v56 = vld [vmem:[#allocation75_spill] sm:$0xff] }
 0xd09   : > { %v15748_v42 = vsel %vm6983_vm6, %v6940_v6, %v9813_v18  ;;  %v7084_v44 = vmul.f32 %v15743_v30, %v17790_v13 }
 0xd0a   : > { %v10739_v3 = vpop.eup %10738  ;;  %v7079_v6 = vmul.f32 %v15748_v42, %v17789_v19 }
 0xd0b   : > { %v9821_v10 = vadd.f32 -1.0, %v10739_v3 }
 0xd0d   : > { %v10741_v35 = vpop.eup %10740  ;;  %v15735_v24 = vsel %vm6991_vm8, %v6946_v17, %v9821_v10  ;;  %v15753_v17 = vsel %vm6984_vm11, %v6969_v43, %v9814_v25  ;;  %v17793_v10 = vld [vmem:[#allocation27_spill] sm:$0xff] }
 0xd0e   : > { %v9822_v8 = vadd.f32 -1.0, %v10741_v35  ;;  %v7087_v41 = vmul.f32 %v15735_v24, %v17789_v19  ;;  %v7080_v43 = vmul.f32 %v15753_v17, %v17790_v13 }
 0xd10   : > { %v15741_v12 = vsel %vm6992_vm10, %v6975_v39, %v9822_v8  ;;  %7159 = vmatpush.msra.mxu2 %v7087_v41  ;;  %v15759_v39 = vsel %vm6979_vm5, %v15722_v38, %v9809_v26  ;;  %v7076_v38 = vmul.f32 %v15764_v20, %v17790_v13 }
 0xd11   : > { %v7088_v51 = vmul.f32 %v15741_v12, %v17790_v13  ;;  %v7075_v16 = vmul.f32 %v15759_v39, %v17789_v19 }
 0xd12   : > { %7160 = vmatpush.msra.mxu2 %v7083_v40 }
 0xd13   : > { %7188 = vmatpush.msra.mxu3 %v7088_v51 }
 0xd14   : > { %7161 = vmatpush.msra.mxu2 %v7079_v6  ;;  %v17794_v6 = vld [vmem:[#allocation32_spill] sm:$0xff] }
 0xd15   : > { %7189 = vmatpush.msra.mxu3 %v7084_v44 }
 0xd16   : > { %7162 = vmatpush.msra.mxu2 %v7075_v16 }
 0xd17   : > { %7190 = vmatpush.msra.mxu3 %v7080_v43  ;;  %9831 = vmatmul.msk.f32.vlgmr.msra.gmra.mxu2 %vm2656_vm15, %v15688_v62 }
 0xd19   : > { %7191 = vmatpush.msra.mxu3 %v7076_v38 }
 0xd1a   : > { %9835 = vmatmul.msk.f32.vlgmr.msra.gmra.mxu3 %vm2656_vm15, %v15688_v62 }
 0xd1f   : > { %9832 = vmatmul.msk.f32.gmra.mxu2 %vm2656_vm15, %v15697_v47 }
 0xd22   : > { %9836 = vmatmul.msk.f32.gmra.mxu3 %vm2656_vm15, %v15697_v47 }
 0xd27   : > { %9833 = vmatmul.msk.f32.gmra.mxu2 %vm2656_vm15, %v15706_v7 }
 0xd2a   : > { %9837 = vmatmul.msk.f32.gmra.mxu3 %vm2656_vm15, %v15706_v7 }
 0xd2f   : > { %9834 = vmatmul.msk.f32.gmra.mxu2 %vm2656_vm15, %v15715_v5 }
 0xd32   : > { %9838 = vmatmul.msk.f32.gmra.mxu3 %vm2656_vm15, %v15715_v5 }
 0xd33   : > { %v7106_v53 = vpop.f32.mrf.mxu0 }
 0xd34   : > { %v15799_v25 = vadd.f32 %v7106_v53, %v17793_v10 }
 0xd36   : > { %v7135_v62 = vpop.f32.mrf.mxu1  ;;  %v7221_v40 = vmin.f32 %v15799_v25, 0.0  ;;  %vm7205_vm1 = vcmp.gt.f32.partialorder %v15799_v25, 0.0 }
 0xd37   : > { %v15802_v37 = vadd.f32 %v7135_v62, %v17793_v10 }
 0xd39   : > { %v7222_v38 = vmin.f32 %v15802_v37, 0.0  ;;  %vm7206_vm6 = vcmp.gt.f32.partialorder %v15802_v37, 0.0 }
 0xd3b   : > { %v7109_v52 = vpop.f32.mrf.mxu0 }
 0xd3c   : > { %v15789_v11 = vadd.f32 %v7109_v52, %v17791_v45 }
 0xd3e   : > { %v7138_v59 = vpop.f32.mrf.mxu1  ;;  %v7225_v18 = vmin.f32 %v15789_v11, 0.0  ;;  %vm7209_vm4 = vcmp.gt.f32.partialorder %v15789_v11, 0.0 }
 0xd3f   : > { %v15792_v47 = vadd.f32 %v7138_v59, %v17791_v45 }
 0xd40   : > { %v7245_v41 = vmul.f32 1.442695, %v7225_v18  ;;  %v7239_v18 = vmul.f32 1.442695, %v7222_v38 }
 0xd41   : > { %v7226_v5 = vmin.f32 %v15792_v47, 0.0  ;;  %vm7210_vm0 = vcmp.gt.f32.partialorder %v15792_v47, 0.0 }
 0xd42   : > { %10742 = vpow2.f32 %v7245_v41 }
 0xd43   : > { %v7112_v3 = vpop.f32.mrf.mxu0  ;;  %v7247_v13 = vmul.f32 1.442695, %v7226_v5 }
 0xd44   : > { %v7113_v35 = vadd.f32 %v7112_v3, %v17792_v56  ;;  %v7237_v3 = vmul.f32 1.442695, %v7221_v40 }
 0xd45   : > { %10744 = vpow2.f32 %v7247_v13 }
 0xd46   : > { %v7141_v7 = vpop.f32.mrf.mxu1  ;;  %v7229_v8 = vmin.f32 %v7113_v35, 0.0  ;;  %vm7213_vm2 = vcmp.gt.f32.partialorder %v7113_v35, 0.0 }
 0xd47   : > { %v7142_v26 = vadd.f32 %v7141_v7, %v17792_v56 }
 0xd48   : > { %v7253_v44 = vmul.f32 1.442695, %v7229_v8  ;;  %v10743_v8 = vpop.eup %10742 }
 0xd49   : > { %v7230_v19 = vmin.f32 %v7142_v26, 0.0  ;;  %vm7214_vm14 = vcmp.gt.f32.partialorder %v7142_v26, 0.0 }
 0xd4a   : > { %10746 = vpow2.f32 %v7253_v44 }
 0xd4b   : > { %v7115_v51 = vpop.f32.mrf.mxu0  ;;  %v7255_v52 = vmul.f32 1.442695, %v7230_v19 }
 0xd4c   : > { %v7116_v43 = vadd.f32 %v7115_v51, %v17794_v6  ;;  %v10745_v51 = vpop.eup %10744 }
 0xd4d   : > { %10748 = vpow2.f32 %v7255_v52  ;;  %v9843_v52 = vadd.f32 -1.0, %v10743_v8 }
 0xd4e   : > { %v7144_v16 = vpop.f32.mrf.mxu1  ;;  %v7233_v59 = vmin.f32 %v7116_v43, 0.0  ;;  %vm7217_vm12 = vcmp.gt.f32.partialorder %v7116_v43, 0.0 }
 0xd4f   : > { %v7145_v53 = vadd.f32 %v7144_v16, %v17794_v6 }
 0xd50   : > { %v7261_v7 = vmul.f32 1.442695, %v7233_v59  ;;  %v10747_v36 = vpop.eup %10746 }
 0xd51   : > { %v7234_v62 = vmin.f32 %v7145_v53, 0.0  ;;  %v9847_v23 = vadd.f32 -1.0, %v10747_v36  ;;  %vm7218_vm13 = vcmp.gt.f32.partialorder %v7145_v53, 0.0  ;;  %v7289_v36 = vsel %vm7209_vm4, %v15789_v11, %v9843_v52  ;;  %v15819_v11 = vld [vmem:[%s17083_s17] sm:$0xff] }
 0xd52   : > { %10750 = vpow2.f32 %v7261_v7 }
 0xd53   : > { %v7263_v5 = vmul.f32 1.442695, %v7234_v62  ;;  %v10749_v19 = vpop.eup %10748  ;;  %v7293_v7 = vsel %vm7213_vm2, %v7113_v35, %v9847_v23 }
 0xd54   : > { %v9848_v44 = vadd.f32 -1.0, %v10749_v19 }
 0xd55   : > { %10752 = vpow2.f32 %v7263_v5 }
 0xd56   : > { %10754 = vpow2.f32 %v7237_v3  ;;  %v9844_v3 = vadd.f32 -1.0, %v10745_v51  ;;  %v7294_v5 = vsel %vm7214_vm14, %v7142_v26, %v9848_v44  ;;  %v15837_v26 = vld [vmem:[%s17083_s17 + $0x10] sm:$0xff] }
 0xd57   : > { %10756 = vpow2.f32 %v7239_v18 }
 0xd58   : > { %v10751_v55 = vpop.eup %10750 }
 0xd59   : > { %v9851_v41 = vadd.f32 -1.0, %v10751_v55 }
 0xd5b   : > { %v10753_v16 = vpop.eup %10752  ;;  %v7297_v38 = vsel %vm7217_vm12, %v7116_v43, %v9851_v41  ;;  %v7290_v43 = vsel %vm7210_vm0, %v15792_v47, %v9844_v3  ;;  %v15828_v47 = vld [vmem:[%s17083_s17 + $0x8] sm:$0xff] }
 0xd5c   : > { %v10755_v13 = vpop.eup %10754  ;;  %v9852_v40 = vadd.f32 -1.0, %v10753_v16  ;;  %7313 = vmatpush.msrb.mxu0 %v7297_v38 }
 0xd5d   : > { %v10757_v59 = vpop.eup %10756  ;;  %v9839_v18 = vadd.f32 -1.0, %v10755_v13 }
 0xd5e   : > { %v7298_v62 = vsel %vm7218_vm13, %v7145_v53, %v9852_v40  ;;  %7314 = vmatpush.msrb.mxu0 %v7293_v7  ;;  %v9840_v55 = vadd.f32 -1.0, %v10757_v59 }
 0xd5f   : > { %7345 = vmatpush.msrb.mxu1 %v7298_v62  ;;  %v7285_v23 = vsel %vm7205_vm1, %v15799_v25, %v9839_v18  ;;  %v15846_v25 = vld [vmem:[%s17083_s17 + $0x18] sm:$0xff] }
 0xd60   : > { %7315 = vmatpush.msrb.mxu0 %v7289_v36  ;;  %v7286_v35 = vsel %vm7206_vm6, %v15802_v37, %v9840_v55  ;;  %v15855_v37 = vld [vmem:[%s17083_s17 + $0x20] sm:$0x1] }
 0xd61   : > { %7346 = vmatpush.msrb.mxu1 %v7294_v5 }
 0xd62   : > { %7316 = vmatpush.msrb.mxu0 %v7285_v23 }
 0xd63   : > { %7347 = vmatpush.msrb.mxu1 %v7290_v43  ;;  %9855 = vmatmul.msk.f32.vlgmr.msrb.gmra.mxu0 %vm2656_vm15, %v15819_v11 }
 0xd65   : > { %7348 = vmatpush.msrb.mxu1 %v7286_v35 }
 0xd66   : > { %9860 = vmatmul.msk.f32.vlgmr.msrb.gmra.mxu1 %vm2656_vm15, %v15819_v11 }
 0xd6b   : > { %9856 = vmatmul.msk.f32.gmra.mxu0 %vm2656_vm15, %v15828_v47 }
 0xd6e   : > { %9861 = vmatmul.msk.f32.gmra.mxu1 %vm2656_vm15, %v15828_v47 }
 0xd73   : > { %9857 = vmatmul.msk.f32.gmra.mxu0 %vm2656_vm15, %v15837_v26 }
 0xd76   : > { %9862 = vmatmul.msk.f32.gmra.mxu1 %vm2656_vm15, %v15837_v26 }
 0xd7b   : > { %9858 = vmatmul.msk.f32.gmra.mxu0 %vm2656_vm15, %v15846_v25 }
 0xd7e   : > { %9863 = vmatmul.msk.f32.gmra.mxu1 %vm2656_vm15, %v15846_v25 }
 0xd83   : > { %9859 = vmatmul.msk.f32.gmra.mxu0 %vm2656_vm15, %v15855_v37 }
 0xd86   : > { %9864 = vmatmul.msk.f32.gmra.mxu1 %vm2656_vm15, %v15855_v37 }
 0xd9a   : > { %v7164_v53 = vpop.f32.mrf.mxu2 }
 0xd9b   : > { %v15872_v62 = vadd.f32 %v7164_v53, %v17793_v10 }
 0xd9d   : > { %v7193_v8 = vpop.f32.mrf.mxu3  ;;  %v7223_v36 = vmin.f32 %v15872_v62, 0.0  ;;  %vm7207_vm3 = vcmp.gt.f32.partialorder %v15872_v62, 0.0 }
 0xd9e   : > { %v15875_v7 = vadd.f32 %v7193_v8, %v17793_v10 }
 0xd9f   : > { %v7241_v8 = vmul.f32 1.442695, %v7223_v36 }
 0xda0   : > { %v7224_v35 = vmin.f32 %v15875_v7, 0.0  ;;  %vm7208_vm12 = vcmp.gt.f32.partialorder %v15875_v7, 0.0 }
 0xda2   : > { %v7167_v51 = vpop.f32.mrf.mxu2 }
 0xda3   : > { %v15862_v16 = vadd.f32 %v7167_v51, %v17791_v45 }
 0xda5   : > { %v7196_v19 = vpop.f32.mrf.mxu3  ;;  %v7227_v38 = vmin.f32 %v15862_v16, 0.0  ;;  %vm7211_vm11 = vcmp.gt.f32.partialorder %v15862_v16, 0.0 }
 0xda6   : > { %v15865_v41 = vadd.f32 %v7196_v19, %v17791_v45 }
 0xda7   : > { %v7249_v45 = vmul.f32 1.442695, %v7227_v38 }
 0xda8   : > { %v7228_v52 = vmin.f32 %v15865_v41, 0.0  ;;  %vm7212_vm5 = vcmp.gt.f32.partialorder %v15865_v41, 0.0 }
 0xda9   : > { %10758 = vpow2.f32 %v7249_v45 }
 0xdaa   : > { %v7170_v13 = vpop.f32.mrf.mxu2  ;;  %v7251_v5 = vmul.f32 1.442695, %v7228_v52 }
 0xdab   : > { %v7171_v40 = vadd.f32 %v7170_v13, %v17792_v56 }
 0xdac   : > { %10760 = vpow2.f32 %v7251_v5 }
 0xdad   : > { %v7199_v44 = vpop.f32.mrf.mxu3  ;;  %v7231_v3 = vmin.f32 %v7171_v40, 0.0  ;;  %vm7215_vm9 = vcmp.gt.f32.partialorder %v7171_v40, 0.0 }
 0xdae   : > { %v7200_v59 = vadd.f32 %v7199_v44, %v17792_v56  ;;  %v7243_v44 = vmul.f32 1.442695, %v7224_v35 }
 0xdaf   : > { %v7257_v43 = vmul.f32 1.442695, %v7231_v3  ;;  %v10759_v52 = vpop.eup %10758 }
 0xdb0   : > { %v7232_v18 = vmin.f32 %v7200_v59, 0.0  ;;  %vm7216_vm10 = vcmp.gt.f32.partialorder %v7200_v59, 0.0 }
 0xdb1   : > { %10762 = vpow2.f32 %v7257_v43 }
 0xdb2   : > { %v7173_v55 = vpop.f32.mrf.mxu2  ;;  %v7259_v51 = vmul.f32 1.442695, %v7232_v18  ;;  %v10761_v3 = vpop.eup %10760 }
 0xdb3   : > { %v7174_v56 = vadd.f32 %v7173_v55, %v17794_v6 }
 0xdb4   : > { %10764 = vpow2.f32 %v7259_v51  ;;  %v9845_v51 = vadd.f32 -1.0, %v10759_v52 }
 0xdb5   : > { %v7202_v23 = vpop.f32.mrf.mxu3  ;;  %v7235_v19 = vmin.f32 %v7174_v56, 0.0  ;;  %vm7219_vm7 = vcmp.gt.f32.partialorder %v7174_v56, 0.0 }
 0xdb6   : > { %v7203_v53 = vadd.f32 %v7202_v23, %v17794_v6 }
 0xdb7   : > { %v7265_v13 = vmul.f32 1.442695, %v7235_v19  ;;  %v10763_v55 = vpop.eup %10762 }
 0xdb8   : > { %v7236_v10 = vmin.f32 %v7203_v53, 0.0  ;;  %v9849_v23 = vadd.f32 -1.0, %v10763_v55  ;;  %vm7220_vm8 = vcmp.gt.f32.partialorder %v7203_v53, 0.0  ;;  %v7291_v55 = vsel %vm7211_vm11, %v15862_v16, %v9845_v51 }
 0xdb9   : > { %10766 = vpow2.f32 %v7265_v13 }
 0xdba   : > { %v7267_v38 = vmul.f32 1.442695, %v7236_v10  ;;  %v10765_v18 = vpop.eup %10764  ;;  %v7295_v13 = vsel %vm7215_vm9, %v7171_v40, %v9849_v23 }
 0xdbb   : > { %v9850_v43 = vadd.f32 -1.0, %v10765_v18 }
 0xdbc   : > { %10768 = vpow2.f32 %v7267_v38 }
 0xdbd   : > { %10770 = vpow2.f32 %v7241_v8  ;;  %v9846_v8 = vadd.f32 -1.0, %v10761_v3  ;;  %v7296_v38 = vsel %vm7216_vm10, %v7200_v59, %v9850_v43 }
 0xdbe   : > { %10772 = vpow2.f32 %v7243_v44 }
 0xdbf   : > { %v10767_v9 = vpop.eup %10766 }
 0xdc0   : > { %v9853_v45 = vadd.f32 -1.0, %v10767_v9 }
 0xdc2   : > { %v10769_v6 = vpop.eup %10768  ;;  %v7299_v35 = vsel %vm7219_vm7, %v7174_v56, %v9853_v45  ;;  %v7292_v56 = vsel %vm7212_vm5, %v15865_v41, %v9846_v8 }
 0xdc3   : > { %v10771_v5 = vpop.eup %10770  ;;  %v9854_v36 = vadd.f32 -1.0, %v10769_v6  ;;  %7377 = vmatpush.msrb.mxu2 %v7299_v35 }
 0xdc4   : > { %v10773_v19 = vpop.eup %10772  ;;  %v9841_v44 = vadd.f32 -1.0, %v10771_v5 }
 0xdc5   : > { %v7300_v10 = vsel %vm7220_vm8, %v7203_v53, %v9854_v36  ;;  %7378 = vmatpush.msrb.mxu2 %v7295_v13  ;;  %v9842_v9 = vadd.f32 -1.0, %v10773_v19 }
 0xdc6   : > { %7409 = vmatpush.msrb.mxu3 %v7300_v10  ;;  %v7287_v40 = vsel %vm7207_vm3, %v15872_v62, %v9841_v44 }
 0xdc7   : > { %7379 = vmatpush.msrb.mxu2 %v7291_v55  ;;  %v7288_v59 = vsel %vm7208_vm12, %v15875_v7, %v9842_v9 }
 0xdc8   : > { %7410 = vmatpush.msrb.mxu3 %v7296_v38 }
 0xdc9   : > { %7380 = vmatpush.msrb.mxu2 %v7287_v40 }
 0xdca   : > { %7411 = vmatpush.msrb.mxu3 %v7292_v56  ;;  %9865 = vmatmul.msk.f32.vlgmr.msrb.gmra.mxu2 %vm2656_vm15, %v15819_v11 }
 0xdcc   : > { %7412 = vmatpush.msrb.mxu3 %v7288_v59 }
 0xdcd   : > { %9870 = vmatmul.msk.f32.vlgmr.msrb.gmra.mxu3 %vm2656_vm15, %v15819_v11 }
 0xdd2   : > { %9866 = vmatmul.msk.f32.gmra.mxu2 %vm2656_vm15, %v15828_v47 }
 0xdd5   : > { %9871 = vmatmul.msk.f32.gmra.mxu3 %vm2656_vm15, %v15828_v47 }
 0xdda   : > { %9867 = vmatmul.msk.f32.gmra.mxu2 %vm2656_vm15, %v15837_v26 }
 0xddd   : > { %9872 = vmatmul.msk.f32.gmra.mxu3 %vm2656_vm15, %v15837_v26 }
 0xde0   : > { %v7318_v16 = vpop.f32.mrf.mxu0 }
 0xde1   : > { %v15926_v40 = vadd.f32 %v7318_v16, %v13909_v29 }
 0xde2   : > { %9868 = vmatmul.msk.f32.gmra.mxu2 %vm2656_vm15, %v15846_v25 }
 0xde3   : > { %v7350_v41 = vpop.f32.mrf.mxu1 }
 0xde5   : > { %9873 = vmatmul.msk.f32.gmra.mxu3 %vm2656_vm15, %v15846_v25 }
 0xde8   : > { %v7321_v11 = vpop.f32.mrf.mxu0 }
 0xdea   : > { %9869 = vmatmul.msk.f32.gmra.mxu2 %vm2656_vm15, %v15855_v37 }
 0xdeb   : > { %v7353_v62 = vpop.f32.mrf.mxu1 }
 0xded   : > { %9874 = vmatmul.msk.f32.gmra.mxu3 %vm2656_vm15, %v15855_v37  ;;  %v15912_v37 = vadd.f32 %v7321_v11, %v13917_v60 }
 0xdef   : > { %v7453_v44 = vmin.f32 %v15912_v37, 0.0  ;;  %vm7433_vm1 = vcmp.gt.f32.partialorder %v15912_v37, 0.0 }
 0xdf0   : > { %v7324_v47 = vpop.f32.mrf.mxu0 }
 0xdf1   : > { %v15915_v35 = vadd.f32 %v7324_v47, %v13924_v27  ;;  %v7477_v59 = vmul.f32 1.442695, %v7453_v44  ;;  %v15932_v47 = vadd.f32 %v7350_v41, %v13909_v29 }
 0xdf3   : > { %v7356_v7 = vpop.f32.mrf.mxu1  ;;  %v7457_v9 = vmin.f32 %v15915_v35, 0.0  ;;  %v7450_v41 = vmin.f32 %v15932_v47, 0.0  ;;  %vm7437_vm14 = vcmp.gt.f32.partialorder %v15915_v35, 0.0 }
 0xdf4   : > { %v15929_v11 = vadd.f32 %v7356_v7, %v13924_v27 }
 0xdf6   : > { %vm7438_vm12 = vcmp.gt.f32.partialorder %v15929_v11, 0.0 }
 0xdf8   : > { %v7327_v53 = vpop.f32.mrf.mxu0 }
 0xdf9   : > { %v15920_v55 = vadd.f32 %v7327_v53, %v13906_v31  ;;  %v15936_v53 = vadd.f32 %v7353_v62, %v13917_v60 }
 0xdfb   : > { %v7359_v26 = vpop.f32.mrf.mxu1  ;;  %v7454_v62 = vmin.f32 %v15936_v53, 0.0  ;;  %vm7441_vm4 = vcmp.gt.f32.partialorder %v15920_v55, 0.0 }
 0xdfc   : > { %v15923_v56 = vadd.f32 %v7359_v26, %v13906_v31 }
 0xdfe   : > { %v7462_v26 = vmin.f32 %v15923_v56, 0.0  ;;  %vm7442_vm0 = vcmp.gt.f32.partialorder %v15923_v56, 0.0 }
 0xe00   : > { %v7330_v52 = vpop.f32.mrf.mxu0 }
 0xe01   : > { %v7331_v3 = vadd.f32 %v7330_v52, %v13903_v48  ;;  %v7485_v52 = vmul.f32 1.442695, %v7457_v9 }
 0xe03   : > { %v7362_v18 = vpop.f32.mrf.mxu1  ;;  %v7465_v45 = vmin.f32 %v7331_v3, 0.0  ;;  %vm7445_vm13 = vcmp.gt.f32.partialorder %v7331_v3, 0.0 }
 0xe04   : > { %v7363_v6 = vadd.f32 %v7362_v18, %v13903_v48 }
 0xe05   : > { %v7501_v23 = vmul.f32 1.442695, %v7465_v45  ;;  %v7458_v45 = vmin.f32 %v15929_v11, 0.0 }
 0xe06   : > { %v7466_v25 = vmin.f32 %v7363_v6, 0.0  ;;  %vm7446_vm2 = vcmp.gt.f32.partialorder %v7363_v6, 0.0 }
 0xe07   : > { %10774 = vpow2.f32 %v7501_v23 }
 0xe08   : > { %v7503_v5 = vmul.f32 1.442695, %v7466_v25 }
 0xe0a   : > { %10776 = vpow2.f32 %v7503_v5  ;;  %v7495_v5 = vmul.f32 1.442695, %v7462_v26 }
 0xe0d   : > { %v10775_v36 = vpop.eup %10774 }
 0xe0e   : > { %v9891_v19 = vadd.f32 -1.0, %v10775_v36 }
 0xe10   : > { %v10777_v43 = vpop.eup %10776  ;;  %v7545_v10 = vsel %vm7445_vm13, %v7331_v3, %v9891_v19  ;;  %v7461_v3 = vmin.f32 %v15920_v55, 0.0  ;;  %v7471_v19 = vmul.f32 1.442695, %v7450_v41  ;;  %vm7434_vm13 = vcmp.gt.f32.partialorder %v15936_v53, 0.0 }
 0xe11   : > { %v9892_v51 = vadd.f32 -1.0, %v10777_v43  ;;  %v9895_v8 = vmul.f32 -1.442695, %v7545_v10  ;;  %v7487_v43 = vmul.f32 1.442695, %v7458_v45 }
 0xe12   : > { %v7493_v25 = vmul.f32 1.442695, %v7461_v3  ;;  %v7479_v10 = vmul.f32 1.442695, %v7454_v62 }
 0xe13   : > { %v7546_v13 = vsel %vm7446_vm2, %v7363_v6, %v9892_v51  ;;  %10778 = vpow2.f32 %v9895_v8  ;;  %v7449_v6 = vmin.f32 %v15926_v40, 0.0  ;;  %vm7429_vm2 = vcmp.gt.f32.partialorder %v15926_v40, 0.0 }
 0xe14   : > { %v9896_v38 = vmul.f32 -1.442695, %v7546_v13 }
 0xe15   : > { %v7469_v36 = vmul.f32 1.442695, %v7449_v6 }
 0xe16   : > { %10780 = vpow2.f32 %v9896_v38 }
 0xe17   : > { %10782 = vpow2.f32 %v7477_v59 }
 0xe18   : > { %10784 = vpow2.f32 %v7485_v52 }
 0xe19   : > { %v10779_v18 = vpop.eup %10778 }
 0xe1a   : > { %v15941_v7 = vadd.f32 1.0, %v10779_v18 }
 0xe1c   : > { %v10781_v16 = vpop.eup %10780  ;;  %10786 = vrcp.f32 %v15941_v7  ;;  %v7576_v6 = vand.u32 2147483648, %v15941_v7  ;;  %v7574_v62 = vand.u32 2147483647, %v15941_v7  ;;  %vm7570_vm8 = vweird.f32 %v15941_v7 }
 0xe1d   : > { %v15944_v23 = vadd.f32 1.0, %v10781_v16  ;;  %v10783_v51 = vpop.eup %10782 }
 0xe1e   : > { %v10785_v8 = vpop.eup %10784  ;;  %v9879_v52 = vadd.f32 -1.0, %v10783_v51  ;;  %v7577_v46 = vor.u32 1.1754944e-38, %v7576_v6  ;;  %vm7575_vm5 = vcmp.eq.f32.partialorder %v7574_v62, 8.507059e+37 }
 0xe1f   : > { %10788 = vrcp.f32 %v15944_v23  ;;  %v9883_v18 = vadd.f32 -1.0, %v10785_v8  ;;  %vm7585_vm10 = vweird.f32 %v15944_v23 }
 0xe20   : > { %10790 = vpow2.f32 %v7493_v25  ;;  %v7591_v25 = vand.u32 2147483648, %v15944_v23 }
 0xe21   : > { %10792 = vpow2.f32 %v7495_v5 }
 0xe22   : > { %10794 = vpow2.f32 %v7469_v36  ;;  %v10787_v13 = vpop.eup %10786 }
 0xe23   : > { %10796 = vpow2.f32 %v7487_v43  ;;  %v7566_v38 = vmul.f32 %v10787_v13, %v15941_v7  ;;  %vm7571_vm6 = vweird.f32 %v10787_v13 }
 0xe24   : > { %10798 = vpow2.f32 %v7471_v19  ;;  %v7589_v19 = vand.u32 2147483647, %v15944_v23  ;;  %vm7572_vm9 = vmor %vm7570_vm8, %vm7571_vm6 }
 0xe25   : > { %v10789_v44 = vpop.eup %10788  ;;  %10800 = vpow2.f32 %v7479_v10  ;;  %v7567_v3 = vsub.f32 1.0, %v7566_v38  ;;  %v15961_v38 = vld [vmem:[%s11835_s2 + $0x8] sm:$0xf] }
 0xe26   : > { %v7581_v9 = vmul.f32 %v10789_v44, %v15944_v23  ;;  %v10791_v59 = vpop.eup %10790  ;;  %vm7586_vm7 = vweird.f32 %v10789_v44  ;;  %vm7590_vm3 = vcmp.eq.f32.partialorder %v7589_v19, 8.507059e+37  ;;  %v17795_v6 = vperm.slane %v15961_v38, 0 }
 0xe27   : > { %v10793_v26 = vpop.eup %10792  ;;  %v7568_v41 = vmul.f32 %v10787_v13, %v7567_v3  ;;  %v9887_v36 = vadd.f32 -1.0, %v10791_v59  ;;  %vm7587_vm11 = vmor %vm7585_vm10, %vm7586_vm7 }
 0xe28   : > { %v7582_v16 = vsub.f32 1.0, %v7581_v9  ;;  %v10795_v45 = vpop.eup %10794  ;;  %v9888_v10 = vadd.f32 -1.0, %v10793_v26  ;;  %v7592_v26 = vor.u32 1.1754944e-38, %v7591_v25 }
 0xe29   : > { %v10797_v5 = vpop.eup %10796  ;;  %v7569_v8 = vadd.f32 %v10787_v13, %v7568_v41  ;;  %v7541_v7 = vsel %vm7441_vm4, %v15920_v55, %v9887_v36 }
 0xe2a   : > { %v7583_v43 = vmul.f32 %v10789_v44, %v7582_v16  ;;  %v10799_v51 = vpop.eup %10798  ;;  %v9884_v28 = vadd.f32 -1.0, %v10797_v5  ;;  %v7542_v23 = vsel %vm7442_vm0, %v15923_v56, %v9888_v10  ;;  %v9875_v16 = vadd.f32 -1.0, %v10795_v45 }
 0xe2b   : > { %v10801_v3 = vpop.eup %10800  ;;  %v7573_v33 = vsel %vm7572_vm9, %v10787_v13, %v7569_v8  ;;  %v7537_v13 = vsel %vm7437_vm14, %v15915_v35, %v9883_v18  ;;  %v9876_v55 = vadd.f32 -1.0, %v10799_v51  ;;  %v15984_v25 = vadd.f32 %v7541_v7, %v15648_v54  ;;  %v16045_v51 = vld [vmem:[%s17085_s19 + $0x10] sm:$0xff] }
 0xe2c   : > { %v7584_v59 = vadd.f32 %v10789_v44, %v7583_v43  ;;  %v7578_v41 = vsel %vm7575_vm5, %v7577_v46, %v7573_v33  ;;  %v9880_v57 = vadd.f32 -1.0, %v10801_v3  ;;  %v17796_v33 = vperm.slane %v15961_v38, 1 }
 0xe2d   : > { %v7634_v5 = vmul.f32 %v17795_v6, %v7578_v41  ;;  %v7533_v45 = vsel %vm7433_vm1, %v15912_v37, %v9879_v52  ;;  %v15991_v35 = vadd.f32 %v7542_v23, %v15654_v32  ;;  %vm7430_vm14 = vcmp.gt.f32.partialorder %v15932_v47, 0.0 }
 0xe2e   : > { %v7588_v9 = vsel %vm7587_vm11, %v10789_v44, %v7584_v59  ;;  %v7538_v44 = vsel %vm7438_vm12, %v15929_v11, %v9884_v28  ;;  %v7534_v62 = vsel %vm7434_vm13, %v15936_v53, %v9880_v57  ;;  %v15996_v28 = vadd.f32 %v7537_v13, %v15650_v58 }
 0xe2f   : > { %v7593_v43 = vsel %vm7590_vm3, %v7592_v26, %v7588_v9  ;;  %v7654_v56 = vperm.slane %v7634_v5, 0  ;;  %v7529_v11 = vsel %vm7429_vm2, %v15926_v40, %v9875_v16  ;;  %v16002_v37 = vadd.f32 %v7538_v44, %v15656_v34  ;;  %v16054_v9 = vld [vmem:[%s17085_s19 + $0x18] sm:$0xff] }
 0xe30   : > { %v7635_v46 = vmul.f32 %v17796_v33, %v7593_v43  ;;  %v7530_v52 = vsel %vm7430_vm14, %v15932_v47, %v9876_v55  ;;  %v16007_v36 = vadd.f32 %v7533_v45, %v15661_v14  ;;  %v16011_v58 = vadd.f32 %v7534_v62, %v15666_v50 }
 0xe31   : > { %v7670_v54 = vmul.f32 %v7654_v56, %v15984_v25  ;;  %v7666_v57 = vmul.f32 %v7654_v56, %v15996_v28  ;;  %v16015_v53 = vadd.f32 %v7529_v11, %v15672_v21  ;;  %v16019_v47 = vadd.f32 %v7530_v52, %v15677_v49  ;;  %v16027_v21 = vld [vmem:[%s17085_s19] sm:$0xff]  ;;  %v16036_v49 = vld [vmem:[%s17085_s19 + $0x8] sm:$0xff] }
 0xe32   : > { %v7655_v18 = vperm.slane %v7635_v46, 0  ;;  %v7662_v34 = vmul.f32 %v7654_v56, %v16007_v36 }
 0xe33   : > { %7686 = vmatpush.msra.mxu0 %v7670_v54  ;;  %v7658_v19 = vmul.f32 %v7654_v56, %v16015_v53 }
 0xe34   : > { %v7671_v32 = vmul.f32 %v7655_v18, %v15991_v35  ;;  %v7667_v40 = vmul.f32 %v7655_v18, %v16002_v37  ;;  %v7663_v14 = vmul.f32 %v7655_v18, %v16011_v58  ;;  %v7659_v50 = vmul.f32 %v7655_v18, %v16019_v47 }
 0xe35   : > { %7687 = vmatpush.msra.mxu0 %v7666_v57 }
 0xe36   : > { %7715 = vmatpush.msra.mxu1 %v7671_v32 }
 0xe37   : > { %7688 = vmatpush.msra.mxu0 %v7662_v34 }
 0xe38   : > { %7716 = vmatpush.msra.mxu1 %v7667_v40 }
 0xe39   : > { %7689 = vmatpush.msra.mxu0 %v7658_v19 }
 0xe3a   : > { %7717 = vmatpush.msra.mxu1 %v7663_v14  ;;  %9899 = vmatmul.msk.f32.vlgmr.msra.gmra.mxu0 %vm2656_vm15, %v16027_v21 }
 0xe3c   : > { %7718 = vmatpush.msra.mxu1 %v7659_v50 }
 0xe3d   : > { %9903 = vmatmul.msk.f32.vlgmr.msra.gmra.mxu1 %vm2656_vm15, %v16027_v21 }
 0xe42   : > { %9900 = vmatmul.msk.f32.gmra.mxu0 %vm2656_vm15, %v16036_v49 }
 0xe45   : > { %9904 = vmatmul.msk.f32.gmra.mxu1 %vm2656_vm15, %v16036_v49 }
 0xe4a   : > { %9901 = vmatmul.msk.f32.gmra.mxu0 %vm2656_vm15, %v16045_v51 }
 0xe4d   : > { %9905 = vmatmul.msk.f32.gmra.mxu1 %vm2656_vm15, %v16045_v51  ;;  %v7382_v10 = vpop.f32.mrf.mxu2 }
 0xe4e   : > { %v16077_v19 = vadd.f32 %v7382_v10, %v13909_v29 }
 0xe50   : > { %v7414_v8 = vpop.f32.mrf.mxu3 }
 0xe52   : > { %9902 = vmatmul.msk.f32.gmra.mxu0 %vm2656_vm15, %v16054_v9 }
 0xe55   : > { %9906 = vmatmul.msk.f32.gmra.mxu1 %vm2656_vm15, %v16054_v9  ;;  %v7385_v3 = vpop.f32.mrf.mxu2 }
 0xe56   : > { %v16063_v45 = vadd.f32 %v7385_v3, %v13917_v60 }
 0xe58   : > { %v7417_v59 = vpop.f32.mrf.mxu3  ;;  %v7455_v52 = vmin.f32 %v16063_v45, 0.0  ;;  %vm7435_vm8 = vcmp.gt.f32.partialorder %v16063_v45, 0.0 }
 0xe5a   : > { %v7481_v50 = vmul.f32 1.442695, %v7455_v52 }
 0xe5d   : > { %v7388_v16 = vpop.f32.mrf.mxu2 }
 0xe5e   : > { %v16066_v62 = vadd.f32 %v7388_v16, %v13924_v27  ;;  %v16083_v16 = vadd.f32 %v7414_v8, %v13909_v29 }
 0xe60   : > { %v7420_v26 = vpop.f32.mrf.mxu3  ;;  %v7459_v40 = vmin.f32 %v16066_v62, 0.0  ;;  %vm7439_vm1 = vcmp.gt.f32.partialorder %v16066_v62, 0.0 }
 0xe61   : > { %v16080_v3 = vadd.f32 %v7420_v26, %v13924_v27  ;;  %v7452_v26 = vmin.f32 %v16083_v16, 0.0 }
 0xe63   : > { %vm7440_vm14 = vcmp.gt.f32.partialorder %v16080_v3, 0.0 }
 0xe65   : > { %v7391_v7 = vpop.f32.mrf.mxu2 }
 0xe66   : > { %v16071_v34 = vadd.f32 %v7391_v7, %v13906_v31  ;;  %v16087_v7 = vadd.f32 %v7417_v59, %v13917_v60 }
 0xe68   : > { %v7423_v41 = vpop.f32.mrf.mxu3  ;;  %vm7443_vm6 = vcmp.gt.f32.partialorder %v16071_v34, 0.0 }
 0xe69   : > { %v16074_v14 = vadd.f32 %v7423_v41, %v13906_v31 }
 0xe6b   : > { %v7464_v31 = vmin.f32 %v16074_v14, 0.0  ;;  %vm7444_vm7 = vcmp.gt.f32.partialorder %v16074_v14, 0.0 }
 0xe6d   : > { %v7394_v23 = vpop.f32.mrf.mxu2 }
 0xe6e   : > { %v7395_v6 = vadd.f32 %v7394_v23, %v13903_v48  ;;  %v7489_v23 = vmul.f32 1.442695, %v7459_v40 }
 0xe70   : > { %v7426_v5 = vpop.f32.mrf.mxu3  ;;  %v7467_v13 = vmin.f32 %v7395_v6, 0.0  ;;  %vm7447_vm4 = vcmp.gt.f32.partialorder %v7395_v6, 0.0 }
 0xe71   : > { %v7427_v43 = vadd.f32 %v7426_v5, %v13903_v48  ;;  %v7451_v5 = vmin.f32 %v16077_v19, 0.0 }
 0xe72   : > { %v7505_v46 = vmul.f32 1.442695, %v7467_v13  ;;  %v7456_v13 = vmin.f32 %v16087_v7, 0.0 }
 0xe73   : > { %v7468_v33 = vmin.f32 %v7427_v43, 0.0  ;;  %vm7448_vm0 = vcmp.gt.f32.partialorder %v7427_v43, 0.0  ;;  %v7473_v60 = vmul.f32 1.442695, %v7451_v5 }
 0xe74   : > { %10802 = vpow2.f32 %v7505_v46  ;;  %v7475_v46 = vmul.f32 1.442695, %v7452_v26 }
 0xe75   : > { %v7507_v55 = vmul.f32 1.442695, %v7468_v33  ;;  %v7499_v33 = vmul.f32 1.442695, %v7464_v31 }
 0xe77   : > { %10804 = vpow2.f32 %v7507_v55 }
 0xe7a   : > { %v10803_v44 = vpop.eup %10802 }
 0xe7b   : > { %v9893_v18 = vadd.f32 -1.0, %v10803_v44  ;;  %v7483_v44 = vmul.f32 1.442695, %v7456_v13 }
 0xe7d   : > { %v10805_v56 = vpop.eup %10804  ;;  %v7547_v11 = vsel %vm7447_vm4, %v7395_v6, %v9893_v18  ;;  %v7463_v6 = vmin.f32 %v16071_v34, 0.0  ;;  %vm7436_vm4 = vcmp.gt.f32.partialorder %v16087_v7, 0.0 }
 0xe7e   : > { %v9894_v54 = vadd.f32 -1.0, %v10805_v56  ;;  %v9897_v48 = vmul.f32 -1.442695, %v7547_v11 }
 0xe7f   : > { %v7497_v29 = vmul.f32 1.442695, %v7463_v6 }
 0xe80   : > { %v7548_v32 = vsel %vm7448_vm0, %v7427_v43, %v9894_v54  ;;  %10806 = vpow2.f32 %v9897_v48  ;;  %v7460_v43 = vmin.f32 %v16080_v3, 0.0  ;;  %vm7431_vm0 = vcmp.gt.f32.partialorder %v16077_v19, 0.0 }
 0xe81   : > { %v9898_v57 = vmul.f32 -1.442695, %v7548_v32 }
 0xe82   : > { %v7491_v59 = vmul.f32 1.442695, %v7460_v43 }
 0xe83   : > { %10808 = vpow2.f32 %v9898_v57 }
 0xe84   : > { %10810 = vpow2.f32 %v7481_v50 }
 0xe85   : > { %10812 = vpow2.f32 %v7489_v23 }
 0xe86   : > { %v10807_v41 = vpop.eup %10806 }
 0xe87   : > { %v7563_v27 = vadd.f32 1.0, %v10807_v41 }
 0xe89   : > { %v10809_v10 = vpop.eup %10808  ;;  %10814 = vrcp.f32 %v7563_v27  ;;  %v7606_v23 = vand.u32 2147483648, %v7563_v27  ;;  %vm7600_vm11 = vweird.f32 %v7563_v27 }
 0xe8a   : > { %v7564_v8 = vadd.f32 1.0, %v10809_v10  ;;  %v10811_v55 = vpop.eup %10810  ;;  %v7604_v10 = vand.u32 2147483647, %v7563_v27 }
 0xe8b   : > { %v10813_v56 = vpop.eup %10812  ;;  %v9881_v52 = vadd.f32 -1.0, %v10811_v55 }
 0xe8c   : > { %10816 = vrcp.f32 %v7564_v8  ;;  %v9885_v50 = vadd.f32 -1.0, %v10813_v56  ;;  %v7621_v5 = vand.u32 2147483648, %v7564_v8  ;;  %v7619_v13 = vand.u32 2147483647, %v7564_v8 }
 0xe8d   : > { %10818 = vpow2.f32 %v7497_v29  ;;  %vm7615_vm3 = vweird.f32 %v7564_v8  ;;  %vm7605_vm13 = vcmp.eq.f32.partialorder %v7604_v10, 8.507059e+37 }
 0xe8e   : > { %10820 = vpow2.f32 %v7499_v33  ;;  %vm7620_vm2 = vcmp.eq.f32.partialorder %v7619_v13, 8.507059e+37 }
 0xe8f   : > { %10822 = vpow2.f32 %v7473_v60  ;;  %v10815_v18 = vpop.eup %10814 }
 0xe90   : > { %10824 = vpow2.f32 %v7491_v59  ;;  %v7596_v11 = vmul.f32 %v10815_v18, %v7563_v27  ;;  %vm7601_vm9 = vweird.f32 %v10815_v18 }
 0xe91   : > { %10826 = vpow2.f32 %v7475_v46  ;;  %v7628_v46 = vperm.slane %v15961_v38, 2  ;;  %vm7602_vm5 = vmor %vm7600_vm11, %vm7601_vm9 }
 0xe92   : > { %v10817_v54 = vpop.eup %10816  ;;  %10828 = vpow2.f32 %v7483_v44  ;;  %v7597_v57 = vsub.f32 1.0, %v7596_v11  ;;  %v7607_v44 = vor.u32 1.1754944e-38, %v7606_v23  ;;  %v17380_v11 = vperm.slane %v15961_v38, 3 }
 0xe93   : > { %v7611_v48 = vmul.f32 %v10817_v54, %v7564_v8  ;;  %v10819_v32 = vpop.eup %10818  ;;  %vm7616_vm10 = vweird.f32 %v10817_v54 }
 0xe94   : > { %v10821_v40 = vpop.eup %10820  ;;  %v7598_v41 = vmul.f32 %v10815_v18, %v7597_v57  ;;  %v9889_v26 = vadd.f32 -1.0, %v10819_v32  ;;  %vm7617_vm12 = vmor %vm7615_vm3, %vm7616_vm10  ;;  %v7622_v57 = vor.u32 1.1754944e-38, %v7621_v5 }
 0xe95   : > { %v7612_v6 = vsub.f32 1.0, %v7611_v48  ;;  %v10823_v31 = vpop.eup %10822  ;;  %v9890_v60 = vadd.f32 -1.0, %v10821_v40 }
 0xe96   : > { %v10825_v43 = vpop.eup %10824  ;;  %v7599_v59 = vadd.f32 %v10815_v18, %v7598_v41  ;;  %v7543_v40 = vsel %vm7443_vm6, %v16071_v34, %v9889_v26 }
 0xe97   : > { %v7613_v29 = vmul.f32 %v10817_v54, %v7612_v6  ;;  %v10827_v33 = vpop.eup %10826  ;;  %v9886_v48 = vadd.f32 -1.0, %v10825_v43  ;;  %v7544_v8 = vsel %vm7444_vm7, %v16074_v14, %v9890_v60  ;;  %v16116_v10 = vadd.f32 %v7543_v40, %v15735_v24 }
 0xe98   : > { %v10829_v55 = vpop.eup %10828  ;;  %v7603_v32 = vsel %vm7602_vm5, %v10815_v18, %v7599_v59  ;;  %v7539_v18 = vsel %vm7439_vm1, %v16066_v62, %v9885_v50  ;;  %v16123_v62 = vadd.f32 %v7544_v8, %v15741_v12  ;;  %vm7432_vm1 = vcmp.gt.f32.partialorder %v16083_v16, 0.0 }
 0xe99   : > { %v7614_v56 = vadd.f32 %v10817_v54, %v7613_v29  ;;  %v7608_v27 = vsel %vm7605_vm13, %v7607_v44, %v7603_v32  ;;  %v9882_v41 = vadd.f32 -1.0, %v10829_v55  ;;  %v9877_v29 = vadd.f32 -1.0, %v10823_v31 }
 0xe9a   : > { %v7636_v23 = vmul.f32 %v7628_v46, %v7608_v27  ;;  %v7540_v5 = vsel %vm7440_vm14, %v16080_v3, %v9886_v48  ;;  %v7535_v31 = vsel %vm7435_vm8, %v16063_v45, %v9881_v52  ;;  %v16128_v3 = vadd.f32 %v7539_v18, %v15737_v1 }
 0xe9b   : > { %v7618_v6 = vsel %vm7617_vm12, %v10817_v54, %v7614_v56  ;;  %v9878_v54 = vadd.f32 -1.0, %v10827_v33  ;;  %v7536_v26 = vsel %vm7436_vm4, %v16087_v7, %v9882_v41  ;;  %v7531_v13 = vsel %vm7431_vm0, %v16077_v19, %v9877_v29 }
 0xe9c   : > { %v7623_v43 = vsel %vm7620_vm2, %v7622_v57, %v7618_v6  ;;  %v7656_v14 = vperm.slane %v7636_v23, 0  ;;  %v16134_v45 = vadd.f32 %v7540_v5, %v15743_v30  ;;  %v16139_v33 = vadd.f32 %v7535_v31, %v15748_v42 }
 0xe9d   : > { %v7637_v34 = vmul.f32 %v17380_v11, %v7623_v43  ;;  %v7532_v52 = vsel %vm7432_vm1, %v16083_v16, %v9878_v54  ;;  %v16143_v7 = vadd.f32 %v7536_v26, %v15753_v17  ;;  %v16147_v60 = vadd.f32 %v7531_v13, %v15759_v39 }
 0xe9e   : > { %v7672_v24 = vmul.f32 %v7656_v14, %v16116_v10  ;;  %v7668_v1 = vmul.f32 %v7656_v14, %v16128_v3  ;;  %v7664_v30 = vmul.f32 %v7656_v14, %v16139_v33  ;;  %v16151_v16 = vadd.f32 %v7532_v52, %v15764_v20 }
 0xe9f   : > { %v7657_v50 = vperm.slane %v7637_v34, 0  ;;  %v7660_v59 = vmul.f32 %v7656_v14, %v16147_v60 }
 0xea0   : > { %7744 = vmatpush.msra.mxu2 %v7672_v24 }
 0xea1   : > { %v7673_v12 = vmul.f32 %v7657_v50, %v16123_v62  ;;  %v7669_v19 = vmul.f32 %v7657_v50, %v16134_v45  ;;  %v7665_v42 = vmul.f32 %v7657_v50, %v16143_v7  ;;  %v7661_v17 = vmul.f32 %v7657_v50, %v16151_v16 }
 0xea2   : > { %7745 = vmatpush.msra.mxu2 %v7668_v1 }
 0xea3   : > { %7773 = vmatpush.msra.mxu3 %v7673_v12 }
 0xea4   : > { %7746 = vmatpush.msra.mxu2 %v7664_v30 }
 0xea5   : > { %7774 = vmatpush.msra.mxu3 %v7669_v19 }
 0xea6   : > { %7747 = vmatpush.msra.mxu2 %v7660_v59 }
 0xea7   : > { %7775 = vmatpush.msra.mxu3 %v7665_v42  ;;  %9907 = vmatmul.msk.f32.vlgmr.msra.gmra.mxu2 %vm2656_vm15, %v16027_v21 }
 0xea9   : > { %7776 = vmatpush.msra.mxu3 %v7661_v17 }
 0xeaa   : > { %9911 = vmatmul.msk.f32.vlgmr.msra.gmra.mxu3 %vm2656_vm15, %v16027_v21 }
 0xeaf   : > { %9908 = vmatmul.msk.f32.gmra.mxu2 %vm2656_vm15, %v16036_v49 }
 0xeb2   : > { %9912 = vmatmul.msk.f32.gmra.mxu3 %vm2656_vm15, %v16036_v49 }
 0xeb7   : > { %9909 = vmatmul.msk.f32.gmra.mxu2 %vm2656_vm15, %v16045_v51  ;;  %v7691_v39 = vpop.f32.mrf.mxu0 }
 0xeba   : > { %9913 = vmatmul.msk.f32.gmra.mxu3 %vm2656_vm15, %v16045_v51  ;;  %v7720_v20 = vpop.f32.mrf.mxu1 }
 0xebb   : > { %v16186_v6 = vadd.f32 %v7720_v20, %v14223_v61 }
 0xebd   : > { %v7807_v5 = vmin.f32 %v16186_v6, 0.0  ;;  %vm7791_vm3 = vcmp.gt.f32.partialorder %v16186_v6, 0.0 }
 0xebf   : > { %9910 = vmatmul.msk.f32.gmra.mxu2 %vm2656_vm15, %v16054_v9  ;;  %v7694_v21 = vpop.f32.mrf.mxu0  ;;  %v7824_v12 = vmul.f32 1.442695, %v7807_v5 }
 0xec0   : > { %v16173_v44 = vadd.f32 %v7694_v21, %v14225_v15 }
 0xec2   : > { %9914 = vmatmul.msk.f32.gmra.mxu3 %vm2656_vm15, %v16054_v9  ;;  %v7723_v55 = vpop.f32.mrf.mxu1  ;;  %v7810_v32 = vmin.f32 %v16173_v44, 0.0  ;;  %v16183_v9 = vadd.f32 %v7691_v39, %v14223_v61  ;;  %vm7794_vm10 = vcmp.gt.f32.partialorder %v16173_v44, 0.0 }
 0xec3   : > { %v16176_v49 = vadd.f32 %v7723_v55, %v14225_v15 }
 0xec4   : > { %v7830_v8 = vmul.f32 1.442695, %v7810_v32  ;;  %v7806_v29 = vmin.f32 %v16183_v9, 0.0  ;;  %vm7790_vm5 = vcmp.gt.f32.partialorder %v16183_v9, 0.0 }
 0xec5   : > { %v7811_v40 = vmin.f32 %v16176_v49, 0.0  ;;  %vm7795_vm11 = vcmp.gt.f32.partialorder %v16176_v49, 0.0 }
 0xec6   : > { %10830 = vpow2.f32 %v7830_v8  ;;  %v7822_v24 = vmul.f32 1.442695, %v7806_v29 }
 0xec7   : > { %v7697_v56 = vpop.f32.mrf.mxu0  ;;  %v7832_v23 = vmul.f32 1.442695, %v7811_v40 }
 0xec8   : > { %v7698_v48 = vadd.f32 %v7697_v56, %v14230_v2 }
 0xec9   : > { %10832 = vpow2.f32 %v7832_v23 }
 0xeca   : > { %v7726_v51 = vpop.f32.mrf.mxu1  ;;  %v7814_v27 = vmin.f32 %v7698_v48, 0.0  ;;  %vm7798_vm8 = vcmp.gt.f32.partialorder %v7698_v48, 0.0 }
 0xecb   : > { %v7727_v57 = vadd.f32 %v7726_v51, %v14230_v2 }
 0xecc   : > { %v7838_v18 = vmul.f32 1.442695, %v7814_v27  ;;  %v10831_v1 = vpop.eup %10830 }
 0xecd   : > { %v7815_v41 = vmin.f32 %v7727_v57, 0.0  ;;  %v9919_v40 = vadd.f32 -1.0, %v10831_v1  ;;  %vm7799_vm9 = vcmp.gt.f32.partialorder %v7727_v57, 0.0 }
 0xece   : > { %10834 = vpow2.f32 %v7838_v18 }
 0xecf   : > { %v7700_v43 = vpop.f32.mrf.mxu0  ;;  %v7840_v14 = vmul.f32 1.442695, %v7815_v41  ;;  %v10833_v19 = vpop.eup %10832  ;;  %v7874_v18 = vsel %vm7794_vm10, %v16173_v44, %v9919_v40  ;;  %v16203_v44 = vld [vmem:[%s17656_s24] sm:$0x1] }
 0xed0   : > { %v7701_v34 = vadd.f32 %v7700_v43, %v14221_v22  ;;  %v9920_v41 = vadd.f32 -1.0, %v10833_v19 }
 0xed1   : > { %10836 = vpow2.f32 %v7840_v14 }
 0xed2   : > { %v7729_v54 = vpop.f32.mrf.mxu1  ;;  %v7818_v50 = vmin.f32 %v7701_v34, 0.0  ;;  %vm7802_vm6 = vcmp.gt.f32.partialorder %v7701_v34, 0.0 }
 0xed3   : > { %v7730_v31 = vadd.f32 %v7729_v54, %v14221_v22 }
 0xed4   : > { %v7846_v13 = vmul.f32 1.442695, %v7818_v50  ;;  %v10835_v30 = vpop.eup %10834 }
 0xed5   : > { %v7819_v26 = vmin.f32 %v7730_v31, 0.0  ;;  %v9923_v20 = vadd.f32 -1.0, %v10835_v30  ;;  %vm7803_vm7 = vcmp.gt.f32.partialorder %v7730_v31, 0.0 }
 0xed6   : > { %10838 = vpow2.f32 %v7846_v13 }
 0xed7   : > { %v7848_v52 = vmul.f32 1.442695, %v7819_v26  ;;  %v10837_v42 = vpop.eup %10836  ;;  %v7878_v8 = vsel %vm7798_vm8, %v7698_v48, %v9923_v20 }
 0xed8   : > { %v9924_v56 = vadd.f32 -1.0, %v10837_v42 }
 0xed9   : > { %10840 = vpow2.f32 %v7848_v52 }
 0xeda   : > { %10842 = vpow2.f32 %v7822_v24  ;;  %v7879_v43 = vsel %vm7799_vm9, %v7727_v57, %v9924_v56 }
 0xedb   : > { %10844 = vpow2.f32 %v7824_v12 }
 0xedc   : > { %v10839_v59 = vpop.eup %10838 }
 0xedd   : > { %v9927_v39 = vadd.f32 -1.0, %v10839_v59 }
 0xedf   : > { %v10841_v17 = vpop.eup %10840  ;;  %v7882_v32 = vsel %vm7802_vm6, %v7701_v34, %v9927_v39  ;;  %v7875_v34 = vsel %vm7795_vm11, %v16176_v49, %v9920_v41 }
 0xee0   : > { %v10843_v21 = vpop.eup %10842  ;;  %v9928_v55 = vadd.f32 -1.0, %v10841_v17  ;;  %7898 = vmatpush.msrb.mxu0 %v7882_v32  ;;  %v4734_v32 = vpop.permute.xlu0 %4733 }
 0xee1   : > { %v10845_v51 = vpop.eup %10844  ;;  %v9915_v23 = vadd.f32 -1.0, %v10843_v21 }
 0xee2   : > { %v7883_v27 = vsel %vm7803_vm7, %v7730_v31, %v9928_v55  ;;  %7899 = vmatpush.msrb.mxu0 %v7878_v8  ;;  %v9916_v29 = vadd.f32 -1.0, %v10845_v51 }
 0xee3   : > { %7918 = vmatpush.msrb.mxu1 %v7883_v27  ;;  %v7870_v48 = vsel %vm7790_vm5, %v16183_v9, %v9915_v23  ;;  %v16235_v23 = vperm.slane %v4734_v32, 0 }
 0xee4   : > { %7900 = vmatpush.msrb.mxu0 %v7874_v18  ;;  %v7871_v57 = vsel %vm7791_vm3, %v16186_v6, %v9916_v29 }
 0xee5   : > { %7919 = vmatpush.msrb.mxu1 %v7879_v43 }
 0xee6   : > { %7901 = vmatpush.msrb.mxu0 %v7870_v48 }
 0xee7   : > { %7920 = vmatpush.msrb.mxu1 %v7875_v34  ;;  %9931 = vmatmul.msk.f32.vlgmr.msrb.gmra.mxu0 %vm2656_vm15, %v16203_v44  ;;  %v6351_v34 = vadd.f32 %v15392_v63, %v16235_v23 }
 0xee9   : > { %7921 = vmatpush.msrb.mxu1 %v7871_v57  ;;  %v17797_v57 = vld [vmem:[#allocation47_spill] sm:$0xff] }
 0xeea   : > { %9932 = vmatmul.msk.f32.vlgmr.msrb.gmra.mxu1 %vm2656_vm15, %v16203_v44 }
 0xf2a   : > { %v7749_v49 = vpop.f32.mrf.mxu2 }
 0xf2b   : > { %v16224_v52 = vadd.f32 %v7749_v49, %v14223_v61  ;;  %v4758_v49 = vadd.f32 %v17797_v57, %v16235_v23 }
 0xf2d   : > { %v7778_v54 = vpop.f32.mrf.mxu3  ;;  %vm7792_vm1 = vcmp.gt.f32.partialorder %v16224_v52, 0.0 }
 0xf32   : > { %v7752_v9 = vpop.f32.mrf.mxu2 }
 0xf33   : > { %v16210_v14 = vadd.f32 %v7752_v9, %v14225_v15  ;;  %v17798_v9 = vld [vmem:[#allocation49_spill] sm:$0xff] }
 0xf35   : > { %v7781_v5 = vpop.f32.mrf.mxu3  ;;  %v7812_v13 = vmin.f32 %v16210_v14, 0.0  ;;  %vm7796_vm4 = vcmp.gt.f32.partialorder %v16210_v14, 0.0 }
 0xf36   : > { %v16213_v6 = vadd.f32 %v7781_v5, %v14225_v15  ;;  %v16228_v15 = vadd.f32 %v7778_v54, %v14223_v61  ;;  %v4778_v5 = vadd.f32 %v17798_v9, %v16235_v23 }
 0xf37   : > { %v7834_v30 = vmul.f32 1.442695, %v7812_v13 }
 0xf38   : > { %v7813_v12 = vmin.f32 %v16213_v6, 0.0  ;;  %v7809_v21 = vmin.f32 %v16228_v15, 0.0  ;;  %vm7797_vm0 = vcmp.gt.f32.partialorder %v16213_v6, 0.0  ;;  %vm7793_vm6 = vcmp.gt.f32.partialorder %v16228_v15, 0.0 }
 0xf39   : > { %10846 = vpow2.f32 %v7834_v30 }
 0xf3a   : > { %v7755_v31 = vpop.f32.mrf.mxu2  ;;  %v7836_v42 = vmul.f32 1.442695, %v7813_v12  ;;  %v7828_v41 = vmul.f32 1.442695, %v7809_v21 }
 0xf3b   : > { %v16216_v50 = vadd.f32 %v7755_v31, %v14230_v2 }
 0xf3c   : > { %10848 = vpow2.f32 %v7836_v42 }
 0xf3d   : > { %v7784_v26 = vpop.f32.mrf.mxu3  ;;  %v7816_v1 = vmin.f32 %v16216_v50, 0.0  ;;  %vm7800_vm2 = vcmp.gt.f32.partialorder %v16216_v50, 0.0 }
 0xf3e   : > { %v16219_v24 = vadd.f32 %v7784_v26, %v14230_v2  ;;  %v7808_v2 = vmin.f32 %v16224_v52, 0.0 }
 0xf3f   : > { %v7842_v17 = vmul.f32 1.442695, %v7816_v1  ;;  %v10847_v43 = vpop.eup %10846 }
 0xf40   : > { %v7817_v19 = vmin.f32 %v16219_v24, 0.0  ;;  %v7826_v40 = vmul.f32 1.442695, %v7808_v2  ;;  %v9921_v2 = vadd.f32 -1.0, %v10847_v43  ;;  %vm7801_vm14 = vcmp.gt.f32.partialorder %v16219_v24, 0.0 }
 0xf41   : > { %10850 = vpow2.f32 %v7842_v17  ;;  %v9512_v17 = vmul.f32 -1.442695, %v4778_v5 }
 0xf42   : > { %v7758_v59 = vpop.f32.mrf.mxu2  ;;  %v7844_v55 = vmul.f32 1.442695, %v7817_v19  ;;  %v10849_v29 = vpop.eup %10848  ;;  %v9724_v19 = vmul.f32 -1.442695, %v6351_v34 }
 0xf43   : > { %v7759_v39 = vadd.f32 %v7758_v59, %v14221_v22  ;;  %v9511_v59 = vmul.f32 -1.442695, %v4758_v49  ;;  %v9922_v21 = vadd.f32 -1.0, %v10849_v29 }
 0xf44   : > { %10852 = vpow2.f32 %v7844_v55 }
 0xf45   : > { %v7787_v20 = vpop.f32.mrf.mxu3  ;;  %v7820_v51 = vmin.f32 %v7759_v39, 0.0  ;;  %vm7804_vm12 = vcmp.gt.f32.partialorder %v7759_v39, 0.0 }
 0xf46   : > { %v7788_v56 = vadd.f32 %v7787_v20, %v14221_v22  ;;  %v6331_v22 = vadd.f32 %v15390_v0, %v16235_v23 }
 0xf47   : > { %v7850_v27 = vmul.f32 1.442695, %v7820_v51  ;;  %v10851_v18 = vpop.eup %10850 }
 0xf48   : > { %v7821_v61 = vmin.f32 %v7788_v56, 0.0  ;;  %v9723_v26 = vmul.f32 -1.442695, %v6331_v22  ;;  %v9925_v12 = vadd.f32 -1.0, %v10851_v18  ;;  %vm7805_vm13 = vcmp.gt.f32.partialorder %v7788_v56, 0.0 }
 0xf49   : > { %10854 = vpow2.f32 %v7850_v27 }
 0xf4a   : > { %v7852_v8 = vmul.f32 1.442695, %v7821_v61  ;;  %v10853_v48 = vpop.eup %10852  ;;  %v7880_v55 = vsel %vm7800_vm2, %v16216_v50, %v9925_v12  ;;  %v7877_v50 = vsel %vm7797_vm0, %v16213_v6, %v9922_v21 }
 0xf4b   : > { %v9926_v30 = vadd.f32 -1.0, %v10853_v48 }
 0xf4c   : > { %10856 = vpow2.f32 %v7852_v8 }
 0xf4d   : > { %10858 = vpow2.f32 %v7826_v40  ;;  %v7881_v61 = vsel %vm7801_vm14, %v16219_v24, %v9926_v30 }
 0xf4e   : > { %10860 = vpow2.f32 %v7828_v41 }
 0xf4f   : > { %v10855_v54 = vpop.eup %10854  ;;  %10862 = vpow2.f32 %v9723_v26 }
 0xf50   : > { %v9929_v13 = vadd.f32 -1.0, %v10855_v54  ;;  %10864 = vpow2.f32 %v9724_v19 }
 0xf51   : > { %10866 = vpow2.f32 %v9511_v59 }
 0xf52   : > { %v10857_v31 = vpop.eup %10856  ;;  %v7884_v63 = vsel %vm7804_vm12, %v7759_v39, %v9929_v13  ;;  %10868 = vpow2.f32 %v9512_v17 }
 0xf53   : > { %v10859_v1 = vpop.eup %10858  ;;  %v9930_v0 = vadd.f32 -1.0, %v10857_v31  ;;  %7938 = vmatpush.msrb.mxu2 %v7884_v63 }
 0xf54   : > { %v10861_v42 = vpop.eup %10860  ;;  %v9917_v51 = vadd.f32 -1.0, %v10859_v1 }
 0xf55   : > { %v7885_v20 = vsel %vm7805_vm13, %v7788_v56, %v9930_v0  ;;  %7939 = vmatpush.msrb.mxu2 %v7880_v55  ;;  %v9918_v39 = vadd.f32 -1.0, %v10861_v42  ;;  %v7876_v56 = vsel %vm7796_vm4, %v16210_v14, %v9921_v2  ;;  %v10863_v40 = vpop.eup %10862 }
 0xf56   : > { %7958 = vmatpush.msrb.mxu3 %v7885_v20  ;;  %v7872_v32 = vsel %vm7792_vm1, %v16224_v52, %v9917_v51  ;;  %v10865_v14 = vpop.eup %10864  ;;  %v16261_v41 = vadd.f32 1.0, %v10863_v40 }
 0xf57   : > { %7940 = vmatpush.msrb.mxu2 %v7876_v56  ;;  %v7873_v24 = vsel %vm7793_vm6, %v16228_v15, %v9918_v39  ;;  %v10867_v6 = vpop.eup %10866  ;;  %v16263_v8 = vadd.f32 1.0, %v10865_v14 }
 0xf58   : > { %7959 = vmatpush.msrb.mxu3 %v7881_v61  ;;  %v10869_v27 = vpop.eup %10868  ;;  %v16265_v52 = vadd.f32 1.0, %v10867_v6  ;;  %10870 = vrcp.f32 %v16261_v41  ;;  %vm6414_vm5 = vweird.f32 %v16261_v41  ;;  %v6418_v6 = vand.u32 2147483647, %v16261_v41 }
 0xf59   : > { %7941 = vmatpush.msrb.mxu2 %v7872_v32  ;;  %v16267_v43 = vadd.f32 1.0, %v10869_v27  ;;  %10872 = vrcp.f32 %v16263_v8  ;;  %v6420_v32 = vand.u32 2147483648, %v16261_v41  ;;  %vm6429_vm12 = vweird.f32 %v16263_v8 }
 0xf5a   : > { %7960 = vmatpush.msrb.mxu3 %v7877_v50  ;;  %9933 = vmatmul.msk.f32.vlgmr.msrb.gmra.mxu2 %vm2656_vm15, %v16203_v44  ;;  %10874 = vrcp.f32 %v16265_v52  ;;  %vm4841_vm7 = vweird.f32 %v16265_v52  ;;  %v4845_v20 = vand.u32 2147483647, %v16265_v52  ;;  %v4847_v21 = vand.u32 2147483648, %v16265_v52 }
 0xf5b   : > { %10876 = vrcp.f32 %v16267_v43  ;;  %v4860_v51 = vand.u32 2147483647, %v16267_v43  ;;  %v4862_v61 = vand.u32 2147483648, %v16267_v43  ;;  %v6433_v27 = vand.u32 2147483647, %v16263_v8 }
 0xf5c   : > { %7961 = vmatpush.msrb.mxu3 %v7873_v24  ;;  %v6435_v24 = vand.u32 2147483648, %v16263_v8  ;;  %vm16324_vm13 = vcmp.eq.f32.partialorder %v4845_v20, 8.507059e+37  ;;  %vm4856_vm2 = vweird.f32 %v16267_v43  ;;  %vm6419_vm6 = vcmp.eq.f32.partialorder %v6418_v6, 8.507059e+37 }
 0xf5d   : > { %9934 = vmatmul.msk.f32.vlgmr.msrb.gmra.mxu3 %vm2656_vm15, %v16203_v44  ;;  %vm16329_vm14 = vcmp.eq.f32.partialorder %v4860_v51, 8.507059e+37 }
 0xf5e   : > { %v16273_v44 = vpop.eup %10870 }
 0xf5f   : > { %v16276_v18 = vpop.eup %10872  ;;  %v6410_v9 = vmul.f32 %v16273_v44, %v16261_v41  ;;  %vm6415_vm9 = vweird.f32 %v16273_v44 }
 0xf60   : > { %v16279_v48 = vpop.eup %10874  ;;  %v6425_v5 = vmul.f32 %v16276_v18, %v16263_v8  ;;  %vm6430_vm11 = vweird.f32 %v16276_v18  ;;  %vm16317_vm3 = vmor %vm6414_vm5, %vm6415_vm9  ;;  %v17816_v8 = vperm.slane %v15961_v38, 0 }
 0xf61   : > { %v16281_v49 = vpop.eup %10876  ;;  %v4837_v31 = vmul.f32 %v16279_v48, %v16265_v52  ;;  %v6411_v13 = vsub.f32 1.0, %v6410_v9  ;;  %vm4842_vm8 = vweird.f32 %v16279_v48  ;;  %vm16335_vm4 = vmor %vm6429_vm12, %vm6430_vm11 }
 0xf62   : > { %v4852_v26 = vmul.f32 %v16281_v49, %v16267_v43  ;;  %v6426_v12 = vsub.f32 1.0, %v6425_v5  ;;  %vm4857_vm10 = vweird.f32 %v16281_v49  ;;  %vm16343_vm0 = vmor %vm4841_vm7, %vm4842_vm8  ;;  %v4863_v43 = vor.u32 1.1754944e-38, %v4862_v61 }
 0xf63   : > { %v4838_v1 = vsub.f32 1.0, %v4837_v31  ;;  %v6412_v59 = vmul.f32 %v16273_v44, %v6411_v13  ;;  %vm16359_vm1 = vmor %vm4856_vm2, %vm4857_vm10  ;;  %v6436_v13 = vor.u32 1.1754944e-38, %v6435_v24  ;;  %vm6434_vm7 = vcmp.eq.f32.partialorder %v6433_v27, 8.507059e+37  ;;  %v17813_v24 = vld [vmem:[#allocation28_spill] sm:$0xff] }
 0xf64   : > { %v7903_v15 = vpop.f32.mrf.mxu0  ;;  %v4853_v0 = vsub.f32 1.0, %v4852_v26  ;;  %v6427_v63 = vmul.f32 %v16276_v18, %v6426_v12  ;;  %v6421_v26 = vor.u32 1.1754944e-38, %v6420_v32 }
 0xf65   : > { %v7904_v29 = vadd.f32 %v7903_v15, %v16235_v23  ;;  %v4839_v17 = vmul.f32 %v16279_v48, %v4838_v1  ;;  %v6413_v39 = vadd.f32 %v16273_v44, %v6412_v59 }
 0xf66   : > { %v4854_v55 = vmul.f32 %v16281_v49, %v4853_v0  ;;  %v6428_v56 = vadd.f32 %v16276_v18, %v6427_v63 }
 0xf67   : > { %v7923_v22 = vpop.f32.mrf.mxu1  ;;  %v9935_v57 = vmul.f32 -1.442695, %v7904_v29  ;;  %v4840_v50 = vadd.f32 %v16279_v48, %v4839_v17  ;;  %v17815_v29 = vperm.slane %v17813_v24, 1 }
 0xf68   : > { %v7924_v34 = vadd.f32 %v7923_v22, %v16235_v23  ;;  %v4855_v40 = vadd.f32 %v16281_v49, %v4854_v55  ;;  %v4848_v22 = vor.u32 1.1754944e-38, %v4847_v21  ;;  %v6432_v9 = vsel %vm16335_vm4, %v16276_v18, %v6428_v56 }
 0xf69   : > { %10878 = vpow2.f32 %v9935_v57  ;;  %v4844_v31 = vsel %vm16343_vm0, %v16279_v48, %v4840_v50  ;;  %v17811_v55 = vperm.slane %v14990_v4, 0 }
 0xf6a   : > { %v9936_v54 = vmul.f32 -1.442695, %v7924_v34  ;;  %v4859_v18 = vsel %vm16359_vm1, %v16281_v49, %v4855_v40  ;;  %v4849_v17 = vsel %vm16324_vm13, %v4848_v22, %v4844_v31  ;;  %v17814_v40 = vperm.slane %v17813_v24, 0 }
 0xf6b   : > { %v4864_v21 = vsel %vm16329_vm14, %v4863_v43, %v4859_v18 }
 0xf6c   : > { %10880 = vpow2.f32 %v9936_v54  ;;  %v6417_v54 = vsel %vm16317_vm3, %v16273_v44, %v6413_v39  ;;  %v17812_v39 = vperm.slane %v14990_v4, 1  ;;  %v4896_v14 = vmul.f32 %v4849_v17, %v17814_v40 }
 0xf6d   : > { %v6422_v1 = vsel %vm6419_vm6, %v6421_v26, %v6417_v54  ;;  %v4897_v22 = vmul.f32 %v4864_v21, %v17815_v29 }
 0xf6e   : > { %v6469_v51 = vmul.f32 %v6422_v1, %v17811_v55 }
 0xf6f   : > { %v10879_v19 = vpop.eup %10878 }
 0xf70   : > { %v16291_v42 = vadd.f32 1.0, %v10879_v19  ;;  %v6437_v19 = vsel %vm6434_vm7, %v6436_v13, %v6432_v9  ;;  %v8046_v41 = vadd.f32 %v6469_v51, %v4896_v14 }
 0xf71   : > { %v6470_v56 = vmul.f32 %v6437_v19, %v17812_v39 }
 0xf72   : > { %v10881_v30 = vpop.eup %10880  ;;  %10882 = vrcp.f32 %v16291_v42  ;;  %v7993_v48 = vand.u32 2147483648, %v16291_v42  ;;  %v7991_v59 = vand.u32 2147483647, %v16291_v42  ;;  %vm7987_vm10 = vweird.f32 %v16291_v42 }
 0xf73   : > { %v16295_v2 = vadd.f32 1.0, %v10881_v30  ;;  %v8047_v9 = vadd.f32 %v6470_v56, %v4897_v22 }
 0xf74   : > { %v7994_v50 = vor.u32 1.1754944e-38, %v7993_v48  ;;  %vm7992_vm3 = vcmp.eq.f32.partialorder %v7991_v59, 8.507059e+37 }
 0xf75   : > { %10884 = vrcp.f32 %v16295_v2  ;;  %v8008_v63 = vand.u32 2147483648, %v16295_v2  ;;  %v8006_v49 = vand.u32 2147483647, %v16295_v2  ;;  %vm8002_vm5 = vweird.f32 %v16295_v2 }
 0xf77   : > { %v8009_v27 = vor.u32 1.1754944e-38, %v8008_v63  ;;  %vm8007_vm13 = vcmp.eq.f32.partialorder %v8006_v49, 8.507059e+37 }
 0xf78   : > { %v10883_v15 = vpop.eup %10882 }
 0xf79   : > { %v7983_v5 = vmul.f32 %v10883_v15, %v16291_v42  ;;  %vm7988_vm8 = vweird.f32 %v10883_v15 }
 0xf7a   : > { %vm7989_vm11 = vmor %vm7987_vm10, %vm7988_vm8 }
 0xf7b   : > { %v10885_v57 = vpop.eup %10884  ;;  %v7984_v12 = vsub.f32 1.0, %v7983_v5 }
 0xf7c   : > { %v7998_v44 = vmul.f32 %v10885_v57, %v16295_v2  ;;  %vm8003_vm9 = vweird.f32 %v10885_v57  ;;  %v17817_v2 = vperm.slane %v15961_v38, 1 }
 0xf7d   : > { %v7985_v30 = vmul.f32 %v10883_v15, %v7984_v12  ;;  %vm8004_vm12 = vmor %vm8002_vm5, %vm8003_vm9 }
 0xf7e   : > { %v7999_v0 = vsub.f32 1.0, %v7998_v44 }
 0xf7f   : > { %v7986_v61 = vadd.f32 %v10883_v15, %v7985_v30 }
 0xf80   : > { %v8000_v20 = vmul.f32 %v10885_v57, %v7999_v0 }
 0xf81   : > { %v7990_v6 = vsel %vm7989_vm11, %v10883_v15, %v7986_v61 }
 0xf82   : > { %v8001_v32 = vadd.f32 %v10885_v57, %v8000_v20  ;;  %v7995_v34 = vsel %vm7992_vm3, %v7994_v50, %v7990_v6 }
 0xf83   : > { %v8042_v43 = vmul.f32 %v7995_v34, %v17816_v8 }
 0xf84   : > { %v8005_v42 = vsel %vm8004_vm12, %v10885_v57, %v8001_v32 }
 0xf85   : > { %v8010_v54 = vsel %vm8007_vm13, %v8009_v27, %v8005_v42  ;;  %v8050_v31 = vadd.f32 %v8046_v41, %v8042_v43 }
 0xf86   : > { %v8043_v5 = vmul.f32 %v8010_v54, %v17817_v2 }
 0xf87   : > { %v8054_v52 = vadd.f32 1e-08, %v8050_v31 }
 0xf88   : > { %v8051_v15 = vadd.f32 %v8047_v9, %v8043_v5 }
 0xf89   : > { %10886 = vrcp.f32 %v8054_v52  ;;  %v8069_v1 = vand.u32 2147483648, %v8054_v52  ;;  %v8067_v0 = vand.u32 2147483647, %v8054_v52  ;;  %vm8063_vm4 = vweird.f32 %v8054_v52 }
 0xf8a   : > { %v8055_v26 = vadd.f32 1e-08, %v8051_v15 }
 0xf8b   : > { %v8070_v20 = vor.u32 1.1754944e-38, %v8069_v1  ;;  %vm8068_vm6 = vcmp.eq.f32.partialorder %v8067_v0, 8.507059e+37  ;;  %v17824_v0 = vld [vmem:[#allocation31_spill] sm:$0xff] }
 0xf8c   : > { %10888 = vrcp.f32 %v8055_v26  ;;  %v8084_v30 = vand.u32 2147483648, %v8055_v26  ;;  %v8082_v63 = vand.u32 2147483647, %v8055_v26  ;;  %vm8078_vm1 = vweird.f32 %v8055_v26 }
 0xf8e   : > { %v8085_v55 = vor.u32 1.1754944e-38, %v8084_v30  ;;  %vm8083_vm8 = vcmp.eq.f32.partialorder %v8082_v63, 8.507059e+37 }
 0xf8f   : > { %v10887_v13 = vpop.eup %10886 }
 0xf90   : > { %v8059_v18 = vmul.f32 %v10887_v13, %v8054_v52  ;;  %vm8064_vm2 = vweird.f32 %v10887_v13 }
 0xf91   : > { %vm8065_vm0 = vmor %vm8063_vm4, %vm8064_vm2 }
 0xf92   : > { %v10889_v44 = vpop.eup %10888  ;;  %v8060_v12 = vsub.f32 1.0, %v8059_v18 }
 0xf93   : > { %v8074_v57 = vmul.f32 %v10889_v44, %v8055_v26  ;;  %vm8079_vm14 = vweird.f32 %v10889_v44 }
 0xf94   : > { %v8061_v48 = vmul.f32 %v10887_v13, %v8060_v12  ;;  %vm8080_vm7 = vmor %vm8078_vm1, %vm8079_vm14  ;;  %v17823_v12 = vld [vmem:[#allocation16_spill] sm:$0xff] }
 0xf95   : > { %v8075_v19 = vsub.f32 1.0, %v8074_v57 }
 0xf96   : > { %v8062_v17 = vadd.f32 %v10887_v13, %v8061_v48 }
 0xf97   : > { %v8076_v59 = vmul.f32 %v10889_v44, %v8075_v19 }
 0xf98   : > { %v8066_v21 = vsel %vm8065_vm0, %v10887_v13, %v8062_v17 }
 0xf99   : > { %v8077_v49 = vadd.f32 %v10889_v44, %v8076_v59  ;;  %v8071_v61 = vsel %vm8068_vm6, %v8070_v20, %v8066_v21  ;;  %v17825_v59 = vld [vmem:[#allocation38_spill] sm:$0xff]  ;;  %v17826_v21 = vld [vmem:[#allocation80_spill] sm:$0xff] }
 0xf9a   : > { %v8118_v50 = vmul.f32 %v8071_v61, %v4896_v14  ;;  %v8122_v32 = vmul.f32 %v8071_v61, %v6469_v51  ;;  %v8126_v40 = vmul.f32 %v8071_v61, %v8042_v43  ;;  %v16389_v42 = vmul.f32 %v8071_v61, %v8050_v31  ;;  %v17818_v14 = vld [vmem:[#allocation77_spill] sm:$0xff]  ;;  %v17820_v31 = vld [vmem:[#allocation84_spill] sm:$0xff] }
 0xf9b   : > { %v8081_v39 = vsel %vm8080_vm7, %v10889_v44, %v8077_v49  ;;  %v17822_v44 = vld [vmem:[#allocation40_spill] sm:$0xff] }
 0xf9c   : > { %v8086_v6 = vsel %vm8083_vm8, %v8085_v55, %v8081_v39  ;;  %v16391_v41 = vperm.slane %v8118_v50, 0  ;;  %v16393_v8 = vperm.slane %v8122_v32, 0  ;;  %v16395_v54 = vperm.slane %v8126_v40, 0  ;;  %v17827_v50 = vld [vmem:[#allocation53_spill] sm:$0xff] }
 0xf9d   : > { %v8119_v27 = vmul.f32 %v8086_v6, %v4897_v22  ;;  %v8123_v29 = vmul.f32 %v8086_v6, %v6470_v56  ;;  %v8127_v34 = vmul.f32 %v8086_v6, %v8043_v5  ;;  %v16397_v9 = vmul.f32 %v8086_v6, %v8051_v15  ;;  %v17819_v22 = vld [vmem:[#allocation39_spill] sm:$0xff]  ;;  %v17821_v15 = vld [vmem:[#allocation29_spill] sm:$0xff] }
 0xf9e   : > { %v8146_v56 = vmul.f32 %v16391_v41, %v17818_v14  ;;  %v8166_v43 = vmul.f32 %v16393_v8, %v17819_v22  ;;  %v8202_v5 = vmul.f32 %v16395_v54, %v15984_v25  ;;  %v8142_v26 = vmul.f32 %v16391_v41, %v17820_v31 }
 0xf9f   : > { %v16399_v2 = vperm.slane %v8119_v27, 0  ;;  %v16401_v52 = vperm.slane %v8123_v29, 0  ;;  %v16403_v51 = vperm.slane %v8127_v34, 0  ;;  %v8162_v1 = vmul.f32 %v16393_v8, %v17823_v12  ;;  %v17828_v29 = vld [vmem:[#allocation85_spill] sm:$0xff] }
 0xfa0   : > { %v8182_v19 = vadd.f32 %v8166_v43, %v8146_v56  ;;  %v8198_v48 = vmul.f32 %v16395_v54, %v15996_v28  ;;  %v8138_v55 = vmul.f32 %v16391_v41, %v17826_v21  ;;  %v8158_v32 = vmul.f32 %v16393_v8, %v17827_v50  ;;  %v17829_v56 = vld [vmem:[#allocation54_spill] sm:$0xff] }
 0xfa1   : > { %v8147_v13 = vmul.f32 %v16399_v2, %v17821_v15  ;;  %v8167_v18 = vmul.f32 %v16401_v52, %v17822_v44  ;;  %v8203_v57 = vmul.f32 %v16403_v51, %v15991_v35  ;;  %v8143_v30 = vmul.f32 %v16399_v2, %v17824_v0 }
 0xfa2   : > { %v8163_v63 = vmul.f32 %v16401_v52, %v17825_v59  ;;  %v8178_v20 = vadd.f32 %v8162_v1, %v8142_v26  ;;  %v8199_v49 = vmul.f32 %v16403_v51, %v16002_v37  ;;  %v16431_v61 = vadd.f32 %v8202_v5, %v8182_v19 }
 0xfa3   : > { %v8183_v17 = vadd.f32 %v8167_v18, %v8147_v13  ;;  %v8194_v40 = vmul.f32 %v16395_v54, %v16007_v36  ;;  %v8139_v34 = vmul.f32 %v16399_v2, %v17828_v29  ;;  %v8159_v43 = vmul.f32 %v16401_v52, %v17829_v56 }
 0xfa4   : > { %v8179_v39 = vadd.f32 %v8163_v63, %v8143_v30  ;;  %v16439_v27 = vadd.f32 %v8198_v48, %v8178_v20  ;;  %v8234_v5 = vsub.f32 %v17818_v14, %v16431_v61  ;;  %v8282_v26 = vsub.f32 %v17819_v22, %v16431_v61 }
 0xfa5   : > { %v16437_v6 = vadd.f32 %v8203_v57, %v8183_v17  ;;  %v8346_v13 = vsub.f32 %v15984_v25, %v16431_v61 }
 0xfa6   : > { %v16451_v18 = vadd.f32 %v8199_v49, %v8179_v39  ;;  %v8230_v14 = vsub.f32 %v17820_v31, %v16439_v27  ;;  %v8250_v48 = vmul.f32 %v8234_v5, %v8234_v5  ;;  %v8298_v30 = vmul.f32 %v8282_v26, %v8282_v26 }
 0xfa7   : > { %v8235_v57 = vsub.f32 %v17821_v15, %v16437_v6  ;;  %v8283_v1 = vsub.f32 %v17822_v44, %v16437_v6  ;;  %v8347_v19 = vsub.f32 %v15991_v35, %v16437_v6  ;;  %v8362_v22 = vmul.f32 %v8346_v13, %v8346_v13 }
 0xfa8   : > { %v8278_v25 = vsub.f32 %v17823_v12, %v16439_v27  ;;  %v8246_v49 = vmul.f32 %v8230_v14, %v8230_v14  ;;  %v8266_v15 = vmul.f32 %v8250_v48, %v16391_v41  ;;  %v8314_v44 = vmul.f32 %v8298_v30, %v16393_v8 }
 0xfa9   : > { %v8251_v63 = vmul.f32 %v8235_v57, %v8235_v57  ;;  %v8299_v17 = vmul.f32 %v8283_v1, %v8283_v1  ;;  %v8363_v20 = vmul.f32 %v8347_v19, %v8347_v19  ;;  %v8378_v39 = vmul.f32 %v8362_v22, %v16395_v54 }
 0xfaa   : > { %v8294_v35 = vmul.f32 %v8278_v25, %v8278_v25  ;;  %v8262_v26 = vmul.f32 %v8246_v49, %v16391_v41  ;;  %v8330_v12 = vadd.f32 %v8314_v44, %v8266_v15  ;;  %v8342_v57 = vsub.f32 %v15996_v28, %v16439_v27 }
 0xfab   : > { %v8267_v11 = vmul.f32 %v8251_v63, %v16399_v2  ;;  %v8315_v31 = vmul.f32 %v8299_v17, %v16401_v52  ;;  %v8379_v5 = vmul.f32 %v8363_v20, %v16403_v51  ;;  %v8231_v1 = vsub.f32 %v17824_v0, %v16451_v18 }
 0xfac   : > { %v8310_v13 = vmul.f32 %v8294_v35, %v16393_v8  ;;  %v8279_v14 = vsub.f32 %v17825_v59, %v16451_v18  ;;  %v8343_v48 = vsub.f32 %v16002_v37, %v16451_v18  ;;  %v8174_v30 = vadd.f32 %v8158_v32, %v8138_v55 }
 0xfad   : > { %v8331_v19 = vadd.f32 %v8315_v31, %v8267_v11  ;;  %v8394_v22 = vadd.f32 %v8378_v39, %v8330_v12  ;;  %v8358_v63 = vmul.f32 %v8342_v57, %v8342_v57  ;;  %v8247_v17 = vmul.f32 %v8231_v1, %v8231_v1 }
 0xfae   : > { %v8326_v25 = vadd.f32 %v8310_v13, %v8262_v26  ;;  %v8295_v49 = vmul.f32 %v8279_v14, %v8279_v14  ;;  %v8359_v15 = vmul.f32 %v8343_v48, %v8343_v48  ;;  %v16479_v44 = vadd.f32 %v8194_v40, %v8174_v30  ;;  %v17831_v13 = vld [vmem:[#allocation51_spill] sm:$0xff] }
 0xfaf   : > { %v8395_v20 = vadd.f32 %v8379_v5, %v8331_v19  ;;  %8438 = vmatpush.msra.mxu0 %v8394_v22  ;;  %v8374_v28 = vmul.f32 %v8358_v63, %v16395_v54  ;;  %v8263_v11 = vmul.f32 %v8247_v17, %v16399_v2  ;;  %v8175_v0 = vadd.f32 %v8159_v43, %v8139_v34  ;;  %v17830_v34 = vld [vmem:[#allocation82_spill] sm:$0xff] }
 0xfb0   : > { %v8195_v59 = vmul.f32 %v16403_v51, %v16011_v58  ;;  %v8311_v37 = vmul.f32 %v8295_v49, %v16401_v52  ;;  %v8375_v55 = vmul.f32 %v8359_v15, %v16403_v51  ;;  %v8226_v32 = vsub.f32 %v17826_v21, %v16479_v44 }
 0xfb1   : > { %8467 = vmatpush.msra.mxu1 %v8395_v20  ;;  %v8274_v40 = vsub.f32 %v17827_v50, %v16479_v44  ;;  %v8390_v39 = vadd.f32 %v8374_v28, %v8326_v25  ;;  %v8338_v35 = vsub.f32 %v16007_v36, %v16479_v44  ;;  %v8134_v43 = vmul.f32 %v16391_v41, %v17830_v34 }
 0xfb2   : > { %v16493_v31 = vadd.f32 %v8195_v59, %v8175_v0  ;;  %v8327_v5 = vadd.f32 %v8311_v37, %v8263_v11  ;;  %v8242_v26 = vmul.f32 %v8226_v32, %v8226_v32  ;;  %v8154_v57 = vmul.f32 %v16393_v8, %v17831_v13 }
 0xfb3   : > { %v8290_v12 = vmul.f32 %v8274_v40, %v8274_v40  ;;  %8439 = vmatpush.msra.mxu0 %v8390_v39  ;;  %v8354_v21 = vmul.f32 %v8338_v35, %v8338_v35 }
 0xfb4   : > { %v8227_v50 = vsub.f32 %v17828_v29, %v16493_v31  ;;  %v8275_v1 = vsub.f32 %v17829_v56, %v16493_v31  ;;  %v8339_v36 = vsub.f32 %v16011_v58, %v16493_v31  ;;  %v8391_v19 = vadd.f32 %v8375_v55, %v8327_v5  ;;  %v17832_v56 = vld [vmem:[#allocation18_spill] sm:$0xff]  ;;  %v17833_v58 = vld [vmem:[#allocation52_spill] sm:$0xff] }
 0xfb5   : > { %v8258_v14 = vmul.f32 %v8242_v26, %v16391_v41  ;;  %v8306_v48 = vmul.f32 %v8290_v12, %v16393_v8  ;;  %v8170_v30 = vadd.f32 %v8154_v57, %v8134_v43  ;;  %v8370_v22 = vmul.f32 %v8354_v21, %v16395_v54 }
 0xfb6   : > { %v8243_v25 = vmul.f32 %v8227_v50, %v8227_v50  ;;  %v8291_v63 = vmul.f32 %v8275_v1, %v8275_v1  ;;  %v8355_v17 = vmul.f32 %v8339_v36, %v8339_v36  ;;  %8468 = vmatpush.msra.mxu1 %v8391_v19  ;;  %v8190_v29 = vmul.f32 %v16395_v54, %v16015_v53 }
 0xfb7   : > { %v8322_v20 = vadd.f32 %v8306_v48, %v8258_v14  ;;  %v8135_v49 = vmul.f32 %v16399_v2, %v17832_v56  ;;  %v8155_v15 = vmul.f32 %v16401_v52, %v17833_v58  ;;  %v8191_v55 = vmul.f32 %v16403_v51, %v16019_v47 }
 0xfb8   : > { %v8259_v28 = vmul.f32 %v8243_v25, %v16399_v2  ;;  %v8307_v11 = vmul.f32 %v8291_v63, %v16401_v52  ;;  %v8206_v59 = vadd.f32 %v8190_v29, %v8170_v30  ;;  %v8371_v40 = vmul.f32 %v8355_v17, %v16403_v51  ;;  %v17834_v63 = vld [vmem:[#allocation15_spill] sm:$0xff] }
 0xfb9   : > { %v8386_v0 = vadd.f32 %v8370_v22, %v8322_v20  ;;  %v8171_v37 = vadd.f32 %v8155_v15, %v8135_v49  ;;  %v6371_v17 = vadd.f32 %v17834_v63, %v16235_v23 }
 0xfba   : > { %v8323_v32 = vadd.f32 %v8307_v11, %v8259_v28  ;;  %v8222_v39 = vsub.f32 %v17830_v34, %v8206_v59  ;;  %v8270_v35 = vsub.f32 %v17831_v13, %v8206_v59  ;;  %v8334_v43 = vsub.f32 %v16015_v53, %v8206_v59 }
 0xfbb   : > { %8440 = vmatpush.msra.mxu0 %v8386_v0  ;;  %v8207_v5 = vadd.f32 %v8191_v55, %v8171_v37  ;;  %v9725_v15 = vmul.f32 -1.442695, %v6371_v17  ;;  %v16555_v0 = vld [vmem:[%s17835_s29 + $0x8] sm:$0xff] }
 0xfbc   : > { %v8387_v26 = vadd.f32 %v8371_v40, %v8323_v32  ;;  %v8238_v12 = vmul.f32 %v8222_v39, %v8222_v39  ;;  %v8286_v57 = vmul.f32 %v8270_v35, %v8270_v35  ;;  %v8350_v21 = vmul.f32 %v8334_v43, %v8334_v43  ;;  %v16587_v32 = vld [vmem:[%s17835_s29 + $0x18] sm:$0xff] }
 0xfbd   : > { %v8223_v50 = vsub.f32 %v17832_v56, %v8207_v5  ;;  %v8271_v1 = vsub.f32 %v17833_v58, %v8207_v5  ;;  %v8335_v36 = vsub.f32 %v16019_v47, %v8207_v5  ;;  %v16535_v47 = vld [vmem:[%s17835_s29] sm:$0xff]  ;;  %10890 = vpow2.f32 %v9725_v15 }
 0xfbe   : > { %8469 = vmatpush.msra.mxu1 %v8387_v26  ;;  %v8254_v19 = vmul.f32 %v8238_v12, %v16391_v41  ;;  %v8302_v34 = vmul.f32 %v8286_v57, %v16393_v8  ;;  %v8366_v30 = vmul.f32 %v8350_v21, %v16395_v54  ;;  %v17836_v41 = vld [vmem:[#allocation41_spill] sm:$0xff]  ;;  %v17837_v54 = vld [vmem:[#allocation43_spill] sm:$0xff] }
 0xfbf   : > { %v8239_v14 = vmul.f32 %v8223_v50, %v8223_v50  ;;  %v8287_v13 = vmul.f32 %v8271_v1, %v8271_v1  ;;  %v8351_v48 = vmul.f32 %v8335_v36, %v8335_v36  ;;  %v6391_v8 = vadd.f32 %v17836_v41, %v16235_v23 }
 0xfc0   : > { %v8318_v53 = vadd.f32 %v8302_v34, %v8254_v19 }
 0xfc1   : > { %v8255_v22 = vmul.f32 %v8239_v14, %v16399_v2  ;;  %v8303_v25 = vmul.f32 %v8287_v13, %v16401_v52  ;;  %v8367_v56 = vmul.f32 %v8351_v48, %v16403_v51  ;;  %v4798_v2 = vadd.f32 %v17837_v54, %v16235_v23  ;;  %v17838_v52 = vld [vmem:[#allocation45_spill] sm:$0xff] }
 0xfc2   : > { %v8382_v20 = vadd.f32 %v8366_v30, %v8318_v53  ;;  %v4818_v49 = vadd.f32 %v17838_v52, %v16235_v23  ;;  %v9726_v28 = vmul.f32 -1.442695, %v6391_v8  ;;  %v16632_v8 = vld [vmem:[%s17840_s23 + $0x8] sm:$0xff] }
 0xfc3   : > { %v8319_v29 = vadd.f32 %v8303_v25, %v8255_v22  ;;  %v9513_v11 = vmul.f32 -1.442695, %v4798_v2 }
 0xfc4   : > { %8441 = vmatpush.msra.mxu0 %v8382_v20  ;;  %v9514_v51 = vmul.f32 -1.442695, %v4818_v49  ;;  %10892 = vpow2.f32 %v9726_v28 }
 0xfc5   : > { %v8383_v58 = vadd.f32 %v8367_v56, %v8319_v29  ;;  %9939 = vmatmul.msk.f32.vlgmr.msra.gmra.mxu0 %vm2656_vm15, %v16535_v47  ;;  %10894 = vpow2.f32 %v9513_v11 }
 0xfc6   : > { %8566 = vmatpush.msrb.mxu0 %v16431_v61  ;;  %10896 = vpow2.f32 %v9514_v51  ;;  %v10891_v61 = vpop.eup %10890 }
 0xfc7   : > { %8470 = vmatpush.msra.mxu1 %v8383_v58 }
 0xfc8   : > { %9943 = vmatmul.msk.f32.vlgmr.msra.gmra.mxu1 %vm2656_vm15, %v16535_v47  ;;  %8567 = vmatpush.msrb.mxu0 %v16439_v27 }
 0xfc9   : > { %8595 = vmatpush.msrb.mxu1 %v16437_v6 }
 0xfca   : > { %8568 = vmatpush.msrb.mxu0 %v16479_v44  ;;  %v10893_v6 = vpop.eup %10892  ;;  %v16566_v44 = vld [vmem:[%s17835_s29 + $0x10] sm:$0xff] }
 0xfcb   : > { %8596 = vmatpush.msrb.mxu1 %v16451_v18  ;;  %v10895_v27 = vpop.eup %10894  ;;  %v16570_v37 = vadd.f32 1.0, %v10893_v6 }
 0xfcc   : > { %8569 = vmatpush.msrb.mxu0 %v8206_v59  ;;  %v10897_v18 = vpop.eup %10896  ;;  %v16568_v59 = vadd.f32 1.0, %v10891_v61 }
 0xfcd   : > { %8597 = vmatpush.msrb.mxu1 %v16493_v31  ;;  %9940 = vmatmul.msk.f32.gmra.mxu0 %vm2656_vm15, %v16555_v0  ;;  %v16572_v31 = vadd.f32 1.0, %v10895_v27  ;;  %v16576_v55 = vadd.f32 1.0, %v10897_v18  ;;  %v6465_v11 = vand.u32 2147483648, %v16570_v37  ;;  %vm6459_vm2 = vweird.f32 %v16570_v37 }
 0xfce   : > { %10898 = vrcp.f32 %v16568_v59  ;;  %vm6444_vm12 = vweird.f32 %v16568_v59  ;;  %v6450_v28 = vand.u32 2147483648, %v16568_v59  ;;  %v6448_v6 = vand.u32 2147483647, %v16568_v59 }
 0xfcf   : > { %8598 = vmatpush.msrb.mxu1 %v8207_v5  ;;  %10900 = vrcp.f32 %v16570_v37  ;;  %vm4871_vm9 = vweird.f32 %v16572_v31  ;;  %v4875_v29 = vand.u32 2147483647, %v16572_v31  ;;  %v4877_v56 = vand.u32 2147483648, %v16572_v31 }
 0xfd0   : > { %9944 = vmatmul.msk.f32.gmra.mxu1 %vm2656_vm15, %v16555_v0  ;;  %10902 = vrcp.f32 %v16572_v31  ;;  %v4890_v2 = vand.u32 2147483647, %v16576_v55  ;;  %v4892_v52 = vand.u32 2147483648, %v16576_v55  ;;  %v6463_v27 = vand.u32 2147483647, %v16570_v37 }
 0xfd1   : > { %10904 = vrcp.f32 %v16576_v55  ;;  %vm16660_vm14 = vcmp.eq.f32.partialorder %v4875_v29, 8.507059e+37  ;;  %vm4886_vm4 = vweird.f32 %v16576_v55  ;;  %vm6449_vm8 = vcmp.eq.f32.partialorder %v6448_v6, 8.507059e+37 }
 0xfd2   : > { %vm16665_vm0 = vcmp.eq.f32.partialorder %v4890_v2, 8.507059e+37 }
 0xfd4   : > { %v16589_v39 = vpop.eup %10898 }
 0xfd5   : > { %9941 = vmatmul.msk.f32.gmra.mxu0 %vm2656_vm15, %v16566_v44  ;;  %v16594_v5 = vpop.eup %10900  ;;  %v6440_v1 = vmul.f32 %v16589_v39, %v16568_v59  ;;  %vm6445_vm11 = vweird.f32 %v16589_v39 }
 0xfd6   : > { %v16597_v12 = vpop.eup %10902  ;;  %v6455_v36 = vmul.f32 %v16594_v5, %v16570_v37  ;;  %vm6460_vm3 = vweird.f32 %v16594_v5  ;;  %vm16653_vm13 = vmor %vm6444_vm12, %vm6445_vm11 }
 0xfd7   : > { %v16599_v21 = vpop.eup %10904  ;;  %v4867_v19 = vmul.f32 %v16597_v12, %v16572_v31  ;;  %v6441_v14 = vsub.f32 1.0, %v6440_v1  ;;  %vm4872_vm10 = vweird.f32 %v16597_v12  ;;  %vm16671_vm1 = vmor %vm6459_vm2, %vm6460_vm3 }
 0xfd8   : > { %9945 = vmatmul.msk.f32.gmra.mxu1 %vm2656_vm15, %v16566_v44  ;;  %v4882_v34 = vmul.f32 %v16599_v21, %v16576_v55  ;;  %v6456_v13 = vsub.f32 1.0, %v6455_v36  ;;  %vm4887_vm5 = vweird.f32 %v16599_v21  ;;  %vm16681_vm6 = vmor %vm4871_vm9, %vm4872_vm10  ;;  %vm6464_vm9 = vcmp.eq.f32.partialorder %v6463_v27, 8.507059e+37 }
 0xfd9   : > { %v4868_v48 = vsub.f32 1.0, %v4867_v19  ;;  %v6442_v63 = vmul.f32 %v16589_v39, %v6441_v14  ;;  %vm16697_vm7 = vmor %vm4886_vm4, %vm4887_vm5  ;;  %v6451_v19 = vor.u32 1.1754944e-38, %v6450_v28  ;;  %v17857_v55 = vperm.slane %v15961_v38, 3 }
 0xfda   : > { %v4883_v30 = vsub.f32 1.0, %v4882_v34  ;;  %v6457_v17 = vmul.f32 %v16594_v5, %v6456_v13  ;;  %v6466_v34 = vor.u32 1.1754944e-38, %v6465_v11  ;;  %v17855_v11 = vperm.slane %v17813_v24, 2 }
 0xfdb   : > { %v4869_v41 = vmul.f32 %v16597_v12, %v4868_v48  ;;  %v6443_v49 = vadd.f32 %v16589_v39, %v6442_v63 }
 0xfdc   : > { %v4884_v54 = vmul.f32 %v16599_v21, %v4883_v30  ;;  %v6458_v58 = vadd.f32 %v16594_v5, %v6457_v17 }
 0xfdd   : > { %v7943_v40 = vpop.f32.mrf.mxu2  ;;  %9942 = vmatmul.msk.f32.gmra.mxu0 %vm2656_vm15, %v16587_v32  ;;  %v4870_v15 = vadd.f32 %v16597_v12, %v4869_v41 }
 0xfde   : > { %v7944_v35 = vadd.f32 %v7943_v40, %v16235_v23  ;;  %v4885_v51 = vadd.f32 %v16599_v21, %v4884_v54  ;;  %v17853_v54 = vperm.slane %v14990_v4, 2 }
 0xfdf   : > { %v4874_v36 = vsel %vm16681_vm6, %v16597_v12, %v4870_v15 }
 0xfe0   : > { %v7963_v43 = vpop.f32.mrf.mxu3  ;;  %v9937_v57 = vmul.f32 -1.442695, %v7944_v35  ;;  %9946 = vmatmul.msk.f32.gmra.mxu1 %vm2656_vm15, %v16587_v32  ;;  %v4878_v35 = vor.u32 1.1754944e-38, %v4877_v56  ;;  %v4889_v14 = vsel %vm16697_vm7, %v16599_v21, %v4885_v51 }
 0xfe1   : > { %v7964_v26 = vadd.f32 %v7963_v43, %v16235_v23  ;;  %v16612_v23 = vld [vmem:[%s17839_s28] sm:$0xff]  ;;  %s9041_s28 = sshll.u32 %s11341_s6, 7 }
 0xfe2   : > { %10906 = vpow2.f32 %v9937_v57  ;;  %v6447_v57 = vsel %vm16653_vm13, %v16589_v39, %v6443_v49  ;;  %v4879_v21 = vsel %vm16660_vm14, %v4878_v35, %v4874_v36  ;;  %v17854_v49 = vperm.slane %v14990_v4, 3  ;;  %s16968_s1 = scalar_lea.vmem [#allocation6], %s9041_s28 }
 0xfe3   : > { %v9938_v50 = vmul.f32 -1.442695, %v7964_v26  ;;  %v4893_v26 = vor.u32 1.1754944e-38, %v4892_v52  ;;  %v6452_v13 = vsel %vm6449_vm8, %v6451_v19, %v6447_v57  ;;  %v4898_v51 = vmul.f32 %v4879_v21, %v17855_v11  ;;  %s8897_s28 = sshll.u32 %s16968_s1, 4  ;;  %s8898_s28 = int_to_ptr.vmem [resolvable:$true] %s8897_s28 }
 0xfe4   : > { %v6471_v2 = vmul.f32 %v6452_v13, %v17853_v54 }
 0xfe5   : > { %10908 = vpow2.f32 %v9938_v50  ;;  %9955 = vmatmul.msk.f32.vlgmr.msrb.gmra.mxu0 %vm2656_vm15, %v16612_v23  ;;  %v6462_v50 = vsel %vm16671_vm1, %v16594_v5, %v6458_v58  ;;  %v16705_v5 = vld [vmem:[%s17840_s23 + $0x10] sm:$0xff]  ;;  %v4894_v56 = vsel %vm16665_vm0, %v4893_v26, %v4889_v14 }
 0xfe6   : > { %v6467_v48 = vsel %vm6464_vm9, %v6466_v34, %v6462_v50  ;;  %v8048_v35 = vadd.f32 %v6471_v2, %v4898_v51 }
 0xfe7   : > { %v6472_v58 = vmul.f32 %v6467_v48, %v17854_v49 }
 0xfe8   : > { %v10907_v53 = vpop.eup %10906  ;;  %9959 = vmatmul.msk.f32.vlgmr.msrb.gmra.mxu1 %vm2656_vm15, %v16612_v23 }
 0xfe9   : > { %v16620_v25 = vadd.f32 1.0, %v10907_v53 }
 0xfeb   : > { %v10909_v22 = vpop.eup %10908  ;;  %10910 = vrcp.f32 %v16620_v25  ;;  %v8023_v53 = vand.u32 2147483648, %v16620_v25  ;;  %v8021_v63 = vand.u32 2147483647, %v16620_v25  ;;  %vm8017_vm5 = vweird.f32 %v16620_v25 }
 0xfec   : > { %v16624_v20 = vadd.f32 1.0, %v10909_v22 }
 0xfed   : > { %9956 = vmatmul.msk.f32.gmra.mxu0 %vm2656_vm15, %v16632_v8  ;;  %v8024_v15 = vor.u32 1.1754944e-38, %v8023_v53  ;;  %vm8022_vm13 = vcmp.eq.f32.partialorder %v8021_v63, 8.507059e+37 }
 0xfee   : > { %10912 = vrcp.f32 %v16624_v20  ;;  %v8038_v17 = vand.u32 2147483648, %v16624_v20  ;;  %v8036_v29 = vand.u32 2147483647, %v16624_v20  ;;  %vm8032_vm12 = vweird.f32 %v16624_v20 }
 0xff0   : > { %9960 = vmatmul.msk.f32.gmra.mxu1 %vm2656_vm15, %v16632_v8  ;;  %v8039_v6 = vor.u32 1.1754944e-38, %v8038_v17  ;;  %vm8037_vm14 = vcmp.eq.f32.partialorder %v8036_v29, 8.507059e+37 }
 0xff1   : > { %v10911_v18 = vpop.eup %10910 }
 0xff2   : > { %v8013_v1 = vmul.f32 %v10911_v18, %v16620_v25  ;;  %vm8018_vm10 = vweird.f32 %v10911_v18  ;;  %v17856_v25 = vperm.slane %v17813_v24, 3 }
 0xff3   : > { %vm8019_vm3 = vmor %vm8017_vm5, %vm8018_vm10 }
 0xff4   : > { %v10913_v37 = vpop.eup %10912  ;;  %v8014_v12 = vsub.f32 1.0, %v8013_v1  ;;  %v4899_v4 = vmul.f32 %v4894_v56, %v17856_v25 }
 0xff5   : > { %v8028_v39 = vmul.f32 %v10913_v37, %v16624_v20  ;;  %9957 = vmatmul.msk.f32.gmra.mxu0 %vm2656_vm15, %v16705_v5  ;;  %vm8033_vm11 = vweird.f32 %v10913_v37  ;;  %v16736_v20 = vld [vmem:[%s17840_s23 + $0x18] sm:$0xff] }
 0xff6   : > { %v8015_v22 = vmul.f32 %v10911_v18, %v8014_v12  ;;  %vm8034_vm2 = vmor %vm8032_vm12, %vm8033_vm11  ;;  %v8049_v59 = vadd.f32 %v6472_v58, %v4899_v4 }
 0xff7   : > { %v8029_v30 = vsub.f32 1.0, %v8028_v39 }
 0xff8   : > { %v8016_v52 = vadd.f32 %v10911_v18, %v8015_v22  ;;  %9961 = vmatmul.msk.f32.gmra.mxu1 %vm2656_vm15, %v16705_v5 }
 0xff9   : > { %v8030_v41 = vmul.f32 %v10913_v37, %v8029_v30 }
 0xffa   : > { %v8020_v61 = vsel %vm8019_vm3, %v10911_v18, %v8016_v52 }
 0xffb   : > { %v8031_v28 = vadd.f32 %v10913_v37, %v8030_v41  ;;  %v8025_v27 = vsel %vm8022_vm13, %v8024_v15, %v8020_v61 }
 0xffc   : > { %v8044_v43 = vmul.f32 %v8025_v27, %v7628_v46 }
 0xffd   : > { %v8035_v40 = vsel %vm8034_vm2, %v10913_v37, %v8031_v28  ;;  %9958 = vmatmul.msk.f32.gmra.mxu0 %vm2656_vm15, %v16736_v20 }
 0xffe   : > { %v8040_v18 = vsel %vm8037_vm14, %v8039_v6, %v8035_v40  ;;  %v8052_v57 = vadd.f32 %v8048_v35, %v8044_v43 }
 0xfff   : > { %v8045_v26 = vmul.f32 %v8040_v18, %v17857_v55 }
0x1000   : > { %v8056_v37 = vadd.f32 1e-08, %v8052_v57  ;;  %9962 = vmatmul.msk.f32.gmra.mxu1 %vm2656_vm15, %v16736_v20 }
0x1001   : > { %v8053_v24 = vadd.f32 %v8049_v59, %v8045_v26  ;;  %v17860_v59 = vld [vmem:[#allocation20_spill] sm:$0xff] }
0x1002   : > { %10914 = vrcp.f32 %v8056_v37  ;;  %v8099_v34 = vand.u32 2147483648, %v8056_v37  ;;  %v8097_v14 = vand.u32 2147483647, %v8056_v37  ;;  %vm8093_vm1 = vweird.f32 %v8056_v37 }
0x1003   : > { %v8057_v50 = vadd.f32 1e-08, %v8053_v24 }
0x1004   : > { %v8100_v30 = vor.u32 1.1754944e-38, %v8099_v34  ;;  %vm8098_vm8 = vcmp.eq.f32.partialorder %v8097_v14, 8.507059e+37 }
0x1005   : > { %10916 = vrcp.f32 %v8057_v50  ;;  %v8114_v12 = vand.u32 2147483648, %v8057_v50  ;;  %v8112_v48 = vand.u32 2147483647, %v8057_v50  ;;  %vm8108_vm7 = vweird.f32 %v8057_v50 }
0x1007   : > { %v8115_v17 = vor.u32 1.1754944e-38, %v8114_v12  ;;  %vm8113_vm10 = vcmp.eq.f32.partialorder %v8112_v48, 8.507059e+37  ;;  %v17866_v48 = vld [vmem:[#allocation106_spill] sm:$0xff] }
0x1008   : > { %v10915_v1 = vpop.eup %10914 }
0x1009   : > { %v8089_v46 = vmul.f32 %v10915_v1, %v8056_v37  ;;  %vm8094_vm4 = vweird.f32 %v10915_v1 }
0x100a   : > { %vm8095_vm6 = vmor %vm8093_vm1, %vm8094_vm4 }
0x100b   : > { %v10917_v36 = vpop.eup %10916  ;;  %v8090_v19 = vsub.f32 1.0, %v8089_v46 }
0x100c   : > { %v8104_v31 = vmul.f32 %v10917_v36, %v8057_v50  ;;  %vm8109_vm0 = vweird.f32 %v10917_v36 }
0x100d   : > { %v8091_v39 = vmul.f32 %v10915_v1, %v8090_v19  ;;  %vm8110_vm9 = vmor %vm8108_vm7, %vm8109_vm0  ;;  %v17864_v19 = vld [vmem:[#allocation107_spill] sm:$0xff] }
0x100e   : > { %v8105_v38 = vsub.f32 1.0, %v8104_v31 }
0x100f   : > { %v8092_v53 = vadd.f32 %v10915_v1, %v8091_v39 }
0x1010   : > { %v8106_v13 = vmul.f32 %v10917_v36, %v8105_v38  ;;  %v17865_v38 = vld [vmem:[#allocation46_spill] sm:$0xff] }
0x1011   : > { %v8096_v63 = vsel %vm8095_vm6, %v10915_v1, %v8092_v53  ;;  %v17863_v1 = vld [vmem:[#allocation44_spill] sm:$0xff] }
0x1012   : > { %v8107_v22 = vadd.f32 %v10917_v36, %v8106_v13  ;;  %v8101_v21 = vsel %vm8098_vm8, %v8100_v30, %v8096_v63  ;;  %v17867_v63 = vld [vmem:[#allocation99_spill] sm:$0xff] }
0x1013   : > { %v8120_v29 = vmul.f32 %v8101_v21, %v4898_v51  ;;  %v8124_v56 = vmul.f32 %v8101_v21, %v6471_v2  ;;  %v8128_v54 = vmul.f32 %v8101_v21, %v8044_v43  ;;  %v16746_v11 = vmul.f32 %v8101_v21, %v8052_v57  ;;  %v17858_v51 = vld [vmem:[#allocation19_spill] sm:$0xff] }
0x1014   : > { %v8111_v41 = vsel %vm8110_vm9, %v10917_v36, %v8107_v22 }
0x1015   : > { %v8116_v52 = vsel %vm8113_vm10, %v8115_v17, %v8111_v41  ;;  %v16748_v61 = vperm.slane %v8120_v29, 0  ;;  %v16750_v6 = vperm.slane %v8124_v56, 0  ;;  %v16752_v25 = vperm.slane %v8128_v54, 0  ;;  %v17868_v56 = vld [vmem:[#allocation109_spill] sm:$0xff] }
0x1016   : > { %v8121_v49 = vmul.f32 %v8116_v52, %v4899_v4  ;;  %v8125_v15 = vmul.f32 %v8116_v52, %v6472_v58  ;;  %v8129_v28 = vmul.f32 %v8116_v52, %v8045_v26  ;;  %v16754_v27 = vmul.f32 %v8116_v52, %v8053_v24  ;;  %v17859_v4 = vld [vmem:[#allocation48_spill] sm:$0xff]  ;;  %v17861_v26 = vld [vmem:[#allocation21_spill] sm:$0xff]  ;;  %v17862_v24 = vld [vmem:[#allocation50_spill] sm:$0xff] }
0x1017   : > { %v8148_v58 = vmul.f32 %v16748_v61, %v17858_v51  ;;  %v8168_v43 = vmul.f32 %v16750_v6, %v17859_v4  ;;  %v8204_v18 = vmul.f32 %v16752_v25, %v16116_v10  ;;  %v8144_v55 = vmul.f32 %v16748_v61, %v17860_v59  ;;  %v17869_v52 = vld [vmem:[#allocation101_spill] sm:$0xff] }
0x1018   : > { %v16756_v40 = vperm.slane %v8121_v49, 0  ;;  %v16758_v35 = vperm.slane %v8125_v15, 0  ;;  %v16760_v2 = vperm.slane %v8129_v28, 0  ;;  %v8164_v36 = vmul.f32 %v16750_v6, %v17863_v1 }
0x1019   : > { %v8184_v46 = vadd.f32 %v8168_v43, %v8148_v58  ;;  %v8200_v31 = vmul.f32 %v16752_v25, %v16128_v3  ;;  %v8140_v53 = vmul.f32 %v16748_v61, %v17866_v48  ;;  %v8160_v17 = vmul.f32 %v16750_v6, %v17867_v63 }
0x101a   : > { %v8149_v57 = vmul.f32 %v16756_v40, %v17861_v26  ;;  %v8169_v37 = vmul.f32 %v16758_v35, %v17862_v24  ;;  %v8205_v50 = vmul.f32 %v16760_v2, %v16123_v62  ;;  %v8145_v34 = vmul.f32 %v16756_v40, %v17864_v19 }
0x101b   : > { %v8165_v39 = vmul.f32 %v16758_v35, %v17865_v38  ;;  %v8180_v12 = vadd.f32 %v8164_v36, %v8144_v55  ;;  %v8201_v13 = vmul.f32 %v16760_v2, %v16134_v45  ;;  %v16788_v30 = vadd.f32 %v8204_v18, %v8184_v46 }
0x101c   : > { %v8185_v14 = vadd.f32 %v8169_v37, %v8149_v57  ;;  %v8196_v21 = vmul.f32 %v16752_v25, %v16139_v33  ;;  %v8141_v54 = vmul.f32 %v16756_v40, %v17868_v56  ;;  %v8161_v49 = vmul.f32 %v16758_v35, %v17869_v52 }
0x101d   : > { %v8181_v22 = vadd.f32 %v8165_v39, %v8145_v34  ;;  %v16796_v29 = vadd.f32 %v8200_v31, %v8180_v12  ;;  %v8236_v15 = vsub.f32 %v17858_v51, %v16788_v30  ;;  %v8284_v28 = vsub.f32 %v17859_v4, %v16788_v30 }
0x101e   : > { %v16794_v41 = vadd.f32 %v8205_v50, %v8185_v14  ;;  %v8348_v58 = vsub.f32 %v16116_v10, %v16788_v30 }
0x101f   : > { %v16808_v43 = vadd.f32 %v8201_v13, %v8181_v22  ;;  %v8232_v51 = vsub.f32 %v17860_v59, %v16796_v29  ;;  %v8252_v37 = vmul.f32 %v8236_v15, %v8236_v15  ;;  %v8300_v50 = vmul.f32 %v8284_v28, %v8284_v28 }
0x1020   : > { %v8237_v18 = vsub.f32 %v17861_v26, %v16794_v41  ;;  %v8285_v55 = vsub.f32 %v17862_v24, %v16794_v41  ;;  %v8349_v57 = vsub.f32 %v16123_v62, %v16794_v41  ;;  %v8364_v4 = vmul.f32 %v8348_v58, %v8348_v58 }
0x1021   : > { %v8280_v10 = vsub.f32 %v17863_v1, %v16796_v29  ;;  %v8248_v34 = vmul.f32 %v8232_v51, %v8232_v51  ;;  %v8268_v26 = vmul.f32 %v8252_v37, %v16748_v61  ;;  %v8316_v24 = vmul.f32 %v8300_v50, %v16750_v6 }
0x1022   : > { %v8253_v36 = vmul.f32 %v8237_v18, %v8237_v18  ;;  %v8301_v46 = vmul.f32 %v8285_v55, %v8285_v55  ;;  %v8365_v31 = vmul.f32 %v8349_v57, %v8349_v57  ;;  %v8380_v39 = vmul.f32 %v8364_v4, %v16752_v25 }
0x1023   : > { %v8296_v62 = vmul.f32 %v8280_v10, %v8280_v10  ;;  %v8264_v13 = vmul.f32 %v8248_v34, %v16748_v61  ;;  %v8332_v1 = vadd.f32 %v8316_v24, %v8268_v26  ;;  %v8344_v15 = vsub.f32 %v16128_v3, %v16796_v29 }
0x1024   : > { %v8269_v14 = vmul.f32 %v8253_v36, %v16756_v40  ;;  %v8317_v59 = vmul.f32 %v8301_v46, %v16758_v35  ;;  %v8381_v12 = vmul.f32 %v8365_v31, %v16760_v2  ;;  %v8233_v28 = vsub.f32 %v17864_v19, %v16808_v43 }
0x1025   : > { %v8312_v22 = vmul.f32 %v8296_v62, %v16750_v6  ;;  %v8281_v18 = vsub.f32 %v17865_v38, %v16808_v43  ;;  %v8345_v55 = vsub.f32 %v16134_v45, %v16808_v43  ;;  %v8176_v57 = vadd.f32 %v8160_v17, %v8140_v53 }
0x1026   : > { %v8333_v58 = vadd.f32 %v8317_v59, %v8269_v14  ;;  %v8396_v51 = vadd.f32 %v8380_v39, %v8332_v1  ;;  %v8360_v50 = vmul.f32 %v8344_v15, %v8344_v15  ;;  %v8249_v4 = vmul.f32 %v8233_v28, %v8233_v28 }
0x1027   : > { %v8328_v37 = vadd.f32 %v8312_v22, %v8264_v13  ;;  %v8297_v36 = vmul.f32 %v8281_v18, %v8281_v18  ;;  %v8361_v46 = vmul.f32 %v8345_v55, %v8345_v55  ;;  %v16836_v31 = vadd.f32 %v8196_v21, %v8176_v57 }
0x1028   : > { %v8397_v10 = vadd.f32 %v8381_v12, %v8333_v58  ;;  %8496 = vmatpush.msra.mxu2 %v8396_v51  ;;  %v8376_v3 = vmul.f32 %v8360_v50, %v16752_v25  ;;  %v8265_v19 = vmul.f32 %v8249_v4, %v16756_v40  ;;  %v8177_v34 = vadd.f32 %v8161_v49, %v8141_v54  ;;  %v17870_v54 = vld [vmem:[#allocation108_spill] sm:$0xff]  ;;  %v17871_v12 = vld [vmem:[#allocation102_spill] sm:$0xff] }
0x1029   : > { %v8197_v38 = vmul.f32 %v16760_v2, %v16143_v7  ;;  %v8313_v45 = vmul.f32 %v8297_v36, %v16758_v35  ;;  %v8377_v53 = vmul.f32 %v8361_v46, %v16760_v2  ;;  %v8228_v17 = vsub.f32 %v17866_v48, %v16836_v31 }
0x102a   : > { %8525 = vmatpush.msra.mxu3 %v8397_v10  ;;  %v8276_v21 = vsub.f32 %v17867_v63, %v16836_v31  ;;  %v8392_v26 = vadd.f32 %v8376_v3, %v8328_v37  ;;  %v8340_v24 = vsub.f32 %v16139_v33, %v16836_v31  ;;  %v8136_v49 = vmul.f32 %v16748_v61, %v17870_v54 }
0x102b   : > { %v16850_v39 = vadd.f32 %v8197_v38, %v8177_v34  ;;  %v8329_v62 = vadd.f32 %v8313_v45, %v8265_v19  ;;  %v8244_v14 = vmul.f32 %v8228_v17, %v8228_v17  ;;  %v8156_v13 = vmul.f32 %v16750_v6, %v17871_v12 }
0x102c   : > { %v8292_v59 = vmul.f32 %v8276_v21, %v8276_v21  ;;  %8497 = vmatpush.msra.mxu2 %v8392_v26  ;;  %v8356_v48 = vmul.f32 %v8340_v24, %v8340_v24  ;;  %v8193_v34 = vmul.f32 %v16760_v2, %v16151_v16 }
0x102d   : > { %v8229_v63 = vsub.f32 %v17868_v56, %v16850_v39  ;;  %v8277_v1 = vsub.f32 %v17869_v52, %v16850_v39  ;;  %v8341_v33 = vsub.f32 %v16143_v7, %v16850_v39  ;;  %v8393_v22 = vadd.f32 %v8377_v53, %v8329_v62  ;;  %v17872_v52 = vld [vmem:[#allocation110_spill] sm:$0xff]  ;;  %v17873_v7 = vld [vmem:[#allocation37_spill] sm:$0xff] }
0x102e   : > { %v8260_v15 = vmul.f32 %v8244_v14, %v16748_v61  ;;  %v8308_v28 = vmul.f32 %v8292_v59, %v16750_v6  ;;  %v8172_v58 = vadd.f32 %v8156_v13, %v8136_v49  ;;  %v8372_v18 = vmul.f32 %v8356_v48, %v16752_v25 }
0x102f   : > { %v8245_v55 = vmul.f32 %v8229_v63, %v8229_v63  ;;  %v8293_v57 = vmul.f32 %v8277_v1, %v8277_v1  ;;  %v8357_v51 = vmul.f32 %v8341_v33, %v8341_v33  ;;  %8526 = vmatpush.msra.mxu3 %v8393_v22  ;;  %v8192_v56 = vmul.f32 %v16752_v25, %v16147_v60 }
0x1030   : > { %v8324_v37 = vadd.f32 %v8308_v28, %v8260_v15  ;;  %v8137_v50 = vmul.f32 %v16756_v40, %v17872_v52  ;;  %v8157_v4 = vmul.f32 %v16758_v35, %v17873_v7 }
0x1031   : > { %v8261_v10 = vmul.f32 %v8245_v55, %v16756_v40  ;;  %v8309_v36 = vmul.f32 %v8293_v57, %v16758_v35  ;;  %v8208_v3 = vadd.f32 %v8192_v56, %v8172_v58  ;;  %v8373_v45 = vmul.f32 %v8357_v51, %v16760_v2  ;;  %v16932_v57 = vpop.permute.xlu0 %8686 }
0x1032   : > { %v8388_v46 = vadd.f32 %v8372_v18, %v8324_v37  ;;  %v8173_v19 = vadd.f32 %v8157_v4, %v8137_v50 }
0x1033   : > { %v8325_v38 = vadd.f32 %v8309_v36, %v8261_v10  ;;  %v8224_v53 = vsub.f32 %v17870_v54, %v8208_v3  ;;  %v8272_v17 = vsub.f32 %v17871_v12, %v8208_v3  ;;  %v8336_v21 = vsub.f32 %v16147_v60, %v8208_v3 }
0x1034   : > { %8498 = vmatpush.msra.mxu2 %v8388_v46  ;;  %v8209_v26 = vadd.f32 %v8193_v34, %v8173_v19 }
0x1035   : > { %v8389_v24 = vadd.f32 %v8373_v45, %v8325_v38  ;;  %v8240_v49 = vmul.f32 %v8224_v53, %v8224_v53  ;;  %v8288_v62 = vmul.f32 %v8272_v17, %v8272_v17  ;;  %v8352_v14 = vmul.f32 %v8336_v21, %v8336_v21 }
0x1036   : > { %v8225_v59 = vsub.f32 %v17872_v52, %v8209_v26  ;;  %v8273_v13 = vsub.f32 %v17873_v7, %v8209_v26  ;;  %v8337_v48 = vsub.f32 %v16151_v16, %v8209_v26 }
0x1037   : > { %8527 = vmatpush.msra.mxu3 %v8389_v24  ;;  %v8256_v63 = vmul.f32 %v8240_v49, %v16748_v61  ;;  %v8304_v54 = vmul.f32 %v8288_v62, %v16750_v6  ;;  %v8368_v22 = vmul.f32 %v8352_v14, %v16752_v25 }
0x1038   : > { %v8241_v1 = vmul.f32 %v8225_v59, %v8225_v59  ;;  %v8289_v12 = vmul.f32 %v8273_v13, %v8273_v13  ;;  %v8353_v33 = vmul.f32 %v8337_v48, %v8337_v48 }
0x1039   : > { %v8320_v60 = vadd.f32 %v8304_v54, %v8256_v63  ;;  %v16950_v45 = vpop.permute.xlu0 %8741 }
0x103a   : > { %v8257_v15 = vmul.f32 %v8241_v1, %v16756_v40  ;;  %v8305_v28 = vmul.f32 %v8289_v12, %v16758_v35  ;;  %v8369_v55 = vmul.f32 %v8353_v33, %v16760_v2 }
0x103b   : > { %v8384_v58 = vadd.f32 %v8368_v22, %v8320_v60 }
0x103c   : > { %v8321_v18 = vadd.f32 %v8305_v28, %v8257_v15 }
0x103d   : > { %8499 = vmatpush.msra.mxu2 %v8384_v58 }
0x103e   : > { %v8385_v16 = vadd.f32 %v8369_v55, %v8321_v18  ;;  %9947 = vmatmul.msk.f32.vlgmr.msra.gmra.mxu2 %vm2656_vm15, %v16535_v47 }
0x103f   : > { %8624 = vmatpush.msrb.mxu2 %v16788_v30  ;;  %v16915_v30 = vpop.permute.xlu2 %8681 }
0x1040   : > { %8528 = vmatpush.msra.mxu3 %v8385_v16 }
0x1041   : > { %9951 = vmatmul.msk.f32.vlgmr.msra.gmra.mxu3 %vm2656_vm15, %v16535_v47  ;;  %8625 = vmatpush.msrb.mxu2 %v16796_v29 }
0x1042   : > { %8653 = vmatpush.msrb.mxu3 %v16794_v41  ;;  %v8443_v61 = vpop.f32.mrf.mxu0 }
0x1043   : > { %8626 = vmatpush.msrb.mxu2 %v16836_v31 }
0x1044   : > { %8654 = vmatpush.msrb.mxu3 %v16808_v43  ;;  %v16926_v43 = vpop.permute.xlu1 %8676 }
0x1045   : > { %8627 = vmatpush.msrb.mxu2 %v8208_v3  ;;  %v8472_v6 = vpop.f32.mrf.mxu1 }
0x1046   : > { %8655 = vmatpush.msrb.mxu3 %v16850_v39  ;;  %9948 = vmatmul.msk.f32.gmra.mxu2 %vm2656_vm15, %v16555_v0 }
0x1047   : > { %v16936_v37 = vpop.permute.xlu2 %8736 }
0x1048   : > { %8656 = vmatpush.msrb.mxu3 %v8209_v26 }
0x1049   : > { %9952 = vmatmul.msk.f32.gmra.mxu3 %vm2656_vm15, %v16555_v0  ;;  %v8402_v0 = vmul.f32 0.33333334, %v16389_v42 }
0x104a   : > { %v8446_v47 = vpop.f32.mrf.mxu0 }
0x104b   : > { %v16924_v29 = vperm.slane %v8402_v0, 0 }
0x104c   : > { %v16946_v19 = vpop.permute.xlu1 %8691 }
0x104d   : > { %v8475_v25 = vpop.f32.mrf.mxu1  ;;  %v8698_v39 = vmul.f32 %v16924_v29, %v16926_v43  ;;  %v8702_v3 = vmul.f32 %v16924_v29, %v16915_v30  ;;  %v8706_v63 = vmul.f32 %v16924_v29, %v16932_v57 }
0x104e   : > { %9949 = vmatmul.msk.f32.gmra.mxu2 %vm2656_vm15, %v16566_v44 }
0x1051   : > { %9953 = vmatmul.msk.f32.gmra.mxu3 %vm2656_vm15, %v16566_v44  ;;  %v8403_v44 = vmul.f32 0.33333334, %v16397_v9 }
0x1052   : > { %v8449_v40 = vpop.f32.mrf.mxu0 }
0x1053   : > { %v16928_v31 = vperm.slane %v8403_v44, 0  ;;  %v8710_v44 = vmul.f32 %v16924_v29, %v16946_v19 }
0x1054   : > { %v16963_v60 = vpop.permute.xlu1 %8746 }
0x1055   : > { %v16908_v35 = vpop.f32.mrf.mxu1  ;;  %v8699_v56 = vmul.f32 %v16928_v31, %v16926_v43  ;;  %v8703_v21 = vmul.f32 %v16928_v31, %v16915_v30  ;;  %v8707_v58 = vmul.f32 %v16928_v31, %v16932_v57 }
0x1056   : > { %9950 = vmatmul.msk.f32.gmra.mxu2 %vm2656_vm15, %v16587_v32 }
0x1059   : > { %9954 = vmatmul.msk.f32.gmra.mxu3 %vm2656_vm15, %v16587_v32 }
0x105a   : > { %v16912_v2 = vpop.f32.mrf.mxu0 }
0x105d   : > { %v16919_v41 = vpop.f32.mrf.mxu1 }
0x105e   : > { %9963 = vmatmul.msk.f32.vlgmr.msrb.gmra.mxu2 %vm2656_vm15, %v16612_v23 }
0x1061   : > { %9967 = vmatmul.msk.f32.vlgmr.msrb.gmra.mxu3 %vm2656_vm15, %v16612_v23 }
0x1062   : > { %v8571_v32 = vpop.f32.mrf.mxu0 }
0x1063   : > { %v8572_v42 = vadd.f32 %v8571_v32, %v8443_v61 }
0x1065   : > { %v8714_v9 = vadd.f32 %v8698_v39, %v8572_v42  ;;  %v8600_v51 = vpop.f32.mrf.mxu1 }
0x1066   : > { %9964 = vmatmul.msk.f32.gmra.mxu2 %vm2656_vm15, %v16632_v8  ;;  %v8601_v23 = vadd.f32 %v8600_v51, %v8472_v6  ;;  %v16979_v51 = vpop.permute.xlu2 %8751 }
0x1067   : > { %v8754_v52 = vadd.f32 %v16936_v37, %v8714_v9 }
0x1068   : > { %v8715_v50 = vadd.f32 %v8699_v56, %v8601_v23 }
0x1069   : > { %9968 = vmatmul.msk.f32.gmra.mxu3 %vm2656_vm15, %v16632_v8  ;;  %v8786_v7 = vmin.f32 %v8754_v52, 0.0  ;;  %vm8770_vm11 = vcmp.gt.f32.partialorder %v8754_v52, 0.0 }
0x106a   : > { %v8755_v4 = vadd.f32 %v16936_v37, %v8715_v50  ;;  %v8574_v10 = vpop.f32.mrf.mxu0 }
0x106b   : > { %v8802_v36 = vmul.f32 1.442695, %v8786_v7  ;;  %v8575_v46 = vadd.f32 %v8574_v10, %v8446_v47 }
0x106c   : > { %v8787_v34 = vmin.f32 %v8755_v4, 0.0  ;;  %vm8771_vm5 = vcmp.gt.f32.partialorder %v8755_v4, 0.0 }
0x106d   : > { %10918 = vpow2.f32 %v8802_v36  ;;  %v8718_v38 = vadd.f32 %v8702_v3, %v8575_v46  ;;  %v8603_v8 = vpop.f32.mrf.mxu1 }
0x106e   : > { %9965 = vmatmul.msk.f32.gmra.mxu2 %vm2656_vm15, %v16705_v5  ;;  %v8804_v53 = vmul.f32 1.442695, %v8787_v34  ;;  %v8604_v17 = vadd.f32 %v8603_v8, %v8475_v25 }
0x106f   : > { %v8758_v26 = vadd.f32 %v16950_v45, %v8718_v38 }
0x1070   : > { %10920 = vpow2.f32 %v8804_v53  ;;  %v8719_v24 = vadd.f32 %v8703_v21, %v8604_v17 }
0x1071   : > { %9969 = vmatmul.msk.f32.gmra.mxu3 %vm2656_vm15, %v16705_v5  ;;  %v8790_v49 = vmin.f32 %v8758_v26, 0.0 }
0x1072   : > { %v8759_v62 = vadd.f32 %v16950_v45, %v8719_v24  ;;  %v8577_v14 = vpop.f32.mrf.mxu0 }
0x1073   : > { %v10919_v59 = vpop.eup %10918  ;;  %v8810_v13 = vmul.f32 1.442695, %v8790_v49  ;;  %v8578_v48 = vadd.f32 %v8577_v14, %v8449_v40 }
0x1074   : > { %v9971_v54 = vadd.f32 -1.0, %v10919_v59  ;;  %v8791_v1 = vmin.f32 %v8759_v62, 0.0  ;;  %vm8775_vm3 = vcmp.gt.f32.partialorder %v8759_v62, 0.0 }
0x1075   : > { %10922 = vpow2.f32 %v8810_v13  ;;  %v8722_v5 = vadd.f32 %v8706_v63, %v8578_v48  ;;  %v8606_v12 = vpop.f32.mrf.mxu1 }
0x1076   : > { %9966 = vmatmul.msk.f32.gmra.mxu2 %vm2656_vm15, %v16736_v20  ;;  %v10921_v33 = vpop.eup %10920  ;;  %v8850_v22 = vsel %vm8770_vm11, %v8754_v52, %v9971_v54  ;;  %v8812_v15 = vmul.f32 1.442695, %v8791_v1  ;;  %v8607_v28 = vadd.f32 %v8606_v12, %v16908_v35  ;;  %v8404_v12 = vmul.f32 0.33333334, %v16746_v11 }
0x1077   : > { %8866 = vst [vmem:[%s16968_s1] sm:$0xff] %v8850_v22  ;;  %v9972_v18 = vadd.f32 -1.0, %v10921_v33  ;;  %v8762_v55 = vadd.f32 %v16963_v60, %v8722_v5  ;;  %v8405_v22 = vmul.f32 0.33333334, %v16754_v27 }
0x1078   : > { %10924 = vpow2.f32 %v8812_v15  ;;  %v8723_v16 = vadd.f32 %v8707_v58, %v8607_v28  ;;  %v8696_v15 = vperm.slane %v8404_v12, 0 }
0x1079   : > { %9970 = vmatmul.msk.f32.gmra.mxu3 %vm2656_vm15, %v16736_v20  ;;  %v8851_v61 = vsel %vm8771_vm5, %v8755_v4, %v9972_v18  ;;  %v8794_v6 = vmin.f32 %v8762_v55, 0.0  ;;  %vm8774_vm15 = vcmp.gt.f32.partialorder %v8758_v26, 0.0  ;;  %vm8778_vm12 = vcmp.gt.f32.partialorder %v8762_v55, 0.0 }
0x107a   : > { %8867 = vst [vmem:[%s16968_s1 + $0x8] sm:$0xff] %v8851_v61  ;;  %v8763_v47 = vadd.f32 %v16963_v60, %v8723_v16  ;;  %v8580_v25 = vpop.f32.mrf.mxu0  ;;  %v16996_v58 = vperm.slane %v8405_v22, 0 }
0x107b   : > { %v10923_v40 = vpop.eup %10922  ;;  %v8818_v35 = vmul.f32 1.442695, %v8794_v6  ;;  %v8581_v0 = vadd.f32 %v8580_v25, %v16912_v2  ;;  %v8711_v2 = vmul.f32 %v16928_v31, %v16946_v19 }
0x107c   : > { %v9975_v32 = vadd.f32 -1.0, %v10923_v40  ;;  %v8795_v42 = vmin.f32 %v8763_v47, 0.0  ;;  %vm8779_vm13 = vcmp.gt.f32.partialorder %v8763_v47, 0.0 }
0x107d   : > { %10926 = vpow2.f32 %v8818_v35  ;;  %v8726_v20 = vadd.f32 %v8710_v44, %v8581_v0  ;;  %v8609_v39 = vpop.f32.mrf.mxu1 }
0x107e   : > { %v10925_v9 = vpop.eup %10924  ;;  %v8854_v23 = vsel %vm8774_vm15, %v8758_v26, %v9975_v32  ;;  %v8820_v56 = vmul.f32 1.442695, %v8795_v42  ;;  %v8610_v52 = vadd.f32 %v8609_v39, %v16919_v41  ;;  %v8704_v32 = vmul.f32 %v8696_v15, %v16915_v30 }
0x107f   : > { %8870 = vst [vmem:[%s16968_s1 + $0x20] sm:$0xff] %v8854_v23  ;;  %v9976_v50 = vadd.f32 -1.0, %v10925_v9  ;;  %v8766_v29 = vadd.f32 %v16979_v51, %v8726_v20 }
0x1080   : > { %10928 = vpow2.f32 %v8820_v56  ;;  %v8727_v7 = vadd.f32 %v8711_v2, %v8610_v52 }
0x1081   : > { %v8855_v4 = vsel %vm8775_vm3, %v8759_v62, %v9976_v50  ;;  %v8798_v10 = vmin.f32 %v8766_v29, 0.0  ;;  %vm8782_vm2 = vcmp.gt.f32.partialorder %v8766_v29, 0.0 }
0x1082   : > { %8871 = vst [vmem:[%s16968_s1 + $0x28] sm:$0xff] %v8855_v4  ;;  %v8767_v36 = vadd.f32 %v16979_v51, %v8727_v7 }
0x1083   : > { %v10927_v46 = vpop.eup %10926  ;;  %v8826_v3 = vmul.f32 1.442695, %v8798_v10  ;;  %v8708_v10 = vmul.f32 %v8696_v15, %v16932_v57 }
0x1084   : > { %v9979_v41 = vadd.f32 -1.0, %v10927_v46  ;;  %v8799_v34 = vmin.f32 %v8767_v36, 0.0  ;;  %vm8783_vm14 = vcmp.gt.f32.partialorder %v8767_v36, 0.0 }
0x1085   : > { %10930 = vpow2.f32 %v8826_v3 }
0x1086   : > { %v10929_v31 = vpop.eup %10928  ;;  %v8858_v38 = vsel %vm8778_vm12, %v8762_v55, %v9979_v41  ;;  %v8828_v8 = vmul.f32 1.442695, %v8799_v34  ;;  %v8700_v55 = vmul.f32 %v8696_v15, %v16926_v43 }
0x1087   : > { %8874 = vst [vmem:[%s16968_s1 + $0x40] sm:$0xff] %v8858_v38  ;;  %v9980_v53 = vadd.f32 -1.0, %v10929_v31 }
0x1088   : > { %10932 = vpow2.f32 %v8828_v8 }
0x1089   : > { %v8859_v17 = vsel %vm8779_vm13, %v8763_v47, %v9980_v53  ;;  %v8701_v47 = vmul.f32 %v16996_v58, %v16926_v43  ;;  %v8705_v43 = vmul.f32 %v16996_v58, %v16915_v30 }
0x108a   : > { %8875 = vst [vmem:[%s16968_s1 + $0x48] sm:$0xff] %v8859_v17 }
0x108b   : > { %v10931_v21 = vpop.eup %10930 }
0x108c   : > { %v9983_v26 = vadd.f32 -1.0, %v10931_v21 }
0x108e   : > { %v10933_v24 = vpop.eup %10932  ;;  %v8862_v49 = vsel %vm8782_vm2, %v8766_v29, %v9983_v26 }
0x108f   : > { %8878 = vst [vmem:[%s16968_s1 + $0x60] sm:$0xff] %v8862_v49  ;;  %v9984_v62 = vadd.f32 -1.0, %v10933_v24 }
0x1091   : > { %v8863_v14 = vsel %vm8783_vm14, %v8767_v36, %v9984_v62 }
0x1092   : > { %8879 = vst [vmem:[%s16968_s1 + $0x68] sm:$0xff] %v8863_v14 }
0x10c1   : > { %v8501_v59 = vpop.f32.mrf.mxu2 }
0x10c4   : > { %v8530_v13 = vpop.f32.mrf.mxu3 }
0x10c9   : > { %v8504_v48 = vpop.f32.mrf.mxu2 }
0x10cc   : > { %v8533_v63 = vpop.f32.mrf.mxu3 }
0x10d1   : > { %v8507_v54 = vpop.f32.mrf.mxu2 }
0x10d4   : > { %v8536_v1 = vpop.f32.mrf.mxu3 }
0x10d9   : > { %v8510_v5 = vpop.f32.mrf.mxu2 }
0x10dc   : > { %v16993_v33 = vpop.f32.mrf.mxu3 }
0x10e1   : > { %v8629_v28 = vpop.f32.mrf.mxu2 }
0x10e2   : > { %v8630_v18 = vadd.f32 %v8629_v28, %v8501_v59 }
0x10e4   : > { %v8716_v16 = vadd.f32 %v8700_v55, %v8630_v18  ;;  %v8658_v61 = vpop.f32.mrf.mxu3 }
0x10e5   : > { %v8659_v6 = vadd.f32 %v8658_v61, %v8530_v13  ;;  %v8712_v13 = vmul.f32 %v8696_v15, %v16946_v19 }
0x10e6   : > { %v8756_v25 = vadd.f32 %v16936_v37, %v8716_v16 }
0x10e7   : > { %v8717_v11 = vadd.f32 %v8701_v47, %v8659_v6 }
0x10e8   : > { %v8788_v40 = vmin.f32 %v8756_v25, 0.0  ;;  %vm8772_vm4 = vcmp.gt.f32.partialorder %v8756_v25, 0.0 }
0x10e9   : > { %v8757_v35 = vadd.f32 %v16936_v37, %v8717_v11  ;;  %v8632_v27 = vpop.f32.mrf.mxu2 }
0x10ea   : > { %v8806_v0 = vmul.f32 1.442695, %v8788_v40  ;;  %v8633_v44 = vadd.f32 %v8632_v27, %v8504_v48 }
0x10eb   : > { %v8789_v42 = vmin.f32 %v8757_v35, 0.0  ;;  %vm8773_vm0 = vcmp.gt.f32.partialorder %v8757_v35, 0.0 }
0x10ec   : > { %10934 = vpow2.f32 %v8806_v0  ;;  %v8720_v20 = vadd.f32 %v8704_v32, %v8633_v44  ;;  %v8661_v39 = vpop.f32.mrf.mxu3 }
0x10ed   : > { %v8808_v9 = vmul.f32 1.442695, %v8789_v42  ;;  %v8662_v23 = vadd.f32 %v8661_v39, %v8533_v63 }
0x10ee   : > { %v8760_v56 = vadd.f32 %v16950_v45, %v8720_v20 }
0x10ef   : > { %10936 = vpow2.f32 %v8808_v9  ;;  %v8721_v52 = vadd.f32 %v8705_v43, %v8662_v23 }
0x10f0   : > { %v8792_v2 = vmin.f32 %v8760_v56, 0.0  ;;  %vm8776_vm1 = vcmp.gt.f32.partialorder %v8760_v56, 0.0 }
0x10f1   : > { %v8761_v37 = vadd.f32 %v16950_v45, %v8721_v52  ;;  %v8635_v50 = vpop.f32.mrf.mxu2  ;;  %v8709_v45 = vmul.f32 %v16996_v58, %v16932_v57 }
0x10f2   : > { %v10935_v29 = vpop.eup %10934  ;;  %v8814_v7 = vmul.f32 1.442695, %v8792_v2  ;;  %v8636_v4 = vadd.f32 %v8635_v50, %v8507_v54 }
0x10f3   : > { %v9973_v36 = vadd.f32 -1.0, %v10935_v29  ;;  %v8793_v46 = vmin.f32 %v8761_v37, 0.0  ;;  %vm8777_vm6 = vcmp.gt.f32.partialorder %v8761_v37, 0.0 }
0x10f4   : > { %10938 = vpow2.f32 %v8814_v7  ;;  %v8724_v30 = vadd.f32 %v8708_v10, %v8636_v4  ;;  %v8664_v3 = vpop.f32.mrf.mxu3 }
0x10f5   : > { %v10937_v41 = vpop.eup %10936  ;;  %v8852_v34 = vsel %vm8772_vm4, %v8756_v25, %v9973_v36  ;;  %v8816_v31 = vmul.f32 1.442695, %v8793_v46  ;;  %v8665_v38 = vadd.f32 %v8664_v3, %v8536_v1 }
0x10f6   : > { %8868 = vst [vmem:[%s16968_s1 + $0x10] sm:$0xff] %v8852_v34  ;;  %v9974_v8 = vadd.f32 -1.0, %v10937_v41  ;;  %v8764_v53 = vadd.f32 %v16963_v60, %v8724_v30 }
0x10f7   : > { %10940 = vpow2.f32 %v8816_v31  ;;  %v8725_v17 = vadd.f32 %v8709_v45, %v8665_v38 }
0x10f8   : > { %v8853_v21 = vsel %vm8773_vm0, %v8757_v35, %v9974_v8  ;;  %v8796_v26 = vmin.f32 %v8764_v53, 0.0  ;;  %vm8780_vm7 = vcmp.gt.f32.partialorder %v8764_v53, 0.0 }
0x10f9   : > { %8869 = vst [vmem:[%s16968_s1 + $0x18] sm:$0xff] %v8853_v21  ;;  %v8765_v24 = vadd.f32 %v16963_v60, %v8725_v17  ;;  %v8638_v49 = vpop.f32.mrf.mxu2  ;;  %v8713_v60 = vmul.f32 %v16996_v58, %v16946_v19 }
0x10fa   : > { %v10939_v62 = vpop.eup %10938  ;;  %v8822_v14 = vmul.f32 1.442695, %v8796_v26  ;;  %v8639_v59 = vadd.f32 %v8638_v49, %v8510_v5 }
0x10fb   : > { %v9977_v57 = vadd.f32 -1.0, %v10939_v62  ;;  %v8797_v48 = vmin.f32 %v8765_v24, 0.0  ;;  %vm8781_vm8 = vcmp.gt.f32.partialorder %v8765_v24, 0.0 }
0x10fc   : > { %10942 = vpow2.f32 %v8822_v14  ;;  %v8728_v63 = vadd.f32 %v8712_v13, %v8639_v59  ;;  %v8667_v54 = vpop.f32.mrf.mxu3 }
0x10fd   : > { %v10941_v1 = vpop.eup %10940  ;;  %v8856_v12 = vsel %vm8776_vm1, %v8760_v56, %v9977_v57  ;;  %v8824_v22 = vmul.f32 1.442695, %v8797_v48  ;;  %v8668_v28 = vadd.f32 %v8667_v54, %v16993_v33 }
0x10fe   : > { %8872 = vst [vmem:[%s16968_s1 + $0x30] sm:$0xff] %v8856_v12  ;;  %v9978_v18 = vadd.f32 -1.0, %v10941_v1  ;;  %v8768_v5 = vadd.f32 %v16979_v51, %v8728_v63 }
0x10ff   : > { %10944 = vpow2.f32 %v8824_v22  ;;  %v8729_v15 = vadd.f32 %v8713_v60, %v8668_v28 }
0x1100   : > { %v8857_v55 = vsel %vm8777_vm6, %v8761_v37, %v9978_v18  ;;  %v8800_v16 = vmin.f32 %v8768_v5, 0.0  ;;  %vm8784_vm9 = vcmp.gt.f32.partialorder %v8768_v5, 0.0 }
0x1101   : > { %8873 = vst [vmem:[%s16968_s1 + $0x38] sm:$0xff] %v8857_v55  ;;  %v8769_v61 = vadd.f32 %v16979_v51, %v8729_v15 }
0x1102   : > { %v10943_v6 = vpop.eup %10942  ;;  %v8830_v33 = vmul.f32 1.442695, %v8800_v16 }
0x1103   : > { %v9981_v47 = vadd.f32 -1.0, %v10943_v6  ;;  %v8801_v25 = vmin.f32 %v8769_v61, 0.0  ;;  %vm8785_vm10 = vcmp.gt.f32.partialorder %v8769_v61, 0.0 }
0x1104   : > { %10946 = vpow2.f32 %v8830_v33 }
0x1105   : > { %v10945_v19 = vpop.eup %10944  ;;  %v8860_v58 = vsel %vm8780_vm7, %v8764_v53, %v9981_v47  ;;  %v8832_v11 = vmul.f32 1.442695, %v8801_v25 }
0x1106   : > { %8876 = vst [vmem:[%s16968_s1 + $0x50] sm:$0xff] %v8860_v58  ;;  %v9982_v40 = vadd.f32 -1.0, %v10945_v19 }
0x1107   : > { %10948 = vpow2.f32 %v8832_v11 }
0x1108   : > { %v8861_v35 = vsel %vm8781_vm8, %v8765_v24, %v9982_v40 }
0x1109   : > { %8877 = vst [vmem:[%s16968_s1 + $0x58] sm:$0xff] %v8861_v35 }
0x110a   : > { %v10947_v51 = vpop.eup %10946 }
0x110b   : > { %v9985_v27 = vadd.f32 -1.0, %v10947_v51 }
0x110d   : > { %v10949_v0 = vpop.eup %10948  ;;  %v8864_v44 = vsel %vm8784_vm9, %v8768_v5, %v9985_v27 }
0x110e   : > { %8880 = vst [vmem:[%s16968_s1 + $0x70] sm:$0xff] %v8864_v44  ;;  %v9986_v32 = vadd.f32 -1.0, %v10949_v0 }
0x1110   : > { %v8865_v42 = vsel %vm8785_vm10, %v8769_v61, %v9986_v32 }
0x1111   : > { %8881 = vst [vmem:[%s16968_s1 + $0x78] sm:$0xff] %v8865_v42 }
0x1112   : > { %11062 = shalt.err (!%p11059_p0)
}
0x1113   : > { %s11122_s6 = smov 512   ;;  %s11123_s1 = smov 32  }
0x1114   : > { %10000 = dma.vmem_to_hbm [thread:$0]  (%p11318_p9), %s8898_s28, 2048, %s8900_s3, %s8883_s5, %s11122_s6, %s11122_s6, %s11123_s1  }
0x1115 PF: > { %s17876_s14 = sld [smem:[#allocation9_spill]]  ;;  %p10007_p1 = pnand %p9038_p12, %p11325_p11 }
0x1117   : > { %p10008_p2 = pneg %p10007_p1 }
0x111b   : > { %s8914_s16 = sand.u32 1, %s17876_s14  }
0x111c   : > { %s8915_s12 = scalar_lea.sflag [#allocation5], %s8914_s16 }
0x111d   : > { %11092 = dma.done.wait (%p10008_p2), %s8915_s12, 2048  }
0x111e   : > { %11094 = vsyncadd (%p10008_p2), %s8915_s12, 4294965248  ;;  %s45_s0 = sadd.s32 1, %s11117_s0   ;;  %s17878_s13 = sld [smem:[#allocation13_spill]] }
0x111f   : > { %p42_p3 = scmp.ge.s32.totalorder %s45_s0, 4   ;;  %s17879_s5 = sld [smem:[#allocation10_spill]] }
0x1120   : > { %s17880_s28 = sld [smem:[#allocation11_spill]]  ;;  %s17881_s8 = smov %s11101_s30 }
0x1121   : > { %s17882_s30 = smov %s11105_s9  ;;  %44 = sbr.rel (!%p42_p3) target bundleno = 28 (0x1c), region = 193 }
0x1124   : > { %s17883_s9 = smov %s17878_s13 }
0x1126   :  { %8921 = vsyncpa [#allocation4], 1 }
0x1127   :  { %8923 = vsyncpa [#allocation4 + $0x1], 1 }
0x1128   :  { %8924 = vsyncpa [#allocation5], 1 }
0x1129   :  { %8926 = vsyncpa [#allocation5 + $0x1], 1 }

</bundles_post_ra>
